<compile_context>
chip_gen: v5e
topology: v5e:2x2
jax: 0.10.0
libtpu: 0.0.40
codegen_flags: <defaults>
</compile_context>

<pallas_src>
import jax
import jax.numpy as jnp
from jax.experimental import pallas as pl
from jax.experimental.pallas import tpu as pltpu


def _make_br_kernel(H, W, C, TR):
    """Fused  out = x + conv2(relu(conv1(x)))  for one NHWC image."""
    assert H % TR == 0
    n_rg = H // TR
    Hp, Wp = H + 2, W + 2

    def kern(x_ref, w1_ref, b1_ref, w2_ref, b2_ref, o_ref, xbf_ref, ypad_ref):
        # x_ref  : (1, H, W, C) f32   input image (residual source, exact)
        # w*_ref : (9, C, C)    bf16  3x3 taps flattened as ky*3 + kx
        # b*_ref : (1, C)       f32
        # o_ref  : (1, H, W, C) f32
        # xbf_ref, ypad_ref : (H+2, W+2, C) bf16 VMEM scratch (zero-padded)

        # Zero-padded bf16 copy of the input (conv1 MXU operand) and a
        # zero-padded buffer for the intermediate activation (conv2 operand).
        xbf_ref[...] = jnp.zeros((Hp, Wp, C), jnp.bfloat16)
        ypad_ref[...] = jnp.zeros((Hp, Wp, C), jnp.bfloat16)
        xbf_ref[1:1 + H, 1:1 + W, :] = x_ref[0].astype(jnp.bfloat16)

        # ---- phase 1: y = relu(conv1(x) + b1), write interior of ypad ----
        for rg in range(n_rg):
            r0 = rg * TR
            acc = jnp.zeros((TR * W, C), jnp.float32)
            for t in range(9):
                ky, kx = t // 3, t % 3
                patch = xbf_ref[r0 + ky:r0 + ky + TR, kx:kx + W, :]
                acc = acc + jnp.dot(patch.reshape(TR * W, C), w1_ref[t],
                                    preferred_element_type=jnp.float32)
            y = jnp.maximum(acc + b1_ref[...], 0.0)
            ypad_ref[1 + r0:1 + r0 + TR, 1:1 + W, :] = (
                y.reshape(TR, W, C).astype(jnp.bfloat16))

        # ---- phase 2: out = x + conv2(y) + b2 ----
        for rg in range(n_rg):
            r0 = rg * TR
            acc = jnp.zeros((TR * W, C), jnp.float32)
            for t in range(9):
                ky, kx = t // 3, t % 3
                patch = ypad_ref[r0 + ky:r0 + ky + TR, kx:kx + W, :]
                acc = acc + jnp.dot(patch.reshape(TR * W, C), w2_ref[t],
                                    preferred_element_type=jnp.float32)
            res = x_ref[0, r0:r0 + TR, :, :].reshape(TR * W, C)   # f32, aligned
            out = acc + b2_ref[...] + res
            o_ref[0, r0:r0 + TR, :, :] = out.reshape(TR, W, C)

    return kern


def br_forward(x_nchw, params):
    """BR block forward.  x_nchw: (N, C, H, W) f32 -> (N, C, H, W) f32."""
    N, C, H, W = x_nchw.shape
    x = jnp.transpose(x_nchw, (0, 2, 3, 1)).astype(jnp.float32)        # NHWC

    # largest row-group size <= 8 dividing H (keeps the live accumulator small)
    TR = next(t for t in (8, 4, 2, 1) if H % t == 0)

    w1 = params["w1"].astype(jnp.bfloat16)                  # (9, C, C)
    w2 = params["w2"].astype(jnp.bfloat16)                  # (9, C, C)
    b1 = params["b1"].reshape(1, C).astype(jnp.float32)
    b2 = params["b2"].reshape(1, C).astype(jnp.float32)

    out = pl.pallas_call(
        _make_br_kernel(H, W, C, TR),
        out_shape=jax.ShapeDtypeStruct((N, H, W, C), jnp.float32),
        grid_spec=pltpu.PrefetchScalarGridSpec(
            num_scalar_prefetch=0,
            grid=(N,),
            in_specs=[
                pl.BlockSpec((1, H, W, C), lambda n: (n, 0, 0, 0)),
                pl.BlockSpec((9, C, C), lambda n: (0, 0, 0)),
                pl.BlockSpec((1, C), lambda n: (0, 0)),
                pl.BlockSpec((9, C, C), lambda n: (0, 0, 0)),
                pl.BlockSpec((1, C), lambda n: (0, 0)),
            ],
            out_specs=pl.BlockSpec((1, H, W, C), lambda n: (n, 0, 0, 0)),
            scratch_shapes=[
                pltpu.VMEM((H + 2, W + 2, C), jnp.bfloat16),   # padded bf16 x
                pltpu.VMEM((H + 2, W + 2, C), jnp.bfloat16),   # padded relu(conv1(x))
            ],
        ),
        compiler_params=pltpu.CompilerParams(
            dimension_semantics=("parallel",)),
    )(x, w1, b1, w2, b2)

    return jnp.transpose(out, (0, 3, 1, 2))                             # NCHW


def init_params(key, C):
    # 3x3 conv weights stored as (9, Cin, Cout), tap index t = ky*3 + kx.
    # (PyTorch layout (Cout, Cin, 3, 3) maps via w[t, ci, co] = w_pt[co, ci, t//3, t%3].)
    k1, k2, k3, k4 = jax.random.split(key, 4)
    s = 0.05
    return {
        "w1": s * jax.random.normal(k1, (9, C, C), dtype=jnp.float32),
        "b1": s * jax.random.normal(k2, (C,), dtype=jnp.float32),
        "w2": s * jax.random.normal(k3, (9, C, C), dtype=jnp.float32),
        "b2": s * jax.random.normal(k4, (C,), dtype=jnp.float32),
    }


def _reference(x_nchw, params):
    """Pure-JAX f32 reference of the BR block (sanity check)."""
    x = jnp.transpose(x_nchw, (0, 2, 3, 1))                              # NHWC

    def conv(v, w, b):
        w_hwio = w.reshape(3, 3, w.shape[1], w.shape[2])
        y = jax.lax.conv_general_dilated(
            v, w_hwio, window_strides=(1, 1), padding="SAME",
            dimension_numbers=("NHWC", "HWIO", "NHWC"))
        return y + b[None, None, None, :]

    y = jnp.maximum(conv(x, params["w1"], params["b1"]), 0.0)
    out = x + conv(y, params["w2"], params["b2"])
    return jnp.transpose(out, (0, 3, 1, 2))


if __name__ == "__main__":
    key = jax.random.PRNGKey(0)
    k_x, k_p = jax.random.split(key)

    N, C, H, W = 2, 128, 16, 16          # feature_num = 128 (lane-dense channels)
    x = jax.random.normal(k_x, (N, C, H, W), dtype=jnp.float32)
    params = init_params(k_p, C)

    out = jax.jit(br_forward)(x, params)
    out = jax.block_until_ready(out)

    assert out.shape == (N, C, H, W), out.shape
    assert bool(jnp.all(jnp.isfinite(out)))

    # Loose tolerance: matmuls use bf16 operands with f32 accumulation.
    ref = _reference(x, params)
    max_err = float(jnp.max(jnp.abs(out - ref)))
    max_ref = float(jnp.max(jnp.abs(ref)))
    assert max_err / (max_ref + 1e-6) < 5e-2, (max_err, max_ref)

    print("KERNEL_OK")
</pallas_src>

<mosaic_0001>
module attributes {stable_mosaic.version = 11 : i64} {
  func.func @kern(%arg0: i32, %arg1: memref<1x16x16x128xf32, #tpu.memory_space<vmem>>, %arg2: memref<9x128x128xbf16, #tpu.memory_space<vmem>>, %arg3: memref<1x128xf32, #tpu.memory_space<vmem>>, %arg4: memref<9x128x128xbf16, #tpu.memory_space<vmem>>, %arg5: memref<1x128xf32, #tpu.memory_space<vmem>>, %arg6: memref<1x16x16x128xf32, #tpu.memory_space<vmem>>, %arg7: memref<18x18x128xbf16, #tpu.memory_space<vmem>>, %arg8: memref<18x18x128xbf16, #tpu.memory_space<vmem>>) attributes {dimension_semantics = [#tpu.dimension_semantics<parallel>], iteration_bounds = array<i64: 2>, scalar_prefetch = 0 : i64, scratch_operands = 2 : i64, tpu.core_type = #tpu.core_type<tc>, window_params = [{transform_indices = @transform_0, window_bounds = array<i64: 1, 16, 16, 128>}, {pipeline_mode = #tpu.pipeline_mode<synchronous>, transform_indices = @transform_1, window_bounds = array<i64: 9, 128, 128>}, {pipeline_mode = #tpu.pipeline_mode<synchronous>, transform_indices = @transform_2, window_bounds = array<i64: 1, 128>}, {pipeline_mode = #tpu.pipeline_mode<synchronous>, transform_indices = @transform_3, window_bounds = array<i64: 9, 128, 128>}, {pipeline_mode = #tpu.pipeline_mode<synchronous>, transform_indices = @transform_4, window_bounds = array<i64: 1, 128>}, {transform_indices = @transform_5, window_bounds = array<i64: 1, 16, 16, 128>}]} {
    %cst = arith.constant 0.000000e+00 : bf16
    %0 = vector.broadcast %cst : bf16 to vector<18x18x128xbf16>
    %c0 = arith.constant 0 : index
    %c0_0 = arith.constant 0 : index
    %c0_1 = arith.constant 0 : index
    %1 = vector.load %arg7[%c0, %c0_0, %c0_1] : memref<18x18x128xbf16, #tpu.memory_space<vmem>>, vector<18x18x128xbf16>
    tpu.vector_store %arg7[%c0, %c0_0, %c0_1], %0 {strides = array<i32>} : memref<18x18x128xbf16, #tpu.memory_space<vmem>>, vector<18x18x128xbf16>,
    %cst_2 = arith.constant 0.000000e+00 : bf16
    %2 = vector.broadcast %cst_2 : bf16 to vector<18x18x128xbf16>
    %c0_3 = arith.constant 0 : index
    %c0_4 = arith.constant 0 : index
    %c0_5 = arith.constant 0 : index
    %3 = vector.load %arg8[%c0_3, %c0_4, %c0_5] : memref<18x18x128xbf16, #tpu.memory_space<vmem>>, vector<18x18x128xbf16>
    tpu.vector_store %arg8[%c0_3, %c0_4, %c0_5], %2 {strides = array<i32>} : memref<18x18x128xbf16, #tpu.memory_space<vmem>>, vector<18x18x128xbf16>,
    %c0_6 = arith.constant 0 : index
    %c0_7 = arith.constant 0 : index
    %c0_8 = arith.constant 0 : index
    %c0_9 = arith.constant 0 : index
    %4 = vector.load %arg1[%c0_6, %c0_7, %c0_8, %c0_9] : memref<1x16x16x128xf32, #tpu.memory_space<vmem>>, vector<1x16x16x128xf32>
    %5 = vector.shape_cast %4 : vector<1x16x16x128xf32> to vector<16x16x128xf32>
    %6 = arith.truncf %5 : vector<16x16x128xf32> to vector<16x16x128xbf16>
    %c1 = arith.constant 1 : index
    %c1_10 = arith.constant 1 : index
    %c0_11 = arith.constant 0 : index
    %7 = vector.load %arg7[%c1, %c1_10, %c0_11] : memref<18x18x128xbf16, #tpu.memory_space<vmem>>, vector<16x16x128xbf16>
    tpu.vector_store %arg7[%c1, %c1_10, %c0_11], %6 {strides = array<i32>} : memref<18x18x128xbf16, #tpu.memory_space<vmem>>, vector<16x16x128xbf16>,
    %cst_12 = arith.constant 0.000000e+00 : f32
    %8 = vector.broadcast %cst_12 : f32 to vector<128x128xf32>
    %c0_13 = arith.constant 0 : index
    %c0_14 = arith.constant 0 : index
    %c0_15 = arith.constant 0 : index
    %9 = vector.load %arg7[%c0_13, %c0_14, %c0_15] : memref<18x18x128xbf16, #tpu.memory_space<vmem>>, vector<8x16x128xbf16>
    %10 = vector.shape_cast %9 : vector<8x16x128xbf16> to vector<128x128xbf16>
    %c0_16 = arith.constant 0 : index
    %c0_17 = arith.constant 0 : index
    %c0_18 = arith.constant 0 : index
    %11 = vector.load %arg2[%c0_16, %c0_17, %c0_18] : memref<9x128x128xbf16, #tpu.memory_space<vmem>>, vector<1x128x128xbf16>
    %12 = vector.shape_cast %11 : vector<1x128x128xbf16> to vector<128x128xbf16>
    %cst_19 = arith.constant dense<0.000000e+00> : vector<128x128xf32>
    %13 = tpu.matmul %10, %12, %cst_19 {dimension_numbers = #tpu.dot_dimension_numbers<[1], [0], [0], [1], [0, 0, 1, 1], [], []>} : vector<128x128xbf16>, vector<128x128xbf16>, vector<128x128xf32> -> vector<128x128xf32>
    %14 = arith.addf %8, %13 : vector<128x128xf32>
    %c0_20 = arith.constant 0 : index
    %c1_21 = arith.constant 1 : index
    %c0_22 = arith.constant 0 : index
    %15 = vector.load %arg7[%c0_20, %c1_21, %c0_22] : memref<18x18x128xbf16, #tpu.memory_space<vmem>>, vector<8x16x128xbf16>
    %16 = vector.shape_cast %15 : vector<8x16x128xbf16> to vector<128x128xbf16>
    %c1_23 = arith.constant 1 : index
    %c0_24 = arith.constant 0 : index
    %c0_25 = arith.constant 0 : index
    %17 = vector.load %arg2[%c1_23, %c0_24, %c0_25] : memref<9x128x128xbf16, #tpu.memory_space<vmem>>, vector<1x128x128xbf16>
    %18 = vector.shape_cast %17 : vector<1x128x128xbf16> to vector<128x128xbf16>
    %cst_26 = arith.constant dense<0.000000e+00> : vector<128x128xf32>
    %19 = tpu.matmul %16, %18, %cst_26 {dimension_numbers = #tpu.dot_dimension_numbers<[1], [0], [0], [1], [0, 0, 1, 1], [], []>} : vector<128x128xbf16>, vector<128x128xbf16>, vector<128x128xf32> -> vector<128x128xf32>
    %20 = arith.addf %14, %19 : vector<128x128xf32>
    %c0_27 = arith.constant 0 : index
    %c2 = arith.constant 2 : index
    %c0_28 = arith.constant 0 : index
    %21 = vector.load %arg7[%c0_27, %c2, %c0_28] : memref<18x18x128xbf16, #tpu.memory_space<vmem>>, vector<8x16x128xbf16>
    %22 = vector.shape_cast %21 : vector<8x16x128xbf16> to vector<128x128xbf16>
    %c2_29 = arith.constant 2 : index
    %c0_30 = arith.constant 0 : index
    %c0_31 = arith.constant 0 : index
    %23 = vector.load %arg2[%c2_29, %c0_30, %c0_31] : memref<9x128x128xbf16, #tpu.memory_space<vmem>>, vector<1x128x128xbf16>
    %24 = vector.shape_cast %23 : vector<1x128x128xbf16> to vector<128x128xbf16>
    %cst_32 = arith.constant dense<0.000000e+00> : vector<128x128xf32>
    %25 = tpu.matmul %22, %24, %cst_32 {dimension_numbers = #tpu.dot_dimension_numbers<[1], [0], [0], [1], [0, 0, 1, 1], [], []>} : vector<128x128xbf16>, vector<128x128xbf16>, vector<128x128xf32> -> vector<128x128xf32>
    %26 = arith.addf %20, %25 : vector<128x128xf32>
    %c1_33 = arith.constant 1 : index
    %c0_34 = arith.constant 0 : index
    %c0_35 = arith.constant 0 : index
    %27 = vector.load %arg7[%c1_33, %c0_34, %c0_35] : memref<18x18x128xbf16, #tpu.memory_space<vmem>>, vector<8x16x128xbf16>
    %28 = vector.shape_cast %27 : vector<8x16x128xbf16> to vector<128x128xbf16>
    %c3 = arith.constant 3 : index
    %c0_36 = arith.constant 0 : index
    %c0_37 = arith.constant 0 : index
    %29 = vector.load %arg2[%c3, %c0_36, %c0_37] : memref<9x128x128xbf16, #tpu.memory_space<vmem>>, vector<1x128x128xbf16>
    %30 = vector.shape_cast %29 : vector<1x128x128xbf16> to vector<128x128xbf16>
    %cst_38 = arith.constant dense<0.000000e+00> : vector<128x128xf32>
    %31 = tpu.matmul %28, %30, %cst_38 {dimension_numbers = #tpu.dot_dimension_numbers<[1], [0], [0], [1], [0, 0, 1, 1], [], []>} : vector<128x128xbf16>, vector<128x128xbf16>, vector<128x128xf32> -> vector<128x128xf32>
    %32 = arith.addf %26, %31 : vector<128x128xf32>
    %c1_39 = arith.constant 1 : index
    %c1_40 = arith.constant 1 : index
    %c0_41 = arith.constant 0 : index
    %33 = vector.load %arg7[%c1_39, %c1_40, %c0_41] : memref<18x18x128xbf16, #tpu.memory_space<vmem>>, vector<8x16x128xbf16>
    %34 = vector.shape_cast %33 : vector<8x16x128xbf16> to vector<128x128xbf16>
    %c4 = arith.constant 4 : index
    %c0_42 = arith.constant 0 : index
    %c0_43 = arith.constant 0 : index
    %35 = vector.load %arg2[%c4, %c0_42, %c0_43] : memref<9x128x128xbf16, #tpu.memory_space<vmem>>, vector<1x128x128xbf16>
    %36 = vector.shape_cast %35 : vector<1x128x128xbf16> to vector<128x128xbf16>
    %cst_44 = arith.constant dense<0.000000e+00> : vector<128x128xf32>
    %37 = tpu.matmul %34, %36, %cst_44 {dimension_numbers = #tpu.dot_dimension_numbers<[1], [0], [0], [1], [0, 0, 1, 1], [], []>} : vector<128x128xbf16>, vector<128x128xbf16>, vector<128x128xf32> -> vector<128x128xf32>
    %38 = arith.addf %32, %37 : vector<128x128xf32>
    %c1_45 = arith.constant 1 : index
    %c2_46 = arith.constant 2 : index
    %c0_47 = arith.constant 0 : index
    %39 = vector.load %arg7[%c1_45, %c2_46, %c0_47] : memref<18x18x128xbf16, #tpu.memory_space<vmem>>, vector<8x16x128xbf16>
    %40 = vector.shape_cast %39 : vector<8x16x128xbf16> to vector<128x128xbf16>
    %c5 = arith.constant 5 : index
    %c0_48 = arith.constant 0 : index
    %c0_49 = arith.constant 0 : index
    %41 = vector.load %arg2[%c5, %c0_48, %c0_49] : memref<9x128x128xbf16, #tpu.memory_space<vmem>>, vector<1x128x128xbf16>
    %42 = vector.shape_cast %41 : vector<1x128x128xbf16> to vector<128x128xbf16>
    %cst_50 = arith.constant dense<0.000000e+00> : vector<128x128xf32>
    %43 = tpu.matmul %40, %42, %cst_50 {dimension_numbers = #tpu.dot_dimension_numbers<[1], [0], [0], [1], [0, 0, 1, 1], [], []>} : vector<128x128xbf16>, vector<128x128xbf16>, vector<128x128xf32> -> vector<128x128xf32>
    %44 = arith.addf %38, %43 : vector<128x128xf32>
    %c2_51 = arith.constant 2 : index
    %c0_52 = arith.constant 0 : index
    %c0_53 = arith.constant 0 : index
    %45 = vector.load %arg7[%c2_51, %c0_52, %c0_53] : memref<18x18x128xbf16, #tpu.memory_space<vmem>>, vector<8x16x128xbf16>
    %46 = vector.shape_cast %45 : vector<8x16x128xbf16> to vector<128x128xbf16>
    %c6 = arith.constant 6 : index
    %c0_54 = arith.constant 0 : index
    %c0_55 = arith.constant 0 : index
    %47 = vector.load %arg2[%c6, %c0_54, %c0_55] : memref<9x128x128xbf16, #tpu.memory_space<vmem>>, vector<1x128x128xbf16>
    %48 = vector.shape_cast %47 : vector<1x128x128xbf16> to vector<128x128xbf16>
    %cst_56 = arith.constant dense<0.000000e+00> : vector<128x128xf32>
    %49 = tpu.matmul %46, %48, %cst_56 {dimension_numbers = #tpu.dot_dimension_numbers<[1], [0], [0], [1], [0, 0, 1, 1], [], []>} : vector<128x128xbf16>, vector<128x128xbf16>, vector<128x128xf32> -> vector<128x128xf32>
    %50 = arith.addf %44, %49 : vector<128x128xf32>
    %c2_57 = arith.constant 2 : index
    %c1_58 = arith.constant 1 : index
    %c0_59 = arith.constant 0 : index
    %51 = vector.load %arg7[%c2_57, %c1_58, %c0_59] : memref<18x18x128xbf16, #tpu.memory_space<vmem>>, vector<8x16x128xbf16>
    %52 = vector.shape_cast %51 : vector<8x16x128xbf16> to vector<128x128xbf16>
    %c7 = arith.constant 7 : index
    %c0_60 = arith.constant 0 : index
    %c0_61 = arith.constant 0 : index
    %53 = vector.load %arg2[%c7, %c0_60, %c0_61] : memref<9x128x128xbf16, #tpu.memory_space<vmem>>, vector<1x128x128xbf16>
    %54 = vector.shape_cast %53 : vector<1x128x128xbf16> to vector<128x128xbf16>
    %cst_62 = arith.constant dense<0.000000e+00> : vector<128x128xf32>
    %55 = tpu.matmul %52, %54, %cst_62 {dimension_numbers = #tpu.dot_dimension_numbers<[1], [0], [0], [1], [0, 0, 1, 1], [], []>} : vector<128x128xbf16>, vector<128x128xbf16>, vector<128x128xf32> -> vector<128x128xf32>
    %56 = arith.addf %50, %55 : vector<128x128xf32>
    %c2_63 = arith.constant 2 : index
    %c2_64 = arith.constant 2 : index
    %c0_65 = arith.constant 0 : index
    %57 = vector.load %arg7[%c2_63, %c2_64, %c0_65] : memref<18x18x128xbf16, #tpu.memory_space<vmem>>, vector<8x16x128xbf16>
    %58 = vector.shape_cast %57 : vector<8x16x128xbf16> to vector<128x128xbf16>
    %c8 = arith.constant 8 : index
    %c0_66 = arith.constant 0 : index
    %c0_67 = arith.constant 0 : index
    %59 = vector.load %arg2[%c8, %c0_66, %c0_67] : memref<9x128x128xbf16, #tpu.memory_space<vmem>>, vector<1x128x128xbf16>
    %60 = vector.shape_cast %59 : vector<1x128x128xbf16> to vector<128x128xbf16>
    %cst_68 = arith.constant dense<0.000000e+00> : vector<128x128xf32>
    %61 = tpu.matmul %58, %60, %cst_68 {dimension_numbers = #tpu.dot_dimension_numbers<[1], [0], [0], [1], [0, 0, 1, 1], [], []>} : vector<128x128xbf16>, vector<128x128xbf16>, vector<128x128xf32> -> vector<128x128xf32>
    %62 = arith.addf %56, %61 : vector<128x128xf32>
    %c0_69 = arith.constant 0 : index
    %c0_70 = arith.constant 0 : index
    %63 = vector.load %arg3[%c0_69, %c0_70] : memref<1x128xf32, #tpu.memory_space<vmem>>, vector<1x128xf32>
    %64 = vector.broadcast %63 : vector<1x128xf32> to vector<128x128xf32>
    %65 = arith.addf %62, %64 : vector<128x128xf32>
    %cst_71 = arith.constant 0.000000e+00 : f32
    %66 = vector.broadcast %cst_71 : f32 to vector<128x128xf32>
    %67 = arith.maximumf %65, %66 : vector<128x128xf32>
    %68 = vector.shape_cast %67 : vector<128x128xf32> to vector<8x16x128xf32>
    %69 = arith.truncf %68 : vector<8x16x128xf32> to vector<8x16x128xbf16>
    %c1_72 = arith.constant 1 : index
    %c1_73 = arith.constant 1 : index
    %c0_74 = arith.constant 0 : index
    %70 = vector.load %arg8[%c1_72, %c1_73, %c0_74] : memref<18x18x128xbf16, #tpu.memory_space<vmem>>, vector<8x16x128xbf16>
    tpu.vector_store %arg8[%c1_72, %c1_73, %c0_74], %69 {strides = array<i32>} : memref<18x18x128xbf16, #tpu.memory_space<vmem>>, vector<8x16x128xbf16>,
    %cst_75 = arith.constant 0.000000e+00 : f32
    %71 = vector.broadcast %cst_75 : f32 to vector<128x128xf32>
    %c8_76 = arith.constant 8 : index
    %c0_77 = arith.constant 0 : index
    %c0_78 = arith.constant 0 : index
    %72 = vector.load %arg7[%c8_76, %c0_77, %c0_78] : memref<18x18x128xbf16, #tpu.memory_space<vmem>>, vector<8x16x128xbf16>
    %73 = vector.shape_cast %72 : vector<8x16x128xbf16> to vector<128x128xbf16>
    %c0_79 = arith.constant 0 : index
    %c0_80 = arith.constant 0 : index
    %c0_81 = arith.constant 0 : index
    %74 = vector.load %arg2[%c0_79, %c0_80, %c0_81] : memref<9x128x128xbf16, #tpu.memory_space<vmem>>, vector<1x128x128xbf16>
    %75 = vector.shape_cast %74 : vector<1x128x128xbf16> to vector<128x128xbf16>
    %cst_82 = arith.constant dense<0.000000e+00> : vector<128x128xf32>
    %76 = tpu.matmul %73, %75, %cst_82 {dimension_numbers = #tpu.dot_dimension_numbers<[1], [0], [0], [1], [0, 0, 1, 1], [], []>} : vector<128x128xbf16>, vector<128x128xbf16>, vector<128x128xf32> -> vector<128x128xf32>
    %77 = arith.addf %71, %76 : vector<128x128xf32>
    %c8_83 = arith.constant 8 : index
    %c1_84 = arith.constant 1 : index
    %c0_85 = arith.constant 0 : index
    %78 = vector.load %arg7[%c8_83, %c1_84, %c0_85] : memref<18x18x128xbf16, #tpu.memory_space<vmem>>, vector<8x16x128xbf16>
    %79 = vector.shape_cast %78 : vector<8x16x128xbf16> to vector<128x128xbf16>
    %c1_86 = arith.constant 1 : index
    %c0_87 = arith.constant 0 : index
    %c0_88 = arith.constant 0 : index
    %80 = vector.load %arg2[%c1_86, %c0_87, %c0_88] : memref<9x128x128xbf16, #tpu.memory_space<vmem>>, vector<1x128x128xbf16>
    %81 = vector.shape_cast %80 : vector<1x128x128xbf16> to vector<128x128xbf16>
    %cst_89 = arith.constant dense<0.000000e+00> : vector<128x128xf32>
    %82 = tpu.matmul %79, %81, %cst_89 {dimension_numbers = #tpu.dot_dimension_numbers<[1], [0], [0], [1], [0, 0, 1, 1], [], []>} : vector<128x128xbf16>, vector<128x128xbf16>, vector<128x128xf32> -> vector<128x128xf32>
    %83 = arith.addf %77, %82 : vector<128x128xf32>
    %c8_90 = arith.constant 8 : index
    %c2_91 = arith.constant 2 : index
    %c0_92 = arith.constant 0 : index
    %84 = vector.load %arg7[%c8_90, %c2_91, %c0_92] : memref<18x18x128xbf16, #tpu.memory_space<vmem>>, vector<8x16x128xbf16>
    %85 = vector.shape_cast %84 : vector<8x16x128xbf16> to vector<128x128xbf16>
    %c2_93 = arith.constant 2 : index
    %c0_94 = arith.constant 0 : index
    %c0_95 = arith.constant 0 : index
    %86 = vector.load %arg2[%c2_93, %c0_94, %c0_95] : memref<9x128x128xbf16, #tpu.memory_space<vmem>>, vector<1x128x128xbf16>
    %87 = vector.shape_cast %86 : vector<1x128x128xbf16> to vector<128x128xbf16>
    %cst_96 = arith.constant dense<0.000000e+00> : vector<128x128xf32>
    %88 = tpu.matmul %85, %87, %cst_96 {dimension_numbers = #tpu.dot_dimension_numbers<[1], [0], [0], [1], [0, 0, 1, 1], [], []>} : vector<128x128xbf16>, vector<128x128xbf16>, vector<128x128xf32> -> vector<128x128xf32>
    %89 = arith.addf %83, %88 : vector<128x128xf32>
    %c9 = arith.constant 9 : index
    %c0_97 = arith.constant 0 : index
    %c0_98 = arith.constant 0 : index
    %90 = vector.load %arg7[%c9, %c0_97, %c0_98] : memref<18x18x128xbf16, #tpu.memory_space<vmem>>, vector<8x16x128xbf16>
    %91 = vector.shape_cast %90 : vector<8x16x128xbf16> to vector<128x128xbf16>
    %c3_99 = arith.constant 3 : index
    %c0_100 = arith.constant 0 : index
    %c0_101 = arith.constant 0 : index
    %92 = vector.load %arg2[%c3_99, %c0_100, %c0_101] : memref<9x128x128xbf16, #tpu.memory_space<vmem>>, vector<1x128x128xbf16>
    %93 = vector.shape_cast %92 : vector<1x128x128xbf16> to vector<128x128xbf16>
    %cst_102 = arith.constant dense<0.000000e+00> : vector<128x128xf32>
    %94 = tpu.matmul %91, %93, %cst_102 {dimension_numbers = #tpu.dot_dimension_numbers<[1], [0], [0], [1], [0, 0, 1, 1], [], []>} : vector<128x128xbf16>, vector<128x128xbf16>, vector<128x128xf32> -> vector<128x128xf32>
    %95 = arith.addf %89, %94 : vector<128x128xf32>
    %c9_103 = arith.constant 9 : index
    %c1_104 = arith.constant 1 : index
    %c0_105 = arith.constant 0 : index
    %96 = vector.load %arg7[%c9_103, %c1_104, %c0_105] : memref<18x18x128xbf16, #tpu.memory_space<vmem>>, vector<8x16x128xbf16>
    %97 = vector.shape_cast %96 : vector<8x16x128xbf16> to vector<128x128xbf16>
    %c4_106 = arith.constant 4 : index
    %c0_107 = arith.constant 0 : index
    %c0_108 = arith.constant 0 : index
    %98 = vector.load %arg2[%c4_106, %c0_107, %c0_108] : memref<9x128x128xbf16, #tpu.memory_space<vmem>>, vector<1x128x128xbf16>
    %99 = vector.shape_cast %98 : vector<1x128x128xbf16> to vector<128x128xbf16>
    %cst_109 = arith.constant dense<0.000000e+00> : vector<128x128xf32>
    %100 = tpu.matmul %97, %99, %cst_109 {dimension_numbers = #tpu.dot_dimension_numbers<[1], [0], [0], [1], [0, 0, 1, 1], [], []>} : vector<128x128xbf16>, vector<128x128xbf16>, vector<128x128xf32> -> vector<128x128xf32>
    %101 = arith.addf %95, %100 : vector<128x128xf32>
    %c9_110 = arith.constant 9 : index
    %c2_111 = arith.constant 2 : index
    %c0_112 = arith.constant 0 : index
    %102 = vector.load %arg7[%c9_110, %c2_111, %c0_112] : memref<18x18x128xbf16, #tpu.memory_space<vmem>>, vector<8x16x128xbf16>
    %103 = vector.shape_cast %102 : vector<8x16x128xbf16> to vector<128x128xbf16>
    %c5_113 = arith.constant 5 : index
    %c0_114 = arith.constant 0 : index
    %c0_115 = arith.constant 0 : index
    %104 = vector.load %arg2[%c5_113, %c0_114, %c0_115] : memref<9x128x128xbf16, #tpu.memory_space<vmem>>, vector<1x128x128xbf16>
    %105 = vector.shape_cast %104 : vector<1x128x128xbf16> to vector<128x128xbf16>
    %cst_116 = arith.constant dense<0.000000e+00> : vector<128x128xf32>
    %106 = tpu.matmul %103, %105, %cst_116 {dimension_numbers = #tpu.dot_dimension_numbers<[1], [0], [0], [1], [0, 0, 1, 1], [], []>} : vector<128x128xbf16>, vector<128x128xbf16>, vector<128x128xf32> -> vector<128x128xf32>
    %107 = arith.addf %101, %106 : vector<128x128xf32>
    %c10 = arith.constant 10 : index
    %c0_117 = arith.constant 0 : index
    %c0_118 = arith.constant 0 : index
    %108 = vector.load %arg7[%c10, %c0_117, %c0_118] : memref<18x18x128xbf16, #tpu.memory_space<vmem>>, vector<8x16x128xbf16>
    %109 = vector.shape_cast %108 : vector<8x16x128xbf16> to vector<128x128xbf16>
    %c6_119 = arith.constant 6 : index
    %c0_120 = arith.constant 0 : index
    %c0_121 = arith.constant 0 : index
    %110 = vector.load %arg2[%c6_119, %c0_120, %c0_121] : memref<9x128x128xbf16, #tpu.memory_space<vmem>>, vector<1x128x128xbf16>
    %111 = vector.shape_cast %110 : vector<1x128x128xbf16> to vector<128x128xbf16>
    %cst_122 = arith.constant dense<0.000000e+00> : vector<128x128xf32>
    %112 = tpu.matmul %109, %111, %cst_122 {dimension_numbers = #tpu.dot_dimension_numbers<[1], [0], [0], [1], [0, 0, 1, 1], [], []>} : vector<128x128xbf16>, vector<128x128xbf16>, vector<128x128xf32> -> vector<128x128xf32>
    %113 = arith.addf %107, %112 : vector<128x128xf32>
    %c10_123 = arith.constant 10 : index
    %c1_124 = arith.constant 1 : index
    %c0_125 = arith.constant 0 : index
    %114 = vector.load %arg7[%c10_123, %c1_124, %c0_125] : memref<18x18x128xbf16, #tpu.memory_space<vmem>>, vector<8x16x128xbf16>
    %115 = vector.shape_cast %114 : vector<8x16x128xbf16> to vector<128x128xbf16>
    %c7_126 = arith.constant 7 : index
    %c0_127 = arith.constant 0 : index
    %c0_128 = arith.constant 0 : index
    %116 = vector.load %arg2[%c7_126, %c0_127, %c0_128] : memref<9x128x128xbf16, #tpu.memory_space<vmem>>, vector<1x128x128xbf16>
    %117 = vector.shape_cast %116 : vector<1x128x128xbf16> to vector<128x128xbf16>
    %cst_129 = arith.constant dense<0.000000e+00> : vector<128x128xf32>
    %118 = tpu.matmul %115, %117, %cst_129 {dimension_numbers = #tpu.dot_dimension_numbers<[1], [0], [0], [1], [0, 0, 1, 1], [], []>} : vector<128x128xbf16>, vector<128x128xbf16>, vector<128x128xf32> -> vector<128x128xf32>
    %119 = arith.addf %113, %118 : vector<128x128xf32>
    %c10_130 = arith.constant 10 : index
    %c2_131 = arith.constant 2 : index
    %c0_132 = arith.constant 0 : index
    %120 = vector.load %arg7[%c10_130, %c2_131, %c0_132] : memref<18x18x128xbf16, #tpu.memory_space<vmem>>, vector<8x16x128xbf16>
    %121 = vector.shape_cast %120 : vector<8x16x128xbf16> to vector<128x128xbf16>
    %c8_133 = arith.constant 8 : index
    %c0_134 = arith.constant 0 : index
    %c0_135 = arith.constant 0 : index
    %122 = vector.load %arg2[%c8_133, %c0_134, %c0_135] : memref<9x128x128xbf16, #tpu.memory_space<vmem>>, vector<1x128x128xbf16>
    %123 = vector.shape_cast %122 : vector<1x128x128xbf16> to vector<128x128xbf16>
    %cst_136 = arith.constant dense<0.000000e+00> : vector<128x128xf32>
    %124 = tpu.matmul %121, %123, %cst_136 {dimension_numbers = #tpu.dot_dimension_numbers<[1], [0], [0], [1], [0, 0, 1, 1], [], []>} : vector<128x128xbf16>, vector<128x128xbf16>, vector<128x128xf32> -> vector<128x128xf32>
    %125 = arith.addf %119, %124 : vector<128x128xf32>
    %c0_137 = arith.constant 0 : index
    %c0_138 = arith.constant 0 : index
    %126 = vector.load %arg3[%c0_137, %c0_138] : memref<1x128xf32, #tpu.memory_space<vmem>>, vector<1x128xf32>
    %127 = vector.broadcast %126 : vector<1x128xf32> to vector<128x128xf32>
    %128 = arith.addf %125, %127 : vector<128x128xf32>
    %cst_139 = arith.constant 0.000000e+00 : f32
    %129 = vector.broadcast %cst_139 : f32 to vector<128x128xf32>
    %130 = arith.maximumf %128, %129 : vector<128x128xf32>
    %131 = vector.shape_cast %130 : vector<128x128xf32> to vector<8x16x128xf32>
    %132 = arith.truncf %131 : vector<8x16x128xf32> to vector<8x16x128xbf16>
    %c9_140 = arith.constant 9 : index
    %c1_141 = arith.constant 1 : index
    %c0_142 = arith.constant 0 : index
    %133 = vector.load %arg8[%c9_140, %c1_141, %c0_142] : memref<18x18x128xbf16, #tpu.memory_space<vmem>>, vector<8x16x128xbf16>
    tpu.vector_store %arg8[%c9_140, %c1_141, %c0_142], %132 {strides = array<i32>} : memref<18x18x128xbf16, #tpu.memory_space<vmem>>, vector<8x16x128xbf16>,
    %cst_143 = arith.constant 0.000000e+00 : f32
    %134 = vector.broadcast %cst_143 : f32 to vector<128x128xf32>
    %c0_144 = arith.constant 0 : index
    %c0_145 = arith.constant 0 : index
    %c0_146 = arith.constant 0 : index
    %135 = vector.load %arg8[%c0_144, %c0_145, %c0_146] : memref<18x18x128xbf16, #tpu.memory_space<vmem>>, vector<8x16x128xbf16>
    %136 = vector.shape_cast %135 : vector<8x16x128xbf16> to vector<128x128xbf16>
    %c0_147 = arith.constant 0 : index
    %c0_148 = arith.constant 0 : index
    %c0_149 = arith.constant 0 : index
    %137 = vector.load %arg4[%c0_147, %c0_148, %c0_149] : memref<9x128x128xbf16, #tpu.memory_space<vmem>>, vector<1x128x128xbf16>
    %138 = vector.shape_cast %137 : vector<1x128x128xbf16> to vector<128x128xbf16>
    %cst_150 = arith.constant dense<0.000000e+00> : vector<128x128xf32>
    %139 = tpu.matmul %136, %138, %cst_150 {dimension_numbers = #tpu.dot_dimension_numbers<[1], [0], [0], [1], [0, 0, 1, 1], [], []>} : vector<128x128xbf16>, vector<128x128xbf16>, vector<128x128xf32> -> vector<128x128xf32>
    %140 = arith.addf %134, %139 : vector<128x128xf32>
    %c0_151 = arith.constant 0 : index
    %c1_152 = arith.constant 1 : index
    %c0_153 = arith.constant 0 : index
    %141 = vector.load %arg8[%c0_151, %c1_152, %c0_153] : memref<18x18x128xbf16, #tpu.memory_space<vmem>>, vector<8x16x128xbf16>
    %142 = vector.shape_cast %141 : vector<8x16x128xbf16> to vector<128x128xbf16>
    %c1_154 = arith.constant 1 : index
    %c0_155 = arith.constant 0 : index
    %c0_156 = arith.constant 0 : index
    %143 = vector.load %arg4[%c1_154, %c0_155, %c0_156] : memref<9x128x128xbf16, #tpu.memory_space<vmem>>, vector<1x128x128xbf16>
    %144 = vector.shape_cast %143 : vector<1x128x128xbf16> to vector<128x128xbf16>
    %cst_157 = arith.constant dense<0.000000e+00> : vector<128x128xf32>
    %145 = tpu.matmul %142, %144, %cst_157 {dimension_numbers = #tpu.dot_dimension_numbers<[1], [0], [0], [1], [0, 0, 1, 1], [], []>} : vector<128x128xbf16>, vector<128x128xbf16>, vector<128x128xf32> -> vector<128x128xf32>
    %146 = arith.addf %140, %145 : vector<128x128xf32>
    %c0_158 = arith.constant 0 : index
    %c2_159 = arith.constant 2 : index
    %c0_160 = arith.constant 0 : index
    %147 = vector.load %arg8[%c0_158, %c2_159, %c0_160] : memref<18x18x128xbf16, #tpu.memory_space<vmem>>, vector<8x16x128xbf16>
    %148 = vector.shape_cast %147 : vector<8x16x128xbf16> to vector<128x128xbf16>
    %c2_161 = arith.constant 2 : index
    %c0_162 = arith.constant 0 : index
    %c0_163 = arith.constant 0 : index
    %149 = vector.load %arg4[%c2_161, %c0_162, %c0_163] : memref<9x128x128xbf16, #tpu.memory_space<vmem>>, vector<1x128x128xbf16>
    %150 = vector.shape_cast %149 : vector<1x128x128xbf16> to vector<128x128xbf16>
    %cst_164 = arith.constant dense<0.000000e+00> : vector<128x128xf32>
    %151 = tpu.matmul %148, %150, %cst_164 {dimension_numbers = #tpu.dot_dimension_numbers<[1], [0], [0], [1], [0, 0, 1, 1], [], []>} : vector<128x128xbf16>, vector<128x128xbf16>, vector<128x128xf32> -> vector<128x128xf32>
    %152 = arith.addf %146, %151 : vector<128x128xf32>
    %c1_165 = arith.constant 1 : index
    %c0_166 = arith.constant 0 : index
    %c0_167 = arith.constant 0 : index
    %153 = vector.load %arg8[%c1_165, %c0_166, %c0_167] : memref<18x18x128xbf16, #tpu.memory_space<vmem>>, vector<8x16x128xbf16>
    %154 = vector.shape_cast %153 : vector<8x16x128xbf16> to vector<128x128xbf16>
    %c3_168 = arith.constant 3 : index
    %c0_169 = arith.constant 0 : index
    %c0_170 = arith.constant 0 : index
    %155 = vector.load %arg4[%c3_168, %c0_169, %c0_170] : memref<9x128x128xbf16, #tpu.memory_space<vmem>>, vector<1x128x128xbf16>
    %156 = vector.shape_cast %155 : vector<1x128x128xbf16> to vector<128x128xbf16>
    %cst_171 = arith.constant dense<0.000000e+00> : vector<128x128xf32>
    %157 = tpu.matmul %154, %156, %cst_171 {dimension_numbers = #tpu.dot_dimension_numbers<[1], [0], [0], [1], [0, 0, 1, 1], [], []>} : vector<128x128xbf16>, vector<128x128xbf16>, vector<128x128xf32> -> vector<128x128xf32>
    %158 = arith.addf %152, %157 : vector<128x128xf32>
    %c1_172 = arith.constant 1 : index
    %c1_173 = arith.constant 1 : index
    %c0_174 = arith.constant 0 : index
    %159 = vector.load %arg8[%c1_172, %c1_173, %c0_174] : memref<18x18x128xbf16, #tpu.memory_space<vmem>>, vector<8x16x128xbf16>
    %160 = vector.shape_cast %159 : vector<8x16x128xbf16> to vector<128x128xbf16>
    %c4_175 = arith.constant 4 : index
    %c0_176 = arith.constant 0 : index
    %c0_177 = arith.constant 0 : index
    %161 = vector.load %arg4[%c4_175, %c0_176, %c0_177] : memref<9x128x128xbf16, #tpu.memory_space<vmem>>, vector<1x128x128xbf16>
    %162 = vector.shape_cast %161 : vector<1x128x128xbf16> to vector<128x128xbf16>
    %cst_178 = arith.constant dense<0.000000e+00> : vector<128x128xf32>
    %163 = tpu.matmul %160, %162, %cst_178 {dimension_numbers = #tpu.dot_dimension_numbers<[1], [0], [0], [1], [0, 0, 1, 1], [], []>} : vector<128x128xbf16>, vector<128x128xbf16>, vector<128x128xf32> -> vector<128x128xf32>
    %164 = arith.addf %158, %163 : vector<128x128xf32>
    %c1_179 = arith.constant 1 : index
    %c2_180 = arith.constant 2 : index
    %c0_181 = arith.constant 0 : index
    %165 = vector.load %arg8[%c1_179, %c2_180, %c0_181] : memref<18x18x128xbf16, #tpu.memory_space<vmem>>, vector<8x16x128xbf16>
    %166 = vector.shape_cast %165 : vector<8x16x128xbf16> to vector<128x128xbf16>
    %c5_182 = arith.constant 5 : index
    %c0_183 = arith.constant 0 : index
    %c0_184 = arith.constant 0 : index
    %167 = vector.load %arg4[%c5_182, %c0_183, %c0_184] : memref<9x128x128xbf16, #tpu.memory_space<vmem>>, vector<1x128x128xbf16>
    %168 = vector.shape_cast %167 : vector<1x128x128xbf16> to vector<128x128xbf16>
    %cst_185 = arith.constant dense<0.000000e+00> : vector<128x128xf32>
    %169 = tpu.matmul %166, %168, %cst_185 {dimension_numbers = #tpu.dot_dimension_numbers<[1], [0], [0], [1], [0, 0, 1, 1], [], []>} : vector<128x128xbf16>, vector<128x128xbf16>, vector<128x128xf32> -> vector<128x128xf32>
    %170 = arith.addf %164, %169 : vector<128x128xf32>
    %c2_186 = arith.constant 2 : index
    %c0_187 = arith.constant 0 : index
    %c0_188 = arith.constant 0 : index
    %171 = vector.load %arg8[%c2_186, %c0_187, %c0_188] : memref<18x18x128xbf16, #tpu.memory_space<vmem>>, vector<8x16x128xbf16>
    %172 = vector.shape_cast %171 : vector<8x16x128xbf16> to vector<128x128xbf16>
    %c6_189 = arith.constant 6 : index
    %c0_190 = arith.constant 0 : index
    %c0_191 = arith.constant 0 : index
    %173 = vector.load %arg4[%c6_189, %c0_190, %c0_191] : memref<9x128x128xbf16, #tpu.memory_space<vmem>>, vector<1x128x128xbf16>
    %174 = vector.shape_cast %173 : vector<1x128x128xbf16> to vector<128x128xbf16>
    %cst_192 = arith.constant dense<0.000000e+00> : vector<128x128xf32>
    %175 = tpu.matmul %172, %174, %cst_192 {dimension_numbers = #tpu.dot_dimension_numbers<[1], [0], [0], [1], [0, 0, 1, 1], [], []>} : vector<128x128xbf16>, vector<128x128xbf16>, vector<128x128xf32> -> vector<128x128xf32>
    %176 = arith.addf %170, %175 : vector<128x128xf32>
    %c2_193 = arith.constant 2 : index
    %c1_194 = arith.constant 1 : index
    %c0_195 = arith.constant 0 : index
    %177 = vector.load %arg8[%c2_193, %c1_194, %c0_195] : memref<18x18x128xbf16, #tpu.memory_space<vmem>>, vector<8x16x128xbf16>
    %178 = vector.shape_cast %177 : vector<8x16x128xbf16> to vector<128x128xbf16>
    %c7_196 = arith.constant 7 : index
    %c0_197 = arith.constant 0 : index
    %c0_198 = arith.constant 0 : index
    %179 = vector.load %arg4[%c7_196, %c0_197, %c0_198] : memref<9x128x128xbf16, #tpu.memory_space<vmem>>, vector<1x128x128xbf16>
    %180 = vector.shape_cast %179 : vector<1x128x128xbf16> to vector<128x128xbf16>
    %cst_199 = arith.constant dense<0.000000e+00> : vector<128x128xf32>
    %181 = tpu.matmul %178, %180, %cst_199 {dimension_numbers = #tpu.dot_dimension_numbers<[1], [0], [0], [1], [0, 0, 1, 1], [], []>} : vector<128x128xbf16>, vector<128x128xbf16>, vector<128x128xf32> -> vector<128x128xf32>
    %182 = arith.addf %176, %181 : vector<128x128xf32>
    %c2_200 = arith.constant 2 : index
    %c2_201 = arith.constant 2 : index
    %c0_202 = arith.constant 0 : index
    %183 = vector.load %arg8[%c2_200, %c2_201, %c0_202] : memref<18x18x128xbf16, #tpu.memory_space<vmem>>, vector<8x16x128xbf16>
    %184 = vector.shape_cast %183 : vector<8x16x128xbf16> to vector<128x128xbf16>
    %c8_203 = arith.constant 8 : index
    %c0_204 = arith.constant 0 : index
    %c0_205 = arith.constant 0 : index
    %185 = vector.load %arg4[%c8_203, %c0_204, %c0_205] : memref<9x128x128xbf16, #tpu.memory_space<vmem>>, vector<1x128x128xbf16>
    %186 = vector.shape_cast %185 : vector<1x128x128xbf16> to vector<128x128xbf16>
    %cst_206 = arith.constant dense<0.000000e+00> : vector<128x128xf32>
    %187 = tpu.matmul %184, %186, %cst_206 {dimension_numbers = #tpu.dot_dimension_numbers<[1], [0], [0], [1], [0, 0, 1, 1], [], []>} : vector<128x128xbf16>, vector<128x128xbf16>, vector<128x128xf32> -> vector<128x128xf32>
    %188 = arith.addf %182, %187 : vector<128x128xf32>
    %c0_207 = arith.constant 0 : index
    %c0_208 = arith.constant 0 : index
    %c0_209 = arith.constant 0 : index
    %c0_210 = arith.constant 0 : index
    %189 = vector.load %arg1[%c0_207, %c0_208, %c0_209, %c0_210] : memref<1x16x16x128xf32, #tpu.memory_space<vmem>>, vector<1x8x16x128xf32>
    %190 = vector.shape_cast %189 : vector<1x8x16x128xf32> to vector<8x16x128xf32>
    %191 = vector.shape_cast %190 : vector<8x16x128xf32> to vector<128x128xf32>
    %c0_211 = arith.constant 0 : index
    %c0_212 = arith.constant 0 : index
    %192 = vector.load %arg5[%c0_211, %c0_212] : memref<1x128xf32, #tpu.memory_space<vmem>>, vector<1x128xf32>
    %193 = vector.broadcast %192 : vector<1x128xf32> to vector<128x128xf32>
    %194 = arith.addf %188, %193 : vector<128x128xf32>
    %195 = arith.addf %194, %191 : vector<128x128xf32>
    %196 = vector.shape_cast %195 : vector<128x128xf32> to vector<8x16x128xf32>
    %c0_213 = arith.constant 0 : index
    %c0_214 = arith.constant 0 : index
    %c0_215 = arith.constant 0 : index
    %c0_216 = arith.constant 0 : index
    %197 = vector.load %arg6[%c0_213, %c0_214, %c0_215, %c0_216] : memref<1x16x16x128xf32, #tpu.memory_space<vmem>>, vector<1x8x16x128xf32>
    %198 = vector.shape_cast %197 : vector<1x8x16x128xf32> to vector<8x16x128xf32>
    %199 = vector.shape_cast %196 : vector<8x16x128xf32> to vector<1x8x16x128xf32>
    tpu.vector_store %arg6[%c0_213, %c0_214, %c0_215, %c0_216], %199 {strides = array<i32>} : memref<1x16x16x128xf32, #tpu.memory_space<vmem>>, vector<1x8x16x128xf32>,
    %cst_217 = arith.constant 0.000000e+00 : f32
    %200 = vector.broadcast %cst_217 : f32 to vector<128x128xf32>
    %c8_218 = arith.constant 8 : index
    %c0_219 = arith.constant 0 : index
    %c0_220 = arith.constant 0 : index
    %201 = vector.load %arg8[%c8_218, %c0_219, %c0_220] : memref<18x18x128xbf16, #tpu.memory_space<vmem>>, vector<8x16x128xbf16>
    %202 = vector.shape_cast %201 : vector<8x16x128xbf16> to vector<128x128xbf16>
    %c0_221 = arith.constant 0 : index
    %c0_222 = arith.constant 0 : index
    %c0_223 = arith.constant 0 : index
    %203 = vector.load %arg4[%c0_221, %c0_222, %c0_223] : memref<9x128x128xbf16, #tpu.memory_space<vmem>>, vector<1x128x128xbf16>
    %204 = vector.shape_cast %203 : vector<1x128x128xbf16> to vector<128x128xbf16>
    %cst_224 = arith.constant dense<0.000000e+00> : vector<128x128xf32>
    %205 = tpu.matmul %202, %204, %cst_224 {dimension_numbers = #tpu.dot_dimension_numbers<[1], [0], [0], [1], [0, 0, 1, 1], [], []>} : vector<128x128xbf16>, vector<128x128xbf16>, vector<128x128xf32> -> vector<128x128xf32>
    %206 = arith.addf %200, %205 : vector<128x128xf32>
    %c8_225 = arith.constant 8 : index
    %c1_226 = arith.constant 1 : index
    %c0_227 = arith.constant 0 : index
    %207 = vector.load %arg8[%c8_225, %c1_226, %c0_227] : memref<18x18x128xbf16, #tpu.memory_space<vmem>>, vector<8x16x128xbf16>
    %208 = vector.shape_cast %207 : vector<8x16x128xbf16> to vector<128x128xbf16>
    %c1_228 = arith.constant 1 : index
    %c0_229 = arith.constant 0 : index
    %c0_230 = arith.constant 0 : index
    %209 = vector.load %arg4[%c1_228, %c0_229, %c0_230] : memref<9x128x128xbf16, #tpu.memory_space<vmem>>, vector<1x128x128xbf16>
    %210 = vector.shape_cast %209 : vector<1x128x128xbf16> to vector<128x128xbf16>
    %cst_231 = arith.constant dense<0.000000e+00> : vector<128x128xf32>
    %211 = tpu.matmul %208, %210, %cst_231 {dimension_numbers = #tpu.dot_dimension_numbers<[1], [0], [0], [1], [0, 0, 1, 1], [], []>} : vector<128x128xbf16>, vector<128x128xbf16>, vector<128x128xf32> -> vector<128x128xf32>
    %212 = arith.addf %206, %211 : vector<128x128xf32>
    %c8_232 = arith.constant 8 : index
    %c2_233 = arith.constant 2 : index
    %c0_234 = arith.constant 0 : index
    %213 = vector.load %arg8[%c8_232, %c2_233, %c0_234] : memref<18x18x128xbf16, #tpu.memory_space<vmem>>, vector<8x16x128xbf16>
    %214 = vector.shape_cast %213 : vector<8x16x128xbf16> to vector<128x128xbf16>
    %c2_235 = arith.constant 2 : index
    %c0_236 = arith.constant 0 : index
    %c0_237 = arith.constant 0 : index
    %215 = vector.load %arg4[%c2_235, %c0_236, %c0_237] : memref<9x128x128xbf16, #tpu.memory_space<vmem>>, vector<1x128x128xbf16>
    %216 = vector.shape_cast %215 : vector<1x128x128xbf16> to vector<128x128xbf16>
    %cst_238 = arith.constant dense<0.000000e+00> : vector<128x128xf32>
    %217 = tpu.matmul %214, %216, %cst_238 {dimension_numbers = #tpu.dot_dimension_numbers<[1], [0], [0], [1], [0, 0, 1, 1], [], []>} : vector<128x128xbf16>, vector<128x128xbf16>, vector<128x128xf32> -> vector<128x128xf32>
    %218 = arith.addf %212, %217 : vector<128x128xf32>
    %c9_239 = arith.constant 9 : index
    %c0_240 = arith.constant 0 : index
    %c0_241 = arith.constant 0 : index
    %219 = vector.load %arg8[%c9_239, %c0_240, %c0_241] : memref<18x18x128xbf16, #tpu.memory_space<vmem>>, vector<8x16x128xbf16>
    %220 = vector.shape_cast %219 : vector<8x16x128xbf16> to vector<128x128xbf16>
    %c3_242 = arith.constant 3 : index
    %c0_243 = arith.constant 0 : index
    %c0_244 = arith.constant 0 : index
    %221 = vector.load %arg4[%c3_242, %c0_243, %c0_244] : memref<9x128x128xbf16, #tpu.memory_space<vmem>>, vector<1x128x128xbf16>
    %222 = vector.shape_cast %221 : vector<1x128x128xbf16> to vector<128x128xbf16>
    %cst_245 = arith.constant dense<0.000000e+00> : vector<128x128xf32>
    %223 = tpu.matmul %220, %222, %cst_245 {dimension_numbers = #tpu.dot_dimension_numbers<[1], [0], [0], [1], [0, 0, 1, 1], [], []>} : vector<128x128xbf16>, vector<128x128xbf16>, vector<128x128xf32> -> vector<128x128xf32>
    %224 = arith.addf %218, %223 : vector<128x128xf32>
    %c9_246 = arith.constant 9 : index
    %c1_247 = arith.constant 1 : index
    %c0_248 = arith.constant 0 : index
    %225 = vector.load %arg8[%c9_246, %c1_247, %c0_248] : memref<18x18x128xbf16, #tpu.memory_space<vmem>>, vector<8x16x128xbf16>
    %226 = vector.shape_cast %225 : vector<8x16x128xbf16> to vector<128x128xbf16>
    %c4_249 = arith.constant 4 : index
    %c0_250 = arith.constant 0 : index
    %c0_251 = arith.constant 0 : index
    %227 = vector.load %arg4[%c4_249, %c0_250, %c0_251] : memref<9x128x128xbf16, #tpu.memory_space<vmem>>, vector<1x128x128xbf16>
    %228 = vector.shape_cast %227 : vector<1x128x128xbf16> to vector<128x128xbf16>
    %cst_252 = arith.constant dense<0.000000e+00> : vector<128x128xf32>
    %229 = tpu.matmul %226, %228, %cst_252 {dimension_numbers = #tpu.dot_dimension_numbers<[1], [0], [0], [1], [0, 0, 1, 1], [], []>} : vector<128x128xbf16>, vector<128x128xbf16>, vector<128x128xf32> -> vector<128x128xf32>
    %230 = arith.addf %224, %229 : vector<128x128xf32>
    %c9_253 = arith.constant 9 : index
    %c2_254 = arith.constant 2 : index
    %c0_255 = arith.constant 0 : index
    %231 = vector.load %arg8[%c9_253, %c2_254, %c0_255] : memref<18x18x128xbf16, #tpu.memory_space<vmem>>, vector<8x16x128xbf16>
    %232 = vector.shape_cast %231 : vector<8x16x128xbf16> to vector<128x128xbf16>
    %c5_256 = arith.constant 5 : index
    %c0_257 = arith.constant 0 : index
    %c0_258 = arith.constant 0 : index
    %233 = vector.load %arg4[%c5_256, %c0_257, %c0_258] : memref<9x128x128xbf16, #tpu.memory_space<vmem>>, vector<1x128x128xbf16>
    %234 = vector.shape_cast %233 : vector<1x128x128xbf16> to vector<128x128xbf16>
    %cst_259 = arith.constant dense<0.000000e+00> : vector<128x128xf32>
    %235 = tpu.matmul %232, %234, %cst_259 {dimension_numbers = #tpu.dot_dimension_numbers<[1], [0], [0], [1], [0, 0, 1, 1], [], []>} : vector<128x128xbf16>, vector<128x128xbf16>, vector<128x128xf32> -> vector<128x128xf32>
    %236 = arith.addf %230, %235 : vector<128x128xf32>
    %c10_260 = arith.constant 10 : index
    %c0_261 = arith.constant 0 : index
    %c0_262 = arith.constant 0 : index
    %237 = vector.load %arg8[%c10_260, %c0_261, %c0_262] : memref<18x18x128xbf16, #tpu.memory_space<vmem>>, vector<8x16x128xbf16>
    %238 = vector.shape_cast %237 : vector<8x16x128xbf16> to vector<128x128xbf16>
    %c6_263 = arith.constant 6 : index
    %c0_264 = arith.constant 0 : index
    %c0_265 = arith.constant 0 : index
    %239 = vector.load %arg4[%c6_263, %c0_264, %c0_265] : memref<9x128x128xbf16, #tpu.memory_space<vmem>>, vector<1x128x128xbf16>
    %240 = vector.shape_cast %239 : vector<1x128x128xbf16> to vector<128x128xbf16>
    %cst_266 = arith.constant dense<0.000000e+00> : vector<128x128xf32>
    %241 = tpu.matmul %238, %240, %cst_266 {dimension_numbers = #tpu.dot_dimension_numbers<[1], [0], [0], [1], [0, 0, 1, 1], [], []>} : vector<128x128xbf16>, vector<128x128xbf16>, vector<128x128xf32> -> vector<128x128xf32>
    %242 = arith.addf %236, %241 : vector<128x128xf32>
    %c10_267 = arith.constant 10 : index
    %c1_268 = arith.constant 1 : index
    %c0_269 = arith.constant 0 : index
    %243 = vector.load %arg8[%c10_267, %c1_268, %c0_269] : memref<18x18x128xbf16, #tpu.memory_space<vmem>>, vector<8x16x128xbf16>
    %244 = vector.shape_cast %243 : vector<8x16x128xbf16> to vector<128x128xbf16>
    %c7_270 = arith.constant 7 : index
    %c0_271 = arith.constant 0 : index
    %c0_272 = arith.constant 0 : index
    %245 = vector.load %arg4[%c7_270, %c0_271, %c0_272] : memref<9x128x128xbf16, #tpu.memory_space<vmem>>, vector<1x128x128xbf16>
    %246 = vector.shape_cast %245 : vector<1x128x128xbf16> to vector<128x128xbf16>
    %cst_273 = arith.constant dense<0.000000e+00> : vector<128x128xf32>
    %247 = tpu.matmul %244, %246, %cst_273 {dimension_numbers = #tpu.dot_dimension_numbers<[1], [0], [0], [1], [0, 0, 1, 1], [], []>} : vector<128x128xbf16>, vector<128x128xbf16>, vector<128x128xf32> -> vector<128x128xf32>
    %248 = arith.addf %242, %247 : vector<128x128xf32>
    %c10_274 = arith.constant 10 : index
    %c2_275 = arith.constant 2 : index
    %c0_276 = arith.constant 0 : index
    %249 = vector.load %arg8[%c10_274, %c2_275, %c0_276] : memref<18x18x128xbf16, #tpu.memory_space<vmem>>, vector<8x16x128xbf16>
    %250 = vector.shape_cast %249 : vector<8x16x128xbf16> to vector<128x128xbf16>
    %c8_277 = arith.constant 8 : index
    %c0_278 = arith.constant 0 : index
    %c0_279 = arith.constant 0 : index
    %251 = vector.load %arg4[%c8_277, %c0_278, %c0_279] : memref<9x128x128xbf16, #tpu.memory_space<vmem>>, vector<1x128x128xbf16>
    %252 = vector.shape_cast %251 : vector<1x128x128xbf16> to vector<128x128xbf16>
    %cst_280 = arith.constant dense<0.000000e+00> : vector<128x128xf32>
    %253 = tpu.matmul %250, %252, %cst_280 {dimension_numbers = #tpu.dot_dimension_numbers<[1], [0], [0], [1], [0, 0, 1, 1], [], []>} : vector<128x128xbf16>, vector<128x128xbf16>, vector<128x128xf32> -> vector<128x128xf32>
    %254 = arith.addf %248, %253 : vector<128x128xf32>
    %c0_281 = arith.constant 0 : index
    %c8_282 = arith.constant 8 : index
    %c0_283 = arith.constant 0 : index
    %c0_284 = arith.constant 0 : index
    %255 = vector.load %arg1[%c0_281, %c8_282, %c0_283, %c0_284] : memref<1x16x16x128xf32, #tpu.memory_space<vmem>>, vector<1x8x16x128xf32>
    %256 = vector.shape_cast %255 : vector<1x8x16x128xf32> to vector<8x16x128xf32>
    %257 = vector.shape_cast %256 : vector<8x16x128xf32> to vector<128x128xf32>
    %c0_285 = arith.constant 0 : index
    %c0_286 = arith.constant 0 : index
    %258 = vector.load %arg5[%c0_285, %c0_286] : memref<1x128xf32, #tpu.memory_space<vmem>>, vector<1x128xf32>
    %259 = vector.broadcast %258 : vector<1x128xf32> to vector<128x128xf32>
    %260 = arith.addf %254, %259 : vector<128x128xf32>
    %261 = arith.addf %260, %257 : vector<128x128xf32>
    %262 = vector.shape_cast %261 : vector<128x128xf32> to vector<8x16x128xf32>
    %c0_287 = arith.constant 0 : index
    %c8_288 = arith.constant 8 : index
    %c0_289 = arith.constant 0 : index
    %c0_290 = arith.constant 0 : index
    %263 = vector.load %arg6[%c0_287, %c8_288, %c0_289, %c0_290] : memref<1x16x16x128xf32, #tpu.memory_space<vmem>>, vector<1x8x16x128xf32>
    %264 = vector.shape_cast %263 : vector<1x8x16x128xf32> to vector<8x16x128xf32>
    %265 = vector.shape_cast %262 : vector<8x16x128xf32> to vector<1x8x16x128xf32>
    tpu.vector_store %arg6[%c0_287, %c8_288, %c0_289, %c0_290], %265 {strides = array<i32>} : memref<1x16x16x128xf32, #tpu.memory_space<vmem>>, vector<1x8x16x128xf32>,
    return
  }
  func.func @transform_0(%arg0: i32) -> (i32, i32, i32, i32) {
    %c0_i32 = arith.constant 0 : i32
    %c0_i32_0 = arith.constant 0 : i32
    %c0_i32_1 = arith.constant 0 : i32
    %c0_i32_2 = arith.constant 0 : i32
    return %arg0, %c0_i32, %c0_i32_0, %c0_i32_1 : i32, i32, i32, i32
  }
  func.func @transform_1(%arg0: i32) -> (i32, i32, i32) {
    %c0_i32 = arith.constant 0 : i32
    %c0_i32_0 = arith.constant 0 : i32
    %c0_i32_1 = arith.constant 0 : i32
    %c0_i32_2 = arith.constant 0 : i32
    return %c0_i32, %c0_i32_0, %c0_i32_1 : i32, i32, i32
  }
  func.func @transform_2(%arg0: i32) -> (i32, i32) {
    %c0_i32 = arith.constant 0 : i32
    %c0_i32_0 = arith.constant 0 : i32
    %c0_i32_1 = arith.constant 0 : i32
    return %c0_i32, %c0_i32_0 : i32, i32
  }
  func.func @transform_3(%arg0: i32) -> (i32, i32, i32) {
    %c0_i32 = arith.constant 0 : i32
    %c0_i32_0 = arith.constant 0 : i32
    %c0_i32_1 = arith.constant 0 : i32
    %c0_i32_2 = arith.constant 0 : i32
    return %c0_i32, %c0_i32_0, %c0_i32_1 : i32, i32, i32
  }
  func.func @transform_4(%arg0: i32) -> (i32, i32) {
    %c0_i32 = arith.constant 0 : i32
    %c0_i32_0 = arith.constant 0 : i32
    %c0_i32_1 = arith.constant 0 : i32
    return %c0_i32, %c0_i32_0 : i32, i32
  }
  func.func @transform_5(%arg0: i32) -> (i32, i32, i32, i32) {
    %c0_i32 = arith.constant 0 : i32
    %c0_i32_0 = arith.constant 0 : i32
    %c0_i32_1 = arith.constant 0 : i32
    %c0_i32_2 = arith.constant 0 : i32
    return %arg0, %c0_i32, %c0_i32_0, %c0_i32_1 : i32, i32, i32, i32
  }
}

</mosaic_0001>

<bundles_post_ra>
// kernel: br_forward.1
= control target key start
LH: loop header
LB: loop body
LE: loop exit
PB: predicated region body
PF: predicated region fallthrough
CT: control target
= control target key end

     0   :  { %10 = vsyncpa [#allocation5], 0  ;;  %s18115_s0 = inlined_call_operand.vmem [shape: f32[2,16,16,128], index: 0, kind: input, shape index: {}]   ;;  %s18116_s1 = inlined_call_operand.vmem [shape: bf16[9,128,128], index: 1, kind: input, shape index: {}]   ;;  %s18117_s2 = inlined_call_operand.vmem [shape: f32[1,128], index: 2, kind: input, shape index: {}]   ;;  %s18118_s3 = inlined_call_operand.vmem [shape: bf16[9,128,128], index: 3, kind: input, shape index: {}]   ;;  %s18119_s4 = inlined_call_operand.vmem [shape: f32[1,128], index: 4, kind: input, shape index: {}]   ;;  %s18120_s5 = inlined_call_operand.hbm [shape: f32[2,16,16,128], index: 5, kind: output, shape index: {}]  }
   0x1   :  { %12 = vsyncpa [#allocation5 + $0x1], 0  ;;  %s13996_s18 = smov 0   ;;  %s13998_s19 = smov 0  }
   0x2   :  { %s14000_s20 = smov 0   ;;  %s14002_s21 = smov 0  }
   0x3 LB: > { %s14017_s22 = sadd.s32 4294967295, %s13961_s21   ;;  %s11224_s23 = sadd.s32 4294967294, %s13961_s21   ;;  %s13961_s21 = sphi %s14002_s21, %s18136_s21   ;;  %s13957_s20 = sphi %s14000_s20, %s18135_s20   ;;  %s13953_s19 = sphi %s13998_s19, %s18134_s19   ;;  %s13949_s18 = sphi %s13996_s18, %s18133_s18  }
   0x4   : > { %s14021_s24 = sadd.s32 1, %s13961_s21   ;;  %s135_s25 = sadd.s32 1, %s13957_s20 }
   0x5   : > { %s132_s26 = ssub.s32 %s13961_s21, %s14021_s24  ;;  %p145_p0 = scmp.ne.s32.totalorder %s13957_s20, %s13953_s19 }
   0x6   : > { %p133_p1 = scmp.eq.s32.totalorder %s132_s26, 0  ;;  %p146_p2 = scmp.eq.s32.totalorder %s14017_s22, 1 }
   0x7   : > { %p151_p3 = scmp.ne.s32.totalorder %s13953_s19, %s13949_s18  ;;  %p152_p4 = scmp.eq.s32.totalorder %s11224_s23, 1 }
   0x8   : > { %s14032_s27 = scalar_select %p133_p1, %s13957_s20, %s135_s25  }
   0x9   : > { %p14034_p5 = por %p146_p2, %p145_p0  ;;  %p14038_p6 = por %p152_p4, %p151_p3 }
   0xa   : > { %p11227_p7 = scmp.ge.s32.totalorder %s13961_s21, 1  ;;  %p190_p8 = scmp.lt.s32.totalorder %s13961_s21, 3 }
   0xc   : > { %p191_p9 = pnand %p11227_p7, %p190_p8 }
   0xd   : > { %p218_p10 = scmp.lt.s32.totalorder (!%p191_p9), %s14017_s22, 1  ;;  %s215_s17 = sand.u32 (!%p191_p9), 1, %s13953_s19  }
   0xe   : > { %194 = sbr.rel (%p191_p9) target bundleno = 1424 (0x590), region = 40  ;;  %s11228_s26 = sshll.u32 (!%p191_p9), %s215_s17, 8 }
   0xf   : > { %s17463_s12 = scalar_lea.vmem (!%p191_p9), [#allocation4], %s11228_s26  ;;  %s13919_s23 = scalar_lea.hbm (!%p191_p9), %s18120_s5, 512 }
  0x10   : > { %s11159_s10 = sshll.u32 (!%p191_p9), %s17463_s12, 4  ;;  %s11160_s10 = int_to_ptr.vmem [resolvable:$true] %s11159_s10 }
  0x13   : > { %v13436_v0 = vld [vmem:[%s18116_s1 + $0x78] sm:$0xff]  ;;  %v13963_v4 = vmov 0   ;;  %v13435_v5 = vld [vmem:[%s18116_s1 + $0x70] sm:$0xff]  ;;  %v13434_v9 = vld [vmem:[%s18116_s1 + $0x68] sm:$0xff]  ;;  %vm877_vm0 = vsmask.f32 3328 }
  0x14   : > { %v13428_v1 = vld [vmem:[%s18116_s1 + $0x38] sm:$0xff]  ;;  %224 = vst [vmem:[#allocation2] sm:$0xf] %v13963_v4  ;;  %1169 = vmatpush.bf16.msra.mxu0 %v13436_v0  ;;  %v13427_v6 = vld [vmem:[%s18116_s1 + $0x30] sm:$0xff]  ;;  %v13426_v10 = vld [vmem:[%s18116_s1 + $0x28] sm:$0xff]  ;;  %vm1387_vm2 = vcmask 1042432  }
  0x15   : > { %v13444_v2 = vld [vmem:[%s18116_s1 + $0xb8] sm:$0xff]  ;;  %1314 = vmatpush.bf16.msra.mxu1 %v13428_v1  ;;  %225 = vst [vmem:[#allocation2 + $0x4] sm:$0xf] %v13963_v4  ;;  %v13443_v7 = vld [vmem:[%s18116_s1 + $0xb0] sm:$0xff]  ;;  %v13442_v11 = vld [vmem:[%s18116_s1 + $0xa8] sm:$0xff]  ;;  %vm1388_vm3 = vcmask 1046532  }
  0x16   : > { %v13460_v3 = vld [vmem:[%s18116_s1 + $0xf8] sm:$0xff]  ;;  %1543 = vmatpush.bf16.msra.mxu2 %v13444_v2  ;;  %v13459_v8 = vld [vmem:[%s18116_s1 + $0xf0] sm:$0xff]  ;;  %226 = vst [vmem:[#allocation2 + $0x8] sm:$0x1] %v13963_v4  ;;  %v13458_v12 = vld [vmem:[%s18116_s1 + $0xe8] sm:$0xff]  ;;  %s219_s30 = scalar_select %p218_p10, %s14017_s22, 1 }
  0x17   : > { %1737 = vmatpush.bf16.msra.mxu3 %v13460_v3  ;;  %227 = vst [vmem:[#allocation2 + $0xc] sm:$0xf] %v13963_v4  ;;  %v13433_v13 = vld [vmem:[%s18116_s1 + $0x60] sm:$0xff]  ;;  %v13432_v24 = vld [vmem:[%s18116_s1 + $0x58] sm:$0xff]  ;;  %v13431_v36 = vld [vmem:[%s18116_s1 + $0x50] sm:$0xff]  ;;  %vm720_vm8 = vcmask 1043456  }
  0x18   : > { %1170 = vmatpush.bf16.msra.mxu0 %v13435_v5  ;;  %228 = vst [vmem:[#allocation2 + $0x10] sm:$0xf] %v13963_v4  ;;  %v13425_v14 = vld [vmem:[%s18116_s1 + $0x20] sm:$0xff]  ;;  %v13424_v25 = vld [vmem:[%s18116_s1 + $0x18] sm:$0xff]  ;;  %vm878_vm1 = vsmask.f32 7440  ;;  %vm14151_vm5 = vmor %vm1387_vm2, %vm1388_vm3 }
  0x19   : > { %1315 = vmatpush.bf16.msra.mxu1 %v13427_v6  ;;  %229 = vst [vmem:[#allocation2 + $0x14] sm:$0x1] %v13963_v4  ;;  %v13441_v15 = vld [vmem:[%s18116_s1 + $0xa0] sm:$0xff]  ;;  %v13440_v28 = vld [vmem:[%s18116_s1 + $0x98] sm:$0xff]  ;;  %v13423_v38 = vld [vmem:[%s18116_s1 + $0x10] sm:$0xff]  ;;  %s13412_s6 = sshll.u32 %s219_s30, 8 }
  0x1a   : > { %1544 = vmatpush.bf16.msra.mxu2 %v13443_v7  ;;  %230 = vst [vmem:[#allocation2 + $0x18] sm:$0xf] %v13963_v4  ;;  %v13457_v16 = vld [vmem:[%s18116_s1 + $0xe0] sm:$0xff]  ;;  %v13456_v32 = vld [vmem:[%s18116_s1 + $0xd8] sm:$0xff]  ;;  %v13439_v39 = vld [vmem:[%s18116_s1 + $0x90] sm:$0xff]  ;;  %s14256_s9 = scalar_lea.vmem %s18115_s0, %s13412_s6  ;;  %vm727_vm11 = vcmask 1040384  }
  0x1b   : > { %1738 = vmatpush.bf16.msra.mxu3 %v13459_v8  ;;  %231 = vst [vmem:[#allocation2 + $0x1c] sm:$0xf] %v13963_v4  ;;  %v837_v17 = vld [vmem:[#allocation2] sm:$0xf]  ;;  %v13455_v40 = vld [vmem:[%s18116_s1 + $0xd0] sm:$0xff]  ;;  %vm14142_vm4 = vmor %vm877_vm0, %vm878_vm1  ;;  %s13797_s30 = sshll.u32 %s14017_s22, 8 }
  0x1c   : > { %1171 = vmatpush.bf16.msra.mxu0 %v13434_v9  ;;  %232 = vst [vmem:[#allocation2 + $0x20] sm:$0x1] %v13963_v4  ;;  %v14101_v18 = vld [vmem:[#allocation2 + $0x4] sm:$0xf]  ;;  %v881_v20 = vshrl.u32 %v837_v17, 16  ;;  %v884_v21 = vshll.u32 %v837_v17, 16  ;;  %s11158_s8 = scalar_lea.hbm %s18120_s5, %s13797_s30 }
  0x1d   : > { %1316 = vmatpush.bf16.msra.mxu1 %v13426_v10  ;;  %v14103_v19 = vld [vmem:[#allocation2 + $0x8] sm:$0x1]  ;;  %v890_v22 = vshll.u32 %v14101_v18, 16  ;;  %v894_v23 = vshrl.u32 %v14101_v18, 16  ;;  %233 = vst [vmem:[#allocation2 + $0x24] sm:$0xf] %v13963_v4 }
  0x1e   : > { %1545 = vmatpush.bf16.msra.mxu2 %v13442_v11  ;;  %v883_v26 = vrot.slane %v881_v20, 4  ;;  %v886_v27 = vrot.slane %v884_v21, 5  ;;  %234 = vst [vmem:[#allocation2 + $0x28] sm:$0xf] %v13963_v4  ;;  %v900_v31 = vshll.u32 %v14103_v19, 16  ;;  %v1392_v35 = vrot.slane %v14101_v18, 5 }
  0x1f   : > { %1739 = vmatpush.bf16.msra.mxu3 %v13458_v12  ;;  %v892_v29 = vrot.slane %v890_v22, 5  ;;  %v896_v30 = vrot.slane %v894_v23, 4  ;;  %235 = vst [vmem:[#allocation2 + $0x2c] sm:$0x1] %v13963_v4  ;;  %v1363_v34 = vld [vmem:[#allocation2] sm:$0xe] }
  0x20   : > { %1172 = vmatpush.bf16.msra.mxu0 %v13433_v13  ;;  %v887_v33 = vor.u32 %v886_v27, %v883_v26  ;;  %236 = vst [vmem:[#allocation2 + $0x30] sm:$0xf] %v13963_v4  ;;  %v902_v43 = vrot.slane %v900_v31, 5  ;;  %v11343_v44 = vrot.slane %v1363_v34, 9  ;;  %v1394_v46 = vrot.slane %v1392_v35, 4  ;;  %v13430_v49 = vld [vmem:[%s18116_s1 + $0x48] sm:$0xff] }
  0x21   : > { %1317 = vmatpush.bf16.msra.mxu1 %v13425_v14  ;;  %v897_v37 = vor.u32 %v896_v30, %v892_v29  ;;  %237 = vst [vmem:[#allocation2 + $0x34] sm:$0xf] %v13963_v4  ;;  %v1395_v47 = vrot.slane %v14103_v19, 5  ;;  %v13422_v50 = vld [vmem:[%s18116_s1 + $0x8] sm:$0xff]  ;;  %v13429_v59 = vld [vmem:[%s18116_s1 + $0x40] sm:$0xff]  ;;  %v13492_v6 = vld [vmem:[%s18116_s1 + $0x1b8] sm:$0xff] }
  0x22   : > { %1546 = vmatpush.bf16.msra.mxu2 %v13441_v15  ;;  %238 = vst [vmem:[#allocation2 + $0x38] sm:$0x1] %v13963_v4  ;;  %v888_v41 = vrot.slane %v887_v33, 4  ;;  %v13438_v53 = vld [vmem:[%s18116_s1 + $0x88] sm:$0xff]  ;;  %v1393_v55 = vsel %vm14151_vm5, %v11343_v44, %v1392_v35  ;;  %v13421_v60 = vld [vmem:[%s18116_s1] sm:$0xff]  ;;  %v13468_v7 = vld [vmem:[%s18116_s1 + $0x138] sm:$0xff] }
  0x23   : > { %1740 = vmatpush.bf16.msra.mxu3 %v13457_v16  ;;  %v898_v42 = vrot.slane %v897_v37, 4  ;;  %239 = vst [vmem:[#allocation2 + $0x3c] sm:$0xf] %v13963_v4  ;;  %v13454_v54 = vld [vmem:[%s18116_s1 + $0xc8] sm:$0xff]  ;;  %v1396_v56 = vsel %vm14151_vm5, %v1394_v46, %v1395_v47  ;;  %v1463_v61 = vunpack.c.l.b16 %v1393_v55  ;;  %v13437_v63 = vld [vmem:[%s18116_s1 + $0x80] sm:$0xff]  ;;  %v13500_v8 = vld [vmem:[%s18116_s1 + $0x1f8] sm:$0xff] }
  0x24   : > { %1173 = vmatpush.bf16.msra.mxu0 %v13432_v24  ;;  %240 = vst [vmem:[#allocation2 + $0x40] sm:$0xf] %v13963_v4  ;;  %v893_v51 = vsel %vm14142_vm4, %v888_v41, %v892_v29  ;;  %v1464_v62 = vunpack.c.l.b16 %v1396_v56  ;;  %v13453_v0 = vld [vmem:[%s18116_s1 + $0xc0] sm:$0xff]  ;;  %v333_v9 = vld [vmem:[%s14256_s9 + $0x8] sm:$0xff]  ;;  %v13476_v11 = vld [vmem:[%s18116_s1 + $0x178] sm:$0xff]  ;;  %s11161_s11 = sshll.u32 %s11158_s8, 4  ;;  %s11162_s11 = int_to_ptr.hbm [resolvable:$true] %s11161_s11 }
  0x25   : > { %1318 = vmatpush.bf16.msra.mxu1 %v13424_v25  ;;  %241 = vst [vmem:[#allocation2 + $0x44] sm:$0x1] %v13963_v4  ;;  %v903_v52 = vsel %vm14142_vm4, %v898_v42, %v902_v43  ;;  %v1089_v57 = vunpack.c.l.b16 %v893_v51  ;;  %v13413_v2 = vld [vmem:[#allocation2] sm:$0xff]  ;;  %v334_v12 = vld [vmem:[%s14256_s9 + $0x10] sm:$0xff]  ;;  %v365_v13 = vpack.c.bf16 %v333_v9, %v333_v9  ;;  %v335_v14 = vld [vmem:[%s14256_s9 + $0x18] sm:$0xff]  ;;  %s11147_s22 = scalar_lea.sflag [#allocation5], %s215_s17 }
  0x26   : > { %1547 = vmatpush.bf16.msra.mxu2 %v13440_v28  ;;  %242 = vst [vmem:[#allocation2 + $0x48] sm:$0xf] %v13963_v4  ;;  %v1090_v58 = vunpack.c.l.b16 %v903_v52  ;;  %v1479_v3 = vpack.c.b16 %v1464_v62, %v1463_v61  ;;  %v332_v5 = vld [vmem:[%s14256_s9] sm:$0xff]  ;;  %v366_v16 = vpack.c.bf16 %v334_v12, %v334_v12  ;;  %v367_v17 = vpack.c.bf16 %v335_v14, %v335_v14  ;;  %v337_v28 = vld [vmem:[%s14256_s9 + $0x28] sm:$0xff]  ;;  %v13499_v41 = vld [vmem:[%s18116_s1 + $0x1f0] sm:$0xff]  ;;  %s13913_s13 = sshra.s32 %s11162_s11, 4  ;;  %s13914_s13 = int_to_ptr.hbm [resolvable:$true] %s13913_s13 }
  0x27   : > { %1741 = vmatpush.bf16.msra.mxu3 %v13456_v32  ;;  %243 = vst [vmem:[#allocation2 + $0x4c] sm:$0xf] %v13963_v4  ;;  %v364_v10 = vpack.c.bf16 %v332_v5, %v332_v5  ;;  %v408_v18 = vshrl.u32 %v365_v13, 16  ;;  %vm396_vm6 = vsmask.f32 256  ;;  %v411_v24 = vshll.u32 %v365_v13, 16  ;;  %p13920_p0 = scmp.lt.s32.totalorder %s13914_s13, %s18120_s5 }
  0x28   : > { %1174 = vmatpush.bf16.msra.mxu0 %v13431_v36  ;;  %244 = vst [vmem:[#allocation2 + $0x50] sm:$0x1] %v13963_v4  ;;  %v1105_v1 = vpack.c.b16 %v1090_v58, %v1089_v57  ;;  %v417_v21 = vshrl.u32 %v366_v16, 16  ;;  %vm397_vm7 = vsmask.f32 4368  ;;  %v425_v22 = vshrl.u32 %v367_v17, 16  ;;  %vm14324_vm13 = vmand %vm727_vm11, %vm396_vm6 }
  0x29   : > { %1319 = vmatpush.bf16.msra.mxu1 %v13423_v38  ;;  %245 = vst [vmem:[#allocation2 + $0x54] sm:$0xf] %v13963_v4  ;;  %v400_v15 = vshrl.u32 %v364_v10, 16  ;;  %v403_v20 = vshll.u32 %v364_v10, 16  ;;  %v410_v23 = vrot.slane %v408_v18, 7  ;;  %v336_v27 = vld [vmem:[%s14256_s9 + $0x20] sm:$0xff]  ;;  %v369_v33 = vpack.c.bf16 %v337_v28, %v337_v28  ;;  %vm14314_vm12 = vmor %vm396_vm6, %vm397_vm7 }
  0x2a   : > { %1548 = vmatpush.bf16.msra.mxu2 %v13439_v39  ;;  %246 = vst [vmem:[#allocation2 + $0x58] sm:$0xf] %v13963_v4  ;;  %vm721_vm9 = vsmask.f32 7938  ;;  %v723_v29 = vld [vmem:[#allocation2 + $0xc] sm:$0xf]  ;;  %v368_v32 = vpack.c.bf16 %v336_v27, %v336_v27 }
  0x2b   : > { %1742 = vmatpush.bf16.msra.mxu3 %v13455_v40  ;;  %247 = vst [vmem:[#allocation2 + $0x5c] sm:$0x1] %v13963_v4  ;;  %v402_v19 = vrot.slane %v400_v15, 7  ;;  %v419_v30 = vrot.slane %v417_v21, 7  ;;  %v420_v31 = vshll.u32 %v366_v16, 16  ;;  %v415_v34 = vrot.slane %v410_v23, 4  ;;  %vm14297_vm10 = vmand %vm720_vm8, %vm721_vm9 }
  0x2c   : > { %1175 = vmatpush.bf16.msra.mxu0 %v13430_v49  ;;  %248 = vst [vmem:[#allocation2 + $0x60] sm:$0xf] %v13963_v4  ;;  %v427_v36 = vrot.slane %v425_v22, 7  ;;  %v428_v37 = vshll.u32 %v367_v17, 16  ;;  %v413_v38 = vor.u32 %v411_v24, %v410_v23  ;;  %v13491_v39 = vld [vmem:[%s18116_s1 + $0x1b0] sm:$0xff]  ;;  %v434_v42 = vshrl.u32 %v368_v32, 16 }
  0x2d   : > { %1320 = vmatpush.bf16.msra.mxu1 %v13422_v50  ;;  %249 = vst [vmem:[#allocation2 + $0x64] sm:$0xf] %v13963_v4  ;;  %v405_v25 = vor.u32 %v403_v20, %v402_v19  ;;  %v406_v26 = vrot.slane %v402_v19, 4  ;;  %v13467_v40 = vld [vmem:[%s18116_s1 + $0x130] sm:$0xff]  ;;  %v442_v47 = vshrl.u32 %v369_v33, 16  ;;  %v422_v50 = vor.u32 %v420_v31, %v419_v30  ;;  %s13915_s14 = scalar_lea.hbm %s13914_s13, 256 }
  0x2e   : > { %1549 = vmatpush.bf16.msra.mxu2 %v13438_v53  ;;  %250 = vst [vmem:[#allocation2 + $0x68] sm:$0x1] %v13963_v4  ;;  %v729_v44 = vld [vmem:[#allocation2 + $0x14] sm:$0x1]  ;;  %v436_v51 = vrot.slane %v434_v42, 7  ;;  %v437_v52 = vshll.u32 %v368_v32, 16  ;;  %v430_v56 = vor.u32 %v428_v37, %v427_v36  ;;  %p13916_p11 = scmp.ne.s32.totalorder %s13914_s13, %s13915_s14  ;;  %p13921_p1 = scmp.lt.s32.totalorder %s13919_s23, %s13915_s14 }
  0x2f   : > { %1743 = vmatpush.bf16.msra.mxu3 %v13454_v54  ;;  %251 = vst [vmem:[#allocation2 + $0x6c] sm:$0xf] %v13963_v4  ;;  %v13475_v46 = vld [vmem:[%s18116_s1 + $0x170] sm:$0xff]  ;;  %v445_v53 = vshll.u32 %v369_v33, 16  ;;  %v724_v54 = vsel %vm14297_vm10, %v405_v25, %v723_v29  ;;  %v423_v55 = vrot.slane %v419_v30, 4  ;;  %v14331_v58 = vrot.slane %v442_v47, 7 }
  0x30   : > { %1176 = vmatpush.bf16.msra.mxu0 %v13429_v59  ;;  %252 = vst [vmem:[#allocation2 + $0x70] sm:$0xf] %v13963_v4  ;;  %v732_v57 = vld [vmem:[#allocation2 + $0x18] sm:$0xf]  ;;  %v414_v59 = vsel %vm14314_vm12, %v406_v26, %v413_v38  ;;  %v730_v61 = vsel %vm14324_vm13, %v415_v34, %v729_v44  ;;  %v736_v62 = vld [vmem:[#allocation2 + $0x20] sm:$0x1]  ;;  %p13917_p12 = pnand %p13916_p11, %p14034_p5  ;;  %p13922_p2 = por %p13921_p1, %p13920_p0 }
  0x31   : > { %1321 = vmatpush.bf16.msra.mxu1 %v13421_v60  ;;  %253 = vst [vmem:[#allocation2 + $0x74] sm:$0x1] %v13963_v4  ;;  %v432_v60 = vrot.slane %v427_v36, 4  ;;  %v431_v5 = vsel %vm14314_vm12, %v423_v55, %v430_v56  ;;  %v13490_v34 = vld [vmem:[%s18116_s1 + $0x1a8] sm:$0xff]  ;;  %v449_v56 = vrot.slane %v14331_v58, 4 }
  0x32   : > { %1550 = vmatpush.bf16.msra.mxu2 %v13437_v63  ;;  %254 = vst [vmem:[#allocation2 + $0x78] sm:$0xf] %v13963_v4  ;;  %v439_v63 = vor.u32 %v437_v52, %v436_v51  ;;  %p13918_p13 = pneg %p13917_p12 }
  0x33   : > { %1744 = vmatpush.bf16.msra.mxu3 %v13453_v0  ;;  %1177 = vmatmul.bf16.vlgmr.msra.gmra.mxu0 %v1105_v1  ;;  %255 = vst [vmem:[#allocation2 + $0x7c] sm:$0xf] %v13963_v4  ;;  %v733_v0 = vsel %vm14297_vm10, %v422_v50, %v732_v57  ;;  %v440_v1 = vrot.slane %v436_v51, 4  ;;  %v13474_v51 = vld [vmem:[%s18116_s1 + $0x168] sm:$0xff] }
  0x34   : > { %1322 = vmatmul.bf16.vlgmr.msra.gmra.mxu1 %v13413_v2  ;;  %256 = vst [vmem:[#allocation2 + $0x80] sm:$0x1] %v13963_v4  ;;  %2115 = vmatpush.bf16.msrb.mxu0 %v13468_v7  ;;  %v447_v2 = vor.u32 %v445_v53, %v14331_v58  ;;  %p13923_p3 = pnand %p13922_p2, %p13918_p13 }
  0x35   : > { %1551 = vmatmul.bf16.vlgmr.msra.gmra.mxu2 %v1479_v3  ;;  %257 = vst [vmem:[#allocation2 + $0x84] sm:$0xf] %v13963_v4  ;;  %2365 = vmatpush.bf16.msrb.mxu1 %v13476_v11  ;;  %v739_v3 = vld [vmem:[#allocation2 + $0x24] sm:$0xf] }
  0x36   : > { %258 = vst [vmem:[#allocation2 + $0x88] sm:$0xf] %v13963_v4  ;;  %2560 = vmatpush.bf16.msrb.mxu2 %v13492_v6  ;;  %v740_v6 = vsel %vm14297_vm10, %v439_v63, %v739_v3  ;;  %v448_v7 = vsel %vm14314_vm12, %v440_v1, %v447_v2 }
  0x37   : > { %259 = vst [vmem:[#allocation2 + $0x8c] sm:$0x1] %v13963_v4  ;;  %2938 = vmatpush.bf16.msrb.mxu3 %v13500_v8 }
  0x38   : > { %260 = vst [vmem:[#allocation2 + $0x90] sm:$0xf] %v13963_v4  ;;  %2116 = vmatpush.bf16.msrb.mxu0 %v13467_v40  ;;  %v13466_v40 = vld [vmem:[%s18116_s1 + $0x128] sm:$0xff] }
  0x39   : > { %261 = vst [vmem:[#allocation2 + $0x94] sm:$0xf] %v13963_v4  ;;  %2366 = vmatpush.bf16.msrb.mxu1 %v13475_v46 }
  0x3a   : > { %262 = vst [vmem:[#allocation2 + $0x98] sm:$0x1] %v13963_v4  ;;  %2561 = vmatpush.bf16.msrb.mxu2 %v13491_v39 }
  0x3b   : > { %263 = vst [vmem:[#allocation2 + $0x9c] sm:$0xf] %v13963_v4  ;;  %2939 = vmatpush.bf16.msrb.mxu3 %v13499_v41  ;;  %v13498_v41 = vld [vmem:[%s18116_s1 + $0x1e8] sm:$0xff] }
  0x3c   : > { %264 = vst [vmem:[#allocation2 + $0xa0] sm:$0xf] %v13963_v4  ;;  %2117 = vmatpush.bf16.msrb.mxu0 %v13466_v40 }
  0x3d   : > { %265 = vst [vmem:[#allocation2 + $0xa4] sm:$0x1] %v13963_v4  ;;  %2367 = vmatpush.bf16.msrb.mxu1 %v13474_v51 }
  0x3e   : > { %266 = vst [vmem:[#allocation2 + $0xa8] sm:$0xf] %v13963_v4  ;;  %2562 = vmatpush.bf16.msrb.mxu2 %v13490_v34  ;;  %v13497_v34 = vld [vmem:[%s18116_s1 + $0x1e0] sm:$0xff] }
  0x3f   : > { %267 = vst [vmem:[#allocation2 + $0xac] sm:$0xf] %v13963_v4  ;;  %2940 = vmatpush.bf16.msrb.mxu3 %v13498_v41 }
  0x40   : > { %268 = vst [vmem:[#allocation2 + $0xb0] sm:$0x1] %v13963_v4 }
  0x41   : > { %269 = vst [vmem:[#allocation2 + $0xb4] sm:$0xf] %v13963_v4 }
  0x42   : > { %270 = vst [vmem:[#allocation2 + $0xb8] sm:$0xf] %v13963_v4 }
  0x43   : > { %271 = vst [vmem:[#allocation2 + $0xbc] sm:$0x1] %v13963_v4  ;;  %2941 = vmatpush.bf16.msrb.mxu3 %v13497_v34 }
  0x44   : > { %272 = vst [vmem:[#allocation2 + $0xc0] sm:$0xf] %v13963_v4 }
  0x45   : > { %273 = vst [vmem:[#allocation2 + $0xc4] sm:$0xf] %v13963_v4 }
  0x46   : > { %274 = vst [vmem:[#allocation2 + $0xc8] sm:$0x1] %v13963_v4 }
  0x47   : > { %275 = vst [vmem:[#allocation2 + $0xcc] sm:$0xf] %v13963_v4 }
  0x48   : > { %276 = vst [vmem:[#allocation2 + $0xd0] sm:$0xf] %v13963_v4 }
  0x49   : > { %277 = vst [vmem:[#allocation2 + $0xd4] sm:$0x1] %v13963_v4 }
  0x4a   : > { %278 = vst [vmem:[#allocation3] sm:$0xf] %v13963_v4 }
  0x4b   : > { %279 = vst [vmem:[#allocation3 + $0x4] sm:$0xf] %v13963_v4 }
  0x4c   : > { %280 = vst [vmem:[#allocation3 + $0x8] sm:$0x1] %v13963_v4 }
  0x4d   : > { %281 = vst [vmem:[#allocation3 + $0xc] sm:$0xf] %v13963_v4 }
  0x4e   : > { %282 = vst [vmem:[#allocation3 + $0x10] sm:$0xf] %v13963_v4 }
  0x4f   : > { %283 = vst [vmem:[#allocation3 + $0x14] sm:$0x1] %v13963_v4 }
  0x50   : > { %284 = vst [vmem:[#allocation3 + $0x18] sm:$0xf] %v13963_v4 }
  0x51   : > { %285 = vst [vmem:[#allocation3 + $0x1c] sm:$0xf] %v13963_v4 }
  0x52   : > { %286 = vst [vmem:[#allocation3 + $0x20] sm:$0x1] %v13963_v4 }
  0x53   : > { %287 = vst [vmem:[#allocation3 + $0x24] sm:$0xf] %v13963_v4 }
  0x54   : > { %288 = vst [vmem:[#allocation3 + $0x28] sm:$0xf] %v13963_v4 }
  0x55   : > { %289 = vst [vmem:[#allocation3 + $0x2c] sm:$0x1] %v13963_v4 }
  0x56   : > { %290 = vst [vmem:[#allocation3 + $0x30] sm:$0xf] %v13963_v4 }
  0x57   : > { %291 = vst [vmem:[#allocation3 + $0x34] sm:$0xf] %v13963_v4 }
  0x58   : > { %292 = vst [vmem:[#allocation3 + $0x38] sm:$0x1] %v13963_v4 }
  0x59   : > { %293 = vst [vmem:[#allocation3 + $0x3c] sm:$0xf] %v13963_v4 }
  0x5a   : > { %294 = vst [vmem:[#allocation3 + $0x40] sm:$0xf] %v13963_v4 }
  0x5b   : > { %295 = vst [vmem:[#allocation3 + $0x44] sm:$0x1] %v13963_v4 }
  0x5c   : > { %296 = vst [vmem:[#allocation3 + $0x48] sm:$0xf] %v13963_v4 }
  0x5d   : > { %297 = vst [vmem:[#allocation3 + $0x4c] sm:$0xf] %v13963_v4 }
  0x5e   : > { %298 = vst [vmem:[#allocation3 + $0x50] sm:$0x1] %v13963_v4 }
  0x5f   : > { %299 = vst [vmem:[#allocation3 + $0x54] sm:$0xf] %v13963_v4 }
  0x60   : > { %300 = vst [vmem:[#allocation3 + $0x58] sm:$0xf] %v13963_v4 }
  0x61   : > { %301 = vst [vmem:[#allocation3 + $0x5c] sm:$0x1] %v13963_v4 }
  0x62   : > { %302 = vst [vmem:[#allocation3 + $0x60] sm:$0xf] %v13963_v4 }
  0x63   : > { %303 = vst [vmem:[#allocation3 + $0x64] sm:$0xf] %v13963_v4 }
  0x64   : > { %304 = vst [vmem:[#allocation3 + $0x68] sm:$0x1] %v13963_v4 }
  0x65   : > { %305 = vst [vmem:[#allocation3 + $0x6c] sm:$0xf] %v13963_v4 }
  0x66   : > { %306 = vst [vmem:[#allocation3 + $0x70] sm:$0xf] %v13963_v4 }
  0x67   : > { %307 = vst [vmem:[#allocation3 + $0x74] sm:$0x1] %v13963_v4 }
  0x68   : > { %308 = vst [vmem:[#allocation3 + $0x78] sm:$0xf] %v13963_v4 }
  0x69   : > { %309 = vst [vmem:[#allocation3 + $0x7c] sm:$0xf] %v13963_v4 }
  0x6a   : > { %310 = vst [vmem:[#allocation3 + $0x80] sm:$0x1] %v13963_v4 }
  0x6b   : > { %311 = vst [vmem:[#allocation3 + $0x84] sm:$0xf] %v13963_v4 }
  0x6c   : > { %312 = vst [vmem:[#allocation3 + $0x88] sm:$0xf] %v13963_v4 }
  0x6d   : > { %313 = vst [vmem:[#allocation3 + $0x8c] sm:$0x1] %v13963_v4 }
  0x6e   : > { %314 = vst [vmem:[#allocation3 + $0x90] sm:$0xf] %v13963_v4 }
  0x6f   : > { %315 = vst [vmem:[#allocation3 + $0x94] sm:$0xf] %v13963_v4 }
  0x70   : > { %316 = vst [vmem:[#allocation3 + $0x98] sm:$0x1] %v13963_v4 }
  0x71   : > { %317 = vst [vmem:[#allocation3 + $0x9c] sm:$0xf] %v13963_v4 }
  0x72   : > { %318 = vst [vmem:[#allocation3 + $0xa0] sm:$0xf] %v13963_v4 }
  0x73   : > { %319 = vst [vmem:[#allocation3 + $0xa4] sm:$0x1] %v13963_v4 }
  0x74   : > { %320 = vst [vmem:[#allocation3 + $0xa8] sm:$0xf] %v13963_v4 }
  0x75   : > { %321 = vst [vmem:[#allocation3 + $0xac] sm:$0xf] %v13963_v4 }
  0x76   : > { %322 = vst [vmem:[#allocation3 + $0xb0] sm:$0x1] %v13963_v4 }
  0x77   : > { %323 = vst [vmem:[#allocation3 + $0xb4] sm:$0xf] %v13963_v4 }
  0x78   : > { %324 = vst [vmem:[#allocation3 + $0xb8] sm:$0xf] %v13963_v4 }
  0x79   : > { %325 = vst [vmem:[#allocation3 + $0xbc] sm:$0x1] %v13963_v4 }
  0x7a   : > { %326 = vst [vmem:[#allocation3 + $0xc0] sm:$0xf] %v13963_v4 }
  0x7b   : > { %327 = vst [vmem:[#allocation3 + $0xc4] sm:$0xf] %v13963_v4 }
  0x7c   : > { %328 = vst [vmem:[#allocation3 + $0xc8] sm:$0x1] %v13963_v4 }
  0x7d   : > { %329 = vst [vmem:[#allocation3 + $0xcc] sm:$0xf] %v13963_v4 }
  0x7e   : > { %330 = vst [vmem:[#allocation3 + $0xd0] sm:$0xf] %v13963_v4 }
  0x7f   : > { %331 = vst [vmem:[#allocation3 + $0xd4] sm:$0x1] %v13963_v4  ;;  %v737_v4 = vsel %vm14324_vm13, %v432_v60, %v736_v62 }
  0x80   : > { %725 = vst [vmem:[#allocation2 + $0xc] sm:$0xf] %v724_v54 }
  0x81   : > { %726 = vst [vmem:[#allocation2 + $0x10] sm:$0xf] %v414_v59 }
  0x82   : > { %731 = vst [vmem:[#allocation2 + $0x14] sm:$0x1] %v730_v61  ;;  %v743_v61 = vld [vmem:[#allocation2 + $0x2c] sm:$0x1] }
  0x83   : > { %734 = vst [vmem:[#allocation2 + $0x18] sm:$0xf] %v733_v0 }
  0x84   : > { %735 = vst [vmem:[#allocation2 + $0x1c] sm:$0xf] %v431_v5 }
  0x85   : > { %738 = vst [vmem:[#allocation2 + $0x20] sm:$0x1] %v737_v4 }
  0x86   : > { %741 = vst [vmem:[#allocation2 + $0x24] sm:$0xf] %v740_v6  ;;  %v744_v6 = vsel %vm14324_vm13, %v449_v56, %v743_v61 }
  0x87   : > { %v839_v8 = vld [vmem:[#allocation2 + $0xc] sm:$0xf]  ;;  %742 = vst [vmem:[#allocation2 + $0x28] sm:$0xf] %v448_v7 }
  0x88   : > { %v1364_v9 = vld [vmem:[#allocation2 + $0xc] sm:$0xe]  ;;  %v840_v11 = vld [vmem:[#allocation2 + $0x10] sm:$0xf]  ;;  %v905_v12 = vshrl.u32 %v839_v8, 16  ;;  %v908_v13 = vshll.u32 %v839_v8, 16 }
  0x89   : > { %v13445_v10 = vld [vmem:[#allocation2 + $0xc] sm:$0xff]  ;;  %v870_v15 = vld [vmem:[#allocation2 + $0x14] sm:$0x1]  ;;  %v914_v16 = vshll.u32 %v840_v11, 16  ;;  %v918_v17 = vshrl.u32 %v840_v11, 16  ;;  %v11344_v18 = vrot.slane %v1364_v9, 9 }
  0x8a   : > { %v13414_v14 = vld [vmem:[#allocation2 + $0xc] sm:$0xff]  ;;  %v1399_v19 = vrot.slane %v840_v11, 5  ;;  %1745 = vmatmul.bf16.vlgmr.msra.gmra.mxu3 %v13445_v10  ;;  %v907_v20 = vrot.slane %v905_v12, 4  ;;  %v910_v21 = vrot.slane %v908_v13, 5  ;;  %v924_v22 = vshll.u32 %v870_v15, 16 }
  0x8b   : > { %1327 = vmatmul.bf16.gmra.mxu1 %v13414_v14  ;;  %v1402_v23 = vrot.slane %v870_v15, 5  ;;  %v841_v24 = vld [vmem:[#allocation2 + $0x18] sm:$0xf]  ;;  %v916_v25 = vrot.slane %v914_v16, 5  ;;  %v920_v26 = vrot.slane %v918_v17, 4  ;;  %v338_v13 = vld [vmem:[%s14256_s9 + $0x30] sm:$0xff] }
  0x8c   : > { %v1400_v27 = vsel %vm14151_vm5, %v11344_v18, %v1399_v19  ;;  %v1401_v28 = vrot.slane %v1399_v19, 4  ;;  %v842_v29 = vld [vmem:[#allocation2 + $0x1c] sm:$0xf]  ;;  %v911_v30 = vor.u32 %v910_v21, %v907_v20  ;;  %v926_v31 = vrot.slane %v924_v22, 5  ;;  %v871_v46 = vld [vmem:[#allocation2 + $0x20] sm:$0x1] }
  0x8d   : > { %v1465_v32 = vunpack.c.l.b16 %v1400_v27  ;;  %v929_v33 = vshrl.u32 %v841_v24, 16  ;;  %v921_v36 = vor.u32 %v920_v26, %v916_v25  ;;  %v932_v38 = vshll.u32 %v841_v24, 16  ;;  %v1365_v55 = vld [vmem:[#allocation2 + $0x18] sm:$0xe]  ;;  %745 = vst [vmem:[#allocation2 + $0x2c] sm:$0x1] %v744_v6 }
  0x8e   : > { %v1403_v37 = vsel %vm14151_vm5, %v1401_v28, %v1402_v23  ;;  %v938_v39 = vshll.u32 %v842_v29, 16  ;;  %v912_v42 = vrot.slane %v911_v30, 4  ;;  %v942_v50 = vshrl.u32 %v842_v29, 16  ;;  %v843_v9 = vld [vmem:[#allocation2 + $0x24] sm:$0xf]  ;;  %v13446_v14 = vld [vmem:[#allocation2 + $0x18] sm:$0xff] }
  0x8f   : > { %v1466_v44 = vunpack.c.l.b16 %v1403_v37  ;;  %v931_v47 = vrot.slane %v929_v33, 4  ;;  %v922_v52 = vrot.slane %v921_v36, 4  ;;  %v934_v53 = vrot.slane %v932_v38, 5  ;;  %v13415_v15 = vld [vmem:[#allocation2 + $0x18] sm:$0xff]  ;;  %v14376_v17 = vld [vmem:[#allocation2 + $0x28] sm:$0xf] }
  0x90   : > { %v940_v54 = vrot.slane %v938_v39, 5  ;;  %v917_v57 = vsel %vm14142_vm4, %v912_v42, %v916_v25  ;;  %v944_v60 = vrot.slane %v942_v50, 4  ;;  %v948_v1 = vshll.u32 %v871_v46, 16  ;;  %v339_v20 = vld [vmem:[%s14256_s9 + $0x38] sm:$0xff]  ;;  %v340_v27 = vld [vmem:[%s14256_s9 + $0x40] sm:$0xff] }
  0x91   : > { %v1480_v59 = vpack.c.b16 %v1466_v44, %v1465_v32  ;;  %v927_v62 = vsel %vm14142_vm4, %v922_v52, %v926_v31  ;;  %v1091_v63 = vunpack.c.l.b16 %v917_v57  ;;  %v935_v0 = vor.u32 %v934_v53, %v931_v47  ;;  %v13489_v32 = vld [vmem:[%s18116_s1 + $0x1a0] sm:$0xff]  ;;  %v746_v44 = vld [vmem:[#allocation2 + $0x30] sm:$0xf] }
  0x92   : > { %v1092_v2 = vunpack.c.l.b16 %v927_v62  ;;  %v945_v3 = vor.u32 %v944_v60, %v940_v54  ;;  %v11345_v58 = vrot.slane %v1365_v55, 9  ;;  %v1406_v5 = vrot.slane %v842_v29, 5  ;;  %v13465_v33 = vld [vmem:[%s18116_s1 + $0x120] sm:$0xff]  ;;  %2563 = vmatpush.bf16.msrb.mxu2 %v13489_v32 }
  0x93   : > { %1556 = vmatmul.bf16.gmra.mxu2 %v1480_v59  ;;  %v1409_v4 = vrot.slane %v871_v46, 5  ;;  %v936_v10 = vrot.slane %v935_v0, 4  ;;  %v950_v12 = vrot.slane %v948_v1, 5  ;;  %v953_v19 = vshrl.u32 %v843_v9, 16  ;;  %v13473_v38 = vld [vmem:[%s18116_s1 + $0x160] sm:$0xff]  ;;  %2118 = vmatpush.bf16.msrb.mxu0 %v13465_v33  ;;  %v341_v46 = vld [vmem:[%s14256_s9 + $0x48] sm:$0xff] }
  0x94   : > { %v1106_v7 = vpack.c.b16 %v1092_v2, %v1091_v63  ;;  %v1408_v8 = vrot.slane %v1406_v5, 4  ;;  %v946_v11 = vrot.slane %v945_v3, 4  ;;  %v1407_v16 = vsel %vm14151_vm5, %v11345_v58, %v1406_v5  ;;  %v1366_v47 = vld [vmem:[#allocation2 + $0x24] sm:$0xe]  ;;  %2368 = vmatpush.bf16.msrb.mxu1 %v13473_v38  ;;  %v872_v63 = vld [vmem:[#allocation2 + $0x2c] sm:$0x1] }
  0x95   : > { %v956_v21 = vshll.u32 %v843_v9, 16  ;;  %v370_v22 = vpack.c.bf16 %v338_v13, %v338_v13  ;;  %v941_v23 = vsel %vm14142_vm4, %v936_v10, %v940_v54  ;;  %v1467_v25 = vunpack.c.l.b16 %v1407_v16  ;;  %v750_v3 = vld [vmem:[#allocation2 + $0x38] sm:$0x1]  ;;  %v753_v16 = vld [vmem:[#allocation2 + $0x3c] sm:$0xf] }
  0x96   : > { %1182 = vmatmul.bf16.gmra.mxu0 %v1106_v7  ;;  %v1410_v18 = vsel %vm14151_vm5, %v1408_v8, %v1409_v4  ;;  %v951_v24 = vsel %vm14142_vm4, %v946_v11, %v950_v12  ;;  %v962_v26 = vshll.u32 %v14376_v17, 16  ;;  %v966_v29 = vshrl.u32 %v14376_v17, 16 }
  0x97   : > { %v1468_v28 = vunpack.c.l.b16 %v1410_v18  ;;  %v371_v30 = vpack.c.bf16 %v339_v20, %v339_v20  ;;  %v451_v31 = vshrl.u32 %v370_v22, 16  ;;  %v955_v36 = vrot.slane %v953_v19, 4 }
  0x98   : > { %v454_v37 = vshll.u32 %v370_v22, 16  ;;  %v1093_v39 = vunpack.c.l.b16 %v941_v23  ;;  %v1094_v40 = vunpack.c.l.b16 %v951_v24  ;;  %v958_v41 = vrot.slane %v956_v21, 5  ;;  %v13447_v21 = vld [vmem:[#allocation2 + $0x24] sm:$0xff] }
  0x99   : > { %v453_v42 = vrot.slane %v451_v31, 7  ;;  %v1413_v50 = vrot.slane %v14376_v17, 5  ;;  %v459_v51 = vshrl.u32 %v371_v30, 16  ;;  %v462_v52 = vshll.u32 %v371_v30, 16  ;;  %v13416_v23 = vld [vmem:[#allocation2 + $0x24] sm:$0xff]  ;;  %v342_v31 = vld [vmem:[%s14256_s9 + $0x50] sm:$0xff] }
  0x9a   : > { %1750 = vmatmul.bf16.gmra.mxu3 %v13446_v14  ;;  %v372_v53 = vpack.c.bf16 %v340_v27, %v340_v27  ;;  %v1481_v54 = vpack.c.b16 %v1468_v28, %v1467_v25  ;;  %v14402_v55 = vrot.slane %v962_v26, 5  ;;  %v968_v56 = vrot.slane %v966_v29, 4  ;;  %v757_v30 = vld [vmem:[#allocation2 + $0x44] sm:$0x1] }
  0x9b   : > { %1332 = vmatmul.bf16.gmra.mxu1 %v13415_v15  ;;  %v456_v57 = vor.u32 %v454_v37, %v453_v42  ;;  %v457_v59 = vrot.slane %v453_v42, 4  ;;  %v461_v60 = vrot.slane %v459_v51, 7  ;;  %v373_v61 = vpack.c.bf16 %v341_v46, %v341_v46  ;;  %v13464_v42 = vld [vmem:[%s18116_s1 + $0x118] sm:$0xff] }
  0x9c   : > { %v468_v62 = vshrl.u32 %v372_v53, 16  ;;  %v959_v0 = vor.u32 %v958_v41, %v955_v36  ;;  %v11346_v1 = vrot.slane %v1366_v47, 9  ;;  %v471_v58 = vshll.u32 %v372_v53, 16  ;;  %v13488_v41 = vld [vmem:[%s18116_s1 + $0x198] sm:$0xff]  ;;  %2119 = vmatpush.bf16.msrb.mxu0 %v13464_v42  ;;  %v13463_v42 = vld [vmem:[%s18116_s1 + $0x110] sm:$0xff] }
  0x9d   : > { %v747_v2 = vsel %vm14297_vm10, %v456_v57, %v746_v44  ;;  %v1107_v5 = vpack.c.b16 %v1094_v40, %v1093_v39  ;;  %v1415_v4 = vrot.slane %v1413_v50, 4  ;;  %v464_v6 = vor.u32 %v462_v52, %v461_v60  ;;  %v13496_v44 = vld [vmem:[%s18116_s1 + $0x1d8] sm:$0xff]  ;;  %2564 = vmatpush.bf16.msrb.mxu2 %v13488_v41  ;;  %v13487_v41 = vld [vmem:[%s18116_s1 + $0x190] sm:$0xff] }
  0x9e   : > { %v466_v7 = vrot.slane %v461_v60, 4  ;;  %748 = vst [vmem:[#allocation2 + $0x30] sm:$0xf] %v747_v2  ;;  %v969_v8 = vor.u32 %v968_v56, %v14402_v55  ;;  %v470_v9 = vrot.slane %v468_v62, 7  ;;  %v476_v10 = vshrl.u32 %v373_v61, 16  ;;  %v13472_v56 = vld [vmem:[%s18116_s1 + $0x158] sm:$0xff]  ;;  %2942 = vmatpush.bf16.msrb.mxu3 %v13496_v44 }
  0x9f   : > { %v479_v11 = vshll.u32 %v373_v61, 16  ;;  %v972_v12 = vshll.u32 %v872_v63, 16  ;;  %v1416_v13 = vrot.slane %v872_v63, 5  ;;  %v465_v14 = vsel %vm14314_vm12, %v457_v59, %v464_v6  ;;  %2369 = vmatpush.bf16.msrb.mxu1 %v13472_v56  ;;  %v13495_v44 = vld [vmem:[%s18116_s1 + $0x1d0] sm:$0xff] }
  0xa0   : > { %v751_v15 = vsel %vm14324_vm13, %v466_v7, %v750_v3  ;;  %749 = vst [vmem:[#allocation2 + $0x34] sm:$0xf] %v465_v14  ;;  %v473_v17 = vor.u32 %v471_v58, %v470_v9  ;;  %v474_v18 = vrot.slane %v470_v9, 4  ;;  %v478_v19 = vrot.slane %v476_v10, 7  ;;  %v343_v58 = vld [vmem:[%s14256_s9 + $0x58] sm:$0xff]  ;;  %2120 = vmatpush.bf16.msrb.mxu0 %v13463_v42  ;;  %v13494_v42 = vld [vmem:[%s18116_s1 + $0x1c8] sm:$0xff] }
  0xa1   : > { %v960_v20 = vrot.slane %v959_v0, 4  ;;  %752 = vst [vmem:[#allocation2 + $0x38] sm:$0x1] %v751_v15  ;;  %v970_v22 = vrot.slane %v969_v8, 4  ;;  %v974_v27 = vrot.slane %v972_v12, 5  ;;  %v1414_v28 = vsel %vm14151_vm5, %v11346_v1, %v1413_v50  ;;  %2565 = vmatpush.bf16.msrb.mxu2 %v13487_v41  ;;  %v13462_v41 = vld [vmem:[%s18116_s1 + $0x108] sm:$0xff] }
  0xa2   : > { %v481_v24 = vor.u32 %v479_v11, %v478_v19  ;;  %v483_v25 = vrot.slane %v478_v19, 4  ;;  %v754_v26 = vsel %vm14297_vm10, %v473_v17, %v753_v16  ;;  %v1417_v29 = vsel %vm14151_vm5, %v1415_v4, %v1416_v13  ;;  %2943 = vmatpush.bf16.msrb.mxu3 %v13495_v44 }
  0xa3   : > { %1561 = vmatmul.bf16.gmra.mxu2 %v1481_v54  ;;  %755 = vst [vmem:[#allocation2 + $0x3c] sm:$0xf] %v754_v26  ;;  %v374_v38 = vpack.c.bf16 %v342_v31, %v342_v31  ;;  %v1469_v39 = vunpack.c.l.b16 %v1414_v28  ;;  %v1470_v40 = vunpack.c.l.b16 %v1417_v29  ;;  %v965_v46 = vsel %vm14142_vm4, %v960_v20, %v14402_v55  ;;  %v345_v28 = vld [vmem:[%s14256_s9 + $0x68] sm:$0xff] }
  0xa4   : > { %v482_v33 = vsel %vm14314_vm12, %v474_v18, %v481_v24  ;;  %v758_v34 = vsel %vm14324_vm13, %v483_v25, %v757_v30  ;;  %v975_v47 = vsel %vm14142_vm4, %v970_v22, %v974_v27  ;;  %v1095_v55 = vunpack.c.l.b16 %v965_v46  ;;  %v760_v22 = vld [vmem:[#allocation2 + $0x48] sm:$0xf]  ;;  %v344_v27 = vld [vmem:[%s14256_s9 + $0x60] sm:$0xff]  ;;  %2121 = vmatpush.bf16.msrb.mxu0 %v13462_v41 }
  0xa5   : > { %v845_v32 = vld [vmem:[#allocation2 + $0x30] sm:$0xf]  ;;  %756 = vst [vmem:[#allocation2 + $0x40] sm:$0xf] %v482_v33  ;;  %v485_v60 = vshrl.u32 %v374_v38, 16  ;;  %v1096_v61 = vunpack.c.l.b16 %v975_v47  ;;  %v1482_v62 = vpack.c.b16 %v1470_v40, %v1469_v39  ;;  %v488_v8 = vshll.u32 %v374_v38, 16 }
  0xa6   : > { %1187 = vmatmul.bf16.gmra.mxu0 %v1107_v5  ;;  %v977_v36 = vshrl.u32 %v845_v32, 16  ;;  %v980_v37 = vshll.u32 %v845_v32, 16  ;;  %759 = vst [vmem:[#allocation2 + $0x44] sm:$0x1] %v758_v34  ;;  %v1367_v57 = vld [vmem:[#allocation2 + $0x30] sm:$0xe]  ;;  %v375_v13 = vpack.c.bf16 %v343_v58, %v343_v58  ;;  %v376_v46 = vpack.c.bf16 %v344_v27, %v344_v27  ;;  %2944 = vmatpush.bf16.msrb.mxu3 %v13494_v42 }
  0xa7   : > { %v846_v50 = vld [vmem:[#allocation2 + $0x34] sm:$0xf]  ;;  %v11347_v3 = vrot.slane %v1367_v57, 9  ;;  %v487_v7 = vrot.slane %v485_v60, 7  ;;  %v1108_v9 = vpack.c.b16 %v1096_v61, %v1095_v55  ;;  %v764_v38 = vld [vmem:[#allocation2 + $0x50] sm:$0x1]  ;;  %v377_v47 = vpack.c.bf16 %v345_v28, %v345_v28 }
  0xa8   : > { %v979_v51 = vrot.slane %v977_v36, 4  ;;  %v982_v52 = vrot.slane %v980_v37, 5  ;;  %v986_v53 = vshll.u32 %v846_v50, 16  ;;  %v990_v54 = vshrl.u32 %v846_v50, 16  ;;  %v873_v63 = vld [vmem:[#allocation2 + $0x38] sm:$0x1] }
  0xa9   : > { %v1420_v59 = vrot.slane %v846_v50, 5  ;;  %v1423_v4 = vrot.slane %v873_v63, 5  ;;  %v996_v10 = vshll.u32 %v873_v63, 16  ;;  %v13448_v15 = vld [vmem:[#allocation2 + $0x30] sm:$0xff]  ;;  %v490_v18 = vor.u32 %v488_v8, %v487_v7  ;;  %v771_v28 = vld [vmem:[#allocation2 + $0x5c] sm:$0x1] }
  0xaa   : > { %1755 = vmatmul.bf16.gmra.mxu3 %v13447_v21  ;;  %v983_v0 = vor.u32 %v982_v52, %v979_v51  ;;  %v988_v1 = vrot.slane %v986_v53, 5  ;;  %v992_v2 = vrot.slane %v990_v54, 4  ;;  %v847_v6 = vld [vmem:[#allocation2 + $0x3c] sm:$0xf]  ;;  %v13417_v20 = vld [vmem:[#allocation2 + $0x30] sm:$0xff]  ;;  %v493_v26 = vshrl.u32 %v375_v13, 16 }
  0xab   : > { %1337 = vmatmul.bf16.gmra.mxu1 %v13416_v23  ;;  %v1422_v5 = vrot.slane %v1420_v59, 4  ;;  %v1001_v14 = vshrl.u32 %v847_v6, 16  ;;  %v1421_v16 = vsel %vm14151_vm5, %v11347_v3, %v1420_v59  ;;  %v998_v19 = vrot.slane %v996_v10, 5  ;;  %v13471_v54 = vld [vmem:[%s18116_s1 + $0x150] sm:$0xff]  ;;  %v1368_v63 = vld [vmem:[#allocation2 + $0x3c] sm:$0xe] }
  0xac   : > { %v984_v11 = vrot.slane %v983_v0, 4  ;;  %v993_v12 = vor.u32 %v992_v2, %v988_v1  ;;  %v14444_v21 = vld [vmem:[#allocation2 + $0x40] sm:$0xf]  ;;  %v1004_v25 = vshll.u32 %v847_v6, 16  ;;  %v1471_v29 = vunpack.c.l.b16 %v1421_v16  ;;  %2370 = vmatpush.bf16.msrb.mxu1 %v13471_v54  ;;  %v767_v6 = vld [vmem:[#allocation2 + $0x54] sm:$0xf] }
  0xad   : > { %v1424_v17 = vsel %vm14151_vm5, %v1422_v5, %v1423_v4  ;;  %v1003_v31 = vrot.slane %v1001_v14, 4  ;;  %v496_v32 = vshll.u32 %v375_v13, 16  ;;  %v1010_v33 = vshll.u32 %v14444_v21, 16  ;;  %v874_v61 = vld [vmem:[#allocation2 + $0x44] sm:$0x1] }
  0xae   : > { %v989_v23 = vsel %vm14142_vm4, %v984_v11, %v988_v1  ;;  %v994_v24 = vrot.slane %v993_v12, 4  ;;  %v1472_v30 = vunpack.c.l.b16 %v1424_v17  ;;  %v491_v34 = vrot.slane %v487_v7, 4 }
  0xaf   : > { %v495_v36 = vrot.slane %v493_v26, 7  ;;  %v761_v37 = vsel %vm14297_vm10, %v490_v18, %v760_v22  ;;  %v1097_v39 = vunpack.c.l.b16 %v989_v23  ;;  %v1014_v40 = vshrl.u32 %v14444_v21, 16  ;;  %v13418_v23 = vld [vmem:[#allocation2 + $0x3c] sm:$0xff] }
  0xb0   : > { %762 = vst [vmem:[#allocation2 + $0x48] sm:$0xf] %v761_v37  ;;  %v999_v50 = vsel %vm14142_vm4, %v994_v24, %v998_v19  ;;  %v1006_v51 = vrot.slane %v1004_v25, 5  ;;  %v502_v56 = vshrl.u32 %v376_v46, 16  ;;  %v505_v57 = vshll.u32 %v376_v46, 16 }
  0xb1   : > { %v498_v52 = vor.u32 %v496_v32, %v495_v36  ;;  %v500_v53 = vrot.slane %v495_v36, 4  ;;  %v510_v59 = vshrl.u32 %v377_v47, 16  ;;  %v513_v60 = vshll.u32 %v377_v47, 16  ;;  %v347_v36 = vld [vmem:[%s14256_s9 + $0x78] sm:$0xff] }
  0xb2   : > { %v1483_v55 = vpack.c.b16 %v1472_v30, %v1471_v29  ;;  %v1098_v2 = vunpack.c.l.b16 %v999_v50  ;;  %v1016_v3 = vrot.slane %v1014_v40, 4  ;;  %v504_v58 = vrot.slane %v502_v56, 7  ;;  %v346_v29 = vld [vmem:[%s14256_s9 + $0x70] sm:$0xff]  ;;  %v13486_v40 = vld [vmem:[%s18116_s1 + $0x188] sm:$0xff] }
  0xb3   : > { %1566 = vmatmul.bf16.gmra.mxu2 %v1482_v62  ;;  %v14468_v62 = vrot.slane %v1010_v33, 5  ;;  %v499_v0 = vsel %vm14314_vm12, %v491_v34, %v498_v52  ;;  %v765_v1 = vsel %vm14324_vm13, %v500_v53, %v764_v38  ;;  %v512_v5 = vrot.slane %v510_v59, 7  ;;  %v13470_v50 = vld [vmem:[%s18116_s1 + $0x148] sm:$0xff] }
  0xb4   : > { %763 = vst [vmem:[#allocation2 + $0x4c] sm:$0xf] %v499_v0  ;;  %v1427_v4 = vrot.slane %v14444_v21, 5  ;;  %v507_v7 = vor.u32 %v505_v57, %v504_v58  ;;  %v508_v8 = vrot.slane %v504_v58, 4  ;;  %v1007_v10 = vor.u32 %v1006_v51, %v1003_v31  ;;  %2566 = vmatpush.bf16.msrb.mxu2 %v13486_v40  ;;  %2371 = vmatpush.bf16.msrb.mxu1 %v13470_v50  ;;  %v13469_v40 = vld [vmem:[%s18116_s1 + $0x140] sm:$0xff] }
  0xb5   : > { %766 = vst [vmem:[#allocation2 + $0x50] sm:$0x1] %v765_v1  ;;  %v1020_v11 = vshll.u32 %v874_v61, 16  ;;  %v11348_v12 = vrot.slane %v1368_v63, 9  ;;  %v1109_v13 = vpack.c.b16 %v1098_v2, %v1097_v39  ;;  %v1017_v14 = vor.u32 %v1016_v3, %v14468_v62 }
  0xb6   : > { %1192 = vmatmul.bf16.gmra.mxu0 %v1108_v9  ;;  %v515_v9 = vor.u32 %v513_v60, %v512_v5  ;;  %v768_v16 = vsel %vm14297_vm10, %v507_v7, %v767_v6  ;;  %v1429_v17 = vrot.slane %v1427_v4, 4  ;;  %v1430_v18 = vrot.slane %v874_v61, 5 }
  0xb7   : > { %769 = vst [vmem:[#allocation2 + $0x54] sm:$0xf] %v768_v16  ;;  %v1008_v19 = vrot.slane %v1007_v10, 4  ;;  %v1018_v21 = vrot.slane %v1017_v14, 4  ;;  %v1022_v22 = vrot.slane %v1020_v11, 5  ;;  %v1428_v24 = vsel %vm14151_vm5, %v11348_v12, %v1427_v4 }
  0xb8   : > { %v849_v25 = vld [vmem:[#allocation2 + $0x48] sm:$0xf]  ;;  %v1431_v26 = vsel %vm14151_vm5, %v1429_v17, %v1430_v18  ;;  %v517_v27 = vrot.slane %v512_v5, 4  ;;  %v1473_v32 = vunpack.c.l.b16 %v1428_v24  ;;  %v378_v44 = vpack.c.bf16 %v346_v29, %v346_v29  ;;  %v774_v4 = vld [vmem:[#allocation2 + $0x60] sm:$0xf]  ;;  %2372 = vmatpush.bf16.msrb.mxu1 %v13469_v40 }
  0xb9   : > { %v1013_v31 = vsel %vm14142_vm4, %v1008_v19, %v14468_v62  ;;  %v1025_v33 = vshrl.u32 %v849_v25, 16  ;;  %v1023_v37 = vsel %vm14142_vm4, %v1018_v21, %v1022_v22  ;;  %v1474_v38 = vunpack.c.l.b16 %v1431_v26  ;;  %v1369_v62 = vld [vmem:[#allocation2 + $0x48] sm:$0xe] }
  0xba   : > { %1760 = vmatmul.bf16.gmra.mxu3 %v13448_v15  ;;  %v516_v15 = vsel %vm14314_vm12, %v508_v8, %v515_v9  ;;  %v772_v34 = vsel %vm14324_vm13, %v517_v27, %v771_v28  ;;  %v1028_v39 = vshll.u32 %v849_v25, 16  ;;  %v379_v51 = vpack.c.bf16 %v347_v36, %v347_v36  ;;  %v1178_v36 = vpop.f32.mrf.mxu0 }
  0xbb   : > { %1342 = vmatmul.bf16.gmra.mxu1 %v13417_v20  ;;  %770 = vst [vmem:[#allocation2 + $0x58] sm:$0xf] %v516_v15  ;;  %v13449_v20 = vld [vmem:[#allocation2 + $0x3c] sm:$0xff]  ;;  %v14485_v30 = vld [vmem:[#allocation2 + $0x4c] sm:$0xf]  ;;  %v1099_v52 = vunpack.c.l.b16 %v1013_v31  ;;  %v1100_v53 = vunpack.c.l.b16 %v1023_v37  ;;  %v519_v54 = vshrl.u32 %v378_v44, 16  ;;  %v1484_v57 = vpack.c.b16 %v1474_v38, %v1473_v32  ;;  %v1323_v37 = vpop.f32.mrf.mxu1 }
  0xbc   : > { %773 = vst [vmem:[#allocation2 + $0x5c] sm:$0x1] %v772_v34  ;;  %v1034_v46 = vshll.u32 %v14485_v30, 16  ;;  %v1038_v47 = vshrl.u32 %v14485_v30, 16  ;;  %v522_v56 = vshll.u32 %v378_v44, 16  ;;  %v1027_v59 = vrot.slane %v1025_v33, 4 }
  0xbd   : > { %v1030_v60 = vrot.slane %v1028_v39, 5  ;;  %v1434_v63 = vrot.slane %v14485_v30, 5  ;;  %v521_v0 = vrot.slane %v519_v54, 7  ;;  %v875_v1 = vld [vmem:[#allocation2 + $0x50] sm:$0x1]  ;;  %v527_v2 = vshrl.u32 %v379_v51, 16 }
  0xbe   : > { %v1040_v61 = vrot.slane %v1038_v47, 4  ;;  %v530_v3 = vshll.u32 %v379_v51, 16  ;;  %v1110_v58 = vpack.c.b16 %v1100_v53, %v1099_v52  ;;  %v11349_v7 = vrot.slane %v1369_v62, 9  ;;  %v851_v16 = vld [vmem:[#allocation2 + $0x54] sm:$0xf]  ;;  %v13450_v18 = vld [vmem:[#allocation2 + $0x48] sm:$0xff] }
  0xbf   : > { %v524_v5 = vor.u32 %v522_v56, %v521_v0  ;;  %v1031_v6 = vor.u32 %v1030_v60, %v1027_v59  ;;  %v525_v8 = vrot.slane %v521_v0, 4  ;;  %v14510_v9 = vrot.slane %v527_v2, 7  ;;  %v13485_v32 = vld [vmem:[%s18116_s1 + $0x180] sm:$0xff]  ;;  %v1370_v60 = vld [vmem:[#allocation2 + $0x54] sm:$0xe] }
  0xc0   : > { %v1044_v11 = vshll.u32 %v875_v1, 16  ;;  %v1436_v12 = vrot.slane %v1434_v63, 4  ;;  %v1435_v24 = vsel %vm14151_vm5, %v11349_v7, %v1434_v63  ;;  %v1049_v26 = vshrl.u32 %v851_v16, 16  ;;  %v13461_v33 = vld [vmem:[%s18116_s1 + $0x100] sm:$0xff]  ;;  %2567 = vmatpush.bf16.msrb.mxu2 %v13485_v32 }
  0xc1   : > { %v532_v14 = vor.u32 %v530_v3, %v14510_v9  ;;  %v775_v15 = vsel %vm14297_vm10, %v524_v5, %v774_v4  ;;  %v1032_v19 = vrot.slane %v1031_v6, 4  ;;  %v1052_v27 = vshll.u32 %v851_v16, 16  ;;  %v13493_v34 = vld [vmem:[%s18116_s1 + $0x1c0] sm:$0xff]  ;;  %2122 = vmatpush.bf16.msrb.mxu0 %v13461_v33  ;;  %v1802_v5 = vld [vmem:[#allocation2 + $0xc] sm:$0xf] }
  0xc2   : > { %v852_v17 = vld [vmem:[#allocation2 + $0x58] sm:$0xf]  ;;  %776 = vst [vmem:[#allocation2 + $0x60] sm:$0xf] %v775_v15  ;;  %v1475_v30 = vunpack.c.l.b16 %v1435_v24  ;;  %v1324_v41 = vadd.f32 %v1323_v37, %v1178_v36  ;;  %v1051_v42 = vrot.slane %v1049_v26, 4  ;;  %2945 = vmatpush.bf16.msrb.mxu3 %v13493_v34  ;;  %v1827_v15 = vshrl.u32 %v1802_v5, 16  ;;  %v1552_v26 = vpop.f32.mrf.mxu2 }
  0xc3   : > { %1571 = vmatmul.bf16.gmra.mxu2 %v1483_v55  ;;  %v1036_v55 = vrot.slane %v1034_v46, 5  ;;  %v533_v21 = vsel %vm14314_vm12, %v525_v8, %v532_v14  ;;  %v1058_v28 = vshll.u32 %v852_v17, 16  ;;  %v1062_v29 = vshrl.u32 %v852_v17, 16  ;;  %v876_v50 = vld [vmem:[#allocation2 + $0x5c] sm:$0x1]  ;;  %v13451_v3 = vld [vmem:[#allocation2 + $0x54] sm:$0xff] }
  0xc4   : > { %777 = vst [vmem:[#allocation2 + $0x64] sm:$0xf] %v533_v21  ;;  %v1054_v44 = vrot.slane %v1052_v27, 5  ;;  %v1441_v54 = vrot.slane %v852_v17, 5  ;;  %v1068_v59 = vshll.u32 %v876_v50, 16  ;;  %v1444_v63 = vrot.slane %v876_v50, 5 }
  0xc5   : > { %v1041_v10 = vor.u32 %v1040_v61, %v1036_v55  ;;  %v1037_v38 = vsel %vm14142_vm4, %v1032_v19, %v1036_v55  ;;  %v1060_v46 = vrot.slane %v1058_v28, 5  ;;  %v1064_v47 = vrot.slane %v1062_v29, 4  ;;  %v1803_v4 = vld [vmem:[#allocation2 + $0x10] sm:$0xf]  ;;  %v1804_v14 = vld [vmem:[#allocation2 + $0x14] sm:$0x1] }
  0xc6   : > { %1197 = vmatmul.bf16.gmra.mxu0 %v1109_v13  ;;  %v1437_v13 = vrot.slane %v875_v1, 5  ;;  %v1101_v51 = vunpack.c.l.b16 %v1037_v38  ;;  %v1055_v56 = vor.u32 %v1054_v44, %v1051_v42  ;;  %v11350_v61 = vrot.slane %v1370_v60, 9  ;;  %v13508_v24 = vld [vmem:[%s18116_s1 + $0x238] sm:$0xff] }
  0xc7   : > { %v1042_v22 = vrot.slane %v1041_v10, 4  ;;  %v1443_v62 = vrot.slane %v1441_v54, 4  ;;  %v1070_v2 = vrot.slane %v1068_v59, 5  ;;  %v2214_v8 = vrot.slane %v1803_v4, 5  ;;  %v2625_v10 = vld [vmem:[#allocation2 + $0x18] sm:$0xf]  ;;  %3188 = vmatpush.bf16.msra.mxu0 %v13508_v24 }
  0xc8   : > { %v1438_v25 = vsel %vm14151_vm5, %v1436_v12, %v1437_v13  ;;  %v1056_v0 = vrot.slane %v1055_v56, 4  ;;  %v1442_v6 = vsel %vm14151_vm5, %v11350_v61, %v1441_v54  ;;  %v2180_v13 = vld [vmem:[#allocation2 + $0xc] sm:$0xe]  ;;  %v1830_v16 = vshll.u32 %v1802_v5, 16  ;;  %v13532_v44 = vld [vmem:[%s18116_s1 + $0x78] sm:$0xff] }
  0xc9   : > { %v1476_v31 = vunpack.c.l.b16 %v1438_v25  ;;  %v1445_v7 = vsel %vm14151_vm5, %v1443_v62, %v1444_v63  ;;  %v1836_v17 = vshll.u32 %v1803_v4, 16  ;;  %v1477_v19 = vunpack.c.l.b16 %v1442_v6  ;;  %v13540_v25 = vld [vmem:[%s18116_s1 + $0xb8] sm:$0xff]  ;;  %3851 = vmatpush.bf16.msra.mxu1 %v13532_v44 }
  0xca   : > { %1765 = vmatmul.bf16.gmra.mxu3 %v13449_v20  ;;  %v13419_v20 = vld [vmem:[#allocation2 + $0x48] sm:$0xff]  ;;  %v2650_v21 = vshrl.u32 %v2625_v10, 16  ;;  %v11527_v27 = vrot.slane %v2180_v13, 9  ;;  %v2216_v28 = vrot.slane %v2214_v8, 4  ;;  %v2217_v29 = vrot.slane %v1804_v14, 5 }
  0xcb   : > { %1347 = vmatmul.bf16.gmra.mxu1 %v13418_v23  ;;  %v1046_v23 = vrot.slane %v1044_v11, 5  ;;  %v1485_v53 = vpack.c.b16 %v1476_v31, %v1475_v30  ;;  %v1061_v11 = vsel %vm14142_vm4, %v1056_v0, %v1060_v46  ;;  %v2626_v30 = vld [vmem:[#allocation2 + $0x1c] sm:$0xf]  ;;  %v14554_v31 = vadd.f32 %v1552_v26, %v1324_v41  ;;  %4221 = vmatpush.bf16.msra.mxu3 %v13540_v25  ;;  %v1805_v0 = vld [vmem:[#allocation2 + $0x18] sm:$0xf] }
  0xcc   : > { %v1103_v32 = vunpack.c.l.b16 %v1061_v11  ;;  %v1829_v34 = vrot.slane %v1827_v15, 4  ;;  %v1832_v36 = vrot.slane %v1830_v16, 5  ;;  %v14556_v37 = vrot.slane %v1836_v17, 5  ;;  %v2181_v13 = vld [vmem:[#allocation2 + $0x18] sm:$0xe] }
  0xcd   : > { %v1047_v39 = vsel %vm14142_vm4, %v1042_v22, %v1046_v23  ;;  %v2653_v22 = vshll.u32 %v2625_v10, 16  ;;  %v13524_v23 = vld [vmem:[%s18116_s1 + $0x38] sm:$0xff]  ;;  %v2659_v40 = vshll.u32 %v2626_v30, 16  ;;  %v2663_v42 = vshrl.u32 %v2626_v30, 16  ;;  %v2628_v15 = vld [vmem:[#allocation2 + $0x24] sm:$0xf] }
  0xce   : > { %v1102_v52 = vunpack.c.l.b16 %v1047_v39  ;;  %3996 = vmatpush.bf16.msra.mxu2 %v13524_v23  ;;  %v2215_v41 = vsel %vm14151_vm5, %v11527_v27, %v2214_v8  ;;  %v1846_v54 = vshll.u32 %v1804_v14, 16  ;;  %v1851_v8 = vshrl.u32 %v1805_v0, 16  ;;  %v1807_v14 = vld [vmem:[#allocation2 + $0x20] sm:$0x1]  ;;  %v2629_v16 = vld [vmem:[#allocation2 + $0x28] sm:$0xf] }
  0xcf   : > { %v2655_v50 = vrot.slane %v2653_v22, 5  ;;  %v2285_v56 = vunpack.c.l.b16 %v2215_v41  ;;  %v2661_v59 = vrot.slane %v2659_v40, 5  ;;  %v2665_v60 = vrot.slane %v2663_v42, 4  ;;  %v13507_v22 = vld [vmem:[%s18116_s1 + $0x230] sm:$0xff]  ;;  %v13477_v42 = vld [vmem:[#allocation2 + $0x18] sm:$0xff] }
  0xd0   : > { %v1111_v55 = vpack.c.b16 %v1102_v52, %v1101_v51  ;;  %v1833_v52 = vor.u32 %v1832_v36, %v1829_v34  ;;  %v1848_v63 = vrot.slane %v1846_v54, 5  ;;  %v1854_v10 = vshll.u32 %v1805_v0, 16  ;;  %v13539_v23 = vld [vmem:[%s18116_s1 + $0xb0] sm:$0xff]  ;;  %3189 = vmatpush.bf16.msra.mxu0 %v13507_v22  ;;  %v1808_v0 = vld [vmem:[#allocation2 + $0x24] sm:$0xf] }
  0xd1   : > { %v2666_v5 = vor.u32 %v2665_v60, %v2661_v59  ;;  %v11528_v25 = vrot.slane %v2181_v13, 9  ;;  %v2224_v27 = vrot.slane %v1807_v14, 5  ;;  %v2683_v30 = vshll.u32 %v2629_v16, 16  ;;  %4222 = vmatpush.bf16.msra.mxu3 %v13539_v23  ;;  %v13531_v41 = vld [vmem:[%s18116_s1 + $0x70] sm:$0xff]  ;;  %v1810_v23 = vld [vmem:[#allocation2 + $0x2c] sm:$0x1] }
  0xd2   : > { %v1834_v62 = vrot.slane %v1833_v52, 4  ;;  %v1853_v34 = vrot.slane %v1851_v8, 4  ;;  %v1856_v36 = vrot.slane %v1854_v10, 5  ;;  %3852 = vmatpush.bf16.msra.mxu1 %v13531_v41  ;;  %v1870_v60 = vshll.u32 %v1807_v14, 16  ;;  %v2631_v13 = vld [vmem:[#allocation2 + $0x30] sm:$0xf] }
  0xd3   : > { %1576 = vmatmul.bf16.gmra.mxu2 %v1484_v57  ;;  %v1065_v57 = vor.u32 %v1064_v47, %v1060_v46  ;;  %v2218_v46 = vsel %vm14151_vm5, %v2216_v28, %v2217_v29  ;;  %v2652_v47 = vrot.slane %v2650_v21, 4  ;;  %v13523_v21 = vld [vmem:[%s18116_s1 + $0x30] sm:$0xff]  ;;  %v2674_v28 = vshrl.u32 %v2628_v15, 16 }
  0xd4   : > { %v1839_v17 = vsel %vm14142_vm4, %v1834_v62, %v14556_v37  ;;  %v2677_v29 = vshll.u32 %v2628_v15, 16  ;;  %3997 = vmatpush.bf16.msra.mxu2 %v13523_v21  ;;  %v1875_v10 = vshrl.u32 %v1808_v0, 16  ;;  %v14601_v21 = vpop.f32.mrf.mxu0 }
  0xd5   : > { %v1066_v1 = vrot.slane %v1065_v57, 4  ;;  %v2286_v57 = vunpack.c.l.b16 %v2218_v46  ;;  %v2656_v61 = vor.u32 %v2655_v50, %v2652_v47 }
  0xd6   : > { %1202 = vmatmul.bf16.gmra.mxu0 %v1110_v58  ;;  %v13420_v58 = vld [vmem:[#allocation2 + $0x54] sm:$0xff]  ;;  %v2679_v52 = vrot.slane %v2677_v29, 5 }
  0xd7   : > { %v1071_v12 = vsel %vm14142_vm4, %v1066_v1, %v1070_v2  ;;  %v1806_v1 = vld [vmem:[#allocation2 + $0x1c] sm:$0xf]  ;;  %v13452_v2 = vld [vmem:[#allocation2 + $0x60] sm:$0xff]  ;;  %v2657_v6 = vrot.slane %v2656_v61, 4 }
  0xd8   : > { %v1104_v33 = vunpack.c.l.b16 %v1071_v12  ;;  %v1860_v11 = vshll.u32 %v1806_v1, 16  ;;  %v1864_v12 = vshrl.u32 %v1806_v1, 16 }
  0xd9   : > { %v2662_v24 = vsel %vm14142_vm4, %v2657_v6, %v2661_v59 }
  0xda   : > { %1770 = vmatmul.bf16.gmra.mxu3 %v13450_v18  ;;  %v1840_v18 = vshrl.u32 %v1803_v4, 16  ;;  %v1112_v51 = vpack.c.b16 %v1104_v33, %v1103_v32  ;;  %v2687_v32 = vshrl.u32 %v2629_v16, 16  ;;  %v14582_v33 = vpop.f32.mrf.mxu1  ;;  %v2858_v46 = vunpack.c.l.b16 %v2662_v24  ;;  %v2632_v24 = vld [vmem:[#allocation2 + $0x34] sm:$0xf] }
  0xdb   : > { %1352 = vmatmul.bf16.gmra.mxu1 %v13419_v20  ;;  %v1478_v20 = vunpack.c.l.b16 %v1445_v7  ;;  %v2221_v7 = vrot.slane %v1806_v1, 5  ;;  %v1809_v1 = vld [vmem:[#allocation2 + $0x28] sm:$0xf]  ;;  %v2711_v41 = vshrl.u32 %v2632_v24, 16 }
  0xdc   : > { %v1842_v38 = vrot.slane %v1840_v18, 4  ;;  %v2689_v54 = vrot.slane %v2687_v32, 4  ;;  %v1888_v15 = vshrl.u32 %v1809_v1, 16  ;;  %v2228_v16 = vrot.slane %v1809_v1, 5  ;;  %v13522_v32 = vld [vmem:[%s18116_s1 + $0x28] sm:$0xff] }
  0xdd   : > { %v1486_v39 = vpack.c.b16 %v1478_v20, %v1477_v19  ;;  %v2667_v19 = vrot.slane %v2666_v5, 4  ;;  %v2223_v26 = vrot.slane %v2221_v7, 4  ;;  %v2222_v47 = vsel %vm14151_vm5, %v11528_v25, %v2221_v7  ;;  %3998 = vmatpush.bf16.msra.mxu2 %v13522_v32 }
  0xde   : > { %v2287_v62 = vunpack.c.l.b16 %v2222_v47  ;;  %v1872_v7 = vrot.slane %v1870_v60, 5  ;;  %v2698_v25 = vshrl.u32 %v2631_v13, 16 }
  0xdf   : > { %v2225_v50 = vsel %vm14151_vm5, %v2223_v26, %v2224_v27  ;;  %v2701_v26 = vshll.u32 %v2631_v13, 16 }
  0xe1   : > { %v2703_v60 = vrot.slane %v2701_v26, 5 }
  0xe3   : > { %1581 = vmatmul.bf16.gmra.mxu2 %v1485_v53  ;;  %v1843_v53 = vor.u32 %v1842_v38, %v14556_v37  ;;  %v14584_v37 = vrot.slane %v1860_v11, 5  ;;  %v1866_v38 = vrot.slane %v1864_v12, 4  ;;  %v1878_v11 = vshll.u32 %v1808_v0, 16  ;;  %v2633_v0 = vld [vmem:[#allocation2 + $0x38] sm:$0x1] }
  0xe4   : > { %v1884_v12 = vshll.u32 %v1809_v1, 16 }
  0xe5   : > { %v1867_v59 = vor.u32 %v1866_v38, %v14584_v37  ;;  %v1880_v29 = vrot.slane %v1878_v11, 5  ;;  %v1890_v38 = vrot.slane %v1888_v15, 4  ;;  %v2717_v15 = vshll.u32 %v2633_v0, 16 }
  0xe6   : > { %1207 = vmatmul.bf16.gmra.mxu0 %v1111_v55  ;;  %v2627_v55 = vld [vmem:[#allocation2 + $0x20] sm:$0x1] }
  0xe7   : > { %v2669_v4 = vshll.u32 %v2627_v55, 16  ;;  %v2630_v55 = vld [vmem:[#allocation2 + $0x2c] sm:$0x1]  ;;  %v1868_v6 = vrot.slane %v1867_v59, 4  ;;  %v2700_v59 = vrot.slane %v2698_v25, 4 }
  0xe8   : > { %v2634_v25 = vld [vmem:[#allocation2 + $0x3c] sm:$0xf] }
  0xe9   : > { %v2671_v20 = vrot.slane %v2669_v4, 5  ;;  %v1873_v27 = vsel %vm14142_vm4, %v1868_v6, %v1872_v7  ;;  %v2704_v7 = vor.u32 %v2703_v60, %v2700_v59 }
  0xea   : > { %1775 = vmatmul.bf16.gmra.mxu3 %v13451_v3  ;;  %v1844_v3 = vrot.slane %v1843_v53, 4  ;;  %v14595_v53 = vrot.slane %v2683_v30, 5  ;;  %v14608_v30 = vrot.slane %v1884_v12, 5 }
  0xeb   : > { %1357 = vmatmul.bf16.gmra.mxu1 %v13420_v58  ;;  %v2301_v58 = vpack.c.b16 %v2286_v57, %v2285_v56  ;;  %v2672_v44 = vsel %vm14142_vm4, %v2667_v19, %v2671_v20  ;;  %v1857_v57 = vor.u32 %v1856_v36, %v1853_v34  ;;  %v2182_v20 = vld [vmem:[#allocation2 + $0x24] sm:$0xe]  ;;  %v13506_v34 = vld [vmem:[%s18116_s1 + $0x228] sm:$0xff] }
  0xec   : > { %v1849_v18 = vsel %vm14142_vm4, %v1844_v3, %v1848_v63  ;;  %v2859_v56 = vunpack.c.l.b16 %v2672_v44  ;;  %v2288_v63 = vunpack.c.l.b16 %v2225_v50  ;;  %v2690_v3 = vor.u32 %v2689_v54, %v14595_v53  ;;  %v13538_v36 = vld [vmem:[%s18116_s1 + $0xa8] sm:$0xff]  ;;  %3190 = vmatpush.bf16.msra.mxu0 %v13506_v34  ;;  %v2635_v34 = vld [vmem:[#allocation2 + $0x40] sm:$0xf] }
  0xed   : > { %v2036_v40 = vunpack.c.l.b16 %v1849_v18  ;;  %v1858_v4 = vrot.slane %v1857_v57, 4  ;;  %v2707_v44 = vshll.u32 %v2632_v24, 16  ;;  %v2038_v50 = vunpack.c.l.b16 %v1873_v27  ;;  %4223 = vmatpush.bf16.msra.mxu3 %v13538_v36 }
  0xee   : > { %v2874_v5 = vpack.c.b16 %v2859_v56, %v2858_v46  ;;  %v2302_v8 = vpack.c.b16 %v2288_v63, %v2287_v62  ;;  %v2691_v18 = vrot.slane %v2690_v3, 4  ;;  %v13478_v56 = vld [vmem:[#allocation2 + $0x24] sm:$0xff]  ;;  %v1891_v62 = vor.u32 %v1890_v38, %v14608_v30 }
  0xef   : > { %v1863_v22 = vsel %vm14142_vm4, %v1858_v4, %v14584_v37  ;;  %v14619_v37 = vpop.f32.mrf.mxu2  ;;  %v14639_v1 = vrot.slane %v2707_v44, 5  ;;  %v2735_v60 = vshrl.u32 %v2635_v34, 16 }
  0xf0   : > { %v2037_v47 = vunpack.c.l.b16 %v1863_v22  ;;  %v1892_v12 = vrot.slane %v1891_v62, 4  ;;  %v13537_v62 = vld [vmem:[%s18116_s1 + $0xa0] sm:$0xff] }
  0xf1   : > { %4224 = vmatpush.bf16.msra.mxu3 %v13537_v62  ;;  %v2638_v62 = vld [vmem:[#allocation2 + $0x4c] sm:$0xf] }
  0xf3   : > { %1586 = vmatmul.bf16.gmra.mxu2 %v1486_v39  ;;  %v2035_v39 = vunpack.c.l.b16 %v1839_v17 }
  0xf5   : > { %v2051_v61 = vpack.c.b16 %v2036_v40, %v2035_v39  ;;  %v11529_v39 = vrot.slane %v2182_v20, 9  ;;  %v2230_v40 = vrot.slane %v2228_v16, 4 }
  0xf6   : > { %1212 = vmatmul.bf16.gmra.mxu0 %v1112_v51  ;;  %v2676_v51 = vrot.slane %v2674_v28, 4  ;;  %v1877_v28 = vrot.slane %v1875_v10, 4 }
  0xf7   : > { %v2229_v63 = vsel %vm14151_vm5, %v11529_v39, %v2228_v16  ;;  %v2719_v39 = vrot.slane %v2717_v15, 5 }
  0xf8   : > { %v1881_v57 = vor.u32 %v1880_v29, %v1877_v28  ;;  %v2289_v4 = vunpack.c.l.b16 %v2229_v63  ;;  %v2705_v28 = vrot.slane %v2704_v7, 4  ;;  %v2183_v29 = vld [vmem:[#allocation2 + $0x30] sm:$0xe] }
  0xfa   : > { %1780 = vmatmul.bf16.gmra.mxu3 %v13452_v2  ;;  %v2680_v2 = vor.u32 %v2679_v52, %v2676_v51  ;;  %v1882_v11 = vrot.slane %v1881_v57, 4  ;;  %v2710_v0 = vsel %vm14142_vm4, %v2705_v28, %v14639_v1 }
  0xfb   : > { %2373 = vmatmul.bf16.vlgmr.msrb.gmra.mxu1 %v2301_v58  ;;  %v2693_v58 = vshll.u32 %v2630_v55, 16  ;;  %v13530_v55 = vld [vmem:[%s18116_s1 + $0x68] sm:$0xff] }
  0xfc   : > { %v2681_v17 = vrot.slane %v2680_v2, 4  ;;  %v2713_v2 = vrot.slane %v2711_v41, 4  ;;  %3853 = vmatpush.bf16.msra.mxu1 %v13530_v55  ;;  %v2722_v41 = vshrl.u32 %v2634_v25, 16  ;;  %v13505_v55 = vld [vmem:[%s18116_s1 + $0x220] sm:$0xff] }
  0xfd   : > { %v2695_v19 = vrot.slane %v2693_v58, 5  ;;  %3191 = vmatpush.bf16.msra.mxu0 %v13505_v55 }
  0xfe   : > { %v2686_v51 = vsel %vm14142_vm4, %v2681_v17, %v14595_v53  ;;  %v1894_v53 = vshll.u32 %v1810_v23, 16  ;;  %v2714_v17 = vor.u32 %v2713_v2, %v14639_v1 }
  0xff   : > { %v2696_v52 = vsel %vm14142_vm4, %v2691_v18, %v2695_v19  ;;  %v2860_v3 = vunpack.c.l.b16 %v2686_v51  ;;  %v1812_v18 = vld [vmem:[#allocation2 + $0x34] sm:$0xf] }
 0x100   : > { %v2861_v58 = vunpack.c.l.b16 %v2696_v52  ;;  %v1896_v13 = vrot.slane %v1894_v53, 5  ;;  %v2235_v32 = vrot.slane %v1812_v18, 5  ;;  %v1912_v44 = vshrl.u32 %v1812_v18, 16 }
 0x101   : > { %v11530_v52 = vrot.slane %v2183_v29, 9 }
 0x102   : > { %v2875_v20 = vpack.c.b16 %v2861_v58, %v2860_v3  ;;  %v1897_v38 = vsel %vm14142_vm4, %v1892_v12, %v1896_v13  ;;  %v2237_v57 = vrot.slane %v2235_v32, 4  ;;  %v1914_v58 = vrot.slane %v1912_v44, 4  ;;  %v13479_v13 = vld [vmem:[#allocation2 + $0x30] sm:$0xff] }
 0x103   : > { %2568 = vmatmul.bf16.vlgmr.msrb.gmra.mxu2 %v13477_v42  ;;  %v2231_v42 = vrot.slane %v1810_v23, 5 }
 0x106   : > { %2123 = vmatmul.bf16.vlgmr.msrb.gmra.mxu0 %v2051_v61 }
 0x108   : > { %v14599_v14 = vpop.f32.mrf.mxu1 }
 0x10a   : > { %2946 = vmatmul.bf16.vlgmr.msrb.gmra.mxu3 %v2874_v5  ;;  %v2052_v5 = vpack.c.b16 %v2038_v50, %v2037_v47  ;;  %v1813_v47 = vld [vmem:[#allocation2 + $0x38] sm:$0x1] }
 0x10b   : > { %2378 = vmatmul.bf16.gmra.mxu1 %v2302_v8  ;;  %v1811_v8 = vld [vmem:[#allocation2 + $0x30] sm:$0xf]  ;;  %v2238_v59 = vrot.slane %v1813_v47, 5 }
 0x10c   : > { %v1899_v23 = vshrl.u32 %v1811_v8, 16  ;;  %v1902_v24 = vshll.u32 %v1811_v8, 16 }
 0x10d   : > { %v1746_v46 = vpop.f32.mrf.mxu3  ;;  %v2239_v15 = vsel %vm14151_vm5, %v2237_v57, %v2238_v59  ;;  %v2637_v59 = vld [vmem:[#allocation2 + $0x48] sm:$0xf] }
 0x10e   : > { %v14627_v54 = vadd.f32 %v1746_v46, %v14554_v31  ;;  %v2232_v31 = vsel %vm14151_vm5, %v2230_v40, %v2231_v42  ;;  %v1908_v40 = vshll.u32 %v1812_v18, 16  ;;  %v2715_v42 = vrot.slane %v2714_v17, 4  ;;  %v13529_v18 = vld [vmem:[%s18116_s1 + $0x60] sm:$0xff] }
 0x10f   : > { %v2290_v6 = vunpack.c.l.b16 %v2232_v31  ;;  %v2725_v46 = vshll.u32 %v2634_v25, 16  ;;  %v1901_v50 = vrot.slane %v1899_v23, 4  ;;  %v1904_v51 = vrot.slane %v1902_v24, 5  ;;  %3854 = vmatpush.bf16.msra.mxu1 %v13529_v18  ;;  %v13504_v18 = vld [vmem:[%s18116_s1 + $0x218] sm:$0xff] }
 0x110   : > { %v14632_v61 = vpop.f32.mrf.mxu1  ;;  %v2040_v31 = vunpack.c.l.b16 %v1897_v38  ;;  %v14662_v2 = vrot.slane %v1908_v40, 5  ;;  %v2720_v8 = vsel %vm14142_vm4, %v2715_v42, %v2719_v39  ;;  %v2737_v17 = vrot.slane %v2735_v60, 4  ;;  %3192 = vmatpush.bf16.msra.mxu0 %v13504_v18 }
 0x111   : > { %v2303_v27 = vpack.c.b16 %v2290_v6, %v2289_v4  ;;  %v2727_v4 = vrot.slane %v2725_v46, 5  ;;  %v2863_v23 = vunpack.c.l.b16 %v2720_v8  ;;  %v1918_v25 = vshll.u32 %v1813_v47, 16  ;;  %v1815_v46 = vld [vmem:[#allocation2 + $0x40] sm:$0xf]  ;;  %v1816_v8 = vld [vmem:[#allocation2 + $0x44] sm:$0x1] }
 0x112   : > { %v1915_v24 = vor.u32 %v1914_v58, %v14662_v2  ;;  %v2292_v29 = vunpack.c.l.b16 %v2239_v15  ;;  %v2242_v55 = vrot.slane %v1815_v46, 5  ;;  %v2184_v58 = vld [vmem:[#allocation2 + $0x3c] sm:$0xe] }
 0x113   : > { %2573 = vmatmul.bf16.gmra.mxu2 %v13478_v56  ;;  %v1183_v10 = vpop.f32.mrf.mxu0  ;;  %v2731_v56 = vshll.u32 %v2635_v34, 16  ;;  %v1920_v44 = vrot.slane %v1918_v25, 5 }
 0x114   : > { %v1329_v16 = vadd.f32 %v14599_v14, %v1183_v10  ;;  %v1887_v14 = vsel %vm14142_vm4, %v1882_v11, %v14608_v30  ;;  %v13521_v30 = vld [vmem:[%s18116_s1 + $0x20] sm:$0xff]  ;;  %v1905_v10 = vor.u32 %v1904_v51, %v1901_v50  ;;  %v2236_v11 = vsel %vm14151_vm5, %v11530_v52, %v2235_v32 }
 0x115   : > { %v14643_v19 = vpop.f32.mrf.mxu3  ;;  %v2039_v63 = vunpack.c.l.b16 %v1887_v14  ;;  %3999 = vmatpush.bf16.msra.mxu2 %v13521_v30  ;;  %v14669_v12 = vrot.slane %v2731_v56, 5  ;;  %v2291_v28 = vunpack.c.l.b16 %v2236_v11  ;;  %v1916_v42 = vrot.slane %v1915_v24, 4 }
 0x116   : > { %v1557_v22 = vpop.f32.mrf.mxu2  ;;  %2128 = vmatmul.bf16.gmra.mxu0 %v2052_v5  ;;  %v2724_v5 = vrot.slane %v2722_v41, 4  ;;  %v1814_v41 = vld [vmem:[#allocation2 + $0x3c] sm:$0xf]  ;;  %v2759_v11 = vshrl.u32 %v2638_v62, 16  ;;  %v2244_v15 = vrot.slane %v2242_v55, 4 }
 0x117   : > { %v1594_v26 = vadd.f32 %v1557_v22, %v1329_v16  ;;  %v2636_v16 = vld [vmem:[#allocation2 + $0x44] sm:$0x1]  ;;  %v2053_v34 = vpack.c.b16 %v2040_v31, %v2039_v63  ;;  %v2738_v14 = vor.u32 %v2737_v17, %v14669_v12  ;;  %v2304_v52 = vpack.c.b16 %v2292_v29, %v2291_v28  ;;  %v13520_v17 = vld [vmem:[%s18116_s1 + $0x18] sm:$0xff] }
 0x118   : > { %v1333_v36 = vpop.f32.mrf.mxu1  ;;  %v2741_v32 = vshll.u32 %v2636_v16, 16  ;;  %v1923_v63 = vshrl.u32 %v1814_v41, 16  ;;  %v1926_v31 = vshll.u32 %v1814_v41, 16  ;;  %v2245_v16 = vrot.slane %v1816_v8, 5 }
 0x119   : > { %4000 = vmatpush.bf16.msra.mxu2 %v13520_v17 }
 0x11a   : > { %2951 = vmatmul.bf16.gmra.mxu3 %v2875_v20  ;;  %v2862_v20 = vunpack.c.l.b16 %v2710_v0  ;;  %v2743_v57 = vrot.slane %v2741_v32, 5  ;;  %v1932_v0 = vshll.u32 %v1815_v46, 16  ;;  %v1928_v24 = vrot.slane %v1926_v31, 5 }
 0x11b   : > { %2383 = vmatmul.bf16.gmra.mxu1 %v2303_v27  ;;  %v1185_v53 = vpop.f32.mrf.mxu0  ;;  %v2728_v27 = vor.u32 %v2727_v4, %v2724_v5  ;;  %v2746_v5 = vshrl.u32 %v2637_v59, 16  ;;  %v2749_v4 = vshll.u32 %v2637_v59, 16 }
 0x11c   : > { %v1331_v3 = vadd.f32 %v14632_v61, %v1185_v53  ;;  %v2876_v40 = vpack.c.b16 %v2863_v23, %v2862_v20  ;;  %v1925_v23 = vrot.slane %v1923_v63, 4  ;;  %v14705_v25 = vrot.slane %v1932_v0, 5 }
 0x11d   : > { %v1751_v6 = vpop.f32.mrf.mxu3  ;;  %v2729_v56 = vrot.slane %v2728_v27, 4  ;;  %v2748_v29 = vrot.slane %v2746_v5, 4  ;;  %v2751_v32 = vrot.slane %v2749_v4, 5 }
 0x11e   : > { %v1559_v7 = vpop.f32.mrf.mxu2  ;;  %v14671_v1 = vadd.f32 %v1751_v6, %v1594_v26  ;;  %v1906_v26 = vrot.slane %v1905_v10, 4  ;;  %v2755_v10 = vshll.u32 %v2638_v62, 16 }
 0x11f   : > { %v1595_v61 = vadd.f32 %v1559_v7, %v1331_v3  ;;  %v1936_v3 = vshrl.u32 %v1815_v46, 16  ;;  %v2734_v7 = vsel %vm14142_vm4, %v2729_v56, %v14669_v12  ;;  %v13536_v12 = vld [vmem:[%s18116_s1 + $0x98] sm:$0xff]  ;;  %v2752_v62 = vor.u32 %v2751_v32, %v2748_v29 }
 0x120   : > { %v1335_v22 = vpop.f32.mrf.mxu1  ;;  %v1911_v47 = vsel %vm14142_vm4, %v1906_v26, %v14662_v2  ;;  %v1921_v2 = vsel %vm14142_vm4, %v1916_v42, %v1920_v44  ;;  %v2761_v42 = vrot.slane %v2759_v11, 4  ;;  %4225 = vmatpush.bf16.msra.mxu3 %v13536_v12  ;;  %v1817_v44 = vld [vmem:[#allocation2 + $0x48] sm:$0xf] }
 0x121   : > { %v14689_v6 = vunpack.c.l.b16 %v1911_v47  ;;  %v1938_v27 = vrot.slane %v1936_v3, 4  ;;  %v2042_v28 = vunpack.c.l.b16 %v1921_v2  ;;  %v2639_v47 = vld [vmem:[#allocation2 + $0x50] sm:$0x1]  ;;  %v1947_v63 = vshrl.u32 %v1817_v44, 16 }
 0x122   : > { %v534_v2 = vrot.slane %v14510_v9, 4  ;;  %v2753_v17 = vrot.slane %v2752_v62, 4  ;;  %v13519_v62 = vld [vmem:[%s18116_s1 + $0x10] sm:$0xff] }
 0x123   : > { %2578 = vmatmul.bf16.gmra.mxu2 %v13479_v13  ;;  %v1188_v38 = vpop.f32.mrf.mxu0  ;;  %v11531_v13 = vrot.slane %v2184_v58, 9  ;;  %v1939_v59 = vor.u32 %v1938_v27, %v14705_v25  ;;  %v2765_v58 = vshll.u32 %v2639_v47, 16  ;;  %v2054_v5 = vpack.c.b16 %v2042_v28, %v14689_v6 }
 0x124   : > { %v1334_v39 = vadd.f32 %v1333_v36, %v1188_v38  ;;  %v2739_v36 = vrot.slane %v2738_v14, 4  ;;  %v14707_v38 = vunpack.c.l.b16 %v2734_v7  ;;  %v1949_v18 = vrot.slane %v1947_v63, 4  ;;  %v13503_v63 = vld [vmem:[%s18116_s1 + $0x210] sm:$0xff]  ;;  %4001 = vmatpush.bf16.msra.mxu2 %v13519_v62 }
 0x125   : > { %v1753_v50 = vpop.f32.mrf.mxu3  ;;  %3193 = vmatpush.bf16.msra.mxu0 %v13503_v63 }
 0x126   : > { %v1562_v51 = vpop.f32.mrf.mxu2  ;;  %v14683_v60 = vadd.f32 %v1753_v50, %v1595_v61  ;;  %2133 = vmatmul.bf16.gmra.mxu0 %v2053_v34  ;;  %v2744_v61 = vsel %vm14142_vm4, %v2739_v36, %v2743_v57  ;;  %v2243_v50 = vsel %vm14151_vm5, %v11531_v13, %v2242_v55  ;;  %v1929_v57 = vor.u32 %v1928_v24, %v1925_v23  ;;  %v14725_v36 = vld [vmem:[#allocation2 + $0x4c] sm:$0xf] }
 0x127   : > { %v1596_v30 = vadd.f32 %v1562_v51, %v1334_v39  ;;  %v14709_v39 = vunpack.c.l.b16 %v2744_v61  ;;  %v2246_v51 = vsel %vm14151_vm5, %v2244_v15, %v2245_v16  ;;  %v1950_v55 = vshll.u32 %v1817_v44, 16 }
 0x128   : > { %v14685_v53 = vpop.f32.mrf.mxu1  ;;  %v2293_v31 = vunpack.c.l.b16 %v2243_v50  ;;  %v2294_v0 = vunpack.c.l.b16 %v2246_v51  ;;  %v1956_v7 = vshll.u32 %v14725_v36, 16  ;;  %v1930_v11 = vrot.slane %v1929_v57, 4 }
 0x129   : > { %v2877_v4 = vpack.c.b16 %v14709_v39, %v14707_v38  ;;  %v1940_v61 = vrot.slane %v1939_v59, 4  ;;  %v1960_v15 = vshrl.u32 %v14725_v36, 16  ;;  %v1952_v9 = vrot.slane %v1950_v55, 5  ;;  %v2185_v38 = vld [vmem:[#allocation2 + $0x48] sm:$0xe] }
 0x12a   : > { %2956 = vmatmul.bf16.gmra.mxu3 %v2876_v40  ;;  %v14711_v40 = vrot.slane %v2755_v10, 5  ;;  %v2767_v24 = vrot.slane %v2765_v58, 5  ;;  %v14737_v29 = vrot.slane %v1956_v7, 5  ;;  %v2249_v32 = vrot.slane %v14725_v36, 5 }
 0x12b   : > { %2388 = vmatmul.bf16.gmra.mxu1 %v2304_v52  ;;  %v1190_v20 = vpop.f32.mrf.mxu0  ;;  %v13528_v52 = vld [vmem:[%s18116_s1 + $0x58] sm:$0xff]  ;;  %v1935_v44 = vsel %vm14142_vm4, %v1930_v11, %v14705_v25  ;;  %v11532_v59 = vrot.slane %v2185_v38, 9 }
 0x12c   : > { %v1336_v26 = vadd.f32 %v1335_v22, %v1190_v20  ;;  %v13480_v22 = vld [vmem:[#allocation2 + $0x3c] sm:$0xff]  ;;  %3855 = vmatpush.bf16.msra.mxu1 %v13528_v52  ;;  %v2762_v3 = vor.u32 %v2761_v42, %v14711_v40  ;;  %v2305_v20 = vpack.c.b16 %v2294_v0, %v2293_v31  ;;  %v778_v42 = vld [vmem:[#allocation2 + $0x68] sm:$0x1]  ;;  %v2758_v47 = vsel %vm14142_vm4, %v2753_v17, %v14711_v40  ;;  %v13535_v40 = vld [vmem:[%s18116_s1 + $0x90] sm:$0xff] }
 0x12d   : > { %v1756_v34 = vpop.f32.mrf.mxu3  ;;  %v779_v50 = vsel %vm14324_vm13, %v534_v2, %v778_v42  ;;  %v14765_v11 = vunpack.c.l.b16 %v2758_v47  ;;  %4226 = vmatpush.bf16.msra.mxu3 %v13535_v40  ;;  %v1820_v42 = vld [vmem:[#allocation2 + $0x54] sm:$0xf] }
 0x12e   : > { %v1564_v14 = vpop.f32.mrf.mxu2  ;;  %v14713_v41 = vadd.f32 %v1756_v34, %v1596_v30  ;;  %v1942_v30 = vshll.u32 %v1816_v8, 16  ;;  %v2640_v8 = vld [vmem:[#allocation2 + $0x54] sm:$0xf]  ;;  %v2763_v23 = vrot.slane %v2762_v3, 4  ;;  %v2641_v34 = vld [vmem:[#allocation2 + $0x58] sm:$0xf] }
 0x12f   : > { %v1597_v46 = vadd.f32 %v1564_v14, %v1336_v26  ;;  %v2770_v27 = vshrl.u32 %v2640_v8, 16  ;;  %v2773_v39 = vshll.u32 %v2640_v8, 16  ;;  %v2779_v52 = vshll.u32 %v2641_v34, 16  ;;  %780 = vst [vmem:[#allocation2 + $0x68] sm:$0x1] %v779_v50  ;;  %v349_v50 = vld [vmem:[%s14256_s9 + $0x88] sm:$0xff] }
 0x130   : > { %v14722_v56 = vpop.f32.mrf.mxu1  ;;  %v1944_v13 = vrot.slane %v1942_v30, 5  ;;  %v2783_v57 = vshrl.u32 %v2641_v34, 16  ;;  %v2768_v25 = vsel %vm14142_vm4, %v2763_v23, %v2767_v24  ;;  %v2251_v30 = vrot.slane %v2249_v32, 4 }
 0x131   : > { %v2772_v3 = vrot.slane %v2770_v27, 4  ;;  %v2775_v58 = vrot.slane %v2773_v39, 5 }
 0x132   : > { %v1945_v51 = vsel %vm14142_vm4, %v1940_v61, %v1944_v13  ;;  %v14767_v61 = vunpack.c.l.b16 %v2768_v25  ;;  %v14769_v13 = vrot.slane %v2779_v52, 5 }
 0x133   : > { %2583 = vmatmul.bf16.gmra.mxu2 %v13480_v22  ;;  %v1193_v10 = vpop.f32.mrf.mxu0  ;;  %v1819_v22 = vld [vmem:[#allocation2 + $0x50] sm:$0x1]  ;;  %v2776_v27 = vor.u32 %v2775_v58, %v2772_v3  ;;  %v14798_v3 = vpack.c.bf16 %v349_v50, %v349_v50 }
 0x134   : > { %v1339_v16 = vadd.f32 %v14685_v53, %v1193_v10  ;;  %v1962_v53 = vrot.slane %v1960_v15, 4  ;;  %v2252_v36 = vrot.slane %v1819_v22, 5  ;;  %v1966_v0 = vshll.u32 %v1819_v22, 16 }
 0x135   : > { %v1758_v12 = vpop.f32.mrf.mxu3  ;;  %v2785_v15 = vrot.slane %v2783_v57, 4  ;;  %v2777_v52 = vrot.slane %v2776_v27, 4  ;;  %v2643_v57 = vld [vmem:[#allocation2 + $0x60] sm:$0xf]  ;;  %v544_v27 = vshrl.u32 %v14798_v3, 16 }
 0x136   : > { %v1567_v6 = vpop.f32.mrf.mxu2  ;;  %v14735_v26 = vadd.f32 %v1758_v12, %v1597_v46  ;;  %2138 = vmatmul.bf16.gmra.mxu0 %v2054_v5  ;;  %v1953_v46 = vor.u32 %v1952_v9, %v1949_v18  ;;  %v1963_v31 = vor.u32 %v1962_v53, %v14737_v29  ;;  %v2043_v5 = vunpack.c.l.b16 %v1935_v44  ;;  %v2642_v12 = vld [vmem:[#allocation2 + $0x5c] sm:$0x1]  ;;  %v14787_v44 = vld [vmem:[#allocation2 + $0x58] sm:$0xf] }
 0x137   : > { %v1598_v28 = vadd.f32 %v1567_v6, %v1339_v16  ;;  %v2250_v18 = vsel %vm14151_vm5, %v11532_v59, %v2249_v32  ;;  %v2253_v9 = vsel %vm14151_vm5, %v2251_v30, %v2252_v36  ;;  %v13527_v6 = vld [vmem:[%s18116_s1 + $0x50] sm:$0xff]  ;;  %v1968_v24 = vrot.slane %v1966_v0, 5  ;;  %v348_v32 = vld [vmem:[%s14256_s9 + $0x80] sm:$0xff] }
 0x138   : > { %v14740_v14 = vpop.f32.mrf.mxu1  ;;  %v1954_v7 = vrot.slane %v1953_v46, 4  ;;  %v1964_v23 = vrot.slane %v1963_v31, 4  ;;  %3856 = vmatpush.bf16.msra.mxu1 %v13527_v6  ;;  %v2295_v34 = vunpack.c.l.b16 %v2250_v18  ;;  %v2296_v53 = vunpack.c.l.b16 %v2253_v9  ;;  %v2186_v18 = vld [vmem:[#allocation2 + $0x54] sm:$0xe] }
 0x139   : > { %v2786_v38 = vor.u32 %v2785_v15, %v14769_v13  ;;  %v2789_v39 = vshll.u32 %v2642_v12, 16  ;;  %v2878_v46 = vpack.c.b16 %v14767_v61, %v14765_v11  ;;  %v380_v25 = vpack.c.bf16 %v348_v32, %v348_v32  ;;  %v14817_v12 = vld [vmem:[#allocation2 + $0x5c] sm:$0x1] }
 0x13a   : > { %2961 = vmatmul.bf16.gmra.mxu3 %v2877_v4  ;;  %v2044_v4 = vunpack.c.l.b16 %v1945_v51  ;;  %v1971_v30 = vshrl.u32 %v1820_v42, 16  ;;  %v1974_v36 = vshll.u32 %v1820_v42, 16  ;;  %v1980_v62 = vshll.u32 %v14787_v44, 16 }
 0x13b   : > { %2393 = vmatmul.bf16.gmra.mxu1 %v2305_v20  ;;  %v1195_v55 = vpop.f32.mrf.mxu0  ;;  %v2787_v31 = vrot.slane %v2786_v38, 4  ;;  %v2791_v0 = vrot.slane %v2789_v39, 5  ;;  %v2256_v11 = vrot.slane %v14787_v44, 5  ;;  %v2797_v61 = vshll.u32 %v2643_v57, 16  ;;  %v13534_v38 = vld [vmem:[%s18116_s1 + $0x88] sm:$0xff] }
 0x13c   : > { %v1341_v2 = vadd.f32 %v14722_v56, %v1195_v55  ;;  %v13481_v56 = vld [vmem:[#allocation2 + $0x48] sm:$0xff]  ;;  %v2055_v22 = vpack.c.b16 %v2044_v4, %v2043_v5  ;;  %v2306_v55 = vpack.c.b16 %v2296_v53, %v2295_v34  ;;  %v1984_v5 = vshrl.u32 %v14787_v44, 16  ;;  %v2644_v4 = vld [vmem:[#allocation2 + $0x64] sm:$0xf]  ;;  %4227 = vmatpush.bf16.msra.mxu3 %v13534_v38 }
 0x13d   : > { %v1761_v8 = vpop.f32.mrf.mxu3  ;;  %v14811_v15 = vrot.slane %v1971_v30, 4  ;;  %v536_v9 = vshrl.u32 %v380_v25, 16  ;;  %v2803_v6 = vshll.u32 %v2644_v4, 16  ;;  %v13518_v34 = vld [vmem:[%s18116_s1 + $0x8] sm:$0xff]  ;;  %v11533_v44 = vrot.slane %v2186_v18, 9 }
 0x13e   : > { %v1569_v10 = vpop.f32.mrf.mxu2  ;;  %v14771_v16 = vadd.f32 %v1761_v8, %v1598_v28  ;;  %v1959_v28 = vsel %vm14142_vm4, %v1954_v7, %v14737_v29  ;;  %v1969_v29 = vsel %vm14142_vm4, %v1964_v23, %v1968_v24  ;;  %v2794_v7 = vshrl.u32 %v2643_v57, 16  ;;  %v13502_v53 = vld [vmem:[%s18116_s1 + $0x208] sm:$0xff]  ;;  %4002 = vmatpush.bf16.msra.mxu2 %v13518_v34  ;;  %v14860_v34 = vld [vmem:[#allocation2 + $0x64] sm:$0xf] }
 0x13f   : > { %v1599_v17 = vadd.f32 %v1569_v10, %v1341_v2  ;;  %v14794_v47 = vunpack.c.l.b16 %v1959_v28  ;;  %v14805_v8 = vunpack.c.l.b16 %v1969_v29  ;;  %v2782_v10 = vsel %vm14142_vm4, %v2777_v52, %v14769_v13  ;;  %3194 = vmatpush.bf16.msra.mxu0 %v13502_v53 }
 0x140   : > { %v14780_v20 = vpop.f32.mrf.mxu1  ;;  %v2807_v23 = vshrl.u32 %v2644_v4, 16  ;;  %v539_v24 = vshll.u32 %v380_v25, 16  ;;  %v2792_v13 = vsel %vm14142_vm4, %v2787_v31, %v2791_v0  ;;  %v1986_v28 = vrot.slane %v1984_v5, 4  ;;  %v13482_v31 = vld [vmem:[#allocation2 + $0x54] sm:$0xff]  ;;  %v2645_v5 = vld [vmem:[#allocation2 + $0x68] sm:$0x1] }
 0x141   : > { %v2796_v32 = vrot.slane %v2794_v7, 4  ;;  %v538_v39 = vrot.slane %v536_v9, 7  ;;  %v2799_v50 = vrot.slane %v2797_v61, 5  ;;  %v546_v52 = vrot.slane %v544_v27, 7  ;;  %v785_v9 = vld [vmem:[#allocation2 + $0x74] sm:$0x1] }
 0x142   : > { %v547_v57 = vshll.u32 %v14798_v3, 16  ;;  %v14834_v30 = vunpack.c.l.b16 %v2782_v10  ;;  %v13526_v3 = vld [vmem:[%s18116_s1 + $0x48] sm:$0xff]  ;;  %v1990_v61 = vshll.u32 %v14817_v12, 16 }
 0x143   : > { %2588 = vmatmul.bf16.gmra.mxu2 %v13481_v56  ;;  %v1198_v51 = vpop.f32.mrf.mxu0  ;;  %v14815_v56 = vrot.slane %v1980_v62, 5  ;;  %v541_v29 = vor.u32 %v539_v24, %v538_v39  ;;  %v14838_v62 = vrot.slane %v2803_v6, 5  ;;  %v542_v4 = vrot.slane %v538_v39, 4  ;;  %3857 = vmatpush.bf16.msra.mxu1 %v13526_v3 }
 0x144   : > { %v1344_v59 = vadd.f32 %v14740_v14, %v1198_v51  ;;  %v551_v6 = vrot.slane %v546_v52, 4  ;;  %v2056_v24 = vpack.c.b16 %v14805_v8, %v14794_v47 }
 0x145   : > { %v1763_v63 = vpop.f32.mrf.mxu3  ;;  %v1987_v10 = vor.u32 %v1986_v28, %v14815_v56 }
 0x146   : > { %v1572_v40 = vpop.f32.mrf.mxu2  ;;  %v14800_v58 = vadd.f32 %v1763_v63, %v1599_v17  ;;  %2143 = vmatmul.bf16.gmra.mxu0 %v2055_v22  ;;  %v14813_v17 = vrot.slane %v1974_v36, 5  ;;  %v2258_v22 = vrot.slane %v2256_v11, 4  ;;  %v14836_v36 = vunpack.c.l.b16 %v2792_v13  ;;  %v1823_v13 = vld [vmem:[#allocation2 + $0x60] sm:$0xf] }
 0x147   : > { %v1600_v2 = vadd.f32 %v1572_v40, %v1344_v59  ;;  %v2809_v63 = vrot.slane %v2807_v23, 4  ;;  %v781_v40 = vld [vmem:[#allocation2 + $0x6c] sm:$0xf]  ;;  %v786_v53 = vsel %vm14324_vm13, %v551_v6, %v785_v9  ;;  %v1988_v39 = vrot.slane %v1987_v10, 4 }
 0x148   : > { %v14803_v14 = vpop.f32.mrf.mxu1  ;;  %v1977_v0 = vor.u32 %v14813_v17, %v14811_v15  ;;  %v2800_v15 = vor.u32 %v2799_v50, %v2796_v32  ;;  %v549_v17 = vor.u32 %v547_v57, %v546_v52  ;;  %v782_v23 = vsel %vm14297_vm10, %v541_v29, %v781_v40  ;;  %787 = vst [vmem:[#allocation2 + $0x74] sm:$0x1] %v786_v53  ;;  %v2187_v40 = vld [vmem:[#allocation2 + $0x60] sm:$0xe] }
 0x149   : > { %v2810_v27 = vor.u32 %v2809_v63, %v14838_v62  ;;  %783 = vst [vmem:[#allocation2 + $0x6c] sm:$0xf] %v782_v23  ;;  %v2879_v47 = vpack.c.b16 %v14836_v36, %v14834_v30  ;;  %v1998_v50 = vshll.u32 %v1823_v13, 16  ;;  %v11534_v23 = vrot.slane %v2187_v40, 9  ;;  %v13483_v40 = vld [vmem:[#allocation2 + $0x60] sm:$0xff] }
 0x14a   : > { %2966 = vmatmul.bf16.gmra.mxu3 %v2878_v46  ;;  %v2259_v46 = vrot.slane %v14817_v12, 5  ;;  %v2813_v12 = vshll.u32 %v2645_v5, 16  ;;  %v550_v32 = vsel %vm14314_vm12, %v542_v4, %v549_v17  ;;  %v1978_v8 = vrot.slane %v1977_v0, 4  ;;  %v14884_v4 = vld [vmem:[#allocation2 + $0x20] sm:$0x1] }
 0x14b   : > { %2398 = vmatmul.bf16.gmra.mxu1 %v2306_v55  ;;  %v1200_v42 = vpop.f32.mrf.mxu0  ;;  %784 = vst [vmem:[#allocation2 + $0x70] sm:$0xf] %v550_v32  ;;  %v2811_v52 = vrot.slane %v2810_v27, 4  ;;  %v3040_v10 = vrot.slane %v14884_v4, 5  ;;  %v14892_v17 = vld [vmem:[#allocation2 + $0x68] sm:$0x1] }
 0x14c   : > { %v1346_v51 = vadd.f32 %v14780_v20, %v1200_v42  ;;  %v2260_v18 = vsel %vm14151_vm5, %v2258_v22, %v2259_v46  ;;  %v1992_v42 = vrot.slane %v1990_v61, 5  ;;  %v2801_v22 = vrot.slane %v2800_v15, 4 }
 0x14d   : > { %v1766_v25 = vpop.f32.mrf.mxu3  ;;  %v2298_v28 = vunpack.c.l.b16 %v2260_v18  ;;  %v1995_v46 = vshrl.u32 %v1823_v13, 16  ;;  %v2815_v57 = vrot.slane %v2813_v12, 5  ;;  %v1983_v3 = vsel %vm14142_vm4, %v1978_v8, %v14815_v56 }
 0x14e   : > { %v1574_v59 = vpop.f32.mrf.mxu2  ;;  %v14840_v55 = vadd.f32 %v1766_v25, %v1600_v2  ;;  %v2257_v2 = vsel %vm14151_vm5, %v11533_v44, %v2256_v11  ;;  %v2004_v25 = vshll.u32 %v14860_v34, 16  ;;  %v2806_v61 = vsel %vm14142_vm4, %v2801_v22, %v14838_v62  ;;  %v13533_v22 = vld [vmem:[%s18116_s1 + $0x80] sm:$0xff] }
 0x14f   : > { %v1601_v20 = vadd.f32 %v1574_v59, %v1346_v51  ;;  %v2297_v11 = vunpack.c.l.b16 %v2257_v2  ;;  %v2008_v59 = vshrl.u32 %v14860_v34, 16  ;;  %v1997_v2 = vrot.slane %v1995_v46, 4  ;;  %v3523_v46 = vld [vmem:[#allocation2 + $0x60] sm:$0xf]  ;;  %4228 = vmatpush.bf16.msra.mxu3 %v13533_v22 }
 0x150   : > { %v14847_v7 = vpop.f32.mrf.mxu1  ;;  %v2000_v18 = vrot.slane %v1998_v50, 5  ;;  %v2646_v9 = vld [vmem:[#allocation2 + $0x6c] sm:$0xf]  ;;  %v2816_v15 = vsel %vm14142_vm4, %v2811_v52, %v2815_v57  ;;  %v14894_v56 = vrot.slane %v2004_v25, 5  ;;  %v2266_v62 = vrot.slane %v14892_v17, 5 }
 0x151   : > { %v2307_v36 = vpack.c.b16 %v2298_v28, %v2297_v11  ;;  %v2010_v6 = vrot.slane %v2008_v59, 4  ;;  %v13517_v11 = vld [vmem:[%s18116_s1] sm:$0xff]  ;;  %v2818_v32 = vshrl.u32 %v2646_v9, 16  ;;  %v2821_v53 = vshll.u32 %v2646_v9, 16 }
 0x152   : > { %v2647_v13 = vld [vmem:[#allocation2 + $0x70] sm:$0xf]  ;;  %v14907_v8 = vunpack.c.l.b16 %v2816_v15  ;;  %4003 = vmatpush.bf16.msra.mxu2 %v13517_v11  ;;  %v14919_v57 = vld [vmem:[#allocation2 + $0x64] sm:$0xf]  ;;  %v3564_v25 = vshrl.u32 %v3523_v46, 16 }
 0x153   : > { %2593 = vmatmul.bf16.gmra.mxu2 %v13482_v31  ;;  %v1203_v38 = vpop.f32.mrf.mxu0  ;;  %v14874_v31 = vld [vmem:[#allocation2 + $0x1c] sm:$0xf]  ;;  %v2648_v11 = vld [vmem:[#allocation2 + $0x74] sm:$0x1] }
 0x154   : > { %v1349_v44 = vadd.f32 %v14803_v14, %v1203_v38  ;;  %v2263_v14 = vrot.slane %v14860_v34, 5  ;;  %v3037_v0 = vrot.slane %v14874_v31, 5  ;;  %v14904_v34 = vunpack.c.l.b16 %v2806_v61 }
 0x155   : > { %v1768_v51 = vpop.f32.mrf.mxu3  ;;  %v2827_v38 = vshll.u32 %v2647_v13, 16  ;;  %v3567_v61 = vshll.u32 %v3523_v46, 16 }
 0x156   : > { %v1577_v29 = vpop.f32.mrf.mxu2  ;;  %v14871_v63 = vadd.f32 %v1768_v51, %v1601_v20  ;;  %2148 = vmatmul.bf16.gmra.mxu0 %v2056_v24  ;;  %v1993_v20 = vsel %vm14142_vm4, %v1988_v39, %v1992_v42  ;;  %v14896_v24 = vunpack.c.l.b16 %v1983_v3  ;;  %v2265_v12 = vrot.slane %v2263_v14, 4 }
 0x157   : > { %v1602_v30 = vadd.f32 %v1577_v29, %v1349_v44  ;;  %v14898_v27 = vunpack.c.l.b16 %v1993_v20  ;;  %v2001_v39 = vor.u32 %v2000_v18, %v1997_v2  ;;  %v2831_v42 = vshrl.u32 %v2647_v13, 16  ;;  %v13501_v44 = vld [vmem:[%s18116_s1 + $0x200] sm:$0xff] }
 0x158   : > { %v14877_v5 = vpop.f32.mrf.mxu1  ;;  %v2011_v29 = vor.u32 %v2010_v6, %v14894_v56  ;;  %v2264_v52 = vsel %vm14151_vm5, %v11534_v23, %v2263_v14  ;;  %v2267_v3 = vsel %vm14151_vm5, %v2265_v12, %v2266_v62  ;;  %3195 = vmatpush.bf16.msra.mxu0 %v13501_v44  ;;  %v13525_v20 = vld [vmem:[%s18116_s1 + $0x40] sm:$0xff]  ;;  %v2820_v18 = vrot.slane %v2818_v32, 4 }
 0x159   : > { %v2823_v14 = vrot.slane %v2821_v53, 5  ;;  %v14928_v9 = vrot.slane %v2827_v38, 5  ;;  %v2833_v15 = vrot.slane %v2831_v42, 4  ;;  %3858 = vmatpush.bf16.msra.mxu1 %v13525_v20  ;;  %v3569_v6 = vrot.slane %v3567_v61, 5  ;;  %v14940_v42 = vld [vmem:[#allocation2 + $0x68] sm:$0x1] }
 0x15a   : > { %2971 = vmatmul.bf16.gmra.mxu3 %v2879_v47  ;;  %v3577_v23 = vshrl.u32 %v14919_v57, 16  ;;  %v3039_v12 = vrot.slane %v3037_v0, 4  ;;  %v2057_v62 = vpack.c.b16 %v14898_v27, %v14896_v24  ;;  %v2880_v13 = vpack.c.b16 %v14907_v8, %v14904_v34 }
 0x15b   : > { %2403 = vmatmul.bf16.gmra.mxu1 %v2307_v36  ;;  %v1205_v28 = vpop.f32.mrf.mxu0  ;;  %v2002_v32 = vrot.slane %v2001_v39, 4  ;;  %v2299_v53 = vunpack.c.l.b16 %v2264_v52  ;;  %v2300_v38 = vunpack.c.l.b16 %v2267_v3  ;;  %v2012_v46 = vrot.slane %v2011_v29, 4 }
 0x15c   : > { %v1351_v47 = vadd.f32 %v14847_v7, %v1205_v28  ;;  %v2014_v7 = vshll.u32 %v14892_v17, 16  ;;  %v3566_v17 = vrot.slane %v3564_v25, 4  ;;  %v3579_v44 = vrot.slane %v3577_v23, 4 }
 0x15d   : > { %v1771_v50 = vpop.f32.mrf.mxu3  ;;  %v2834_v27 = vor.u32 %v2833_v15, %v14928_v9  ;;  %v2837_v34 = vshll.u32 %v2648_v11, 16  ;;  %v3041_v29 = vsel %vm14151_vm5, %v3039_v12, %v3040_v10  ;;  %v2308_v61 = vpack.c.b16 %v2300_v38, %v2299_v53  ;;  %v13572_v12 = vld [vmem:[%s18116_s1 + $0x178] sm:$0xff] }
 0x15e   : > { %v1579_v51 = vpop.f32.mrf.mxu2  ;;  %v14921_v59 = vadd.f32 %v1771_v50, %v1602_v30  ;;  %v3573_v30 = vshll.u32 %v14919_v57, 16  ;;  %v2016_v50 = vrot.slane %v2014_v7, 5  ;;  %v3570_v8 = vor.u32 %v3569_v6, %v3566_v17  ;;  %5041 = vmatpush.bf16.msrb.mxu2 %v13572_v12 }
 0x15f   : > { %v1603_v36 = vadd.f32 %v1579_v51, %v1351_v47  ;;  %v3003_v47 = vld [vmem:[#allocation2 + $0x18] sm:$0xe]  ;;  %v2824_v51 = vor.u32 %v2823_v14, %v2820_v18  ;;  %v2835_v4 = vrot.slane %v2834_v27, 4  ;;  %v2839_v10 = vrot.slane %v2837_v34, 5 }
 0x160   : > { %v1355_v2 = vpop.f32.mrf.mxu1  ;;  %v14938_v28 = vrot.slane %v3573_v30, 5  ;;  %v11711_v25 = vrot.slane %v3003_v47, 9  ;;  %v3109_v30 = vunpack.c.l.b16 %v3041_v29  ;;  %v3571_v15 = vrot.slane %v3570_v8, 4 }
 0x161   : > { %v2825_v31 = vrot.slane %v2824_v51, 4  ;;  %v2017_v17 = vsel %vm14142_vm4, %v2012_v46, %v2016_v50  ;;  %v3525_v46 = vld [vmem:[#allocation2 + $0x6c] sm:$0xf]  ;;  %v14981_v50 = vld [vmem:[#allocation2 + $0x70] sm:$0xf] }
 0x162   : > { %v3038_v39 = vsel %vm14151_vm5, %v11711_v25, %v3037_v0  ;;  %v3580_v7 = vor.u32 %v3579_v44, %v14938_v28  ;;  %v2007_v0 = vsel %vm14142_vm4, %v2002_v32, %v14894_v56  ;;  %v13556_v56 = vld [vmem:[%s18116_s1 + $0xf8] sm:$0xff]  ;;  %v2050_v47 = vunpack.c.l.b16 %v2017_v17 }
 0x163   : > { %2598 = vmatmul.bf16.gmra.mxu2 %v13483_v40  ;;  %v1208_v22 = vpop.f32.mrf.mxu0  ;;  %v3108_v18 = vunpack.c.l.b16 %v3038_v39  ;;  %v2049_v32 = vunpack.c.l.b16 %v2007_v0  ;;  %v2830_v53 = vsel %vm14142_vm4, %v2825_v31, %v14928_v9  ;;  %v2840_v44 = vsel %vm14142_vm4, %v2835_v4, %v2839_v10  ;;  %4415 = vmatpush.bf16.msrb.mxu0 %v13556_v56  ;;  %v351_v39 = vld [vmem:[%s14256_s9 + $0x98] sm:$0xff]  ;;  %v4045_v56 = vld [vmem:[#allocation2 + $0x60] sm:$0xe] }
 0x164   : > { %v1354_v24 = vadd.f32 %v14877_v5, %v1208_v22  ;;  %v3583_v5 = vshll.u32 %v14940_v42, 16  ;;  %v3581_v6 = vrot.slane %v3580_v7, 4  ;;  %v3576_v22 = vsel %vm14142_vm4, %v3571_v15, %v14938_v28  ;;  %v13484_v28 = vld [vmem:[#allocation2 + $0x6c] sm:$0xff] }
 0x165   : > { %v1773_v20 = vpop.f32.mrf.mxu3  ;;  %v3597_v27 = vshll.u32 %v14981_v50, 16  ;;  %v383_v4 = vpack.c.bf16 %v351_v39, %v351_v39  ;;  %v2058_v10 = vpack.c.b16 %v2050_v47, %v2049_v32 }
 0x166   : > { %v1582_v40 = vpop.f32.mrf.mxu2  ;;  %v14954_v52 = vadd.f32 %v1773_v20, %v1603_v36  ;;  %2153 = vmatmul.bf16.gmra.mxu0 %v2057_v62  ;;  %v14961_v36 = vpack.c.b16 %v3109_v30, %v3108_v18  ;;  %v3585_v23 = vrot.slane %v3583_v5, 5  ;;  %v13588_v62 = vld [vmem:[%s18116_s1 + $0x1b8] sm:$0xff]  ;;  %v2872_v5 = vunpack.c.l.b16 %v2830_v53 }
 0x167   : > { %v1604_v3 = vadd.f32 %v1582_v40, %v1354_v24  ;;  %5235 = vmatpush.bf16.msrb.mxu3 %v13588_v62  ;;  %v3591_v24 = vshll.u32 %v3525_v46, 16  ;;  %v13564_v20 = vld [vmem:[%s18116_s1 + $0x138] sm:$0xff]  ;;  %v3601_v40 = vshrl.u32 %v14981_v50, 16  ;;  %v3771_v18 = vunpack.c.l.b16 %v3576_v22 }
 0x168   : > { %v1358_v14 = vpop.f32.mrf.mxu1  ;;  %v3586_v9 = vsel %vm14142_vm4, %v3581_v6, %v3585_v23  ;;  %4792 = vmatpush.bf16.msrb.mxu1 %v13564_v20  ;;  %v14993_v15 = vrot.slane %v3597_v27, 5  ;;  %v14995_v23 = vld [vmem:[#allocation2 + $0x74] sm:$0x1]  ;;  %v4071_v62 = vrot.slane %v14919_v57, 5  ;;  %v564_v57 = vshll.u32 %v383_v4, 16 }
 0x169   : > { %v3772_v30 = vunpack.c.l.b16 %v3586_v9  ;;  %v3603_v17 = vrot.slane %v3601_v40, 4  ;;  %v3607_v9 = vshll.u32 %v14995_v23, 16 }
 0x16a   : > { %2976 = vmatmul.bf16.gmra.mxu3 %v2880_v13  ;;  %v350_v13 = vld [vmem:[%s14256_s9 + $0x90] sm:$0xff]  ;;  %v4073_v27 = vrot.slane %v4071_v62, 4 }
 0x16b   : > { %2408 = vmatmul.bf16.gmra.mxu1 %v2308_v61  ;;  %v1210_v11 = vpop.f32.mrf.mxu0  ;;  %v382_v29 = vpack.c.bf16 %v350_v13, %v350_v13  ;;  %v2873_v61 = vunpack.c.l.b16 %v2840_v44  ;;  %v3787_v22 = vpack.c.b16 %v3772_v30, %v3771_v18  ;;  %v13571_v18 = vld [vmem:[%s18116_s1 + $0x170] sm:$0xff] }
 0x16c   : > { %v1356_v38 = vadd.f32 %v1355_v2, %v1210_v11  ;;  %v3588_v2 = vshrl.u32 %v3525_v46, 16  ;;  %5042 = vmatpush.bf16.msrb.mxu2 %v13571_v18 }
 0x16d   : > { %v1776_v51 = vpop.f32.mrf.mxu3  ;;  %v553_v31 = vshrl.u32 %v382_v29, 16  ;;  %v556_v53 = vshll.u32 %v382_v29, 16  ;;  %v792_v29 = vld [vmem:[#allocation2 + $0x80] sm:$0x1] }
 0x16e   : > { %v1584_v25 = vpop.f32.mrf.mxu2  ;;  %v14986_v34 = vadd.f32 %v1776_v51, %v1604_v3  ;;  %v3590_v0 = vrot.slane %v3588_v2, 4  ;;  %v3593_v3 = vrot.slane %v3591_v24, 5  ;;  %v561_v51 = vshrl.u32 %v383_v4, 16  ;;  %v788_v24 = vld [vmem:[#allocation2 + $0x78] sm:$0xf] }
 0x16f   : > { %v1605_v8 = vadd.f32 %v1584_v25, %v1356_v38  ;;  %v555_v11 = vrot.slane %v553_v31, 7  ;;  %v2881_v38 = vpack.c.b16 %v2873_v61, %v2872_v5  ;;  %v3604_v25 = vor.u32 %v3603_v17, %v14993_v15  ;;  %v13555_v31 = vld [vmem:[%s18116_s1 + $0xf0] sm:$0xff]  ;;  %v352_v17 = vld [vmem:[%s14256_s9 + $0xa0] sm:$0xff] }
 0x170   : > { %v1360_v7 = vpop.f32.mrf.mxu1  ;;  %v3594_v46 = vor.u32 %v3593_v3, %v3590_v0  ;;  %v11879_v2 = vrot.slane %v4045_v56, 9  ;;  %v3609_v61 = vrot.slane %v3607_v9, 5  ;;  %4416 = vmatpush.bf16.msrb.mxu0 %v13555_v31 }
 0x171   : > { %v558_v20 = vor.u32 %v556_v53, %v555_v11  ;;  %v559_v39 = vrot.slane %v555_v11, 4  ;;  %v3605_v5 = vrot.slane %v3604_v25, 4  ;;  %v3004_v11 = vld [vmem:[#allocation2 + $0x24] sm:$0xe]  ;;  %v13846_v53 = vld [vmem:[#allocation2 + $0x28] sm:$0xf] }
 0x172   : > { %v3595_v40 = vrot.slane %v3594_v46, 4  ;;  %v4072_v3 = vsel %vm14151_vm5, %v11879_v2, %v4071_v62  ;;  %v13509_v2 = vld [vmem:[#allocation2 + $0x60] sm:$0xff] }
 0x173   : > { %2603 = vmatmul.bf16.gmra.mxu2 %v13484_v28  ;;  %v1213_v6 = vpop.f32.mrf.mxu0  ;;  %v4074_v28 = vrot.slane %v14940_v42, 5  ;;  %v13587_v42 = vld [vmem:[%s18116_s1 + $0x1b0] sm:$0xff]  ;;  %v789_v30 = vsel %vm14297_vm10, %v558_v20, %v788_v24 }
 0x174   : > { %v1359_v12 = vadd.f32 %v1358_v14, %v1213_v6  ;;  %790 = vst [vmem:[#allocation2 + $0x78] sm:$0xf] %v789_v30  ;;  %v353_v6 = vld [vmem:[%s14256_s9 + $0xa8] sm:$0xff]  ;;  %v3600_v62 = vsel %vm14142_vm4, %v3595_v40, %v14993_v15  ;;  %5236 = vmatpush.bf16.msrb.mxu3 %v13587_v42  ;;  %v13563_v24 = vld [vmem:[%s18116_s1 + $0x130] sm:$0xff]  ;;  %v11712_v40 = vrot.slane %v3004_v11, 9 }
 0x175   : > { %v1778_v13 = vpop.f32.mrf.mxu3  ;;  %v4075_v56 = vsel %vm14151_vm5, %v4073_v27, %v4074_v28  ;;  %v4141_v27 = vunpack.c.l.b16 %v4072_v3  ;;  %4793 = vmatpush.bf16.msrb.mxu1 %v13563_v24  ;;  %v3773_v31 = vunpack.c.l.b16 %v3600_v62  ;;  %v4081_v62 = vrot.slane %v14995_v23, 5 }
 0x176   : > { %v1587_v44 = vpop.f32.mrf.mxu2  ;;  %v14998_v32 = vadd.f32 %v1778_v13, %v1605_v8  ;;  %2158 = vmatmul.bf16.gmra.mxu0 %v2058_v10  ;;  %v563_v8 = vrot.slane %v561_v51, 7  ;;  %v3044_v13 = vrot.slane %v13846_v53, 5  ;;  %v385_v51 = vpack.c.bf16 %v353_v6, %v353_v6 }
 0x177   : > { %v1606_v47 = vadd.f32 %v1587_v44, %v1359_v12  ;;  %v4142_v28 = vunpack.c.l.b16 %v4075_v56 }
 0x178   : > { %v15002_v14 = vpop.f32.mrf.mxu1  ;;  %v566_v4 = vor.u32 %v564_v57, %v563_v8  ;;  %v568_v10 = vrot.slane %v563_v8, 4  ;;  %v3610_v57 = vsel %vm14142_vm4, %v3605_v5, %v3609_v61  ;;  %v3046_v8 = vrot.slane %v3044_v13, 4  ;;  %v4046_v5 = vld [vmem:[#allocation2 + $0x6c] sm:$0xe] }
 0x179   : > { %v4078_v61 = vrot.slane %v14981_v50, 5  ;;  %v3774_v42 = vunpack.c.l.b16 %v3610_v57 }
 0x17a   : > { %2981 = vmatmul.bf16.gmra.mxu3 %v2881_v38  ;;  %v384_v38 = vpack.c.bf16 %v352_v17, %v352_v17  ;;  %v567_v46 = vsel %vm14314_vm12, %v559_v39, %v566_v4  ;;  %v578_v39 = vshrl.u32 %v385_v51, 16  ;;  %v581_v17 = vshll.u32 %v385_v51, 16 }
 0x17b   : > { %3859 = vmatmul.bf16.vlgmr.msra.gmra.mxu1 %v3787_v22  ;;  %v1215_v0 = vpop.f32.mrf.mxu0  ;;  %791 = vst [vmem:[#allocation2 + $0x7c] sm:$0xf] %v567_v46  ;;  %v3527_v4 = vld [vmem:[#allocation2 + $0x78] sm:$0xf] }
 0x17c   : > { %v1361_v12 = vadd.f32 %v1360_v7, %v1215_v0  ;;  %v793_v7 = vsel %vm14324_vm13, %v568_v10, %v792_v29  ;;  %v570_v15 = vshrl.u32 %v384_v38, 16  ;;  %v13847_v29 = vld [vmem:[#allocation2 + $0x2c] sm:$0x1]  ;;  %v573_v0 = vshll.u32 %v384_v38, 16 }
 0x17d   : > { %v1781_v44 = vpop.f32.mrf.mxu3  ;;  %794 = vst [vmem:[#allocation2 + $0x80] sm:$0x1] %v793_v7  ;;  %v3047_v18 = vrot.slane %v13847_v29, 5  ;;  %v15042_v10 = vrot.slane %v578_v39, 7  ;;  %v3612_v50 = vshrl.u32 %v3527_v4, 16  ;;  %v3615_v53 = vshll.u32 %v3527_v4, 16 }
 0x17e   : > { %v1589_v22 = vpop.f32.mrf.mxu2  ;;  %v15029_v25 = vadd.f32 %v1781_v44, %v1606_v47  ;;  %v1326_v47 = vadd.f32 %v14582_v33, %v14601_v21  ;;  %v572_v30 = vrot.slane %v570_v15, 7  ;;  %v4157_v33 = vpack.c.b16 %v4142_v28, %v4141_v27 }
 0x17f   : > { %v1607_v9 = vadd.f32 %v1589_v22, %v1361_v12  ;;  %v15046_v21 = vsel %vm14151_vm5, %v11712_v40, %v3044_v13  ;;  %v11880_v12 = vrot.slane %v4046_v5, 9  ;;  %v15051_v11 = vsel %vm14151_vm5, %v3046_v8, %v3047_v18  ;;  %v799_v5 = vld [vmem:[#allocation2 + $0x8c] sm:$0x1] }
 0x180   : > { %v15036_v20 = vpop.f32.mrf.mxu1  ;;  %v1593_v3 = vadd.f32 %v14619_v37, %v1326_v47  ;;  %v4080_v37 = vrot.slane %v4078_v61, 4  ;;  %v3788_v22 = vpack.c.b16 %v3774_v42, %v3773_v31  ;;  %v3614_v7 = vrot.slane %v3612_v50, 4  ;;  %v355_v50 = vld [vmem:[%s14256_s9 + $0xb8] sm:$0xff] }
 0x181   : > { %v575_v13 = vor.u32 %v573_v0, %v572_v30  ;;  %v576_v57 = vrot.slane %v572_v30, 4  ;;  %v583_v24 = vor.u32 %v581_v17, %v15042_v10  ;;  %v3617_v27 = vrot.slane %v3615_v53, 5  ;;  %v13586_v30 = vld [vmem:[%s18116_s1 + $0x1a8] sm:$0xff] }
 0x182   : > { %v15054_v46 = vld [vmem:[#allocation2 + $0x7c] sm:$0xf]  ;;  %v4082_v47 = vsel %vm14151_vm5, %v4080_v37, %v4081_v62  ;;  %v3110_v31 = vunpack.c.l.b16 %v15046_v21  ;;  %v3111_v42 = vunpack.c.l.b16 %v15051_v11  ;;  %5237 = vmatpush.bf16.msrb.mxu3 %v13586_v30 }
 0x183   : > { %4004 = vmatmul.bf16.vlgmr.msra.gmra.mxu2 %v13509_v2  ;;  %v2124_v6 = vpop.f32.mrf.mxu0  ;;  %v3621_v23 = vshll.u32 %v15054_v46, 16  ;;  %v3625_v28 = vshrl.u32 %v15054_v46, 16  ;;  %v3618_v8 = vor.u32 %v3617_v27, %v3614_v7  ;;  %v584_v0 = vsel %vm14314_vm12, %v576_v57, %v583_v24  ;;  %v13510_v57 = vld [vmem:[#allocation2 + $0x6c] sm:$0xff] }
 0x184   : > { %v2164_v56 = vadd.f32 %v2124_v6, %v14627_v54  ;;  %v15060_v54 = vld [vmem:[#allocation2 + $0x80] sm:$0x1]  ;;  %798 = vst [vmem:[#allocation2 + $0x88] sm:$0xf] %v584_v0  ;;  %v4144_v37 = vunpack.c.l.b16 %v4082_v47  ;;  %v3005_v24 = vld [vmem:[#allocation2 + $0x30] sm:$0xe] }
 0x185   : > { %v1783_v38 = vpop.f32.mrf.mxu3  ;;  %v3631_v40 = vshll.u32 %v15060_v54, 16  ;;  %v3623_v29 = vrot.slane %v3621_v23, 5  ;;  %v3627_v18 = vrot.slane %v3625_v28, 4  ;;  %v3619_v17 = vrot.slane %v3618_v8, 4  ;;  %v13562_v23 = vld [vmem:[%s18116_s1 + $0x128] sm:$0xff] }
 0x186   : > { %v2569_v44 = vpop.f32.mrf.mxu2  ;;  %v15056_v51 = vadd.f32 %v1783_v38, %v1607_v9  ;;  %v2414_v2 = vadd.f32 %v15002_v14, %v2164_v56  ;;  %3196 = vmatmul.bf16.vlgmr.msra.gmra.mxu0 %v14961_v36  ;;  %v1787_v9 = vadd.f32 %v14643_v19, %v1593_v3  ;;  %v4079_v36 = vsel %vm14151_vm5, %v11880_v12, %v4078_v61  ;;  %v795_v14 = vld [vmem:[#allocation2 + $0x84] sm:$0xf]  ;;  %v13570_v19 = vld [vmem:[%s18116_s1 + $0x168] sm:$0xff]  ;;  %v354_v12 = vld [vmem:[%s14256_s9 + $0xb0] sm:$0xff] }
 0x187   : > { %v13554_v61 = vld [vmem:[%s18116_s1 + $0xe8] sm:$0xff]  ;;  %v585_v3 = vrot.slane %v15042_v10, 4  ;;  %v3628_v6 = vor.u32 %v3627_v18, %v3623_v29  ;;  %v796_v21 = vsel %vm14297_vm10, %v575_v13, %v795_v14  ;;  %v4143_v11 = vunpack.c.l.b16 %v4079_v36  ;;  %5043 = vmatpush.bf16.msrb.mxu2 %v13570_v19  ;;  %4794 = vmatpush.bf16.msrb.mxu1 %v13562_v23 }
 0x188   : > { %v15063_v15 = vpop.f32.mrf.mxu1  ;;  %v2609_v39 = vadd.f32 %v2569_v44, %v2414_v2  ;;  %4417 = vmatpush.bf16.msrb.mxu0 %v13554_v61  ;;  %797 = vst [vmem:[#allocation2 + $0x84] sm:$0xf] %v796_v21  ;;  %v13848_v44 = vld [vmem:[#allocation2 + $0x34] sm:$0xf]  ;;  %v386_v7 = vpack.c.bf16 %v354_v12, %v354_v12  ;;  %v3624_v27 = vsel %vm14142_vm4, %v3619_v17, %v3623_v29  ;;  %v4085_v36 = vrot.slane %v15054_v46, 5 }
 0x189   : > { %v800_v53 = vsel %vm14324_vm13, %v585_v3, %v799_v5  ;;  %v3629_v62 = vrot.slane %v3628_v6, 4  ;;  %v15101_v28 = vpack.c.bf16 %v355_v50, %v355_v50  ;;  %v3125_v14 = vpack.c.b16 %v3111_v42, %v3110_v31  ;;  %v13849_v61 = vld [vmem:[#allocation2 + $0x38] sm:$0x1] }
 0x18a   : > { %4229 = vmatmul.bf16.vlgmr.msra.gmra.mxu3 %v4157_v33  ;;  %v3633_v33 = vrot.slane %v3631_v40, 5  ;;  %801 = vst [vmem:[#allocation2 + $0x8c] sm:$0x1] %v800_v53  ;;  %v4158_v47 = vpack.c.b16 %v4144_v37, %v4143_v11  ;;  %v11713_v8 = vrot.slane %v3005_v24, 9  ;;  %v3775_v29 = vunpack.c.l.b16 %v3624_v27 }
 0x18b   : > { %3864 = vmatmul.bf16.gmra.mxu1 %v3788_v22  ;;  %v2126_v4 = vpop.f32.mrf.mxu0  ;;  %v3051_v22 = vrot.slane %v13848_v44, 5  ;;  %v587_v5 = vshrl.u32 %v386_v7, 16  ;;  %v3054_v30 = vrot.slane %v13849_v61, 5  ;;  %v15108_v3 = vld [vmem:[#allocation2 + $0x88] sm:$0xf]  ;;  %v4087_v6 = vrot.slane %v4085_v36, 4 }
 0x18c   : > { %v2165_v56 = vadd.f32 %v2126_v4, %v1787_v9  ;;  %v3634_v9 = vsel %vm14142_vm4, %v3629_v62, %v3633_v33  ;;  %v595_v4 = vshrl.u32 %v15101_v28, 16  ;;  %v4088_v46 = vrot.slane %v15060_v54, 5 }
 0x18d   : > { %v2947_v10 = vpop.f32.mrf.mxu3  ;;  %v3776_v18 = vunpack.c.l.b16 %v3634_v9  ;;  %v3053_v19 = vrot.slane %v3051_v22, 4  ;;  %v3645_v42 = vshll.u32 %v15108_v3, 16  ;;  %v590_v33 = vshll.u32 %v386_v7, 16 }
 0x18e   : > { %v2571_v38 = vpop.f32.mrf.mxu2  ;;  %v15093_v13 = vadd.f32 %v2947_v10, %v2609_v39  ;;  %v2415_v2 = vadd.f32 %v15036_v20, %v2165_v56  ;;  %v4047_v39 = vld [vmem:[#allocation2 + $0x78] sm:$0xe]  ;;  %v3649_v11 = vshrl.u32 %v15108_v3, 16  ;;  %v589_v44 = vrot.slane %v587_v5, 7 }
 0x18f   : > { %v11881_v0 = vrot.slane %v4047_v39, 9  ;;  %v3529_v31 = vld [vmem:[#allocation2 + $0x84] sm:$0xf]  ;;  %v3789_v10 = vpack.c.b16 %v3776_v18, %v3775_v29  ;;  %v598_v54 = vshll.u32 %v15101_v28, 16  ;;  %v3052_v39 = vsel %vm14151_vm5, %v11713_v8, %v3051_v22  ;;  %v802_v18 = vld [vmem:[#allocation2 + $0x90] sm:$0xf] }
 0x190   : > { %v15103_v40 = vpop.f32.mrf.mxu1  ;;  %v2610_v20 = vadd.f32 %v2571_v38, %v2415_v2  ;;  %v3636_v50 = vshrl.u32 %v3529_v31, 16  ;;  %v3639_v56 = vshll.u32 %v3529_v31, 16  ;;  %v15117_v38 = vrot.slane %v3645_v42, 5  ;;  %v13569_v22 = vld [vmem:[%s18116_s1 + $0x160] sm:$0xff]  ;;  %v3006_v31 = vld [vmem:[#allocation2 + $0x3c] sm:$0xe] }
 0x191   : > { %v15114_v12 = vld [vmem:[#allocation2 + $0x8c] sm:$0x1]  ;;  %v597_v2 = vrot.slane %v595_v4, 7  ;;  %v3651_v23 = vrot.slane %v3649_v11, 4  ;;  %v3055_v28 = vsel %vm14151_vm5, %v3053_v19, %v3054_v30  ;;  %v592_v29 = vor.u32 %v590_v33, %v589_v44  ;;  %v13585_v8 = vld [vmem:[%s18116_s1 + $0x1a0] sm:$0xff]  ;;  %5044 = vmatpush.bf16.msrb.mxu2 %v13569_v22 }
 0x192   : > { %v3638_v24 = vrot.slane %v3636_v50, 4  ;;  %v3641_v27 = vrot.slane %v3639_v56, 5  ;;  %v4089_v5 = vsel %vm14151_vm5, %v4087_v6, %v4088_v46  ;;  %v593_v19 = vrot.slane %v589_v44, 4  ;;  %v806_v33 = vld [vmem:[#allocation2 + $0x98] sm:$0x1]  ;;  %5238 = vmatpush.bf16.msrb.mxu3 %v13585_v8 }
 0x193   : > { %4009 = vmatmul.bf16.gmra.mxu2 %v13510_v57  ;;  %v2129_v17 = vpop.f32.mrf.mxu0  ;;  %v3112_v46 = vunpack.c.l.b16 %v3052_v39  ;;  %v3113_v11 = vunpack.c.l.b16 %v3055_v28 }
 0x194   : > { %v2166_v21 = vadd.f32 %v2129_v17, %v14671_v1  ;;  %v3655_v1 = vshll.u32 %v15114_v12, 16  ;;  %v602_v17 = vrot.slane %v597_v2, 4 }
 0x195   : > { %v2949_v37 = vpop.f32.mrf.mxu3 }
 0x196   : > { %v2574_v53 = vpop.f32.mrf.mxu2  ;;  %v15120_v62 = vadd.f32 %v2949_v37, %v2610_v20  ;;  %v2416_v7 = vadd.f32 %v15063_v15, %v2166_v21  ;;  %3201 = vmatmul.bf16.gmra.mxu0 %v3125_v14  ;;  %v4086_v20 = vsel %vm14151_vm5, %v11881_v0, %v4085_v36  ;;  %v3642_v15 = vor.u32 %v3641_v27, %v3638_v24  ;;  %v13553_v36 = vld [vmem:[%s18116_s1 + $0xe0] sm:$0xff] }
 0x197   : > { %v3652_v14 = vor.u32 %v3651_v23, %v15117_v38  ;;  %v3657_v61 = vrot.slane %v3655_v1, 5  ;;  %4418 = vmatpush.bf16.msrb.mxu0 %v13553_v36  ;;  %v356_v21 = vld [vmem:[%s14256_s9 + $0xc0] sm:$0xff]  ;;  %v4145_v37 = vunpack.c.l.b16 %v4086_v20  ;;  %v11714_v23 = vrot.slane %v3006_v31, 9 }
 0x198   : > { %v15124_v57 = vpop.f32.mrf.mxu1  ;;  %v2611_v9 = vadd.f32 %v2574_v53, %v2416_v7  ;;  %v3643_v0 = vrot.slane %v3642_v15, 4  ;;  %v4146_v53 = vunpack.c.l.b16 %v4089_v5  ;;  %v13511_v7 = vld [vmem:[#allocation2 + $0x78] sm:$0xff]  ;;  %v13561_v24 = vld [vmem:[%s18116_s1 + $0x120] sm:$0xff]  ;;  %v388_v28 = vpack.c.bf16 %v356_v21, %v356_v21 }
 0x199   : > { %v3653_v4 = vrot.slane %v3652_v14, 4  ;;  %4795 = vmatpush.bf16.msrb.mxu1 %v13561_v24 }
 0x19a   : > { %4234 = vmatmul.bf16.gmra.mxu3 %v4158_v47  ;;  %v600_v47 = vor.u32 %v598_v54, %v597_v2  ;;  %v3648_v1 = vsel %vm14142_vm4, %v3643_v0, %v15117_v38  ;;  %v604_v5 = vshrl.u32 %v388_v28, 16  ;;  %v4159_v22 = vpack.c.b16 %v4146_v53, %v4145_v37 }
 0x19b   : > { %3869 = vmatmul.bf16.gmra.mxu1 %v3789_v10  ;;  %v2131_v30 = vpop.f32.mrf.mxu0  ;;  %v803_v10 = vsel %vm14297_vm10, %v592_v29, %v802_v18  ;;  %v3658_v2 = vsel %vm14142_vm4, %v3653_v4, %v3657_v61  ;;  %v3777_v15 = vunpack.c.l.b16 %v3648_v1  ;;  %v4048_v29 = vld [vmem:[#allocation2 + $0x84] sm:$0xe]  ;;  %v3126_v18 = vpack.c.b16 %v3113_v11, %v3112_v46 }
 0x19c   : > { %v2167_v6 = vadd.f32 %v2131_v30, %v14683_v60  ;;  %v601_v42 = vsel %vm14314_vm12, %v593_v19, %v600_v47  ;;  %v357_v60 = vld [vmem:[%s14256_s9 + $0xc8] sm:$0xff]  ;;  %804 = vst [vmem:[#allocation2 + $0x90] sm:$0xf] %v803_v10  ;;  %v3778_v14 = vunpack.c.l.b16 %v3658_v2  ;;  %v13851_v19 = vld [vmem:[#allocation2 + $0x44] sm:$0x1]  ;;  %v11882_v0 = vrot.slane %v4048_v29, 9 }
 0x19d   : > { %v2952_v50 = vpop.f32.mrf.mxu3  ;;  %805 = vst [vmem:[#allocation2 + $0x94] sm:$0xf] %v601_v42  ;;  %v15166_v38 = vpack.c.bf16 %v357_v60, %v357_v60  ;;  %v3061_v47 = vrot.slane %v13851_v19, 5  ;;  %v4092_v4 = vrot.slane %v15108_v3, 5  ;;  %v606_v3 = vrot.slane %v604_v5, 7  ;;  %v13584_v29 = vld [vmem:[%s18116_s1 + $0x198] sm:$0xff] }
 0x19e   : > { %v2576_v56 = vpop.f32.mrf.mxu2  ;;  %v15151_v44 = vadd.f32 %v2952_v50, %v2611_v9  ;;  %v2417_v54 = vadd.f32 %v15103_v40, %v2167_v6  ;;  %v13850_v9 = vld [vmem:[#allocation2 + $0x40] sm:$0xf]  ;;  %v807_v40 = vsel %vm14324_vm13, %v602_v17, %v806_v33  ;;  %v3790_v42 = vpack.c.b16 %v3778_v14, %v3777_v15  ;;  %v13568_v14 = vld [vmem:[%s18116_s1 + $0x158] sm:$0xff]  ;;  %5239 = vmatpush.bf16.msrb.mxu3 %v13584_v29 }
 0x19f   : > { %v3058_v39 = vrot.slane %v13850_v9, 5  ;;  %808 = vst [vmem:[#allocation2 + $0x98] sm:$0x1] %v807_v40  ;;  %v612_v6 = vshrl.u32 %v15166_v38, 16  ;;  %v4095_v33 = vrot.slane %v15114_v12, 5  ;;  %v607_v37 = vshll.u32 %v388_v28, 16  ;;  %5045 = vmatpush.bf16.msrb.mxu2 %v13568_v14 }
 0x1a0   : > { %v15162_v27 = vpop.f32.mrf.mxu1  ;;  %v2612_v20 = vadd.f32 %v2576_v56, %v2417_v54  ;;  %v4094_v9 = vrot.slane %v4092_v4, 4  ;;  %v809_v28 = vld [vmem:[#allocation2 + $0x9c] sm:$0xf]  ;;  %v610_v19 = vrot.slane %v606_v3, 4  ;;  %v13853_v14 = vld [vmem:[#allocation2 + $0x50] sm:$0x1] }
 0x1a1   : > { %v15170_v36 = vsel %vm14151_vm5, %v11714_v23, %v3058_v39  ;;  %v3060_v8 = vrot.slane %v3058_v39, 4  ;;  %v614_v24 = vrot.slane %v612_v6, 7  ;;  %v615_v23 = vshll.u32 %v15166_v38, 16  ;;  %v13552_v38 = vld [vmem:[%s18116_s1 + $0xd8] sm:$0xff] }
 0x1a2   : > { %4419 = vmatpush.bf16.msrb.mxu0 %v13552_v38  ;;  %v3068_v38 = vrot.slane %v13853_v14, 5 }
 0x1a3   : > { %4014 = vmatmul.bf16.gmra.mxu2 %v13511_v7  ;;  %v2134_v61 = vpop.f32.mrf.mxu0  ;;  %v3531_v21 = vld [vmem:[#allocation2 + $0x90] sm:$0xf]  ;;  %v617_v6 = vor.u32 %v615_v23, %v614_v24 }
 0x1a4   : > { %v2168_v30 = vadd.f32 %v2134_v61, %v14713_v41  ;;  %v15174_v17 = vld [vmem:[#allocation2 + $0x94] sm:$0xf]  ;;  %v3660_v60 = vshrl.u32 %v3531_v21, 16  ;;  %v3663_v54 = vshll.u32 %v3531_v21, 16  ;;  %v3114_v61 = vunpack.c.l.b16 %v15170_v36 }
 0x1a5   : > { %v2954_v46 = vpop.f32.mrf.mxu3  ;;  %v3669_v50 = vshll.u32 %v15174_v17, 16  ;;  %v3673_v56 = vshrl.u32 %v15174_v17, 16  ;;  %v4096_v36 = vsel %vm14151_vm5, %v4094_v9, %v4095_v33  ;;  %v13560_v33 = vld [vmem:[%s18116_s1 + $0x118] sm:$0xff] }
 0x1a6   : > { %v2579_v31 = vpop.f32.mrf.mxu2  ;;  %v15180_v11 = vadd.f32 %v2954_v46, %v2612_v20  ;;  %v2418_v41 = vadd.f32 %v15124_v57, %v2168_v30  ;;  %3206 = vmatmul.bf16.gmra.mxu0 %v3126_v18  ;;  %v15185_v10 = vld [vmem:[#allocation2 + $0x98] sm:$0x1]  ;;  %v3662_v57 = vrot.slane %v3660_v60, 4  ;;  %v3665_v39 = vrot.slane %v3663_v54, 5  ;;  %v13512_v54 = vld [vmem:[#allocation2 + $0x84] sm:$0xff]  ;;  %4796 = vmatpush.bf16.msrb.mxu1 %v13560_v33 }
 0x1a7   : > { %v15187_v7 = vrot.slane %v3669_v50, 5  ;;  %v3675_v12 = vrot.slane %v3673_v56, 4  ;;  %v3679_v2 = vshll.u32 %v15185_v10, 16  ;;  %v3062_v20 = vsel %vm14151_vm5, %v3060_v8, %v3061_v47  ;;  %v13852_v56 = vld [vmem:[#allocation2 + $0x4c] sm:$0xf] }
 0x1a8   : > { %v15183_v53 = vpop.f32.mrf.mxu1  ;;  %v2613_v1 = vadd.f32 %v2579_v31, %v2418_v41  ;;  %v609_v18 = vor.u32 %v607_v37, %v606_v3  ;;  %v4093_v30 = vsel %vm14151_vm5, %v11882_v0, %v4092_v4  ;;  %v619_v46 = vrot.slane %v614_v24, 4  ;;  %v813_v31 = vld [vmem:[#allocation2 + $0xa4] sm:$0x1]  ;;  %v359_v37 = vld [vmem:[%s14256_s9 + $0xd8] sm:$0xff] }
 0x1a9   : > { %v3676_v40 = vor.u32 %v3675_v12, %v15187_v7  ;;  %v3681_v15 = vrot.slane %v3679_v2, 5  ;;  %v3065_v41 = vrot.slane %v13852_v56, 5  ;;  %v3115_v60 = vunpack.c.l.b16 %v3062_v20  ;;  %v3007_v12 = vld [vmem:[#allocation2 + $0x48] sm:$0xe] }
 0x1aa   : > { %4239 = vmatmul.bf16.gmra.mxu3 %v4159_v22  ;;  %v3666_v22 = vor.u32 %v3665_v39, %v3662_v57  ;;  %v814_v23 = vsel %vm14324_vm13, %v619_v46, %v813_v31  ;;  %v4147_v39 = vunpack.c.l.b16 %v4093_v30  ;;  %v11715_v20 = vrot.slane %v3007_v12, 9  ;;  %v4049_v46 = vld [vmem:[#allocation2 + $0x90] sm:$0xe] }
 0x1ab   : > { %3874 = vmatmul.bf16.gmra.mxu1 %v3790_v42  ;;  %v2136_v5 = vpop.f32.mrf.mxu0  ;;  %v3677_v8 = vrot.slane %v3676_v40, 4  ;;  %v358_v42 = vld [vmem:[%s14256_s9 + $0xd0] sm:$0xff]  ;;  %v4148_v40 = vunpack.c.l.b16 %v4096_v36  ;;  %815 = vst [vmem:[#allocation2 + $0xa4] sm:$0x1] %v814_v23  ;;  %v4099_v36 = vrot.slane %v15174_v17, 5  ;;  %v4102_v17 = vrot.slane %v15185_v10, 5 }
 0x1ac   : > { %v2169_v47 = vadd.f32 %v2136_v5, %v14735_v26  ;;  %v3667_v3 = vrot.slane %v3666_v22, 4  ;;  %v810_v26 = vsel %vm14297_vm10, %v609_v18, %v809_v28  ;;  %v390_v9 = vpack.c.bf16 %v358_v42, %v358_v42  ;;  %v13567_v10 = vld [vmem:[%s18116_s1 + $0x150] sm:$0xff] }
 0x1ad   : > { %v2957_v21 = vpop.f32.mrf.mxu3  ;;  %v3682_v2 = vsel %vm14142_vm4, %v3677_v8, %v3681_v15  ;;  %811 = vst [vmem:[#allocation2 + $0x9c] sm:$0xf] %v810_v26  ;;  %v391_v28 = vpack.c.bf16 %v359_v37, %v359_v37  ;;  %v3067_v15 = vrot.slane %v3065_v41, 4  ;;  %5046 = vmatpush.bf16.msrb.mxu2 %v13567_v10 }
 0x1ae   : > { %v2581_v50 = vpop.f32.mrf.mxu2  ;;  %v15213_v0 = vadd.f32 %v2957_v21, %v2613_v1  ;;  %v2419_v4 = vadd.f32 %v15162_v27, %v2169_v47  ;;  %v3672_v1 = vsel %vm14142_vm4, %v3667_v3, %v15187_v7  ;;  %v618_v27 = vsel %vm14314_vm12, %v610_v19, %v617_v6 }
 0x1af   : > { %812 = vst [vmem:[#allocation2 + $0xa0] sm:$0xf] %v618_v27  ;;  %v621_v29 = vshrl.u32 %v390_v9, 16  ;;  %v3127_v7 = vpack.c.b16 %v3115_v60, %v3114_v61  ;;  %v3779_v18 = vunpack.c.l.b16 %v3672_v1  ;;  %v3780_v5 = vunpack.c.l.b16 %v3682_v2 }
 0x1b0   : > { %v15221_v24 = vpop.f32.mrf.mxu1  ;;  %v2614_v57 = vadd.f32 %v2581_v50, %v2419_v4  ;;  %v629_v22 = vshrl.u32 %v391_v28, 16  ;;  %v632_v47 = vshll.u32 %v391_v28, 16  ;;  %v4160_v6 = vpack.c.b16 %v4148_v40, %v4147_v39  ;;  %v816_v28 = vld [vmem:[#allocation2 + $0xa8] sm:$0xf] }
 0x1b1   : > { %v623_v19 = vrot.slane %v621_v29, 7  ;;  %v15235_v50 = vsel %vm14151_vm5, %v11715_v20, %v3065_v41  ;;  %v15239_v61 = vsel %vm14151_vm5, %v3067_v15, %v3068_v38  ;;  %v624_v3 = vshll.u32 %v390_v9, 16  ;;  %v13551_v38 = vld [vmem:[%s18116_s1 + $0xd0] sm:$0xff] }
 0x1b2   : > { %v15231_v31 = vrot.slane %v629_v22, 7  ;;  %v3791_v37 = vpack.c.b16 %v3780_v5, %v3779_v18  ;;  %v15251_v27 = vld [vmem:[#allocation2 + $0xa4] sm:$0x1]  ;;  %v4101_v20 = vrot.slane %v4099_v36, 4  ;;  %v13583_v29 = vld [vmem:[%s18116_s1 + $0x190] sm:$0xff]  ;;  %v3116_v5 = vunpack.c.l.b16 %v15235_v50  ;;  %4420 = vmatpush.bf16.msrb.mxu0 %v13551_v38 }
 0x1b3   : > { %4019 = vmatmul.bf16.gmra.mxu2 %v13512_v54  ;;  %v2139_v8 = vpop.f32.mrf.mxu0  ;;  %v627_v4 = vrot.slane %v623_v19, 4  ;;  %v11883_v54 = vrot.slane %v4049_v46, 9  ;;  %v3703_v39 = vshll.u32 %v15251_v27, 16  ;;  %v626_v40 = vor.u32 %v624_v3, %v623_v19  ;;  %v360_v19 = vld [vmem:[%s14256_s9 + $0xe0] sm:$0xff]  ;;  %v3008_v3 = vld [vmem:[#allocation2 + $0x54] sm:$0xe]  ;;  %5240 = vmatpush.bf16.msrb.mxu3 %v13583_v29 }
 0x1b4   : > { %v2170_v30 = vadd.f32 %v2139_v8, %v14771_v16  ;;  %v3533_v56 = vld [vmem:[#allocation2 + $0x9c] sm:$0xf]  ;;  %v634_v33 = vor.u32 %v632_v47, %v15231_v31  ;;  %v3117_v22 = vunpack.c.l.b16 %v15239_v61  ;;  %v636_v46 = vrot.slane %v15231_v31, 4 }
 0x1b5   : > { %v2959_v42 = vpop.f32.mrf.mxu3  ;;  %v3684_v12 = vshrl.u32 %v3533_v56, 16  ;;  %v3687_v2 = vshll.u32 %v3533_v56, 16  ;;  %v4100_v50 = vsel %vm14151_vm5, %v11883_v54, %v4099_v36  ;;  %v4103_v31 = vsel %vm14151_vm5, %v4101_v20, %v4102_v17  ;;  %v13559_v36 = vld [vmem:[%s18116_s1 + $0x110] sm:$0xff]  ;;  %v361_v54 = vld [vmem:[%s14256_s9 + $0xe8] sm:$0xff] }
 0x1b6   : > { %v2584_v21 = vpop.f32.mrf.mxu2  ;;  %v15242_v26 = vadd.f32 %v2959_v42, %v2614_v57  ;;  %v2420_v16 = vadd.f32 %v15183_v53, %v2170_v30  ;;  %3211 = vmatmul.bf16.gmra.mxu0 %v3127_v7  ;;  %v15247_v41 = vld [vmem:[#allocation2 + $0xa0] sm:$0xf]  ;;  %v635_v7 = vsel %vm14314_vm12, %v627_v4, %v634_v33  ;;  %v820_v42 = vld [vmem:[#allocation2 + $0xb0] sm:$0x1]  ;;  %v3128_v17 = vpack.c.b16 %v3117_v22, %v3116_v5  ;;  %v13855_v22 = vld [vmem:[#allocation2 + $0x5c] sm:$0x1] }
 0x1b7   : > { %v3693_v23 = vshll.u32 %v15247_v41, 16  ;;  %v3697_v53 = vshrl.u32 %v15247_v41, 16  ;;  %v3686_v9 = vrot.slane %v3684_v12, 4  ;;  %v3689_v57 = vrot.slane %v3687_v2, 5  ;;  %819 = vst [vmem:[#allocation2 + $0xac] sm:$0xf] %v635_v7  ;;  %4797 = vmatpush.bf16.msrb.mxu1 %v13559_v36 }
 0x1b8   : > { %v15245_v60 = vpop.f32.mrf.mxu1  ;;  %v2615_v1 = vadd.f32 %v2584_v21, %v2420_v16  ;;  %v817_v16 = vsel %vm14297_vm10, %v626_v40, %v816_v28  ;;  %v13513_v12 = vld [vmem:[#allocation2 + $0x90] sm:$0xff]  ;;  %v4149_v40 = vunpack.c.l.b16 %v4100_v50  ;;  %v4150_v28 = vunpack.c.l.b16 %v4103_v31 }
 0x1b9   : > { %v3695_v15 = vrot.slane %v3693_v23, 5  ;;  %v3699_v14 = vrot.slane %v3697_v53, 4  ;;  %v3690_v8 = vor.u32 %v3689_v57, %v3686_v9  ;;  %818 = vst [vmem:[#allocation2 + $0xa8] sm:$0xf] %v817_v16  ;;  %v13854_v23 = vld [vmem:[#allocation2 + $0x58] sm:$0xf] }
 0x1ba   : > { %4244 = vmatmul.bf16.gmra.mxu3 %v4160_v6  ;;  %v3705_v6 = vrot.slane %v3703_v39, 5  ;;  %v3072_v53 = vrot.slane %v13854_v23, 5  ;;  %v11716_v20 = vrot.slane %v3008_v3, 9  ;;  %v4106_v50 = vrot.slane %v15247_v41, 5 }
 0x1bb   : > { %3879 = vmatmul.bf16.gmra.mxu1 %v3791_v37  ;;  %v2141_v18 = vpop.f32.mrf.mxu0  ;;  %v3700_v30 = vor.u32 %v3699_v14, %v3695_v15  ;;  %v3691_v61 = vrot.slane %v3690_v8, 4  ;;  %v393_v14 = vpack.c.bf16 %v361_v54, %v361_v54 }
 0x1bc   : > { %v2171_v47 = vadd.f32 %v2141_v18, %v14800_v58  ;;  %v392_v58 = vpack.c.bf16 %v360_v19, %v360_v19  ;;  %v3074_v8 = vrot.slane %v3072_v53, 4  ;;  %v3075_v19 = vrot.slane %v13855_v22, 5 }
 0x1bd   : > { %v2962_v21 = vpop.f32.mrf.mxu3  ;;  %v3701_v2 = vrot.slane %v3700_v30, 4 }
 0x1be   : > { %v2586_v56 = vpop.f32.mrf.mxu2  ;;  %v15276_v37 = vadd.f32 %v2962_v21, %v2615_v1  ;;  %v2421_v4 = vadd.f32 %v15221_v24, %v2171_v47  ;;  %v3696_v1 = vsel %vm14142_vm4, %v3691_v61, %v3695_v15  ;;  %v821_v24 = vsel %vm14324_vm13, %v636_v46, %v820_v42  ;;  %v15293_v29 = vld [vmem:[#allocation2 + $0xac] sm:$0xf] }
 0x1bf   : > { %v638_v9 = vshrl.u32 %v392_v58, 16  ;;  %v3706_v39 = vsel %vm14142_vm4, %v3701_v2, %v3705_v6  ;;  %822 = vst [vmem:[#allocation2 + $0xb0] sm:$0x1] %v821_v24  ;;  %v3781_v10 = vunpack.c.l.b16 %v3696_v1  ;;  %v641_v7 = vshll.u32 %v392_v58, 16 }
 0x1c0   : > { %v15285_v33 = vpop.f32.mrf.mxu1  ;;  %v2616_v57 = vadd.f32 %v2586_v56, %v2421_v4  ;;  %v3782_v38 = vunpack.c.l.b16 %v3706_v39  ;;  %v3717_v47 = vshll.u32 %v15293_v29, 16  ;;  %v3721_v30 = vshrl.u32 %v15293_v29, 16  ;;  %v4050_v56 = vld [vmem:[#allocation2 + $0x9c] sm:$0xe]  ;;  %v3535_v3 = vld [vmem:[#allocation2 + $0xa8] sm:$0xf] }
 0x1c1   : > { %v15295_v15 = vrot.slane %v638_v9, 7  ;;  %v4161_v46 = vpack.c.b16 %v4150_v28, %v4149_v40  ;;  %v15302_v21 = vsel %vm14151_vm5, %v11716_v20, %v3072_v53  ;;  %v646_v61 = vshrl.u32 %v393_v14, 16  ;;  %v823_v9 = vld [vmem:[#allocation2 + $0xb4] sm:$0xf]  ;;  %v13566_v20 = vld [vmem:[%s18116_s1 + $0x148] sm:$0xff] }
 0x1c2   : > { %v3792_v58 = vpack.c.b16 %v3782_v38, %v3781_v10  ;;  %v3708_v2 = vshrl.u32 %v3535_v3, 16  ;;  %v3711_v36 = vshll.u32 %v3535_v3, 16  ;;  %v3719_v54 = vrot.slane %v3717_v47, 5  ;;  %5047 = vmatpush.bf16.msrb.mxu2 %v13566_v20 }
 0x1c3   : > { %4024 = vmatmul.bf16.gmra.mxu2 %v13513_v12  ;;  %v2144_v18 = vpop.f32.mrf.mxu0  ;;  %v643_v4 = vor.u32 %v641_v7, %v15295_v15  ;;  %v3723_v23 = vrot.slane %v3721_v30, 4  ;;  %v11884_v41 = vrot.slane %v4050_v56, 9  ;;  %v649_v24 = vshll.u32 %v393_v14, 16  ;;  %v13550_v14 = vld [vmem:[%s18116_s1 + $0xc8] sm:$0xff] }
 0x1c4   : > { %v2172_v5 = vadd.f32 %v2144_v18, %v14840_v55  ;;  %v3076_v40 = vsel %vm14151_vm5, %v3074_v8, %v3075_v19  ;;  %v4108_v28 = vrot.slane %v4106_v50, 4  ;;  %v644_v10 = vrot.slane %v15295_v15, 4  ;;  %4421 = vmatpush.bf16.msrb.mxu0 %v13550_v14  ;;  %v13857_v14 = vld [vmem:[#allocation2 + $0x68] sm:$0x1] }
 0x1c5   : > { %v2964_v6 = vpop.f32.mrf.mxu3  ;;  %v3724_v39 = vor.u32 %v3723_v23, %v3719_v54  ;;  %v648_v38 = vrot.slane %v646_v61, 7  ;;  %v824_v22 = vsel %vm14297_vm10, %v643_v4, %v823_v9  ;;  %v3118_v56 = vunpack.c.l.b16 %v15302_v21 }
 0x1c6   : > { %v2589_v42 = vpop.f32.mrf.mxu2  ;;  %v15305_v16 = vadd.f32 %v2964_v6, %v2616_v57  ;;  %v2422_v55 = vadd.f32 %v15245_v60, %v2172_v5  ;;  %3216 = vmatmul.bf16.gmra.mxu0 %v3128_v17  ;;  %v15311_v31 = vld [vmem:[#allocation2 + $0xb0] sm:$0x1]  ;;  %v4109_v60 = vrot.slane %v15251_v27, 5  ;;  %v3710_v57 = vrot.slane %v3708_v2, 4  ;;  %v13582_v27 = vld [vmem:[%s18116_s1 + $0x188] sm:$0xff] }
 0x1c7   : > { %v3727_v1 = vshll.u32 %v15311_v31, 16  ;;  %v3713_v17 = vrot.slane %v3711_v36, 5  ;;  %v3725_v8 = vrot.slane %v3724_v39, 4  ;;  %v651_v47 = vor.u32 %v649_v24, %v648_v38  ;;  %v827_v6 = vld [vmem:[#allocation2 + $0xbc] sm:$0x1]  ;;  %5241 = vmatpush.bf16.msrb.mxu3 %v13582_v27  ;;  %v13558_v2 = vld [vmem:[%s18116_s1 + $0x108] sm:$0xff] }
 0x1c8   : > { %v15309_v12 = vpop.f32.mrf.mxu1  ;;  %v2617_v53 = vadd.f32 %v2589_v42, %v2422_v55  ;;  %v653_v30 = vrot.slane %v648_v38, 4  ;;  %v3119_v15 = vunpack.c.l.b16 %v3076_v40  ;;  %v4107_v3 = vsel %vm14151_vm5, %v11884_v41, %v4106_v50  ;;  %825 = vst [vmem:[#allocation2 + $0xb4] sm:$0xf] %v824_v22  ;;  %v13856_v41 = vld [vmem:[#allocation2 + $0x64] sm:$0xf]  ;;  %4798 = vmatpush.bf16.msrb.mxu1 %v13558_v2 }
 0x1c9   : > { %v3714_v18 = vor.u32 %v3713_v17, %v3710_v57  ;;  %v3729_v5 = vrot.slane %v3727_v1, 5  ;;  %v4110_v4 = vsel %vm14151_vm5, %v4108_v28, %v4109_v60  ;;  %v652_v21 = vsel %vm14314_vm12, %v644_v10, %v651_v47  ;;  %v3009_v60 = vld [vmem:[#allocation2 + $0x60] sm:$0xe] }
 0x1ca   : > { %4249 = vmatmul.bf16.gmra.mxu3 %v4161_v46  ;;  %826 = vst [vmem:[#allocation2 + $0xb8] sm:$0xf] %v652_v21  ;;  %v3079_v1 = vrot.slane %v13856_v41, 5  ;;  %v4151_v24 = vunpack.c.l.b16 %v4107_v3  ;;  %v4152_v9 = vunpack.c.l.b16 %v4110_v4  ;;  %v3129_v57 = vpack.c.b16 %v3119_v15, %v3118_v56  ;;  %v13549_v41 = vld [vmem:[%s18116_s1 + $0xc0] sm:$0xff] }
 0x1cb   : > { %3884 = vmatmul.bf16.gmra.mxu1 %v3792_v58  ;;  %v2146_v7 = vpop.f32.mrf.mxu0  ;;  %v3715_v61 = vrot.slane %v3714_v18, 4  ;;  %v13514_v58 = vld [vmem:[#allocation2 + $0x9c] sm:$0xff]  ;;  %v3730_v23 = vsel %vm14142_vm4, %v3725_v8, %v3729_v5  ;;  %v11717_v28 = vrot.slane %v3009_v60, 9  ;;  %v3082_v27 = vrot.slane %v13857_v14, 5  ;;  %4422 = vmatpush.bf16.msrb.mxu0 %v13549_v41 }
 0x1cc   : > { %v2173_v19 = vadd.f32 %v2146_v7, %v14871_v63  ;;  %v3784_v39 = vunpack.c.l.b16 %v3730_v23  ;;  %v3081_v20 = vrot.slane %v3079_v1, 4  ;;  %v4162_v7 = vpack.c.b16 %v4152_v9, %v4151_v24 }
 0x1cd   : > { %v2967_v46 = vpop.f32.mrf.mxu3  ;;  %v3720_v50 = vsel %vm14142_vm4, %v3715_v61, %v3719_v54 }
 0x1ce   : > { %v2591_v42 = vpop.f32.mrf.mxu2  ;;  %v15333_v55 = vadd.f32 %v2967_v46, %v2617_v53  ;;  %v2423_v63 = vadd.f32 %v15285_v33, %v2173_v19  ;;  %v828_v33 = vsel %vm14324_vm13, %v653_v30, %v827_v6  ;;  %v3783_v17 = vunpack.c.l.b16 %v3720_v50  ;;  %v4051_v30 = vld [vmem:[#allocation2 + $0xa8] sm:$0xe] }
 0x1cf   : > { %829 = vst [vmem:[#allocation2 + $0xbc] sm:$0x1] %v828_v33  ;;  %v3537_v10 = vld [vmem:[#allocation2 + $0xb4] sm:$0xf]  ;;  %v4113_v6 = vrot.slane %v15293_v29, 5  ;;  %v11885_v4 = vrot.slane %v4051_v30, 9 }
 0x1d0   : > { %v15343_v36 = vpop.f32.mrf.mxu1  ;;  %v2618_v53 = vadd.f32 %v2591_v42, %v2423_v63  ;;  %v3732_v8 = vshrl.u32 %v3537_v10, 16  ;;  %v3735_v5 = vshll.u32 %v3537_v10, 16  ;;  %v3793_v47 = vpack.c.b16 %v3784_v39, %v3783_v17 }
 0x1d1   : > { %v4115_v23 = vrot.slane %v4113_v6, 4  ;;  %v4116_v33 = vrot.slane %v15311_v31, 5  ;;  %v4114_v14 = vsel %vm14151_vm5, %v11885_v4, %v4113_v6 }
 0x1d2   : > { %v3734_v56 = vrot.slane %v3732_v8, 4  ;;  %v3737_v15 = vrot.slane %v3735_v5, 5  ;;  %v13858_v8 = vld [vmem:[#allocation2 + $0x70] sm:$0xf] }
 0x1d3   : > { %4029 = vmatmul.bf16.gmra.mxu2 %v13514_v58  ;;  %v2149_v54 = vpop.f32.mrf.mxu0  ;;  %v3083_v58 = vsel %vm14151_vm5, %v3081_v20, %v3082_v27  ;;  %v3086_v5 = vrot.slane %v13858_v8, 5 }
 0x1d4   : > { %v2174_v40 = vadd.f32 %v2149_v54, %v14921_v59  ;;  %v15356_v59 = vld [vmem:[#allocation2 + $0xb8] sm:$0xf]  ;;  %v3738_v2 = vor.u32 %v3737_v15, %v3734_v56  ;;  %v3121_v31 = vunpack.c.l.b16 %v3083_v58  ;;  %v4480_v54 = vld [vmem:[#allocation2 + $0x6c] sm:$0xf] }
 0x1d5   : > { %v2969_v38 = vpop.f32.mrf.mxu3  ;;  %v3741_v3 = vshll.u32 %v15356_v59, 16  ;;  %v3745_v61 = vshrl.u32 %v15356_v59, 16  ;;  %v4505_v10 = vshrl.u32 %v4480_v54, 16  ;;  %v4508_v56 = vshll.u32 %v4480_v54, 16 }
 0x1d6   : > { %v2594_v18 = vpop.f32.mrf.mxu2  ;;  %v15352_v22 = vadd.f32 %v2969_v38, %v2618_v53  ;;  %v2424_v19 = vadd.f32 %v15309_v12, %v2174_v40  ;;  %3221 = vmatmul.bf16.gmra.mxu0 %v3129_v57  ;;  %v15360_v42 = vld [vmem:[#allocation2 + $0xbc] sm:$0x1]  ;;  %v3080_v12 = vsel %vm14151_vm5, %v11717_v28, %v3079_v1  ;;  %v13565_v53 = vld [vmem:[%s18116_s1 + $0x140] sm:$0xff]  ;;  %v3739_v9 = vrot.slane %v3738_v2, 4  ;;  %v15380_v40 = vld [vmem:[#allocation2 + $0x70] sm:$0xf] }
 0x1d7   : > { %v3751_v29 = vshll.u32 %v15360_v42, 16  ;;  %v3743_v21 = vrot.slane %v3741_v3, 5  ;;  %v3747_v50 = vrot.slane %v3745_v61, 4  ;;  %v13581_v1 = vld [vmem:[%s18116_s1 + $0x180] sm:$0xff]  ;;  %v3120_v39 = vunpack.c.l.b16 %v3080_v12  ;;  %5048 = vmatpush.bf16.msrb.mxu2 %v13565_v53  ;;  %v3010_v61 = vld [vmem:[#allocation2 + $0x6c] sm:$0xe] }
 0x1d8   : > { %v15358_v46 = vpop.f32.mrf.mxu1  ;;  %v2619_v63 = vadd.f32 %v2594_v18, %v2424_v19  ;;  %5242 = vmatpush.bf16.msrb.mxu3 %v13581_v1  ;;  %v4117_v18 = vsel %vm14151_vm5, %v4115_v23, %v4116_v33  ;;  %v13557_v19 = vld [vmem:[%s18116_s1 + $0x100] sm:$0xff]  ;;  %v4153_v12 = vunpack.c.l.b16 %v4114_v14  ;;  %v4507_v58 = vrot.slane %v4505_v10, 4  ;;  %v15402_v23 = vld [vmem:[#allocation2 + $0x74] sm:$0x1] }
 0x1d9   : > { %v3748_v60 = vor.u32 %v3747_v50, %v3743_v21  ;;  %v3753_v57 = vrot.slane %v3751_v29, 5  ;;  %v3744_v30 = vsel %vm14142_vm4, %v3739_v9, %v3743_v21  ;;  %v3130_v3 = vpack.c.b16 %v3121_v31, %v3120_v39  ;;  %4799 = vmatpush.bf16.msrb.mxu1 %v13557_v19  ;;  %v4052_v31 = vld [vmem:[#allocation2 + $0xb4] sm:$0xe] }
 0x1da   : > { %4254 = vmatmul.bf16.gmra.mxu3 %v4162_v7  ;;  %v4510_v29 = vrot.slane %v4508_v56, 5  ;;  %v4154_v2 = vunpack.c.l.b16 %v4117_v18  ;;  %v3785_v21 = vunpack.c.l.b16 %v3744_v30  ;;  %v11718_v41 = vrot.slane %v3010_v61, 9 }
 0x1db   : > { %3889 = vmatmul.bf16.gmra.mxu1 %v3793_v47  ;;  %v2151_v24 = vpop.f32.mrf.mxu0  ;;  %v3749_v27 = vrot.slane %v3748_v60, 4  ;;  %v3088_v1 = vrot.slane %v3086_v5, 4  ;;  %v11886_v8 = vrot.slane %v4052_v31, 9  ;;  %v4123_v30 = vrot.slane %v15360_v42, 5  ;;  %v15424_v42 = vld [vmem:[#allocation2 + $0x7c] sm:$0xf] }
 0x1dc   : > { %v2175_v17 = vadd.f32 %v2151_v24, %v14954_v52  ;;  %v13515_v52 = vld [vmem:[#allocation2 + $0xa8] sm:$0xff]  ;;  %v13859_v24 = vld [vmem:[#allocation2 + $0x74] sm:$0x1]  ;;  %v4511_v54 = vor.u32 %v4510_v29, %v4507_v58  ;;  %v4163_v10 = vpack.c.b16 %v4154_v2, %v4153_v12  ;;  %v4891_v12 = vrot.slane %v15380_v40, 5  ;;  %v4483_v58 = vld [vmem:[#allocation2 + $0x78] sm:$0xf] }
 0x1dd   : > { %v2972_v28 = vpop.f32.mrf.mxu3  ;;  %v3754_v6 = vsel %vm14142_vm4, %v3749_v27, %v3753_v57  ;;  %v3089_v9 = vrot.slane %v13859_v24, 5  ;;  %v4120_v57 = vrot.slane %v15356_v59, 5  ;;  %v4538_v24 = vshll.u32 %v15424_v42, 16 }
 0x1de   : > { %v2596_v20 = vpop.f32.mrf.mxu2  ;;  %v15384_v38 = vadd.f32 %v2972_v28, %v2619_v63  ;;  %v2425_v7 = vadd.f32 %v15343_v36, %v2175_v17  ;;  %v4514_v36 = vshll.u32 %v15380_v40, 16  ;;  %v4518_v63 = vshrl.u32 %v15380_v40, 16  ;;  %v13516_v40 = vld [vmem:[#allocation2 + $0xb4] sm:$0xff] }
 0x1df   : > { %v3786_v50 = vunpack.c.l.b16 %v3754_v6  ;;  %v3090_v59 = vsel %vm14151_vm5, %v3088_v1, %v3089_v9  ;;  %v4122_v19 = vrot.slane %v4120_v57, 4  ;;  %v4512_v6 = vrot.slane %v4511_v54, 4 }
 0x1e0   : > { %v15392_v47 = vpop.f32.mrf.mxu1  ;;  %v2620_v15 = vadd.f32 %v2596_v20, %v2425_v7  ;;  %v15400_v4 = vrot.slane %v4514_v36, 5  ;;  %v4520_v33 = vrot.slane %v4518_v63, 4  ;;  %v4524_v20 = vshll.u32 %v15402_v23, 16 }
 0x1e1   : > { %v3794_v7 = vpack.c.b16 %v3786_v50, %v3785_v21  ;;  %v4124_v63 = vsel %vm14151_vm5, %v4122_v19, %v4123_v30  ;;  %v4857_v50 = vld [vmem:[#allocation2 + $0x6c] sm:$0xe]  ;;  %v4542_v9 = vshrl.u32 %v15424_v42, 16  ;;  %v4893_v31 = vrot.slane %v4891_v12, 4  ;;  %v13596_v19 = vld [vmem:[%s18116_s1 + $0x1f8] sm:$0xff] }
 0x1e2   : > { %v4521_v28 = vor.u32 %v4520_v33, %v15400_v4  ;;  %v4526_v36 = vrot.slane %v4524_v20, 5  ;;  %v4517_v21 = vsel %vm14142_vm4, %v4512_v6, %v15400_v4  ;;  %v4529_v33 = vshrl.u32 %v4483_v58, 16  ;;  %5612 = vmatpush.bf16.msra.mxu0 %v13596_v19 }
 0x1e3   : > { %4034 = vmatmul.bf16.gmra.mxu2 %v13515_v52  ;;  %v2154_v53 = vpop.f32.mrf.mxu0  ;;  %v12063_v4 = vrot.slane %v4857_v50, 9  ;;  %v4894_v54 = vrot.slane %v15402_v23, 5  ;;  %v13620_v23 = vld [vmem:[%s18118_s3 + $0x38] sm:$0xff] }
 0x1e4   : > { %v2176_v60 = vadd.f32 %v2154_v53, %v14986_v34  ;;  %v3087_v34 = vsel %vm14151_vm5, %v11718_v41, %v3086_v5  ;;  %v4522_v56 = vrot.slane %v4521_v28, 4  ;;  %v4121_v5 = vsel %vm14151_vm5, %v11886_v8, %v4120_v57  ;;  %v13628_v8 = vld [vmem:[%s18118_s3 + $0x78] sm:$0xff]  ;;  %6669 = vmatpush.bf16.msra.mxu3 %v13620_v23 }
 0x1e5   : > { %v2974_v17 = vpop.f32.mrf.mxu3  ;;  %v4532_v53 = vshll.u32 %v4483_v58, 16  ;;  %v4156_v57 = vunpack.c.l.b16 %v4124_v63  ;;  %v4712_v28 = vunpack.c.l.b16 %v4517_v21  ;;  %6524 = vmatpush.bf16.msra.mxu2 %v13628_v8  ;;  %v4858_v50 = vld [vmem:[#allocation2 + $0x78] sm:$0xe] }
 0x1e6   : > { %v2599_v39 = vpop.f32.mrf.mxu2  ;;  %v15408_v14 = vadd.f32 %v2974_v17, %v2620_v15  ;;  %v2426_v27 = vadd.f32 %v15358_v46, %v2176_v60  ;;  %3226 = vmatmul.bf16.gmra.mxu0 %v3130_v3  ;;  %v3122_v15 = vunpack.c.l.b16 %v3087_v34  ;;  %v3123_v3 = vunpack.c.l.b16 %v3090_v59 }
 0x1e7   : > { %v4155_v60 = vunpack.c.l.b16 %v4121_v5  ;;  %v4540_v34 = vrot.slane %v4538_v24, 5  ;;  %v4544_v59 = vrot.slane %v4542_v9, 4 }
 0x1e8   : > { %v15411_v52 = vpop.f32.mrf.mxu1  ;;  %v2621_v18 = vadd.f32 %v2599_v39, %v2426_v27  ;;  %v4531_v27 = vrot.slane %v4529_v33, 4 }
 0x1e9   : > { %v4164_v6 = vpack.c.b16 %v4156_v57, %v4155_v60  ;;  %v12064_v60 = vrot.slane %v4858_v50, 9  ;;  %v4486_v57 = vld [vmem:[#allocation2 + $0x84] sm:$0xf] }
 0x1ea   : > { %4259 = vmatmul.bf16.gmra.mxu3 %v4163_v10  ;;  %v4534_v10 = vrot.slane %v4532_v53, 5 }
 0x1eb   : > { %3894 = vmatmul.bf16.gmra.mxu1 %v3794_v7  ;;  %v2156_v46 = vpop.f32.mrf.mxu0  ;;  %v3131_v7 = vpack.c.b16 %v3123_v3, %v3122_v15 }
 0x1ec   : > { %v2177_v61 = vadd.f32 %v2156_v46, %v14998_v32  ;;  %v4527_v32 = vsel %vm14142_vm4, %v4522_v56, %v4526_v36  ;;  %v4892_v56 = vsel %vm14151_vm5, %v12063_v4, %v4891_v12  ;;  %v13604_v36 = vld [vmem:[%s18116_s1 + $0x238] sm:$0xff]  ;;  %v4535_v5 = vor.u32 %v4534_v10, %v4531_v27 }
 0x1ed   : > { %v2977_v29 = vpop.f32.mrf.mxu3  ;;  %v4713_v20 = vunpack.c.l.b16 %v4527_v32  ;;  %v4545_v12 = vor.u32 %v4544_v59, %v4540_v34  ;;  %5861 = vmatpush.bf16.msra.mxu1 %v13604_v36  ;;  %v4961_v21 = vunpack.c.l.b16 %v4892_v56 }
 0x1ee   : > { %v2601_v2 = vpop.f32.mrf.mxu2  ;;  %v15431_v41 = vadd.f32 %v2977_v29, %v2621_v18  ;;  %v2427_v1 = vadd.f32 %v15392_v47, %v2177_v61  ;;  %v15437_v47 = vld [vmem:[#allocation2 + $0x80] sm:$0x1]  ;;  %v4895_v61 = vsel %vm14151_vm5, %v4893_v31, %v4894_v54  ;;  %v4536_v33 = vrot.slane %v4535_v5, 4  ;;  %v13627_v5 = vld [vmem:[%s18118_s3 + $0x70] sm:$0xff] }
 0x1ef   : > { %v4728_v3 = vpack.c.b16 %v4713_v20, %v4712_v28  ;;  %v4548_v58 = vshll.u32 %v15437_v47, 16  ;;  %v4962_v32 = vunpack.c.l.b16 %v4895_v61  ;;  %v4546_v53 = vrot.slane %v4545_v12, 4  ;;  %v13619_v12 = vld [vmem:[%s18118_s3 + $0x30] sm:$0xff]  ;;  %6525 = vmatpush.bf16.msra.mxu2 %v13627_v5 }
 0x1f0   : > { %v2411_v17 = vpop.f32.mrf.mxu1  ;;  %v2622_v39 = vadd.f32 %v2601_v2, %v2427_v1  ;;  %v4553_v54 = vshrl.u32 %v4486_v57, 16  ;;  %v4556_v28 = vshll.u32 %v4486_v57, 16  ;;  %v4901_v8 = vrot.slane %v15437_v47, 5  ;;  %6670 = vmatpush.bf16.msra.mxu3 %v13619_v12 }
 0x1f1   : > { %v4550_v1 = vrot.slane %v4548_v58, 5  ;;  %v4977_v9 = vpack.c.b16 %v4962_v32, %v4961_v21  ;;  %v13603_v21 = vld [vmem:[%s18116_s1 + $0x230] sm:$0xff] }
 0x1f2   : > { %v4555_v19 = vrot.slane %v4553_v54, 4  ;;  %v4558_v23 = vrot.slane %v4556_v28, 5  ;;  %5862 = vmatpush.bf16.msra.mxu1 %v13603_v21 }
 0x1f3   : > { %4039 = vmatmul.bf16.gmra.mxu2 %v13516_v40  ;;  %v2159_v18 = vpop.f32.mrf.mxu0 }
 0x1f4   : > { %v2178_v30 = vadd.f32 %v2159_v18, %v15029_v25  ;;  %v4559_v58 = vor.u32 %v4558_v23, %v4555_v19 }
 0x1f5   : > { %v2979_v46 = vpop.f32.mrf.mxu3 }
 0x1f6   : > { %v2604_v15 = vpop.f32.mrf.mxu2  ;;  %v15456_v63 = vadd.f32 %v2979_v46, %v2622_v39  ;;  %v2428_v25 = vadd.f32 %v15411_v52, %v2178_v30  ;;  %3231 = vmatmul.bf16.gmra.mxu0 %v3131_v7  ;;  %v4898_v52 = vrot.slane %v15424_v42, 5  ;;  %v15464_v39 = vld [vmem:[#allocation2 + $0x88] sm:$0xf]  ;;  %v4541_v42 = vsel %vm14142_vm4, %v4536_v33, %v4540_v34  ;;  %v15484_v34 = vld [vmem:[%s18117_s2] ss:$0 sm:$0xff] }
 0x1f7   : > { %v4562_v20 = vshll.u32 %v15464_v39, 16  ;;  %v4566_v27 = vshrl.u32 %v15464_v39, 16  ;;  %v4714_v36 = vunpack.c.l.b16 %v4541_v42 }
 0x1f8   : > { %v15460_v29 = vpop.f32.mrf.mxu1  ;;  %v2623_v2 = vadd.f32 %v2604_v15, %v2428_v25  ;;  %v4900_v18 = vrot.slane %v4898_v52, 4  ;;  %v13541_v15 = vld [vmem:[#allocation2 + $0x6c] sm:$0xff]  ;;  %v4899_v47 = vsel %vm14151_vm5, %v12064_v60, %v4898_v52 }
 0x1f9   : > { %v4568_v56 = vrot.slane %v4566_v27, 4  ;;  %v13595_v25 = vld [vmem:[%s18116_s1 + $0x1f0] sm:$0xff]  ;;  %v4859_v27 = vld [vmem:[#allocation2 + $0x84] sm:$0xe] }
 0x1fa   : > { %4264 = vmatmul.bf16.gmra.mxu3 %v4164_v6  ;;  %v15477_v6 = vrot.slane %v4562_v20, 5  ;;  %v4902_v61 = vsel %vm14151_vm5, %v4900_v18, %v4901_v8  ;;  %5613 = vmatpush.bf16.msra.mxu0 %v13595_v25  ;;  %v12065_v18 = vrot.slane %v4859_v27, 9  ;;  %v13594_v27 = vld [vmem:[%s18116_s1 + $0x1e8] sm:$0xff] }
 0x1fb   : > { %4800 = vmatmul.bf16.vlgmr.msrb.gmra.mxu1 %v4728_v3  ;;  %v2161_v40 = vpop.f32.mrf.mxu0  ;;  %v4964_v60 = vunpack.c.l.b16 %v4902_v61 }
 0x1fc   : > { %v2179_v24 = vadd.f32 %v2161_v40, %v15056_v51  ;;  %v4551_v51 = vsel %vm14142_vm4, %v4546_v53, %v4550_v1  ;;  %v4569_v32 = vor.u32 %v4568_v56, %v15477_v6  ;;  %v4963_v40 = vunpack.c.l.b16 %v4899_v47 }
 0x1fd   : > { %v2982_v4 = vpop.f32.mrf.mxu3  ;;  %v4715_v46 = vunpack.c.l.b16 %v4551_v51 }
 0x1fe   : > { %v2606_v31 = vpop.f32.mrf.mxu2  ;;  %v15468_v10 = vadd.f32 %v2982_v4, %v2623_v2  ;;  %v2429_v7 = vadd.f32 %v2411_v17, %v2179_v24  ;;  %v15479_v17 = vld [vmem:[#allocation2 + $0x8c] sm:$0x1]  ;;  %v4560_v4 = vrot.slane %v4559_v58, 4  ;;  %v4570_v28 = vrot.slane %v4569_v32, 4  ;;  %v3466_v58 = vld [vmem:[#allocation3 + $0xc] sm:$0xf]  ;;  %5614 = vmatpush.bf16.msra.mxu0 %v13594_v27 }
 0x1ff   : > { %v4572_v50 = vshll.u32 %v15479_v17, 16  ;;  %v4729_v1 = vpack.c.b16 %v4715_v46, %v4714_v36  ;;  %v4978_v42 = vpack.c.b16 %v4964_v60, %v4963_v40  ;;  %v4908_v19 = vrot.slane %v15479_v17, 5  ;;  %v4489_v36 = vld [vmem:[#allocation2 + $0x90] sm:$0xf]  ;;  %v15519_v46 = vld [vmem:[#allocation2 + $0x94] sm:$0xf] }
 0x200   : > { %v15474_v59 = vpop.f32.mrf.mxu1  ;;  %v2624_v30 = vadd.f32 %v2606_v31, %v2429_v7  ;;  %v4905_v31 = vrot.slane %v15464_v39, 5  ;;  %v4580_v61 = vshll.u32 %v4489_v36, 16  ;;  %v4590_v5 = vshrl.u32 %v15519_v46, 16  ;;  %v4492_v27 = vld [vmem:[#allocation2 + $0x9c] sm:$0xf] }
 0x201   : > { %v4574_v20 = vrot.slane %v4572_v50, 5 }
 0x202   : > { %v4907_v8 = vrot.slane %v4905_v31, 4  ;;  %v4582_v32 = vrot.slane %v4580_v61, 5 }
 0x203   : > { %5049 = vmatmul.bf16.vlgmr.msrb.gmra.mxu2 %v4977_v9  ;;  %v3197_v3 = vpop.f32.mrf.mxu0  ;;  %v4575_v56 = vsel %vm14142_vm4, %v4570_v28, %v4574_v20  ;;  %v13626_v20 = vld [vmem:[%s18118_s3 + $0x68] sm:$0xff] }
 0x204   : > { %v3237_v2 = vadd.f32 %v3197_v3, %v15093_v13  ;;  %v13573_v13 = vld [vmem:[#allocation2 + $0x78] sm:$0xff]  ;;  %v4577_v3 = vshrl.u32 %v4489_v36, 16  ;;  %6526 = vmatpush.bf16.msra.mxu2 %v13626_v20 }
 0x205   : > { %v2984_v33 = vpop.f32.mrf.mxu3 }
 0x206   : > { %v4005_v53 = vpop.f32.mrf.mxu2  ;;  %v15505_v52 = vadd.f32 %v2984_v33, %v2624_v30  ;;  %v3257_v24 = vadd.f32 %v15484_v34, %v3237_v2  ;;  %4423 = vmatmul.bf16.vlgmr.msrb.gmra.mxu0 %v13541_v15  ;;  %v4579_v21 = vrot.slane %v4577_v3, 4  ;;  %v4592_v33 = vrot.slane %v4590_v5, 4  ;;  %v3470_v5 = vld [vmem:[#allocation3 + $0x14] sm:$0x1] }
 0x207   : > { %v4006_v9 = vadd.f32 %v4005_v53, %v15460_v29  ;;  %v4565_v29 = vsel %vm14142_vm4, %v4560_v4, %v15477_v6  ;;  %v4586_v6 = vshll.u32 %v15519_v46, 16  ;;  %v13542_v4 = vld [vmem:[#allocation2 + $0x78] sm:$0xff] }
 0x208   : > { %v15509_v57 = vpop.f32.mrf.mxu1  ;;  %v3273_v54 = vmax.f32 %v3257_v24, 0.0  ;;  %v4716_v40 = vunpack.c.l.b16 %v4565_v29  ;;  %v4717_v24 = vunpack.c.l.b16 %v4575_v56 }
 0x209   : > { %v15529_v50 = vrot.slane %v4586_v6, 5 }
 0x20a   : > { %v3289_v7 = vpack.c.bf16 %v3273_v54, %v3273_v54  ;;  %5243 = vmatmul.bf16.vlgmr.msrb.gmra.mxu3 %v13573_v13  ;;  %v15531_v13 = vld [vmem:[#allocation2 + $0x98] sm:$0x1]  ;;  %v4909_v54 = vsel %vm14151_vm5, %v4907_v8, %v4908_v19 }
 0x20b   : > { %4805 = vmatmul.bf16.gmra.mxu1 %v4729_v1  ;;  %v3199_v51 = vpop.f32.mrf.mxu0  ;;  %v4596_v8 = vshll.u32 %v15531_v13, 16  ;;  %v4966_v36 = vunpack.c.l.b16 %v4909_v54 }
 0x20c   : > { %v3306_v23 = vshrl.u32 %v3289_v7, 16  ;;  %v3309_v30 = vshll.u32 %v3289_v7, 16  ;;  %v3238_v39 = vadd.f32 %v3199_v51, %v15120_v62  ;;  %v13618_v7 = vld [vmem:[%s18118_s3 + $0x28] sm:$0xff] }
 0x20d   : > { %v4230_v15 = vpop.f32.mrf.mxu3  ;;  %6671 = vmatpush.bf16.msra.mxu3 %v13618_v7 }
 0x20e   : > { %v4007_v47 = vpop.f32.mrf.mxu2  ;;  %v3308_v25 = vrot.slane %v3306_v23, 7  ;;  %v15523_v17 = vadd.f32 %v4230_v15, %v4006_v9  ;;  %v3258_v12 = vadd.f32 %v15484_v34, %v3238_v39  ;;  %v4730_v39 = vpack.c.b16 %v4717_v24, %v4716_v40  ;;  %v4860_v40 = vld [vmem:[#allocation2 + $0x90] sm:$0xe] }
 0x20f   : > { %v4008_v62 = vadd.f32 %v4007_v47, %v15474_v59  ;;  %v4906_v59 = vsel %vm14151_vm5, %v12065_v18, %v4905_v31  ;;  %v4593_v31 = vor.u32 %v4592_v33, %v15529_v50  ;;  %v13602_v18 = vld [vmem:[%s18116_s1 + $0x228] sm:$0xff] }
 0x210   : > { %v15527_v2 = vpop.f32.mrf.mxu1  ;;  %v3311_v53 = vor.u32 %v3309_v30, %v3308_v25  ;;  %v3274_v1 = vmax.f32 %v3258_v12, 0.0  ;;  %v4965_v56 = vunpack.c.l.b16 %v4906_v59  ;;  %v3312_v6 = vrot.slane %v3308_v25, 4  ;;  %5863 = vmatpush.bf16.msra.mxu1 %v13602_v18 }
 0x211   : > { %v4601_v18 = vshrl.u32 %v4492_v27, 16 }
 0x212   : > { %v3467_v9 = vsel %vm14297_vm10, %v3311_v53, %v3466_v58  ;;  %v3290_v60 = vpack.c.bf16 %v3274_v1, %v3274_v1  ;;  %v4598_v1 = vrot.slane %v4596_v8, 5  ;;  %v4604_v8 = vshll.u32 %v4492_v27, 16 }
 0x213   : > { %5054 = vmatmul.bf16.gmra.mxu2 %v4978_v42  ;;  %3468 = vst [vmem:[#allocation3 + $0xc] sm:$0xf] %v3467_v9  ;;  %v3202_v28 = vpop.f32.mrf.mxu0  ;;  %v4583_v42 = vor.u32 %v4582_v32, %v4579_v21  ;;  %v4594_v21 = vrot.slane %v4593_v31, 4  ;;  %v4912_v32 = vrot.slane %v15519_v46, 5 }
 0x214   : > { %v3314_v51 = vshrl.u32 %v3290_v60, 16  ;;  %v3239_v29 = vadd.f32 %v3202_v28, %v15151_v44  ;;  %v3317_v19 = vshll.u32 %v3290_v60, 16  ;;  %v13574_v44 = vld [vmem:[#allocation2 + $0x84] sm:$0xff]  ;;  %v4979_v60 = vpack.c.b16 %v4966_v36, %v4965_v56 }
 0x215   : > { %v4232_v23 = vpop.f32.mrf.mxu3  ;;  %v4584_v58 = vrot.slane %v4583_v42, 4  ;;  %v4599_v28 = vsel %vm14142_vm4, %v4594_v21, %v4598_v1  ;;  %v4914_v20 = vrot.slane %v4912_v32, 4  ;;  %v4603_v56 = vrot.slane %v4601_v18, 4 }
 0x216   : > { %v4010_v30 = vpop.f32.mrf.mxu2  ;;  %v3316_v15 = vrot.slane %v3314_v51, 7  ;;  %v15554_v47 = vadd.f32 %v4232_v23, %v4008_v62  ;;  %v3259_v3 = vadd.f32 %v15484_v34, %v3239_v29  ;;  %4428 = vmatmul.bf16.gmra.mxu0 %v13542_v4  ;;  %v12066_v4 = vrot.slane %v4860_v40, 9  ;;  %v15572_v29 = vld [vmem:[#allocation2 + $0xa0] sm:$0xf] }
 0x217   : > { %v4011_v61 = vadd.f32 %v4010_v30, %v15509_v57  ;;  %v4589_v46 = vsel %vm14142_vm4, %v4584_v58, %v15529_v50  ;;  %v4915_v51 = vrot.slane %v15531_v13, 5  ;;  %v3473_v30 = vld [vmem:[#allocation3 + $0x18] sm:$0xf]  ;;  %v4606_v36 = vrot.slane %v4604_v8, 5 }
 0x218   : > { %v15558_v12 = vpop.f32.mrf.mxu1  ;;  %v3319_v33 = vor.u32 %v3317_v19, %v3316_v15  ;;  %v3321_v53 = vrot.slane %v3316_v15, 4  ;;  %v3275_v62 = vmax.f32 %v3259_v3, 0.0  ;;  %v4610_v15 = vshll.u32 %v15572_v29, 16 }
 0x219   : > { %v4614_v13 = vshrl.u32 %v15572_v29, 16  ;;  %v4916_v1 = vsel %vm14151_vm5, %v4914_v20, %v4915_v51 }
 0x21a   : > { %v3320_v24 = vsel %vm14314_vm12, %v3312_v6, %v3319_v33  ;;  %v3471_v57 = vsel %vm14324_vm13, %v3321_v53, %v3470_v5  ;;  %v3291_v25 = vpack.c.bf16 %v3275_v62, %v3275_v62  ;;  %5248 = vmatmul.bf16.gmra.mxu3 %v13574_v44  ;;  %v15585_v6 = vld [vmem:[#allocation2 + $0xa4] sm:$0x1]  ;;  %v4719_v5 = vunpack.c.l.b16 %v4599_v28 }
 0x21b   : > { %4810 = vmatmul.bf16.gmra.mxu1 %v4730_v39  ;;  %3469 = vst [vmem:[#allocation3 + $0x10] sm:$0xf] %v3320_v24  ;;  %v3204_v9 = vpop.f32.mrf.mxu0  ;;  %v15587_v58 = vrot.slane %v4610_v15, 5  ;;  %v4616_v21 = vrot.slane %v4614_v13, 4  ;;  %v13543_v53 = vld [vmem:[#allocation2 + $0x84] sm:$0xff]  ;;  %v4913_v62 = vsel %vm14151_vm5, %v12066_v4, %v4912_v32  ;;  %v4620_v32 = vshll.u32 %v15585_v6, 16 }
 0x21c   : > { %3472 = vst [vmem:[#allocation3 + $0x14] sm:$0x1] %v3471_v57  ;;  %v3323_v59 = vshrl.u32 %v3291_v25, 16  ;;  %v3240_v54 = vadd.f32 %v3204_v9, %v15180_v11  ;;  %v3326_v7 = vshll.u32 %v3291_v25, 16  ;;  %v13625_v24 = vld [vmem:[%s18118_s3 + $0x60] sm:$0xff]  ;;  %v4607_v9 = vor.u32 %v4606_v36, %v4603_v56 }
 0x21d   : > { %v4235_v42 = vpop.f32.mrf.mxu3  ;;  %v13593_v57 = vld [vmem:[%s18116_s1 + $0x1e0] sm:$0xff]  ;;  %6527 = vmatpush.bf16.msra.mxu2 %v13625_v24  ;;  %v4622_v15 = vrot.slane %v4620_v32, 5  ;;  %v4919_v13 = vrot.slane %v15572_v29, 5 }
 0x21e   : > { %v4012_v31 = vpop.f32.mrf.mxu2  ;;  %v15574_v50 = vrot.slane %v3323_v59, 7  ;;  %v15576_v19 = vadd.f32 %v4235_v42, %v4011_v61  ;;  %v3260_v11 = vadd.f32 %v15484_v34, %v3240_v54  ;;  %v4718_v61 = vunpack.c.l.b16 %v4589_v46  ;;  %v13617_v25 = vld [vmem:[%s18118_s3 + $0x20] sm:$0xff]  ;;  %5615 = vmatpush.bf16.msra.mxu0 %v13593_v57  ;;  %v4495_v57 = vld [vmem:[#allocation2 + $0xa8] sm:$0xf] }
 0x21f   : > { %v4013_v23 = vadd.f32 %v4012_v31, %v15527_v2  ;;  %v13601_v4 = vld [vmem:[%s18116_s1 + $0x220] sm:$0xff]  ;;  %v4617_v59 = vor.u32 %v4616_v21, %v15587_v58  ;;  %v4968_v42 = vunpack.c.l.b16 %v4916_v1  ;;  %6672 = vmatpush.bf16.msra.mxu3 %v13617_v25  ;;  %v4608_v36 = vrot.slane %v4607_v9, 4 }
 0x220   : > { %v15580_v39 = vpop.f32.mrf.mxu1  ;;  %v3328_v3 = vor.u32 %v3326_v7, %v15574_v50  ;;  %v3276_v44 = vmax.f32 %v3260_v11, 0.0  ;;  %v4731_v27 = vpack.c.b16 %v4719_v5, %v4718_v61  ;;  %v4967_v7 = vunpack.c.l.b16 %v4913_v62  ;;  %5864 = vmatpush.bf16.msra.mxu1 %v13601_v4  ;;  %v4861_v5 = vld [vmem:[#allocation2 + $0x9c] sm:$0xe] }
 0x221   : > { %v3329_v11 = vrot.slane %v15574_v50, 4  ;;  %v4618_v61 = vrot.slane %v4617_v59, 4  ;;  %v4613_v29 = vsel %vm14142_vm4, %v4608_v36, %v15587_v58  ;;  %v4921_v24 = vrot.slane %v4919_v13, 4 }
 0x222   : > { %v3474_v2 = vsel %vm14297_vm10, %v3328_v3, %v3473_v30  ;;  %v3292_v33 = vpack.c.bf16 %v3276_v44, %v3276_v44  ;;  %v3477_v30 = vld [vmem:[#allocation3 + $0x20] sm:$0x1]  ;;  %v4625_v4 = vshrl.u32 %v4495_v57, 16  ;;  %v4628_v59 = vshll.u32 %v4495_v57, 16 }
 0x223   : > { %5059 = vmatmul.bf16.gmra.mxu2 %v4979_v60  ;;  %3475 = vst [vmem:[#allocation3 + $0x18] sm:$0xf] %v3474_v2  ;;  %v3207_v40 = vpop.f32.mrf.mxu0 }
 0x224   : > { %v3331_v60 = vshrl.u32 %v3292_v33, 16  ;;  %v3241_v46 = vadd.f32 %v3207_v40, %v15213_v0  ;;  %v3334_v54 = vshll.u32 %v3292_v33, 16  ;;  %v13575_v0 = vld [vmem:[#allocation2 + $0x90] sm:$0xff]  ;;  %v4980_v33 = vpack.c.b16 %v4968_v42, %v4967_v7 }
 0x225   : > { %v4237_v28 = vpop.f32.mrf.mxu3  ;;  %v4623_v40 = vsel %vm14142_vm4, %v4618_v61, %v4622_v15  ;;  %v4627_v7 = vrot.slane %v4625_v4, 4  ;;  %v4630_v42 = vrot.slane %v4628_v59, 5  ;;  %v13544_v61 = vld [vmem:[#allocation2 + $0x90] sm:$0xff]  ;;  %v3484_v4 = vld [vmem:[#allocation3 + $0x2c] sm:$0x1] }
 0x226   : > { %v4015_v20 = vpop.f32.mrf.mxu2  ;;  %v3333_v31 = vrot.slane %v3331_v60, 7  ;;  %v15610_v51 = vadd.f32 %v4237_v28, %v4013_v23  ;;  %v3261_v18 = vadd.f32 %v15484_v34, %v3241_v46  ;;  %4433 = vmatmul.bf16.gmra.mxu0 %v13543_v53  ;;  %v12067_v53 = vrot.slane %v4861_v5, 9  ;;  %v15629_v46 = vld [vmem:[#allocation2 + $0xac] sm:$0xf] }
 0x227   : > { %v4016_v8 = vadd.f32 %v4015_v20, %v15558_v12  ;;  %v4922_v60 = vrot.slane %v15585_v6, 5  ;;  %v3480_v20 = vld [vmem:[#allocation3 + $0x24] sm:$0xf]  ;;  %v4638_v6 = vshrl.u32 %v15629_v46, 16  ;;  %v4721_v36 = vunpack.c.l.b16 %v4623_v40 }
 0x228   : > { %v15615_v56 = vpop.f32.mrf.mxu1  ;;  %v3336_v3 = vor.u32 %v3334_v54, %v3333_v31  ;;  %v3338_v23 = vrot.slane %v3333_v31, 4  ;;  %v3277_v44 = vmax.f32 %v3261_v18, 0.0  ;;  %v4634_v31 = vshll.u32 %v15629_v46, 16 }
 0x229   : > { %v4923_v5 = vsel %vm14151_vm5, %v4921_v24, %v4922_v60 }
 0x22a   : > { %v3337_v21 = vsel %vm14314_vm12, %v3329_v11, %v3336_v3  ;;  %v3478_v12 = vsel %vm14324_vm13, %v3338_v23, %v3477_v30  ;;  %v3293_v50 = vpack.c.bf16 %v3277_v44, %v3277_v44  ;;  %5253 = vmatmul.bf16.gmra.mxu3 %v13575_v0  ;;  %v4720_v11 = vunpack.c.l.b16 %v4613_v29  ;;  %v15644_v30 = vld [vmem:[#allocation2 + $0xb0] sm:$0x1] }
 0x22b   : > { %4815 = vmatmul.bf16.gmra.mxu1 %v4731_v27  ;;  %3476 = vst [vmem:[#allocation3 + $0x1c] sm:$0xf] %v3337_v21  ;;  %v3209_v2 = vpop.f32.mrf.mxu0  ;;  %v15646_v15 = vrot.slane %v4634_v31, 5  ;;  %v4640_v3 = vrot.slane %v4638_v6, 4  ;;  %v4862_v6 = vld [vmem:[#allocation2 + $0xa8] sm:$0xe] }
 0x22c   : > { %3479 = vst [vmem:[#allocation3 + $0x20] sm:$0x1] %v3478_v12  ;;  %v3340_v62 = vshrl.u32 %v3293_v50, 16  ;;  %v3242_v1 = vadd.f32 %v3209_v2, %v15242_v26  ;;  %v3343_v25 = vshll.u32 %v3293_v50, 16  ;;  %v13592_v12 = vld [vmem:[%s18116_s1 + $0x1d8] sm:$0xff] }
 0x22d   : > { %v4240_v9 = vpop.f32.mrf.mxu3  ;;  %v13616_v50 = vld [vmem:[%s18118_s3 + $0x18] sm:$0xff]  ;;  %v4641_v2 = vor.u32 %v4640_v3, %v15646_v15  ;;  %5616 = vmatpush.bf16.msra.mxu0 %v13592_v12 }
 0x22e   : > { %v4017_v32 = vpop.f32.mrf.mxu2  ;;  %v15631_v58 = vrot.slane %v3340_v62, 7  ;;  %v15633_v54 = vadd.f32 %v4240_v9, %v4016_v8  ;;  %v3262_v26 = vadd.f32 %v15484_v34, %v3242_v1  ;;  %v4920_v8 = vsel %vm14151_vm5, %v12067_v53, %v4919_v13  ;;  %v13624_v13 = vld [vmem:[%s18118_s3 + $0x58] sm:$0xff]  ;;  %6673 = vmatpush.bf16.msra.mxu3 %v13616_v50 }
 0x22f   : > { %v4018_v28 = vadd.f32 %v4017_v32, %v15580_v39  ;;  %v4631_v39 = vor.u32 %v4630_v42, %v4627_v7  ;;  %v4969_v62 = vunpack.c.l.b16 %v4920_v8  ;;  %v13600_v1 = vld [vmem:[%s18116_s1 + $0x218] sm:$0xff]  ;;  %v4970_v9 = vunpack.c.l.b16 %v4923_v5  ;;  %6528 = vmatpush.bf16.msra.mxu2 %v13624_v13 }
 0x230   : > { %v15637_v27 = vpop.f32.mrf.mxu1  ;;  %v3345_v18 = vor.u32 %v3343_v25, %v15631_v58  ;;  %v3278_v0 = vmax.f32 %v3262_v26, 0.0  ;;  %v4732_v25 = vpack.c.b16 %v4721_v36, %v4720_v11  ;;  %v13576_v26 = vld [vmem:[#allocation2 + $0x9c] sm:$0xff]  ;;  %5865 = vmatpush.bf16.msra.mxu1 %v13600_v1  ;;  %v4642_v42 = vrot.slane %v4641_v2, 4  ;;  %v15689_v1 = vld [vmem:[#allocation2 + $0xb8] sm:$0xf] }
 0x231   : > { %v4632_v32 = vrot.slane %v4631_v39, 4  ;;  %v3346_v11 = vrot.slane %v15631_v58, 4  ;;  %v4981_v39 = vpack.c.b16 %v4970_v9, %v4969_v62  ;;  %v4929_v13 = vrot.slane %v15644_v30, 5 }
 0x232   : > { %v3481_v23 = vsel %vm14297_vm10, %v3345_v18, %v3480_v20  ;;  %v3294_v44 = vpack.c.bf16 %v3278_v0, %v3278_v0  ;;  %v4926_v18 = vrot.slane %v15629_v46, 5  ;;  %v362_v0 = vld [vmem:[%s14256_s9 + $0xf0] sm:$0xff]  ;;  %v12068_v46 = vrot.slane %v4862_v6, 9 }
 0x233   : > { %5064 = vmatmul.bf16.gmra.mxu2 %v4980_v33  ;;  %3482 = vst [vmem:[#allocation3 + $0x24] sm:$0xf] %v3481_v23  ;;  %v3212_v21 = vpop.f32.mrf.mxu0  ;;  %v4644_v33 = vshll.u32 %v15644_v30, 16  ;;  %v394_v3 = vpack.c.bf16 %v362_v0, %v362_v0  ;;  %v4662_v6 = vshrl.u32 %v15689_v1, 16 }
 0x234   : > { %v3348_v29 = vshrl.u32 %v3294_v44, 16  ;;  %v3243_v53 = vadd.f32 %v3212_v21, %v15276_v37  ;;  %v3351_v40 = vshll.u32 %v3294_v44, 16  ;;  %v4928_v21 = vrot.slane %v4926_v18, 4 }
 0x235   : > { %v4242_v24 = vpop.f32.mrf.mxu3  ;;  %v4646_v31 = vrot.slane %v4644_v33, 5 }
 0x236   : > { %v4020_v57 = vpop.f32.mrf.mxu2  ;;  %v3350_v60 = vrot.slane %v3348_v29, 7  ;;  %v15667_v59 = vadd.f32 %v4242_v24, %v4018_v28  ;;  %v3263_v37 = vadd.f32 %v15484_v34, %v3243_v53  ;;  %4438 = vmatmul.bf16.gmra.mxu0 %v13544_v61  ;;  %v4498_v29 = vld [vmem:[#allocation2 + $0xb4] sm:$0xf] }
 0x237   : > { %v4021_v20 = vadd.f32 %v4020_v57, %v15615_v56  ;;  %v4637_v56 = vsel %vm14142_vm4, %v4632_v32, %v15646_v15  ;;  %v4647_v5 = vsel %vm14142_vm4, %v4642_v42, %v4646_v31  ;;  %v655_v15 = vshrl.u32 %v394_v3, 16 }
 0x238   : > { %v15671_v7 = vpop.f32.mrf.mxu1  ;;  %v3353_v28 = vor.u32 %v3351_v40, %v3350_v60  ;;  %v3355_v8 = vrot.slane %v3350_v60, 4  ;;  %v3279_v36 = vmax.f32 %v3263_v37, 0.0  ;;  %v15687_v33 = vunpack.c.l.b16 %v4637_v56  ;;  %v363_v60 = vld [vmem:[%s14256_s9 + $0xf8] sm:$0xff] }
 0x239   : > { %v4649_v40 = vshrl.u32 %v4498_v29, 16  ;;  %v4652_v24 = vshll.u32 %v4498_v29, 16  ;;  %v15691_v57 = vrot.slane %v655_v15, 7  ;;  %v4658_v31 = vshll.u32 %v15689_v1, 16 }
 0x23a   : > { %v3354_v23 = vsel %vm14314_vm12, %v3346_v11, %v3353_v28  ;;  %v3485_v44 = vsel %vm14324_vm13, %v3355_v8, %v3484_v4  ;;  %v3295_v61 = vpack.c.bf16 %v3279_v36, %v3279_v36  ;;  %5258 = vmatmul.bf16.gmra.mxu3 %v13576_v26  ;;  %v3487_v4 = vld [vmem:[#allocation3 + $0x30] sm:$0xf]  ;;  %v15707_v28 = vld [vmem:[#allocation2 + $0xbc] sm:$0x1]  ;;  %v830_v8 = vld [vmem:[#allocation2 + $0xc0] sm:$0xf]  ;;  %v4723_v36 = vunpack.c.l.b16 %v4647_v5 }
 0x23b   : > { %4820 = vmatmul.bf16.gmra.mxu1 %v4732_v25  ;;  %3483 = vst [vmem:[#allocation3 + $0x28] sm:$0xf] %v3354_v23  ;;  %v3214_v58 = vpop.f32.mrf.mxu0  ;;  %v658_v25 = vshll.u32 %v394_v3, 16  ;;  %v4651_v26 = vrot.slane %v4649_v40, 4  ;;  %v4654_v42 = vrot.slane %v4652_v24, 5  ;;  %v15710_v56 = vrot.slane %v4658_v31, 5 }
 0x23c   : > { %3486 = vst [vmem:[#allocation3 + $0x2c] sm:$0x1] %v3485_v44  ;;  %v3357_v12 = vshrl.u32 %v3295_v61, 16  ;;  %v3360_v50 = vshll.u32 %v3295_v61, 16  ;;  %v3244_v2 = vadd.f32 %v3214_v58, %v15305_v16  ;;  %v4664_v3 = vrot.slane %v4662_v6, 4  ;;  %v13545_v58 = vld [vmem:[#allocation2 + $0x9c] sm:$0xff] }
 0x23d   : > { %v4245_v53 = vpop.f32.mrf.mxu3  ;;  %v395_v23 = vpack.c.bf16 %v363_v60, %v363_v60  ;;  %v4930_v15 = vsel %vm14151_vm5, %v4928_v21, %v4929_v13  ;;  %v13591_v5 = vld [vmem:[%s18116_s1 + $0x1d0] sm:$0xff]  ;;  %v13577_v31 = vld [vmem:[#allocation2 + $0xa8] sm:$0xff] }
 0x23e   : > { %v4022_v62 = vpop.f32.mrf.mxu2  ;;  %v15693_v30 = vrot.slane %v3357_v12, 7  ;;  %v15695_v9 = vadd.f32 %v4245_v53, %v4021_v20  ;;  %v3264_v32 = vadd.f32 %v15484_v34, %v3244_v2  ;;  %v4927_v20 = vsel %vm14151_vm5, %v12068_v46, %v4926_v18  ;;  %v13623_v46 = vld [vmem:[%s18118_s3 + $0x50] sm:$0xff]  ;;  %5617 = vmatpush.bf16.msra.mxu0 %v13591_v5 }
 0x23f   : > { %v4023_v16 = vadd.f32 %v4022_v62, %v15637_v27  ;;  %v660_v27 = vor.u32 %v658_v25, %v15691_v57  ;;  %v13615_v12 = vld [vmem:[%s18118_s3 + $0x10] sm:$0xff]  ;;  %v4971_v29 = vunpack.c.l.b16 %v4927_v20  ;;  %v4665_v62 = vor.u32 %v4664_v3, %v15710_v56  ;;  %6529 = vmatpush.bf16.msra.mxu2 %v13623_v46 }
 0x240   : > { %v15700_v37 = vpop.f32.mrf.mxu1  ;;  %v3362_v0 = vor.u32 %v3360_v50, %v15693_v30  ;;  %v3280_v11 = vmax.f32 %v3264_v32, 0.0  ;;  %v4655_v50 = vor.u32 %v4654_v42, %v4651_v26  ;;  %v13599_v53 = vld [vmem:[%s18116_s1 + $0x210] sm:$0xff]  ;;  %v4733_v32 = vpack.c.b16 %v4723_v36, %v15687_v33  ;;  %6674 = vmatpush.bf16.msra.mxu3 %v13615_v12  ;;  %v834_v12 = vld [vmem:[#allocation2 + $0xc8] sm:$0x1] }
 0x241   : > { %v831_v21 = vsel %vm14297_vm10, %v660_v27, %v830_v8  ;;  %v4972_v60 = vunpack.c.l.b16 %v4930_v15  ;;  %5866 = vmatpush.bf16.msra.mxu1 %v13599_v53  ;;  %v4933_v5 = vrot.slane %v15689_v1, 5 }
 0x242   : > { %v3488_v44 = vsel %vm14297_vm10, %v3362_v0, %v3487_v4  ;;  %v3296_v61 = vpack.c.bf16 %v3280_v11, %v3280_v11  ;;  %832 = vst [vmem:[#allocation2 + $0xc0] sm:$0xf] %v831_v21  ;;  %v663_v4 = vshrl.u32 %v395_v23, 16  ;;  %v3363_v0 = vrot.slane %v15693_v30, 4  ;;  %v3491_v11 = vld [vmem:[#allocation3 + $0x38] sm:$0x1] }
 0x243   : > { %5069 = vmatmul.bf16.gmra.mxu2 %v4981_v39  ;;  %3489 = vst [vmem:[#allocation3 + $0x30] sm:$0xf] %v3488_v44  ;;  %v3217_v18 = vpop.f32.mrf.mxu0  ;;  %v4668_v39 = vshll.u32 %v15707_v28, 16  ;;  %v4656_v33 = vrot.slane %v4655_v50, 4  ;;  %v4863_v44 = vld [vmem:[#allocation2 + $0xb4] sm:$0xe] }
 0x244   : > { %v3365_v13 = vshrl.u32 %v3296_v61, 16  ;;  %v3245_v2 = vadd.f32 %v3217_v18, %v15333_v55  ;;  %v3368_v40 = vshll.u32 %v3296_v61, 16  ;;  %v4982_v61 = vpack.c.b16 %v4972_v60, %v4971_v29 }
 0x245   : > { %v4247_v24 = vpop.f32.mrf.mxu3  ;;  %v4670_v27 = vrot.slane %v4668_v39, 5  ;;  %v665_v15 = vrot.slane %v663_v4, 7  ;;  %v666_v18 = vshll.u32 %v395_v23, 16  ;;  %v12069_v39 = vrot.slane %v4863_v44, 9 }
 0x246   : > { %v4025_v25 = vpop.f32.mrf.mxu2  ;;  %v3367_v26 = vrot.slane %v3365_v13, 7  ;;  %v15734_v42 = vadd.f32 %v4247_v24, %v4023_v16  ;;  %v3265_v55 = vadd.f32 %v15484_v34, %v3245_v2  ;;  %4443 = vmatmul.bf16.gmra.mxu0 %v13545_v58  ;;  %v4666_v16 = vrot.slane %v4665_v62, 4  ;;  %v15750_v13 = vld [vmem:[#allocation3 + $0xc] sm:$0xf] }
 0x247   : > { %v4026_v6 = vadd.f32 %v4025_v25, %v15671_v7  ;;  %v661_v58 = vrot.slane %v15691_v57, 4  ;;  %v4661_v57 = vsel %vm14142_vm4, %v4656_v33, %v15710_v56  ;;  %v668_v23 = vor.u32 %v666_v18, %v665_v15 }
 0x248   : > { %v15739_v20 = vpop.f32.mrf.mxu1  ;;  %v3370_v8 = vor.u32 %v3368_v40, %v3367_v26  ;;  %v3372_v36 = vrot.slane %v3367_v26, 4  ;;  %v3281_v3 = vmax.f32 %v3265_v55, 0.0  ;;  %v670_v21 = vrot.slane %v665_v15, 4  ;;  %v13546_v15 = vld [vmem:[#allocation2 + $0xa8] sm:$0xff] }
 0x249   : > { %v4671_v1 = vsel %vm14142_vm4, %v4666_v16, %v4670_v27  ;;  %v4501_v62 = vld [vmem:[#allocation2 + $0xc0] sm:$0xf]  ;;  %v669_v25 = vsel %vm14314_vm12, %v661_v58, %v668_v23  ;;  %v4934_v18 = vsel %vm14151_vm5, %v12069_v39, %v4933_v5 }
 0x24a   : > { %v3371_v7 = vsel %vm14314_vm12, %v3363_v0, %v3370_v8  ;;  %v3492_v30 = vsel %vm14324_vm13, %v3372_v36, %v3491_v11  ;;  %v3297_v46 = vpack.c.bf16 %v3281_v3, %v3281_v3  ;;  %5263 = vmatmul.bf16.gmra.mxu3 %v13577_v31  ;;  %v835_v56 = vsel %vm14324_vm13, %v670_v21, %v834_v12  ;;  %v3494_v31 = vld [vmem:[#allocation3 + $0x3c] sm:$0xf] }
 0x24b   : > { %4825 = vmatmul.bf16.gmra.mxu1 %v4733_v32  ;;  %3490 = vst [vmem:[#allocation3 + $0x34] sm:$0xf] %v3371_v7  ;;  %v3219_v50 = vpop.f32.mrf.mxu0  ;;  %v4673_v32 = vshrl.u32 %v4501_v62, 16  ;;  %v4676_v60 = vshll.u32 %v4501_v62, 16  ;;  %v6260_v11 = vshrl.u32 %v15750_v13, 16  ;;  %v4935_v8 = vrot.slane %v4933_v5, 4 }
 0x24c   : > { %3493 = vst [vmem:[#allocation3 + $0x38] sm:$0x1] %v3492_v30  ;;  %v3374_v2 = vshrl.u32 %v3297_v46, 16  ;;  %v3377_v29 = vshll.u32 %v3297_v46, 16  ;;  %v3246_v53 = vadd.f32 %v3219_v50, %v15352_v22  ;;  %v4936_v36 = vrot.slane %v15707_v28, 5  ;;  %v13622_v30 = vld [vmem:[%s18118_s3 + $0x48] sm:$0xff] }
 0x24d   : > { %v4250_v40 = vpop.f32.mrf.mxu3  ;;  %833 = vst [vmem:[#allocation2 + $0xc4] sm:$0xf] %v669_v25  ;;  %v4724_v3 = vunpack.c.l.b16 %v4661_v57  ;;  %v4675_v16 = vrot.slane %v4673_v32, 4  ;;  %v4678_v44 = vrot.slane %v4676_v60, 5  ;;  %v13590_v28 = vld [vmem:[%s18116_s1 + $0x1c8] sm:$0xff]  ;;  %v6263_v12 = vshll.u32 %v15750_v13, 16  ;;  %6530 = vmatpush.bf16.msra.mxu2 %v13622_v30 }
 0x24e   : > { %v4027_v24 = vpop.f32.mrf.mxu2  ;;  %v15759_v4 = vrot.slane %v3374_v2, 7  ;;  %v15761_v26 = vadd.f32 %v4250_v40, %v4026_v6  ;;  %v3266_v22 = vadd.f32 %v15484_v34, %v3246_v53  ;;  %836 = vst [vmem:[#allocation2 + $0xc8] sm:$0x1] %v835_v56  ;;  %v4725_v6 = vunpack.c.l.b16 %v4671_v1  ;;  %v13614_v46 = vld [vmem:[%s18118_s3 + $0x8] sm:$0xff]  ;;  %5618 = vmatpush.bf16.msra.mxu0 %v13590_v28  ;;  %v13578_v25 = vld [vmem:[#allocation2 + $0xb4] sm:$0xff] }
 0x24f   : > { %v4028_v55 = vadd.f32 %v4027_v24, %v15700_v37  ;;  %v4937_v5 = vsel %vm14151_vm5, %v4935_v8, %v4936_v36  ;;  %v13598_v57 = vld [vmem:[%s18116_s1 + $0x208] sm:$0xff]  ;;  %v15790_v39 = vrot.slane %v6260_v11, 4  ;;  %v4973_v53 = vunpack.c.l.b16 %v4934_v18  ;;  %6675 = vmatpush.bf16.msra.mxu3 %v13614_v46 }
 0x250   : > { %v15765_v0 = vpop.f32.mrf.mxu1  ;;  %v3379_v33 = vor.u32 %v3377_v29, %v15759_v4  ;;  %v3282_v27 = vmax.f32 %v3266_v22, 0.0  ;;  %v4734_v29 = vpack.c.b16 %v4725_v6, %v4724_v3  ;;  %v4679_v62 = vor.u32 %v4678_v44, %v4675_v16  ;;  %v15798_v60 = vld [vmem:[#allocation3 + $0x10] sm:$0xf]  ;;  %v3498_v22 = vld [vmem:[#allocation3 + $0x44] sm:$0x1]  ;;  %5867 = vmatpush.bf16.msra.mxu1 %v13598_v57 }
 0x251   : > { %v4974_v11 = vunpack.c.l.b16 %v4937_v5  ;;  %v3380_v8 = vrot.slane %v15759_v4, 4  ;;  %v6269_v4 = vshll.u32 %v15798_v60, 16 }
 0x252   : > { %v3495_v37 = vsel %vm14297_vm10, %v3379_v33, %v3494_v31  ;;  %v3298_v58 = vpack.c.bf16 %v3282_v27, %v3282_v27 }
 0x253   : > { %5074 = vmatmul.bf16.gmra.mxu2 %v4982_v61  ;;  %3496 = vst [vmem:[#allocation3 + $0x3c] sm:$0xf] %v3495_v37  ;;  %v3222_v7 = vpop.f32.mrf.mxu0  ;;  %v4864_v37 = vld [vmem:[#allocation2 + $0xc0] sm:$0xe]  ;;  %v4983_v28 = vpack.c.b16 %v4974_v11, %v4973_v53 }
 0x254   : > { %v3382_v61 = vshrl.u32 %v3298_v58, 16  ;;  %v3247_v50 = vadd.f32 %v3222_v7, %v15384_v38  ;;  %v3385_v23 = vshll.u32 %v3298_v58, 16  ;;  %v15792_v1 = vld [vmem:[#allocation2 + $0xc4] sm:$0xf] }
 0x255   : > { %v4252_v21 = vpop.f32.mrf.mxu3  ;;  %v4503_v32 = vld [vmem:[#allocation2 + $0xc8] sm:$0x1]  ;;  %v4682_v33 = vshll.u32 %v15792_v1, 16  ;;  %v4940_v58 = vrot.slane %v15792_v1, 5 }
 0x256   : > { %v4030_v2 = vpop.f32.mrf.mxu2  ;;  %v3384_v38 = vrot.slane %v3382_v61, 7  ;;  %v15794_v40 = vadd.f32 %v4252_v21, %v4028_v55  ;;  %v3267_v24 = vadd.f32 %v15484_v34, %v3247_v50  ;;  %4448 = vmatmul.bf16.gmra.mxu0 %v13546_v15  ;;  %v4686_v55 = vshrl.u32 %v15792_v1, 16 }
 0x257   : > { %v4031_v56 = vadd.f32 %v4030_v2, %v15739_v20  ;;  %v4692_v27 = vshll.u32 %v4503_v32, 16  ;;  %v4680_v20 = vrot.slane %v4679_v62, 4  ;;  %v4684_v16 = vrot.slane %v4682_v33, 5 }
 0x258   : > { %v15800_v31 = vpop.f32.mrf.mxu1  ;;  %v3387_v36 = vor.u32 %v3385_v23, %v3384_v38  ;;  %v3389_v3 = vrot.slane %v3384_v38, 4  ;;  %v3283_v6 = vmax.f32 %v3267_v24, 0.0  ;;  %v4688_v44 = vrot.slane %v4686_v55, 4  ;;  %v15825_v55 = vld [vmem:[#allocation2 + $0x7c] sm:$0xf] }
 0x259   : > { %v4694_v61 = vrot.slane %v4692_v27, 5  ;;  %v6273_v50 = vshrl.u32 %v15798_v60, 16  ;;  %v12070_v23 = vrot.slane %v4864_v37, 9  ;;  %v4943_v21 = vrot.slane %v4503_v32, 5 }
 0x25a   : > { %v3388_v15 = vsel %vm14314_vm12, %v3380_v8, %v3387_v36  ;;  %v3499_v18 = vsel %vm14324_vm13, %v3389_v3, %v3498_v22  ;;  %v3299_v7 = vpack.c.bf16 %v3283_v6, %v3283_v6  ;;  %5268 = vmatmul.bf16.gmra.mxu3 %v13578_v25  ;;  %v4689_v46 = vor.u32 %v4688_v44, %v4684_v16  ;;  %v5300_v25 = vld [vmem:[#allocation2 + $0x78] sm:$0xf] }
 0x25b   : > { %4830 = vmatmul.bf16.gmra.mxu1 %v4734_v29  ;;  %3497 = vst [vmem:[#allocation3 + $0x40] sm:$0xf] %v3388_v15  ;;  %v3224_v30 = vpop.f32.mrf.mxu0  ;;  %v4685_v29 = vsel %vm14142_vm4, %v4680_v20, %v4684_v16  ;;  %v4942_v24 = vrot.slane %v4940_v58, 4  ;;  %v15829_v27 = vrot.slane %v6263_v12, 5  ;;  %v15831_v8 = vrot.slane %v6269_v4, 5  ;;  %v13547_v44 = vld [vmem:[#allocation2 + $0xb4] sm:$0xff] }
 0x25c   : > { %3500 = vst [vmem:[#allocation3 + $0x44] sm:$0x1] %v3499_v18  ;;  %v3391_v5 = vshrl.u32 %v3299_v7, 16  ;;  %v3248_v57 = vadd.f32 %v3224_v30, %v15408_v14  ;;  %v3394_v2 = vshll.u32 %v3299_v7, 16  ;;  %v4690_v38 = vrot.slane %v4689_v46, 4  ;;  %v13621_v7 = vld [vmem:[%s18118_s3 + $0x40] sm:$0xff] }
 0x25d   : > { %v4255_v1 = vpop.f32.mrf.mxu3  ;;  %v3501_v14 = vld [vmem:[#allocation3 + $0x48] sm:$0xf]  ;;  %v4726_v3 = vunpack.c.l.b16 %v4685_v29  ;;  %v4944_v20 = vsel %vm14151_vm5, %v4942_v24, %v4943_v21  ;;  %v5328_v16 = vshll.u32 %v5300_v25, 16  ;;  %v5334_v37 = vshll.u32 %v15825_v55, 16  ;;  %6531 = vmatpush.bf16.msra.mxu2 %v13621_v7 }
 0x25e   : > { %v4032_v62 = vpop.f32.mrf.mxu2  ;;  %v15815_v53 = vrot.slane %v3391_v5, 7  ;;  %v15817_v22 = vadd.f32 %v4255_v1, %v4031_v56  ;;  %v3268_v60 = vadd.f32 %v15484_v34, %v3248_v57  ;;  %v4695_v32 = vsel %vm14142_vm4, %v4690_v38, %v4694_v61  ;;  %v13589_v4 = vld [vmem:[%s18116_s1 + $0x1c0] sm:$0xff] }
 0x25f   : > { %v4033_v11 = vadd.f32 %v4032_v62, %v15765_v0  ;;  %v4941_v34 = vsel %vm14151_vm5, %v12070_v23, %v4940_v58  ;;  %v5325_v0 = vshrl.u32 %v5300_v25, 16  ;;  %v4727_v6 = vunpack.c.l.b16 %v4695_v32  ;;  %v13613_v30 = vld [vmem:[%s18118_s3] sm:$0xff]  ;;  %v5677_v23 = vld [vmem:[#allocation2 + $0x78] sm:$0xe]  ;;  %5619 = vmatpush.bf16.msra.mxu0 %v13589_v4 }
 0x260   : > { %v15821_v33 = vpop.f32.mrf.mxu1  ;;  %v3396_v56 = vor.u32 %v3394_v2, %v15815_v53  ;;  %v3284_v36 = vmax.f32 %v3268_v60, 0.0  ;;  %v15841_v15 = vrot.slane %v6273_v50, 4  ;;  %v4975_v58 = vunpack.c.l.b16 %v4941_v34  ;;  %v13597_v5 = vld [vmem:[%s18116_s1 + $0x200] sm:$0xff]  ;;  %6676 = vmatpush.bf16.msra.mxu3 %v13613_v30 }
 0x261   : > { %v4976_v50 = vunpack.c.l.b16 %v4944_v20  ;;  %v15857_v57 = vrot.slane %v5325_v0, 4  ;;  %v4735_v62 = vpack.c.b16 %v4727_v6, %v4726_v3  ;;  %v15859_v29 = vrot.slane %v5328_v16, 5  ;;  %v15867_v60 = vld [vmem:[%s18117_s2] ss:$0 sm:$0xff]  ;;  %5868 = vmatpush.bf16.msra.mxu1 %v13597_v5  ;;  %v6196_v6 = vld [vmem:[#allocation3 + $0x4] sm:$0xf] }
 0x262   : > { %v3502_v13 = vsel %vm14297_vm10, %v3396_v56, %v3501_v14  ;;  %v3300_v12 = vpack.c.bf16 %v3284_v36, %v3284_v36  ;;  %v5711_v38 = vrot.slane %v15825_v55, 5  ;;  %v13579_v32 = vld [vmem:[#allocation2 + $0xc0] sm:$0xff]  ;;  %v6195_v36 = vld [vmem:[#allocation3] sm:$0xf]  ;;  %v3397_v34 = vrot.slane %v15815_v53, 4 }
 0x263   : > { %5079 = vmatmul.bf16.gmra.mxu2 %v4983_v28  ;;  %3503 = vst [vmem:[#allocation3 + $0x48] sm:$0xf] %v3502_v13  ;;  %v3227_v18 = vpop.f32.mrf.mxu0  ;;  %v5338_v28 = vshrl.u32 %v15825_v55, 16  ;;  %v12247_v3 = vrot.slane %v5677_v23, 9  ;;  %v6236_v4 = vshrl.u32 %v6195_v36, 16 }
 0x264   : > { %v3399_v46 = vshrl.u32 %v3300_v12, 16  ;;  %v3249_v61 = vadd.f32 %v3227_v18, %v15431_v41  ;;  %v3402_v21 = vshll.u32 %v3300_v12, 16  ;;  %v3505_v41 = vld [vmem:[#allocation3 + $0x50] sm:$0x1]  ;;  %v5302_v12 = vld [vmem:[#allocation2 + $0x80] sm:$0x1]  ;;  %v4984_v18 = vpack.c.b16 %v4976_v50, %v4975_v58 }
 0x265   : > { %v4257_v2 = vpop.f32.mrf.mxu3  ;;  %v5340_v0 = vrot.slane %v5338_v28, 4  ;;  %v5714_v7 = vrot.slane %v5302_v12, 5  ;;  %v6239_v28 = vshll.u32 %v6195_v36, 16  ;;  %v5344_v58 = vshll.u32 %v5302_v12, 16  ;;  %v6227_v50 = vld [vmem:[#allocation3 + $0x8] sm:$0x1] }
 0x266   : > { %v4035_v1 = vpop.f32.mrf.mxu2  ;;  %v3401_v24 = vrot.slane %v3399_v46, 7  ;;  %v15862_v25 = vadd.f32 %v4257_v2, %v4033_v11  ;;  %v3269_v14 = vadd.f32 %v15867_v60, %v3249_v61  ;;  %4453 = vmatmul.bf16.gmra.mxu0 %v13547_v44  ;;  %v15874_v11 = vrot.slane %v5334_v37, 5 }
 0x267   : > { %v4036_v56 = vadd.f32 %v4035_v1, %v15800_v31  ;;  %v5713_v44 = vrot.slane %v5711_v38, 4  ;;  %v5331_v31 = vor.u32 %v15859_v29, %v15857_v57  ;;  %v6238_v5 = vrot.slane %v6236_v4, 4  ;;  %v13636_v29 = vld [vmem:[%s18118_s3 + $0xb8] sm:$0xff] }
 0x268   : > { %v15872_v55 = vpop.f32.mrf.mxu1  ;;  %v3404_v20 = vor.u32 %v3402_v21, %v3401_v24  ;;  %v3406_v16 = vrot.slane %v3401_v24, 4  ;;  %v3285_v13 = vmax.f32 %v3269_v14, 0.0  ;;  %v5341_v61 = vor.u32 %v5340_v0, %v15874_v11  ;;  %6895 = vmatpush.bf16.msrb.mxu0 %v13636_v29 }
 0x269   : > { %v6245_v57 = vshll.u32 %v6196_v6, 16  ;;  %v5712_v2 = vsel %vm14151_vm5, %v12247_v3, %v5711_v38  ;;  %v5715_v1 = vsel %vm14151_vm5, %v5713_v44, %v5714_v7  ;;  %v13668_v38 = vld [vmem:[%s18118_s3 + $0x178] sm:$0xff]  ;;  %v5332_v12 = vrot.slane %v5331_v31, 4 }
 0x26a   : > { %v3405_v53 = vsel %vm14314_vm12, %v3397_v34, %v3404_v20  ;;  %v3506_v37 = vsel %vm14324_vm13, %v3406_v16, %v3505_v41  ;;  %v3301_v30 = vpack.c.bf16 %v3285_v13, %v3285_v13  ;;  %5273 = vmatmul.bf16.gmra.mxu3 %v13579_v32  ;;  %v6241_v32 = vrot.slane %v6239_v28, 5  ;;  %v13652_v16 = vld [vmem:[%s18118_s3 + $0xf8] sm:$0xff]  ;;  %v3508_v13 = vld [vmem:[#allocation3 + $0x54] sm:$0xf] }
 0x26b   : > { %4835 = vmatmul.bf16.gmra.mxu1 %v4735_v62  ;;  %3504 = vst [vmem:[#allocation3 + $0x4c] sm:$0xf] %v3405_v53  ;;  %v3229_v46 = vpop.f32.mrf.mxu0  ;;  %v13660_v62 = vld [vmem:[%s18118_s3 + $0x138] sm:$0xff]  ;;  %v15894_v36 = vrot.slane %v6245_v57, 5  ;;  %v15910_v44 = vrot.slane %v5344_v58, 5  ;;  %7717 = vmatpush.bf16.msrb.mxu3 %v13668_v38  ;;  %v5781_v28 = vunpack.c.l.b16 %v5712_v2 }
 0x26c   : > { %3507 = vst [vmem:[#allocation3 + $0x50] sm:$0x1] %v3506_v37  ;;  %v3408_v23 = vshrl.u32 %v3301_v30, 16  ;;  %v3250_v21 = vadd.f32 %v3229_v46, %v15456_v63  ;;  %v3411_v24 = vshll.u32 %v3301_v30, 16  ;;  %v6249_v63 = vshrl.u32 %v6196_v6, 16  ;;  %7467 = vmatpush.bf16.msrb.mxu2 %v13660_v62  ;;  %7089 = vmatpush.bf16.msrb.mxu1 %v13652_v16 }
 0x26d   : > { %v4260_v41 = vpop.f32.mrf.mxu3  ;;  %v6242_v7 = vor.u32 %v6241_v32, %v6238_v5  ;;  %v5342_v37 = vrot.slane %v5341_v61, 4  ;;  %v15913_v30 = vld [vmem:[#allocation3 + $0x14] sm:$0x1]  ;;  %v5782_v46 = vunpack.c.l.b16 %v5715_v1  ;;  %v13548_v5 = vld [vmem:[#allocation2 + $0xc0] sm:$0xff]  ;;  %v6266_v61 = vor.u32 %v15829_v27, %v15790_v39  ;;  %v5304_v32 = vld [vmem:[#allocation2 + $0x88] sm:$0xf] }
 0x26e   : > { %v4037_v14 = vpop.f32.mrf.mxu2  ;;  %v15899_v34 = vrot.slane %v3408_v23, 7  ;;  %v15901_v0 = vadd.f32 %v4260_v41, %v4036_v56  ;;  %v3270_v3 = vadd.f32 %v15867_v60, %v3250_v21  ;;  %v6251_v4 = vrot.slane %v6249_v63, 4  ;;  %v15991_v27 = vld [vmem:[#allocation3 + $0x1c] sm:$0xf] }
 0x26f   : > { %v4038_v20 = vadd.f32 %v4037_v14, %v15821_v33  ;;  %v6255_v33 = vshll.u32 %v6227_v50, 16  ;;  %v6243_v57 = vrot.slane %v6242_v7, 4  ;;  %v6276_v50 = vor.u32 %v15841_v15, %v15831_v8  ;;  %v5303_v14 = vld [vmem:[#allocation2 + $0x84] sm:$0xf] }
 0x270   : > { %v15908_v6 = vpop.f32.mrf.mxu1  ;;  %v3413_v56 = vor.u32 %v3411_v24, %v15899_v34  ;;  %v3286_v53 = vmax.f32 %v3270_v3, 0.0  ;;  %v6252_v23 = vor.u32 %v6251_v4, %v15894_v36  ;;  %v6279_v2 = vshll.u32 %v15913_v30, 16 }
 0x271   : > { %v6257_v21 = vrot.slane %v6255_v33, 5  ;;  %v5337_v41 = vsel %vm14142_vm4, %v5332_v12, %v15874_v11  ;;  %v5797_v16 = vpack.c.b16 %v5782_v46, %v5781_v28  ;;  %v13580_v12 = vld [vmem:[#allocation2 + $0xcc] sm:$0xff]  ;;  %v5349_v28 = vshrl.u32 %v5303_v14, 16 }
 0x272   : > { %v3509_v31 = vsel %vm14297_vm10, %v3413_v56, %v3508_v13  ;;  %v3302_v58 = vpack.c.bf16 %v3286_v53, %v3286_v53  ;;  %v6253_v29 = vrot.slane %v6252_v23, 4  ;;  %v6248_v13 = vsel %vm14142_vm4, %v6243_v57, %v15894_v36  ;;  %v5678_v56 = vld [vmem:[#allocation2 + $0x84] sm:$0xe] }
 0x273   : > { %5084 = vmatmul.bf16.gmra.mxu2 %v4984_v18  ;;  %3510 = vst [vmem:[#allocation3 + $0x54] sm:$0xf] %v3509_v31  ;;  %v3232_v62 = vpop.f32.mrf.mxu0  ;;  %v5347_v18 = vsel %vm14142_vm4, %v5342_v37, %v15910_v44  ;;  %v3414_v53 = vrot.slane %v15899_v34, 4  ;;  %v3512_v37 = vld [vmem:[#allocation3 + $0x5c] sm:$0x1]  ;;  %v5352_v36 = vshll.u32 %v5303_v14, 16 }
 0x274   : > { %v3416_v1 = vshrl.u32 %v3302_v58, 16  ;;  %v3251_v24 = vadd.f32 %v3232_v62, %v15468_v10  ;;  %v3419_v63 = vshll.u32 %v3302_v58, 16  ;;  %v6258_v10 = vsel %vm14142_vm4, %v6253_v29, %v6257_v21  ;;  %v15944_v62 = vld [vmem:[#allocation2 + $0x8c] sm:$0x1]  ;;  %v13635_v14 = vld [vmem:[%s18118_s3 + $0xb0] sm:$0xff] }
 0x275   : > { %v4262_v38 = vpop.f32.mrf.mxu3  ;;  %v5358_v46 = vshll.u32 %v5304_v32, 16  ;;  %v15942_v58 = vunpack.c.l.b16 %v5337_v41  ;;  %v6444_v21 = vunpack.c.l.b16 %v6248_v13  ;;  %v13659_v41 = vld [vmem:[%s18118_s3 + $0x130] sm:$0xff]  ;;  %v5354_v13 = vrot.slane %v5352_v36, 5  ;;  %6896 = vmatpush.bf16.msrb.mxu0 %v13635_v14 }
 0x276   : > { %v4040_v3 = vpop.f32.mrf.mxu2  ;;  %v3418_v7 = vrot.slane %v3416_v1, 7  ;;  %v15935_v4 = vadd.f32 %v4262_v38, %v4038_v20  ;;  %v3271_v11 = vadd.f32 %v15867_v60, %v3251_v24  ;;  %4458 = vmatmul.bf16.gmra.mxu0 %v13548_v5  ;;  %v5362_v20 = vshrl.u32 %v5304_v32, 16  ;;  %7468 = vmatpush.bf16.msrb.mxu2 %v13659_v41 }
 0x277   : > { %v4041_v44 = vadd.f32 %v4040_v3, %v15872_v55  ;;  %v6445_v5 = vunpack.c.l.b16 %v6258_v10  ;;  %v12248_v55 = vrot.slane %v5678_v56, 9  ;;  %v15950_v24 = vunpack.c.l.b16 %v5347_v18 }
 0x278   : > { %v15940_v33 = vpop.f32.mrf.mxu1  ;;  %v3421_v57 = vor.u32 %v3419_v63, %v3418_v7  ;;  %v3423_v23 = vrot.slane %v3418_v7, 4  ;;  %v3287_v31 = vmax.f32 %v3271_v11, 0.0  ;;  %v13667_v63 = vld [vmem:[%s18118_s3 + $0x170] sm:$0xff]  ;;  %v5351_v3 = vrot.slane %v5349_v28, 4 }
 0x279   : > { %v5718_v10 = vrot.slane %v5304_v32, 5  ;;  %v5721_v18 = vrot.slane %v15944_v62, 5  ;;  %v15963_v11 = vrot.slane %v5358_v46, 5  ;;  %7718 = vmatpush.bf16.msrb.mxu3 %v13667_v63  ;;  %v6199_v32 = vld [vmem:[#allocation3 + $0x18] sm:$0xf]  ;;  %v5368_v63 = vshll.u32 %v15944_v62, 16 }
 0x27a   : > { %v3422_v34 = vsel %vm14314_vm12, %v3414_v53, %v3421_v57  ;;  %v3513_v29 = vsel %vm14324_vm13, %v3423_v23, %v3512_v37  ;;  %v3303_v1 = vpack.c.bf16 %v3287_v31, %v3287_v31  ;;  %5278 = vmatmul.bf16.gmra.mxu3 %v13580_v12  ;;  %v5364_v12 = vrot.slane %v5362_v20, 4  ;;  %v13651_v20 = vld [vmem:[%s18118_s3 + $0xf0] sm:$0xff] }
 0x27b   : > { %5869 = vmatmul.bf16.vlgmr.msra.gmra.mxu1 %v5797_v16  ;;  %3511 = vst [vmem:[#allocation3 + $0x58] sm:$0xf] %v3422_v34  ;;  %v3234_v38 = vpop.f32.mrf.mxu0  ;;  %v6460_v57 = vpack.c.b16 %v6445_v5, %v6444_v21  ;;  %v5719_v28 = vsel %vm14151_vm5, %v12248_v55, %v5718_v10  ;;  %v5720_v36 = vrot.slane %v5718_v10, 4  ;;  %v3515_v34 = vld [vmem:[#allocation3 + $0x60] sm:$0xf]  ;;  %v6267_v55 = vrot.slane %v6266_v61, 4 }
 0x27c   : > { %3514 = vst [vmem:[#allocation3 + $0x5c] sm:$0x1] %v3513_v29  ;;  %v3425_v16 = vshrl.u32 %v3303_v1, 16  ;;  %v3252_v7 = vadd.f32 %v3234_v38, %v15505_v52  ;;  %v3428_v56 = vshll.u32 %v3303_v1, 16  ;;  %v5355_v1 = vor.u32 %v5354_v13, %v5351_v3  ;;  %7090 = vmatpush.bf16.msrb.mxu1 %v13651_v20 }
 0x27d   : > { %v4265_v53 = vpop.f32.mrf.mxu3  ;;  %v5722_v5 = vsel %vm14151_vm5, %v5720_v36, %v5721_v18  ;;  %v6284_v41 = vshrl.u32 %v6199_v32, 16  ;;  %v5365_v14 = vor.u32 %v5364_v12, %v15963_v11  ;;  %v5783_v38 = vunpack.c.l.b16 %v5719_v28  ;;  %v13605_v36 = vld [vmem:[#allocation3] sm:$0xff] }
 0x27e   : > { %v4042_v37 = vpop.f32.mrf.mxu2  ;;  %v15967_v23 = vrot.slane %v3425_v16, 7  ;;  %v15969_v31 = vadd.f32 %v4265_v53, %v4041_v44  ;;  %v3272_v52 = vadd.f32 %v15867_v60, %v3252_v7  ;;  %v6277_v60 = vrot.slane %v6276_v50, 4 }
 0x27f   : > { %v4043_v46 = vadd.f32 %v4042_v37, %v15908_v6  ;;  %v6281_v6 = vrot.slane %v6279_v2, 5  ;;  %v5784_v39 = vunpack.c.l.b16 %v5722_v5  ;;  %v5548_v30 = vpack.c.b16 %v15950_v24, %v15942_v58  ;;  %v5307_v5 = vld [vmem:[#allocation2 + $0x94] sm:$0xf] }
 0x280   : > { %v15976_v21 = vpop.f32.mrf.mxu1  ;;  %v3430_v44 = vor.u32 %v3428_v56, %v15967_v23  ;;  %v3288_v29 = vmax.f32 %v3272_v52, 0.0  ;;  %v6272_v2 = vsel %vm14142_vm4, %v6267_v55, %v15831_v8  ;;  %v6287_v3 = vshll.u32 %v6199_v32, 16  ;;  %v5306_v32 = vld [vmem:[#allocation2 + $0x90] sm:$0xf] }
 0x281   : > { %v6282_v62 = vsel %vm14142_vm4, %v6277_v60, %v6281_v6  ;;  %v16003_v18 = vrot.slane %v6284_v41, 4  ;;  %v6293_v16 = vshll.u32 %v15991_v27, 16  ;;  %v5356_v24 = vrot.slane %v5355_v1, 4  ;;  %v5679_v1 = vld [vmem:[#allocation2 + $0x90] sm:$0xe] }
 0x282   : > { %v3516_v15 = vsel %vm14297_vm10, %v3430_v44, %v3515_v34  ;;  %v3304_v61 = vpack.c.bf16 %v3288_v29, %v3288_v29  ;;  %v5366_v12 = vrot.slane %v5365_v14, 4  ;;  %v5370_v56 = vrot.slane %v5368_v63, 5  ;;  %v5308_v14 = vld [vmem:[#allocation2 + $0x98] sm:$0x1] }
 0x283   : > { %6532 = vmatmul.bf16.vlgmr.msra.gmra.mxu2 %v6460_v57  ;;  %3517 = vst [vmem:[#allocation3 + $0x60] sm:$0xf] %v3516_v15  ;;  %v4424_v50 = vpop.f32.mrf.mxu0  ;;  %v5798_v53 = vpack.c.b16 %v5784_v39, %v5783_v38  ;;  %v6446_v20 = vunpack.c.l.b16 %v6272_v2  ;;  %v6447_v34 = vunpack.c.l.b16 %v6282_v62  ;;  %v6289_v55 = vrot.slane %v6287_v3, 5 }
 0x284   : > { %v3433_v13 = vshrl.u32 %v3304_v61, 16  ;;  %v4464_v10 = vadd.f32 %v4424_v50, %v15523_v17  ;;  %v3436_v57 = vshll.u32 %v3304_v61, 16  ;;  %v3519_v17 = vld [vmem:[#allocation3 + $0x68] sm:$0x1]  ;;  %v6297_v60 = vshrl.u32 %v15991_v27, 16  ;;  %v13634_v61 = vld [vmem:[%s18118_s3 + $0xa8] sm:$0xff] }
 0x285   : > { %v4267_v7 = vpop.f32.mrf.mxu3  ;;  %v3431_v6 = vrot.slane %v15967_v23, 4  ;;  %v5371_v41 = vsel %vm14142_vm4, %v5366_v12, %v5370_v56  ;;  %v5373_v63 = vshrl.u32 %v5306_v32, 16  ;;  %v5376_v38 = vshll.u32 %v5306_v32, 16  ;;  %6897 = vmatpush.bf16.msrb.mxu0 %v13634_v61 }
 0x286   : > { %v5050_v58 = vpop.f32.mrf.mxu2  ;;  %v3435_v37 = vrot.slane %v3433_v13, 7  ;;  %v16006_v8 = vadd.f32 %v4267_v7, %v4043_v46  ;;  %v4841_v28 = vadd.f32 %v15940_v33, %v4464_v10  ;;  %5620 = vmatmul.bf16.vlgmr.msra.gmra.mxu0 %v5548_v30  ;;  %v5361_v33 = vsel %vm14142_vm4, %v5356_v24, %v15963_v11  ;;  %v13658_v11 = vld [vmem:[%s18118_s3 + $0x128] sm:$0xff] }
 0x287   : > { %v5382_v27 = vshll.u32 %v5307_v5, 16  ;;  %v5386_v15 = vshrl.u32 %v5307_v5, 16  ;;  %v13666_v30 = vld [vmem:[%s18118_s3 + $0x168] sm:$0xff]  ;;  %v12249_v2 = vrot.slane %v5679_v1, 9  ;;  %v5725_v62 = vrot.slane %v5307_v5, 5  ;;  %7469 = vmatpush.bf16.msrb.mxu2 %v13658_v11 }
 0x288   : > { %v16009_v52 = vpop.f32.mrf.mxu1  ;;  %v3438_v44 = vor.u32 %v3436_v57, %v3435_v37  ;;  %v3440_v29 = vrot.slane %v3435_v37, 4  ;;  %v5090_v46 = vadd.f32 %v5050_v58, %v4841_v28  ;;  %v5728_v3 = vrot.slane %v5308_v14, 5  ;;  %7719 = vmatpush.bf16.msrb.mxu3 %v13666_v30 }
 0x289   : > { %v6290_v13 = vor.u32 %v6289_v55, %v16003_v18  ;;  %v5534_v7 = vunpack.c.l.b16 %v5361_v33  ;;  %v6295_v58 = vrot.slane %v6293_v16, 5  ;;  %v6299_v24 = vrot.slane %v6297_v60, 4 }
 0x28a   : > { %v3439_v39 = vsel %vm14314_vm12, %v3431_v6, %v3438_v44  ;;  %v3520_v23 = vsel %vm14324_vm13, %v3440_v29, %v3519_v17  ;;  %6677 = vmatmul.bf16.vlgmr.msra.gmra.mxu3 %v13605_v36  ;;  %v5375_v37 = vrot.slane %v5373_v63, 4  ;;  %v5378_v57 = vrot.slane %v5376_v38, 5  ;;  %v6229_v44 = vld [vmem:[#allocation3 + $0x20] sm:$0x1] }
 0x28b   : > { %5874 = vmatmul.bf16.gmra.mxu1 %v5798_v53  ;;  %3518 = vst [vmem:[#allocation3 + $0x64] sm:$0xf] %v3439_v39  ;;  %v4426_v50 = vpop.f32.mrf.mxu0  ;;  %v5535_v53 = vunpack.c.l.b16 %v5371_v41  ;;  %v5727_v28 = vrot.slane %v5725_v62, 4  ;;  %v16036_v18 = vrot.slane %v5382_v27, 5  ;;  %v5388_v17 = vrot.slane %v5386_v15, 4 }
 0x28c   : > { %3521 = vst [vmem:[#allocation3 + $0x68] sm:$0x1] %v3520_v23  ;;  %v4465_v10 = vadd.f32 %v4426_v50, %v15554_v47  ;;  %v13650_v47 = vld [vmem:[%s18118_s3 + $0xe8] sm:$0xff]  ;;  %v5726_v5 = vsel %vm14151_vm5, %v12249_v2, %v5725_v62  ;;  %v6461_v6 = vpack.c.b16 %v6447_v34, %v6446_v20  ;;  %v5392_v29 = vshll.u32 %v5308_v14, 16  ;;  %v6201_v39 = vld [vmem:[#allocation3 + $0x24] sm:$0xf] }
 0x28d   : > { %v5244_v12 = vpop.f32.mrf.mxu3  ;;  %v5729_v55 = vsel %vm14151_vm5, %v5727_v28, %v5728_v3  ;;  %7091 = vmatpush.bf16.msrb.mxu1 %v13650_v47  ;;  %v6300_v1 = vor.u32 %v6299_v24, %v6295_v58  ;;  %v5549_v33 = vpack.c.b16 %v5535_v53, %v5534_v7  ;;  %v5389_v41 = vor.u32 %v5388_v17, %v16036_v18  ;;  %v6202_v50 = vld [vmem:[#allocation3 + $0x28] sm:$0xf]  ;;  %v5309_v7 = vld [vmem:[#allocation2 + $0x9c] sm:$0xf]  ;;  %v13606_v53 = vld [vmem:[#allocation3 + $0xc] sm:$0xff] }
 0x28e   : > { %v5052_v56 = vpop.f32.mrf.mxu2  ;;  %v16033_v36 = vadd.f32 %v5244_v12, %v5090_v46  ;;  %v4842_v32 = vadd.f32 %v15976_v21, %v4465_v10  ;;  %v5379_v21 = vor.u32 %v5378_v57, %v5375_v37  ;;  %v6291_v46 = vrot.slane %v6290_v13, 4  ;;  %v5680_v57 = vld [vmem:[#allocation2 + $0x9c] sm:$0xe] }
 0x28f   : > { %v5785_v63 = vunpack.c.l.b16 %v5726_v5  ;;  %v5786_v38 = vunpack.c.l.b16 %v5729_v55  ;;  %v6303_v27 = vshll.u32 %v6229_v44, 16  ;;  %v5394_v14 = vrot.slane %v5392_v29, 5 }
 0x290   : > { %v16041_v16 = vpop.f32.mrf.mxu1  ;;  %v5091_v60 = vadd.f32 %v5052_v56, %v4842_v32  ;;  %v6296_v20 = vsel %vm14142_vm4, %v6291_v46, %v6295_v58  ;;  %v5380_v61 = vrot.slane %v5379_v21, 4  ;;  %v6301_v30 = vrot.slane %v6300_v1, 4  ;;  %v5310_v58 = vld [vmem:[#allocation2 + $0xa0] sm:$0xf] }
 0x291   : > { %v6308_v2 = vshrl.u32 %v6201_v39, 16  ;;  %v5390_v13 = vrot.slane %v5389_v41, 4  ;;  %v5799_v10 = vpack.c.b16 %v5786_v38, %v5785_v63  ;;  %v6448_v12 = vunpack.c.l.b16 %v6296_v20  ;;  %v13657_v46 = vld [vmem:[%s18118_s3 + $0x120] sm:$0xff] }
 0x292   : > { %v6311_v56 = vshll.u32 %v6201_v39, 16  ;;  %v5732_v28 = vrot.slane %v5310_v58, 5  ;;  %v6317_v32 = vshll.u32 %v6202_v50, 16  ;;  %v6321_v17 = vshrl.u32 %v6202_v50, 16  ;;  %v13633_v1 = vld [vmem:[%s18118_s3 + $0xa0] sm:$0xff]  ;;  %7470 = vmatpush.bf16.msrb.mxu2 %v13657_v46 }
 0x293   : > { %6537 = vmatmul.bf16.gmra.mxu2 %v6461_v6  ;;  %v4429_v23 = vpop.f32.mrf.mxu0  ;;  %v5397_v5 = vshrl.u32 %v5309_v7, 16  ;;  %v5400_v55 = vshll.u32 %v5309_v7, 16  ;;  %v5385_v6 = vsel %vm14142_vm4, %v5380_v61, %v16036_v18  ;;  %v5395_v44 = vsel %vm14142_vm4, %v5390_v13, %v5394_v14  ;;  %6898 = vmatpush.bf16.msrb.mxu0 %v13633_v1  ;;  %v13649_v7 = vld [vmem:[%s18118_s3 + $0xe0] sm:$0xff] }
 0x294   : > { %v4466_v15 = vadd.f32 %v4429_v23, %v15576_v19  ;;  %v6305_v19 = vrot.slane %v6303_v27, 5  ;;  %v5406_v21 = vshll.u32 %v5310_v58, 16  ;;  %v5410_v29 = vshrl.u32 %v5310_v58, 16  ;;  %7092 = vmatpush.bf16.msrb.mxu1 %v13649_v7 }
 0x295   : > { %v5246_v34 = vpop.f32.mrf.mxu3  ;;  %v12250_v18 = vrot.slane %v5680_v57, 9  ;;  %v5734_v63 = vrot.slane %v5732_v28, 4  ;;  %v6313_v39 = vrot.slane %v6311_v56, 5  ;;  %v6323_v20 = vrot.slane %v6321_v17, 4 }
 0x296   : > { %v5055_v11 = vpop.f32.mrf.mxu2  ;;  %v16051_v62 = vadd.f32 %v5246_v34, %v5091_v60  ;;  %v4843_v3 = vadd.f32 %v16009_v52, %v4466_v15  ;;  %5625 = vmatmul.bf16.gmra.mxu0 %v5549_v33  ;;  %v6306_v47 = vsel %vm14142_vm4, %v6301_v30, %v6305_v19  ;;  %v16058_v52 = vld [vmem:[#allocation2 + $0xa4] sm:$0x1]  ;;  %v6310_v60 = vrot.slane %v6308_v2, 4 }
 0x297   : > { %v13665_v33 = vld [vmem:[%s18118_s3 + $0x160] sm:$0xff]  ;;  %v5735_v38 = vrot.slane %v16058_v52, 5  ;;  %v6449_v27 = vunpack.c.l.b16 %v6306_v47  ;;  %v16076_v15 = vrot.slane %v6317_v32, 5  ;;  %v5536_v61 = vunpack.c.l.b16 %v5385_v6 }
 0x298   : > { %v16054_v24 = vpop.f32.mrf.mxu1  ;;  %v5092_v37 = vadd.f32 %v5055_v11, %v4843_v3  ;;  %v5537_v14 = vunpack.c.l.b16 %v5395_v44  ;;  %v5399_v30 = vrot.slane %v5397_v5, 4  ;;  %v5402_v50 = vrot.slane %v5400_v55, 5  ;;  %v6230_v2 = vld [vmem:[#allocation3 + $0x2c] sm:$0x1]  ;;  %7720 = vmatpush.bf16.msrb.mxu3 %v13665_v33  ;;  %v6203_v5 = vld [vmem:[#allocation3 + $0x30] sm:$0xf] }
 0x299   : > { %v5733_v58 = vsel %vm14151_vm5, %v12250_v18, %v5732_v28  ;;  %v5736_v56 = vsel %vm14151_vm5, %v5734_v63, %v5735_v38  ;;  %v6462_v57 = vpack.c.b16 %v6449_v27, %v6448_v12  ;;  %v6327_v32 = vshll.u32 %v6230_v2, 16 }
 0x29a   : > { %6682 = vmatmul.bf16.gmra.mxu3 %v13606_v53  ;;  %v6314_v53 = vor.u32 %v6313_v39, %v6310_v60  ;;  %v5403_v17 = vor.u32 %v5402_v50, %v5399_v30  ;;  %v5416_v47 = vshll.u32 %v16058_v52, 16  ;;  %v5550_v55 = vpack.c.b16 %v5537_v14, %v5536_v61  ;;  %v5313_v14 = vld [vmem:[#allocation2 + $0xac] sm:$0xf]  ;;  %v13607_v50 = vld [vmem:[#allocation3 + $0x18] sm:$0xff] }
 0x29b   : > { %5879 = vmatmul.bf16.gmra.mxu1 %v5799_v10  ;;  %v4431_v41 = vpop.f32.mrf.mxu0  ;;  %v16081_v10 = vrot.slane %v5406_v21, 5  ;;  %v5787_v44 = vunpack.c.l.b16 %v5733_v58  ;;  %v5788_v28 = vunpack.c.l.b16 %v5736_v56  ;;  %v6204_v21 = vld [vmem:[#allocation3 + $0x34] sm:$0xf]  ;;  %v6329_v1 = vrot.slane %v6327_v32, 5  ;;  %v5314_v58 = vld [vmem:[#allocation2 + $0xb0] sm:$0x1] }
 0x29c   : > { %v4467_v23 = vadd.f32 %v4431_v41, %v15610_v51  ;;  %v5412_v51 = vrot.slane %v5410_v29, 4  ;;  %v6315_v46 = vrot.slane %v6314_v53, 4  ;;  %v6332_v33 = vshrl.u32 %v6203_v5, 16 }
 0x29d   : > { %v5249_v34 = vpop.f32.mrf.mxu3  ;;  %v5404_v63 = vrot.slane %v5403_v17, 4  ;;  %v5418_v38 = vrot.slane %v5416_v47, 5  ;;  %v6335_v52 = vshll.u32 %v6203_v5, 16  ;;  %v6341_v39 = vshll.u32 %v6204_v21, 16  ;;  %v13656_v47 = vld [vmem:[%s18118_s3 + $0x118] sm:$0xff] }
 0x29e   : > { %v5057_v11 = vpop.f32.mrf.mxu2  ;;  %v16078_v3 = vadd.f32 %v5249_v34, %v5092_v37  ;;  %v4844_v13 = vadd.f32 %v16041_v16, %v4467_v23  ;;  %v6324_v16 = vor.u32 %v6323_v20, %v16076_v15  ;;  %v5413_v6 = vor.u32 %v5412_v51, %v16081_v10  ;;  %v5681_v51 = vld [vmem:[#allocation2 + $0xa8] sm:$0xe]  ;;  %v13632_v5 = vld [vmem:[%s18118_s3 + $0x98] sm:$0xff]  ;;  %7471 = vmatpush.bf16.msrb.mxu2 %v13656_v47 }
 0x29f   : > { %v5800_v34 = vpack.c.b16 %v5788_v28, %v5787_v44  ;;  %v6345_v30 = vshrl.u32 %v6204_v21, 16  ;;  %v5739_v7 = vrot.slane %v5313_v14, 5  ;;  %v5430_v32 = vshll.u32 %v5313_v14, 16  ;;  %6899 = vmatpush.bf16.msrb.mxu0 %v13632_v5 }
 0x2a0   : > { %v16086_v19 = vpop.f32.mrf.mxu1  ;;  %v5093_v37 = vadd.f32 %v5057_v11, %v4844_v13  ;;  %v6325_v12 = vrot.slane %v6324_v16, 4  ;;  %v5414_v20 = vrot.slane %v5413_v6, 4  ;;  %v5312_v11 = vld [vmem:[#allocation2 + $0xa8] sm:$0xf]  ;;  %v5434_v17 = vshrl.u32 %v5313_v14, 16 }
 0x2a1   : > { %v5421_v56 = vshrl.u32 %v5312_v11, 16  ;;  %v5424_v53 = vshll.u32 %v5312_v11, 16  ;;  %v5741_v44 = vrot.slane %v5739_v7, 4  ;;  %v5742_v28 = vrot.slane %v5314_v58, 5 }
 0x2a2   : > { %v6330_v13 = vsel %vm14142_vm4, %v6325_v12, %v6329_v1  ;;  %v5419_v16 = vsel %vm14142_vm4, %v5414_v20, %v5418_v38  ;;  %v6347_v21 = vrot.slane %v6345_v30, 4  ;;  %v6231_v20 = vld [vmem:[#allocation3 + $0x38] sm:$0x1] }
 0x2a3   : > { %6542 = vmatmul.bf16.gmra.mxu2 %v6462_v57  ;;  %v4434_v29 = vpop.f32.mrf.mxu0  ;;  %v16106_v57 = vrot.slane %v6341_v39, 5  ;;  %v16126_v39 = vrot.slane %v5430_v32, 5 }
 0x2a4   : > { %v4468_v60 = vadd.f32 %v4434_v29, %v15633_v54  ;;  %v6320_v54 = vsel %vm14142_vm4, %v6315_v46, %v16076_v15  ;;  %v5409_v15 = vsel %vm14142_vm4, %v5404_v63, %v16081_v10  ;;  %v12251_v10 = vrot.slane %v5681_v51, 9 }
 0x2a5   : > { %v5251_v41 = vpop.f32.mrf.mxu3  ;;  %v6450_v46 = vunpack.c.l.b16 %v6320_v54  ;;  %v5426_v63 = vrot.slane %v5424_v53, 5  ;;  %v5743_v54 = vsel %vm14151_vm5, %v5741_v44, %v5742_v28  ;;  %v6348_v30 = vor.u32 %v6347_v21, %v16106_v57  ;;  %v6206_v28 = vld [vmem:[#allocation3 + $0x40] sm:$0xf] }
 0x2a6   : > { %v5060_v18 = vpop.f32.mrf.mxu2  ;;  %v16096_v23 = vadd.f32 %v5251_v41, %v5093_v37  ;;  %v4845_v27 = vadd.f32 %v16054_v24, %v4468_v60  ;;  %5630 = vmatmul.bf16.gmra.mxu0 %v5550_v55  ;;  %v6334_v24 = vrot.slane %v6332_v33, 4  ;;  %v6337_v37 = vrot.slane %v6335_v52, 5  ;;  %v13664_v55 = vld [vmem:[%s18118_s3 + $0x158] sm:$0xff] }
 0x2a7   : > { %v6451_v60 = vunpack.c.l.b16 %v6330_v13  ;;  %v5538_v33 = vunpack.c.l.b16 %v5409_v15  ;;  %v5539_v41 = vunpack.c.l.b16 %v5419_v16  ;;  %7721 = vmatpush.bf16.msrb.mxu3 %v13664_v55  ;;  %v5740_v11 = vsel %vm14151_vm5, %v12251_v10, %v5739_v7 }
 0x2a8   : > { %v16099_v61 = vpop.f32.mrf.mxu1  ;;  %v5094_v2 = vadd.f32 %v5060_v18, %v4845_v27  ;;  %v5423_v18 = vrot.slane %v5421_v56, 4  ;;  %v5436_v27 = vrot.slane %v5434_v17, 4  ;;  %v6338_v14 = vor.u32 %v6337_v37, %v6334_v24  ;;  %v6205_v56 = vld [vmem:[#allocation3 + $0x3c] sm:$0xf] }
 0x2a9   : > { %v5440_v13 = vshll.u32 %v5314_v58, 16  ;;  %v6351_v51 = vshll.u32 %v6231_v20, 16  ;;  %v5551_v53 = vpack.c.b16 %v5539_v41, %v5538_v33  ;;  %v5789_v16 = vunpack.c.l.b16 %v5740_v11  ;;  %v5316_v33 = vld [vmem:[#allocation2 + $0xb8] sm:$0xf]  ;;  %v5317_v11 = vld [vmem:[#allocation2 + $0xbc] sm:$0x1] }
 0x2aa   : > { %6687 = vmatmul.bf16.gmra.mxu3 %v13607_v50  ;;  %v6463_v50 = vpack.c.b16 %v6451_v60, %v6450_v46  ;;  %v5437_v15 = vor.u32 %v5436_v27, %v16126_v39  ;;  %v5790_v32 = vunpack.c.l.b16 %v5743_v54  ;;  %v6339_v17 = vrot.slane %v6338_v14, 4 }
 0x2ab   : > { %5884 = vmatmul.bf16.gmra.mxu1 %v5800_v34  ;;  %v4436_v6 = vpop.f32.mrf.mxu0  ;;  %v6349_v47 = vrot.slane %v6348_v30, 4  ;;  %v6356_v37 = vshrl.u32 %v6205_v56, 16  ;;  %v5442_v10 = vrot.slane %v5440_v13, 5  ;;  %v6353_v44 = vrot.slane %v6351_v51, 5  ;;  %v13655_v13 = vld [vmem:[%s18118_s3 + $0x110] sm:$0xff] }
 0x2ac   : > { %v4469_v29 = vadd.f32 %v4436_v6, %v15667_v59  ;;  %v13648_v59 = vld [vmem:[%s18118_s3 + $0xd8] sm:$0xff]  ;;  %v6344_v58 = vsel %vm14142_vm4, %v6339_v17, %v16106_v57  ;;  %v5438_v46 = vrot.slane %v5437_v15, 4  ;;  %v5801_v60 = vpack.c.b16 %v5790_v32, %v5789_v16  ;;  %v5682_v57 = vld [vmem:[#allocation2 + $0xb4] sm:$0xe]  ;;  %7472 = vmatpush.bf16.msrb.mxu2 %v13655_v13 }
 0x2ad   : > { %v5254_v12 = vpop.f32.mrf.mxu3  ;;  %7093 = vmatpush.bf16.msrb.mxu1 %v13648_v59  ;;  %v6359_v41 = vshll.u32 %v6205_v56, 16  ;;  %v6365_v27 = vshll.u32 %v6206_v28, 16  ;;  %v6369_v20 = vshrl.u32 %v6206_v28, 16  ;;  %v6452_v59 = vunpack.c.l.b16 %v6344_v58  ;;  %v13631_v51 = vld [vmem:[%s18118_s3 + $0x90] sm:$0xff] }
 0x2ae   : > { %v5062_v1 = vpop.f32.mrf.mxu2  ;;  %v16123_v38 = vadd.f32 %v5254_v12, %v5094_v2  ;;  %v4846_v52 = vadd.f32 %v16086_v19, %v4469_v29  ;;  %v5427_v2 = vor.u32 %v5426_v63, %v5423_v18  ;;  %v5315_v12 = vld [vmem:[#allocation2 + $0xb4] sm:$0xf]  ;;  %v13608_v18 = vld [vmem:[#allocation3 + $0x24] sm:$0xff]  ;;  %v6358_v14 = vrot.slane %v6356_v37, 4  ;;  %6900 = vmatpush.bf16.msrb.mxu0 %v13631_v51 }
 0x2af   : > { %v5448_v54 = vshll.u32 %v5315_v12, 16  ;;  %v13663_v56 = vld [vmem:[%s18118_s3 + $0x150] sm:$0xff]  ;;  %v12252_v15 = vrot.slane %v5682_v57, 9  ;;  %v5749_v32 = vrot.slane %v5317_v11, 5  ;;  %v6361_v17 = vrot.slane %v6359_v41, 5 }
 0x2b0   : > { %v16131_v34 = vpop.f32.mrf.mxu1  ;;  %v5095_v19 = vadd.f32 %v5062_v1, %v4846_v52  ;;  %v5428_v6 = vrot.slane %v5427_v2, 4  ;;  %v6354_v1 = vsel %vm14142_vm4, %v6349_v47, %v6353_v44  ;;  %v5746_v52 = vrot.slane %v5316_v33, 5  ;;  %7722 = vmatpush.bf16.msrb.mxu3 %v13663_v56 }
 0x2b1   : > { %v5458_v2 = vshrl.u32 %v5316_v33, 16  ;;  %v16165_v47 = vrot.slane %v6365_v27, 5  ;;  %v5450_v58 = vrot.slane %v5448_v54, 5  ;;  %v5464_v57 = vshll.u32 %v5317_v11, 16 }
 0x2b2   : > { %v5433_v30 = vsel %vm14142_vm4, %v5428_v6, %v16126_v39  ;;  %v6453_v39 = vunpack.c.l.b16 %v6354_v1  ;;  %v5748_v16 = vrot.slane %v5746_v52, 4  ;;  %v6362_v27 = vor.u32 %v6361_v17, %v6358_v14 }
 0x2b3   : > { %6547 = vmatmul.bf16.gmra.mxu2 %v6463_v50  ;;  %v4439_v7 = vpop.f32.mrf.mxu0  ;;  %v5454_v50 = vshll.u32 %v5316_v33, 16  ;;  %v5466_v11 = vrot.slane %v5464_v57, 5 }
 0x2b4   : > { %v4470_v24 = vadd.f32 %v4439_v7, %v15695_v9  ;;  %v5750_v1 = vsel %vm14151_vm5, %v5748_v16, %v5749_v32  ;;  %v6464_v41 = vpack.c.b16 %v6453_v39, %v6452_v59  ;;  %v6208_v59 = vld [vmem:[#allocation3 + $0x4c] sm:$0xf]  ;;  %v6363_v14 = vrot.slane %v6362_v27, 4  ;;  %v13654_v27 = vld [vmem:[%s18118_s3 + $0x108] sm:$0xff] }
 0x2b5   : > { %v5256_v5 = vpop.f32.mrf.mxu3  ;;  %7473 = vmatpush.bf16.msrb.mxu2 %v13654_v27 }
 0x2b6   : > { %v5065_v55 = vpop.f32.mrf.mxu2  ;;  %v16143_v21 = vadd.f32 %v5256_v5, %v5095_v19  ;;  %v4847_v29 = vadd.f32 %v16099_v61, %v4470_v24  ;;  %5635 = vmatmul.bf16.gmra.mxu0 %v5551_v53  ;;  %v5445_v61 = vshrl.u32 %v5315_v12, 16  ;;  %v5443_v19 = vsel %vm14142_vm4, %v5438_v46, %v5442_v10  ;;  %v13647_v46 = vld [vmem:[%s18118_s3 + $0xd0] sm:$0xff] }
 0x2b7   : > { %v6371_v24 = vrot.slane %v6369_v20, 4  ;;  %v5541_v6 = vunpack.c.l.b16 %v5443_v19  ;;  %v5747_v12 = vsel %vm14151_vm5, %v12252_v15, %v5746_v52  ;;  %7094 = vmatpush.bf16.msrb.mxu1 %v13647_v46  ;;  %v5792_v19 = vunpack.c.l.b16 %v5750_v1  ;;  %v5320_v1 = vld [vmem:[#allocation2 + $0xc8] sm:$0x1] }
 0x2b8   : > { %v16146_v9 = vpop.f32.mrf.mxu1  ;;  %v5096_v63 = vadd.f32 %v5065_v55, %v4847_v29  ;;  %v5540_v55 = vunpack.c.l.b16 %v5433_v30  ;;  %v5447_v10 = vrot.slane %v5445_v61, 4  ;;  %v16170_v29 = vrot.slane %v5454_v50, 5 }
 0x2b9   : > { %v6372_v20 = vor.u32 %v6371_v24, %v16165_v47  ;;  %v5791_v30 = vunpack.c.l.b16 %v5747_v12  ;;  %v5318_v24 = vld [vmem:[#allocation2 + $0xc0] sm:$0xf]  ;;  %v6393_v12 = vshrl.u32 %v6208_v59, 16 }
 0x2ba   : > { %6692 = vmatmul.bf16.gmra.mxu3 %v13608_v18  ;;  %v6232_v18 = vld [vmem:[#allocation3 + $0x44] sm:$0x1]  ;;  %v5552_v61 = vpack.c.b16 %v5541_v6, %v5540_v55  ;;  %v6389_v6 = vshll.u32 %v6208_v59, 16 }
 0x2bb   : > { %5889 = vmatmul.bf16.gmra.mxu1 %v5801_v60  ;;  %v4441_v53 = vpop.f32.mrf.mxu0  ;;  %v6375_v50 = vshll.u32 %v6232_v18, 16  ;;  %v6373_v15 = vrot.slane %v6372_v20, 4  ;;  %v5802_v17 = vpack.c.b16 %v5792_v19, %v5791_v30  ;;  %v13630_v20 = vld [vmem:[%s18118_s3 + $0x88] sm:$0xff]  ;;  %v6395_v59 = vrot.slane %v6393_v12, 4 }
 0x2bc   : > { %v4471_v7 = vadd.f32 %v4441_v53, %v15734_v42  ;;  %v5460_v42 = vrot.slane %v5458_v2, 4  ;;  %6901 = vmatpush.bf16.msrb.mxu0 %v13630_v20 }
 0x2bd   : > { %v5259_v37 = vpop.f32.mrf.mxu3 }
 0x2be   : > { %v5067_v5 = vpop.f32.mrf.mxu2  ;;  %v16167_v44 = vadd.f32 %v5259_v37, %v5096_v63  ;;  %v4848_v28 = vadd.f32 %v16131_v34, %v4471_v7  ;;  %v6207_v34 = vld [vmem:[#allocation3 + $0x48] sm:$0xf]  ;;  %v5451_v63 = vor.u32 %v5450_v58, %v5447_v10  ;;  %v5461_v54 = vor.u32 %v5460_v42, %v16170_v29  ;;  %v13609_v10 = vld [vmem:[#allocation3 + $0x30] sm:$0xff] }
 0x2bf   : > { %v6380_v2 = vshrl.u32 %v6207_v34, 16  ;;  %v6383_v51 = vshll.u32 %v6207_v34, 16  ;;  %v5683_v42 = vld [vmem:[#allocation2 + $0xc0] sm:$0xe] }
 0x2c0   : > { %v16175_v60 = vpop.f32.mrf.mxu1  ;;  %v5097_v33 = vadd.f32 %v5067_v5, %v4848_v28  ;;  %v5452_v39 = vrot.slane %v5451_v63, 4  ;;  %v5462_v7 = vrot.slane %v5461_v54, 4  ;;  %v6377_v5 = vrot.slane %v6375_v50, 5 }
 0x2c1   : > { %v6382_v55 = vrot.slane %v6380_v2, 4  ;;  %v6368_v28 = vsel %vm14142_vm4, %v6363_v14, %v16165_v47  ;;  %v6385_v18 = vrot.slane %v6383_v51, 5  ;;  %v12253_v30 = vrot.slane %v5683_v42, 9 }
 0x2c2   : > { %v5457_v34 = vsel %vm14142_vm4, %v5452_v39, %v16170_v29  ;;  %v5467_v63 = vsel %vm14142_vm4, %v5462_v7, %v5466_v11  ;;  %v6454_v29 = vunpack.c.l.b16 %v6368_v28  ;;  %v6233_v28 = vld [vmem:[#allocation3 + $0x50] sm:$0x1]  ;;  %v5488_v42 = vshll.u32 %v5320_v1, 16 }
 0x2c3   : > { %6552 = vmatmul.bf16.gmra.mxu2 %v6464_v41  ;;  %v4444_v52 = vpop.f32.mrf.mxu0  ;;  %v5472_v41 = vshll.u32 %v5318_v24, 16  ;;  %v5543_v39 = vunpack.c.l.b16 %v5467_v63 }
 0x2c4   : > { %v4472_v13 = vadd.f32 %v4444_v52, %v15761_v26  ;;  %v5319_v26 = vld [vmem:[#allocation2 + $0xc4] sm:$0xf]  ;;  %v5756_v52 = vrot.slane %v5320_v1, 5  ;;  %v5490_v20 = vrot.slane %v5488_v42, 5 }
 0x2c5   : > { %v5261_v56 = vpop.f32.mrf.mxu3  ;;  %v5753_v46 = vrot.slane %v5319_v26, 5  ;;  %v5478_v47 = vshll.u32 %v5319_v26, 16  ;;  %v5482_v57 = vshrl.u32 %v5319_v26, 16  ;;  %v5474_v14 = vrot.slane %v5472_v41, 5 }
 0x2c6   : > { %v5070_v53 = vpop.f32.mrf.mxu2  ;;  %v16184_v16 = vadd.f32 %v5261_v56, %v5097_v33  ;;  %v4849_v32 = vadd.f32 %v16146_v9, %v4472_v13  ;;  %5640 = vmatmul.bf16.gmra.mxu0 %v5552_v61  ;;  %v6378_v9 = vsel %vm14142_vm4, %v6373_v15, %v6377_v5  ;;  %v5469_v33 = vshrl.u32 %v5318_v24, 16  ;;  %v13662_v61 = vld [vmem:[%s18118_s3 + $0x148] sm:$0xff] }
 0x2c7   : > { %v5755_v19 = vrot.slane %v5753_v46, 4  ;;  %v6455_v2 = vunpack.c.l.b16 %v6378_v9  ;;  %v6391_v13 = vrot.slane %v6389_v6, 5  ;;  %7723 = vmatpush.bf16.msrb.mxu3 %v13662_v61  ;;  %v16212_v7 = vrot.slane %v5478_v47, 5 }
 0x2c8   : > { %v16187_v37 = vpop.f32.mrf.mxu1  ;;  %v5098_v58 = vadd.f32 %v5070_v53, %v4849_v32  ;;  %v5542_v53 = vunpack.c.l.b16 %v5457_v34  ;;  %v5471_v11 = vrot.slane %v5469_v33, 4  ;;  %v5754_v5 = vsel %vm14151_vm5, %v12253_v30, %v5753_v46 }
 0x2c9   : > { %v5757_v26 = vsel %vm14151_vm5, %v5755_v19, %v5756_v52  ;;  %v6386_v6 = vor.u32 %v6385_v18, %v6382_v55  ;;  %v6396_v12 = vor.u32 %v6395_v59, %v6391_v13  ;;  %v5793_v41 = vunpack.c.l.b16 %v5754_v5  ;;  %v6210_v52 = vld [vmem:[#allocation3 + $0x58] sm:$0xf] }
 0x2ca   : > { %6697 = vmatmul.bf16.gmra.mxu3 %v13609_v10  ;;  %v5553_v9 = vpack.c.b16 %v5543_v39, %v5542_v53  ;;  %v5794_v34 = vunpack.c.l.b16 %v5757_v26  ;;  %v6399_v46 = vshll.u32 %v6233_v28, 16  ;;  %v5322_v59 = vld [vmem:[#allocation2 + $0xd0] sm:$0xf]  ;;  %v5684_v39 = vld [vmem:[#allocation2 + $0xcc] sm:$0xe]  ;;  %v13661_v28 = vld [vmem:[%s18118_s3 + $0x140] sm:$0xff] }
 0x2cb   : > { %5894 = vmatmul.bf16.gmra.mxu1 %v5802_v17  ;;  %v4446_v54 = vpop.f32.mrf.mxu0  ;;  %v5484_v17 = vrot.slane %v5482_v57, 4  ;;  %v6387_v47 = vrot.slane %v6386_v6, 4  ;;  %v6397_v1 = vrot.slane %v6396_v12, 4  ;;  %v5506_v42 = vshrl.u32 %v5322_v59, 16  ;;  %7724 = vmatpush.bf16.msrb.mxu3 %v13661_v28 }
 0x2cc   : > { %v4473_v50 = vadd.f32 %v4446_v54, %v15794_v40  ;;  %v13646_v40 = vld [vmem:[%s18118_s3 + $0xc8] sm:$0xff]  ;;  %v5803_v19 = vpack.c.b16 %v5794_v34, %v5793_v41  ;;  %v12254_v12 = vrot.slane %v5684_v39, 9 }
 0x2cd   : > { %v5264_v51 = vpop.f32.mrf.mxu3  ;;  %7095 = vmatpush.bf16.msrb.mxu1 %v13646_v40  ;;  %v5485_v33 = vor.u32 %v5484_v17, %v16212_v7  ;;  %v6392_v61 = vsel %vm14142_vm4, %v6387_v47, %v6391_v13  ;;  %v6413_v17 = vshll.u32 %v6210_v52, 16  ;;  %v6417_v40 = vshrl.u32 %v6210_v52, 16 }
 0x2ce   : > { %v5072_v56 = vpop.f32.mrf.mxu2  ;;  %v16209_v15 = vadd.f32 %v5264_v51, %v5098_v58  ;;  %v4850_v32 = vadd.f32 %v16175_v60, %v4473_v50  ;;  %v6465_v58 = vpack.c.b16 %v6455_v2, %v6454_v29  ;;  %v5475_v60 = vor.u32 %v5474_v14, %v5471_v11  ;;  %v13610_v51 = vld [vmem:[#allocation3 + $0x3c] sm:$0xff] }
 0x2cf   : > { %v5486_v30 = vrot.slane %v5485_v33, 4  ;;  %v6401_v2 = vrot.slane %v6399_v46, 5  ;;  %v6456_v53 = vunpack.c.l.b16 %v6392_v61  ;;  %v5760_v11 = vrot.slane %v5322_v59, 5  ;;  %v16237_v14 = vld [vmem:[#allocation2 + $0xd4] sm:$0x1] }
 0x2d0   : > { %v16217_v24 = vpop.f32.mrf.mxu1  ;;  %v5099_v10 = vadd.f32 %v5072_v56, %v4850_v32  ;;  %v5476_v18 = vrot.slane %v5475_v60, 4  ;;  %v6209_v32 = vld [vmem:[#allocation3 + $0x54] sm:$0xf]  ;;  %v5763_v33 = vrot.slane %v16237_v14, 5 }
 0x2d1   : > { %v5491_v5 = vsel %vm14142_vm4, %v5486_v30, %v5490_v20  ;;  %v6407_v47 = vshll.u32 %v6209_v32, 16  ;;  %v6419_v20 = vrot.slane %v6417_v40, 4 }
 0x2d2   : > { %v5481_v13 = vsel %vm14142_vm4, %v5476_v18, %v16212_v7  ;;  %v13653_v7 = vld [vmem:[%s18118_s3 + $0x100] sm:$0xff]  ;;  %v16252_v18 = vrot.slane %v6413_v17, 5 }
 0x2d3   : > { %6557 = vmatmul.bf16.gmra.mxu2 %v6465_v58  ;;  %v4449_v63 = vpop.f32.mrf.mxu0  ;;  %v13629_v58 = vld [vmem:[%s18118_s3 + $0x80] sm:$0xff] }
 0x2d4   : > { %v4474_v57 = vadd.f32 %v4449_v63, %v15817_v22  ;;  %v5321_v22 = vld [vmem:[#allocation2 + $0xcc] sm:$0xf]  ;;  %v6404_v63 = vshrl.u32 %v6209_v32, 16  ;;  %7474 = vmatpush.bf16.msrb.mxu2 %v13653_v7  ;;  %6902 = vmatpush.bf16.msrb.mxu0 %v13629_v58 }
 0x2d5   : > { %v5266_v27 = vpop.f32.mrf.mxu3  ;;  %v5493_v26 = vshrl.u32 %v5321_v22, 16  ;;  %v5496_v6 = vshll.u32 %v5321_v22, 16  ;;  %v5761_v22 = vsel %vm14151_vm5, %v12254_v12, %v5760_v11  ;;  %v7154_v12 = vld [vmem:[#allocation3 + $0xc] sm:$0xf] }
 0x2d6   : > { %v5075_v55 = vpop.f32.mrf.mxu2  ;;  %v16227_v54 = vadd.f32 %v5266_v27, %v5099_v10  ;;  %v4851_v29 = vadd.f32 %v16187_v37, %v4474_v57  ;;  %5645 = vmatmul.bf16.gmra.mxu0 %v5553_v9  ;;  %v6402_v37 = vsel %vm14142_vm4, %v6397_v1, %v6401_v2  ;;  %v5502_v10 = vshll.u32 %v5322_v59, 16 }
 0x2d7   : > { %v5762_v9 = vrot.slane %v5760_v11, 4  ;;  %v6457_v34 = vunpack.c.l.b16 %v6402_v37  ;;  %v5544_v27 = vunpack.c.l.b16 %v5481_v13  ;;  %v5498_v30 = vrot.slane %v5496_v6, 5 }
 0x2d8   : > { %v16230_v50 = vpop.f32.mrf.mxu1  ;;  %v5100_v56 = vadd.f32 %v5075_v55, %v4851_v29  ;;  %v5545_v55 = vunpack.c.l.b16 %v5491_v5  ;;  %v5495_v29 = vrot.slane %v5493_v26, 4  ;;  %v16262_v52 = vrot.slane %v5502_v10, 5  ;;  %v16269_v5 = vld [vmem:[#allocation3 + $0x10] sm:$0xf] }
 0x2d9   : > { %v5508_v2 = vrot.slane %v5506_v42, 4  ;;  %v5764_v59 = vsel %vm14151_vm5, %v5762_v9, %v5763_v33  ;;  %v6406_v39 = vrot.slane %v6404_v63, 4  ;;  %v6409_v13 = vrot.slane %v6407_v47, 5 }
 0x2da   : > { %6702 = vmatmul.bf16.gmra.mxu3 %v13610_v51  ;;  %v6420_v37 = vor.u32 %v6419_v20, %v16252_v18  ;;  %v5554_v32 = vpack.c.b16 %v5545_v55, %v5544_v27  ;;  %v5795_v17 = vunpack.c.l.b16 %v5761_v22  ;;  %v5796_v40 = vunpack.c.l.b16 %v5764_v59  ;;  %v13611_v27 = vld [vmem:[#allocation3 + $0x48] sm:$0xff] }
 0x2db   : > { %5899 = vmatmul.bf16.gmra.mxu1 %v5803_v19  ;;  %v4451_v60 = vpop.f32.mrf.mxu0  ;;  %v5499_v6 = vor.u32 %v5498_v30, %v5495_v29  ;;  %v5509_v11 = vor.u32 %v5508_v2, %v16262_v52  ;;  %v5512_v10 = vshll.u32 %v16237_v14, 16  ;;  %v6410_v58 = vor.u32 %v6409_v13, %v6406_v39 }
 0x2dc   : > { %v4475_v41 = vadd.f32 %v4451_v60, %v15862_v25  ;;  %v13645_v25 = vld [vmem:[%s18118_s3 + $0xc0] sm:$0xff]  ;;  %v6421_v42 = vrot.slane %v6420_v37, 4  ;;  %v7188_v9 = vshll.u32 %v16269_v5, 16  ;;  %v7192_v33 = vshrl.u32 %v16269_v5, 16 }
 0x2dd   : > { %v5269_v46 = vpop.f32.mrf.mxu3  ;;  %7096 = vmatpush.bf16.msrb.mxu1 %v13645_v25  ;;  %v5804_v63 = vpack.c.b16 %v5796_v40, %v5795_v17  ;;  %v5500_v14 = vrot.slane %v5499_v6, 4  ;;  %v6411_v20 = vrot.slane %v6410_v58, 4  ;;  %v7182_v30 = vshll.u32 %v7154_v12, 16  ;;  %v16301_v58 = vld [vmem:[#allocation3 + $0x1c] sm:$0xf] }
 0x2de   : > { %v5077_v57 = vpop.f32.mrf.mxu2  ;;  %v16254_v61 = vadd.f32 %v5269_v46, %v5100_v56  ;;  %v4852_v1 = vadd.f32 %v16217_v24, %v4475_v41  ;;  %v6466_v56 = vpack.c.b16 %v6457_v34, %v6456_v53  ;;  %v6234_v24 = vld [vmem:[#allocation3 + $0x5c] sm:$0x1]  ;;  %v5510_v46 = vrot.slane %v5509_v11, 4 }
 0x2df   : > { %v6423_v7 = vshll.u32 %v6234_v24, 16  ;;  %v16281_v25 = vrot.slane %v7188_v9, 5  ;;  %v7194_v2 = vrot.slane %v7192_v33, 4  ;;  %v5505_v59 = vsel %vm14142_vm4, %v5500_v14, %v16262_v52 }
 0x2e0   : > { %v16260_v19 = vpop.f32.mrf.mxu1  ;;  %v5101_v51 = vadd.f32 %v5077_v57, %v4852_v1  ;;  %v5514_v57 = vrot.slane %v5512_v10, 5  ;;  %v7179_v1 = vshrl.u32 %v7154_v12, 16  ;;  %v7184_v40 = vrot.slane %v7182_v30, 5 }
 0x2e1   : > { %v5546_v52 = vunpack.c.l.b16 %v5505_v59 }
 0x2e2   : > { %v7181_v17 = vrot.slane %v7179_v1, 4 }
 0x2e3   : > { %6562 = vmatmul.bf16.gmra.mxu2 %v6466_v56  ;;  %v4454_v26 = vpop.f32.mrf.mxu0 }
 0x2e4   : > { %v4476_v53 = vadd.f32 %v4454_v26, %v15901_v0  ;;  %v6425_v0 = vrot.slane %v6423_v7, 5 }
 0x2e5   : > { %v5271_v28 = vpop.f32.mrf.mxu3 }
 0x2e6   : > { %v5080_v60 = vpop.f32.mrf.mxu2  ;;  %v16276_v41 = vadd.f32 %v5271_v28, %v5101_v51  ;;  %v4853_v34 = vadd.f32 %v16230_v50, %v4476_v53  ;;  %5650 = vmatmul.bf16.gmra.mxu0 %v5554_v32  ;;  %v6426_v29 = vsel %vm14142_vm4, %v6421_v42, %v6425_v0  ;;  %v6416_v50 = vsel %vm14142_vm4, %v6411_v20, %v16252_v18  ;;  %v16292_v32 = vld [vmem:[#allocation3 + $0x14] sm:$0x1]  ;;  %v13861_v0 = vld [vmem:[#allocation3 + $0x4] sm:$0xf] }
 0x2e7   : > { %v5515_v51 = vsel %vm14142_vm4, %v5510_v46, %v5514_v57  ;;  %v6459_v24 = vunpack.c.l.b16 %v6426_v29  ;;  %v6458_v37 = vunpack.c.l.b16 %v6416_v50  ;;  %v7195_v18 = vor.u32 %v7194_v2, %v16281_v25  ;;  %v6718_v57 = vld [vmem:[#allocation3] sm:$0xe] }
 0x2e8   : > { %v4836_v47 = vpop.f32.mrf.mxu1  ;;  %v5102_v55 = vadd.f32 %v5080_v60, %v4853_v34  ;;  %v5547_v11 = vunpack.c.l.b16 %v5515_v51  ;;  %v7198_v53 = vshll.u32 %v16292_v32, 16  ;;  %v7185_v60 = vor.u32 %v7184_v40, %v7181_v17  ;;  %v7157_v34 = vld [vmem:[#allocation3 + $0x18] sm:$0xf]  ;;  %v13700_v20 = vld [vmem:[%s18118_s3 + $0x238] sm:$0xff] }
 0x2e9   : > { %v7196_v42 = vrot.slane %v7195_v18, 4  ;;  %v13692_v50 = vld [vmem:[%s18118_s3 + $0x1f8] sm:$0xff]  ;;  %v12415_v59 = vrot.slane %v6718_v57, 9  ;;  %8540 = vmatpush.bf16.msra.mxu2 %v13700_v20  ;;  %v7206_v17 = vshll.u32 %v7157_v34, 16 }
 0x2ea   : > { %6707 = vmatmul.bf16.gmra.mxu3 %v13611_v27  ;;  %v5555_v28 = vpack.c.b16 %v5547_v11, %v5546_v52  ;;  %v7200_v33 = vrot.slane %v7198_v53, 5  ;;  %v6744_v27 = vrot.slane %v13861_v0, 5  ;;  %v7186_v30 = vrot.slane %v7185_v60, 4  ;;  %8290 = vmatpush.bf16.msra.mxu1 %v13692_v50  ;;  %v7532_v11 = vld [vmem:[#allocation3 + $0xc] sm:$0xe] }
 0x2eb   : > { %5904 = vmatmul.bf16.gmra.mxu1 %v5804_v63  ;;  %v4456_v22 = vpop.f32.mrf.mxu0  ;;  %v7216_v63 = vshrl.u32 %v16301_v58, 16 }
 0x2ec   : > { %v4477_v56 = vadd.f32 %v4456_v22, %v15935_v4  ;;  %v6467_v4 = vpack.c.b16 %v6459_v24, %v6458_v37  ;;  %v7201_v2 = vsel %vm14142_vm4, %v7196_v42, %v7200_v33  ;;  %v6746_v51 = vrot.slane %v6744_v27, 4  ;;  %v13637_v37 = vld [vmem:[#allocation3 + $0xc] sm:$0xff] }
 0x2ed   : > { %v5274_v39 = vpop.f32.mrf.mxu3  ;;  %v7218_v18 = vrot.slane %v7216_v63, 4  ;;  %v7191_v52 = vsel %vm14142_vm4, %v7186_v30, %v16281_v25  ;;  %v7388_v42 = vunpack.c.l.b16 %v7201_v2 }
 0x2ee   : > { %v5082_v13 = vpop.f32.mrf.mxu2  ;;  %v16295_v26 = vadd.f32 %v5274_v39, %v5102_v55  ;;  %v4854_v6 = vadd.f32 %v16260_v19, %v4477_v56  ;;  %v7212_v19 = vshll.u32 %v16301_v58, 16  ;;  %v7566_v55 = vrot.slane %v16269_v5, 5  ;;  %v13724_v5 = vld [vmem:[%s18118_s3 + $0x78] sm:$0xff]  ;;  %v13862_v56 = vld [vmem:[#allocation3 + $0x8] sm:$0x1]  ;;  %v13612_v39 = vld [vmem:[#allocation3 + $0x54] sm:$0xff] }
 0x2ef   : > { %v6747_v24 = vrot.slane %v13862_v56, 5  ;;  %9002 = vmatpush.bf16.msra.mxu3 %v13724_v5 }
 0x2f0   : > { %v16298_v10 = vpop.f32.mrf.mxu1  ;;  %v5103_v7 = vadd.f32 %v5082_v13, %v4854_v6  ;;  %v16325_v40 = vrot.slane %v7212_v19, 5  ;;  %v7568_v6 = vrot.slane %v7566_v55, 4  ;;  %v7208_v19 = vrot.slane %v7206_v17, 5  ;;  %v7160_v17 = vld [vmem:[#allocation3 + $0x24] sm:$0xf] }
 0x2f1   : > { %v6748_v60 = vsel %vm14151_vm5, %v6746_v51, %v6747_v24 }
 0x2f2   : > { %v7219_v25 = vor.u32 %v7218_v18, %v16325_v40 }
 0x2f3   : > { %6567 = vmatmul.bf16.gmra.mxu2 %v6467_v4  ;;  %v4459_v12 = vpop.f32.mrf.mxu0  ;;  %v16331_v4 = vld [vmem:[#allocation3 + $0x20] sm:$0x1] }
 0x2f4   : > { %v4478_v9 = vadd.f32 %v4459_v12, %v15969_v31  ;;  %v13684_v31 = vld [vmem:[%s18118_s3 + $0x1b8] sm:$0xff]  ;;  %v13863_v12 = vld [vmem:[#allocation3 + $0x10] sm:$0xf]  ;;  %v7222_v0 = vshll.u32 %v16331_v4, 16  ;;  %v7220_v56 = vrot.slane %v7219_v25, 4 }
 0x2f5   : > { %v5276_v14 = vpop.f32.mrf.mxu3  ;;  %7912 = vmatpush.bf16.msra.mxu0 %v13684_v31 }
 0x2f6   : > { %v5085_v46 = vpop.f32.mrf.mxu2  ;;  %v16313_v1 = vadd.f32 %v5276_v14, %v5103_v7  ;;  %v4855_v29 = vadd.f32 %v4836_v47, %v4478_v9  ;;  %5655 = vmatmul.bf16.gmra.mxu0 %v5555_v28  ;;  %v7203_v47 = vshrl.u32 %v7157_v34, 16  ;;  %v7569_v7 = vrot.slane %v16292_v32, 5 }
 0x2f7   : > { %v6745_v28 = vsel %vm14151_vm5, %v12415_v59, %v6744_v27  ;;  %v6751_v9 = vrot.slane %v13863_v12, 5  ;;  %v7387_v14 = vunpack.c.l.b16 %v7191_v52  ;;  %v6719_v59 = vld [vmem:[#allocation3 + $0xc] sm:$0xe]  ;;  %v7533_v52 = vld [vmem:[#allocation3 + $0x18] sm:$0xe] }
 0x2f8   : > { %v16323_v22 = vpop.f32.mrf.mxu1  ;;  %v5104_v13 = vadd.f32 %v5085_v46, %v4855_v29  ;;  %v7205_v34 = vrot.slane %v7203_v47, 4  ;;  %v12599_v46 = vrot.slane %v7532_v11, 9  ;;  %v7570_v57 = vsel %vm14151_vm5, %v7568_v6, %v7569_v7  ;;  %v13864_v47 = vld [vmem:[#allocation3 + $0x14] sm:$0x1]  ;;  %v13865_v7 = vld [vmem:[#allocation3 + $0x1c] sm:$0xf] }
 0x2f9   : > { %v6815_v31 = vunpack.c.l.b16 %v6745_v28  ;;  %v6816_v29 = vunpack.c.l.b16 %v6748_v60  ;;  %v6753_v2 = vrot.slane %v6751_v9, 4  ;;  %v7403_v50 = vpack.c.b16 %v7388_v42, %v7387_v14  ;;  %v16358_v60 = vld [vmem:[%s18117_s2] ss:$0 sm:$0xff] }
 0x2fa   : > { %6712 = vmatmul.bf16.gmra.mxu3 %v13612_v39  ;;  %v7209_v51 = vor.u32 %v7208_v19, %v7205_v34  ;;  %v7638_v24 = vunpack.c.l.b16 %v7570_v57  ;;  %v6754_v39 = vrot.slane %v13864_v47, 5  ;;  %v12416_v6 = vrot.slane %v6719_v59, 9 }
 0x2fb   : > { %7097 = vmatmul.bf16.vlgmr.msrb.gmra.mxu1 %v13637_v37  ;;  %v4461_v53 = vpop.f32.mrf.mxu0  ;;  %v7573_v11 = vrot.slane %v16301_v58, 5  ;;  %v7227_v14 = vshrl.u32 %v7160_v17, 16 }
 0x2fc   : > { %v4479_v33 = vadd.f32 %v4461_v53, %v16006_v8  ;;  %v7567_v8 = vsel %vm14151_vm5, %v12599_v46, %v7566_v55  ;;  %v16351_v55 = vsel %vm14151_vm5, %v6753_v2, %v6754_v39  ;;  %v6758_v53 = vrot.slane %v13865_v7, 5 }
 0x2fd   : > { %v5279_v63 = vpop.f32.mrf.mxu3  ;;  %v7637_v37 = vunpack.c.l.b16 %v7567_v8  ;;  %v7210_v42 = vrot.slane %v7209_v51, 4  ;;  %v6752_v58 = vsel %vm14151_vm5, %v12416_v6, %v6751_v9  ;;  %v7230_v46 = vshll.u32 %v7160_v17, 16  ;;  %v13638_v51 = vld [vmem:[#allocation3 + $0x18] sm:$0xff] }
 0x2fe   : > { %v5087_v32 = vpop.f32.mrf.mxu2  ;;  %v16342_v27 = vadd.f32 %v5279_v63, %v5104_v13  ;;  %v4856_v20 = vadd.f32 %v16298_v10, %v4479_v33  ;;  %v6831_v13 = vpack.c.b16 %v6816_v29, %v6815_v31  ;;  %v7224_v10 = vrot.slane %v7222_v0, 5  ;;  %v16362_v33 = vld [vmem:[#allocation3 + $0x28] sm:$0xf]  ;;  %v13683_v63 = vld [vmem:[%s18118_s3 + $0x1b0] sm:$0xff] }
 0x2ff   : > { %v7653_v19 = vpack.c.b16 %v7638_v24, %v7637_v37  ;;  %v6818_v9 = vunpack.c.l.b16 %v16351_v55  ;;  %v13691_v31 = vld [vmem:[%s18118_s3 + $0x1f0] sm:$0xff]  ;;  %7913 = vmatpush.bf16.msra.mxu0 %v13683_v63  ;;  %v7236_v24 = vshll.u32 %v16362_v33, 16  ;;  %v7240_v47 = vshrl.u32 %v16362_v33, 16  ;;  %v7534_v63 = vld [vmem:[#allocation3 + $0x24] sm:$0xe] }
 0x300   : > { %v16347_v30 = vpop.f32.mrf.mxu1  ;;  %v5105_v5 = vadd.f32 %v5087_v32, %v4856_v20  ;;  %v7225_v12 = vsel %vm14142_vm4, %v7220_v56, %v7224_v10  ;;  %v13723_v32 = vld [vmem:[%s18118_s3 + $0x70] sm:$0xff]  ;;  %v7215_v20 = vsel %vm14142_vm4, %v7210_v42, %v16325_v40  ;;  %v7576_v56 = vrot.slane %v16331_v4, 5  ;;  %8291 = vmatpush.bf16.msra.mxu1 %v13691_v31  ;;  %v16391_v40 = vld [vmem:[#allocation3 + $0x2c] sm:$0x1] }
 0x301   : > { %v6720_v29 = vld [vmem:[#allocation3 + $0x18] sm:$0xe]  ;;  %v16387_v2 = vunpack.c.l.b16 %v7225_v12  ;;  %9003 = vmatpush.bf16.msra.mxu3 %v13723_v32  ;;  %v7229_v10 = vrot.slane %v7227_v14, 4  ;;  %v7232_v17 = vrot.slane %v7230_v46, 5  ;;  %v6817_v6 = vunpack.c.l.b16 %v6752_v58 }
 0x302   : > { %v12417_v39 = vrot.slane %v6720_v29, 9  ;;  %v7389_v55 = vunpack.c.l.b16 %v7215_v20  ;;  %v7246_v12 = vshll.u32 %v16391_v40, 16  ;;  %v16405_v58 = vrot.slane %v7236_v24, 5 }
 0x303   : > { %7475 = vmatmul.bf16.vlgmr.msrb.gmra.mxu2 %v7403_v50  ;;  %v5621_v18 = vpop.f32.mrf.mxu0  ;;  %v7575_v50 = vrot.slane %v7573_v11, 4  ;;  %v6832_v14 = vpack.c.b16 %v6818_v9, %v6817_v6  ;;  %v7233_v20 = vor.u32 %v7232_v17, %v7229_v10  ;;  %v7583_v10 = vrot.slane %v16391_v40, 5 }
 0x304   : > { %v5661_v28 = vadd.f32 %v5621_v18, %v16033_v36  ;;  %v13699_v36 = vld [vmem:[%s18118_s3 + $0x230] sm:$0xff]  ;;  %v7404_v46 = vpack.c.b16 %v16387_v2, %v7389_v55  ;;  %v13867_v55 = vld [vmem:[#allocation3 + $0x28] sm:$0xf] }
 0x305   : > { %v5281_v34 = vpop.f32.mrf.mxu3  ;;  %8541 = vmatpush.bf16.msra.mxu2 %v13699_v36  ;;  %v7577_v7 = vsel %vm14151_vm5, %v7575_v50, %v7576_v56  ;;  %v7242_v36 = vrot.slane %v7240_v47, 4  ;;  %v16411_v50 = vld [vmem:[#allocation3 + $0x24] sm:$0xe]  ;;  %v12601_v56 = vrot.slane %v7534_v63, 9  ;;  %v7163_v47 = vld [vmem:[#allocation3 + $0x30] sm:$0xf] }
 0x306   : > { %v6533_v25 = vpop.f32.mrf.mxu2  ;;  %v16375_v57 = vadd.f32 %v5281_v34, %v5105_v5  ;;  %v5910_v0 = vadd.f32 %v16323_v22, %v5661_v28  ;;  %6903 = vmatmul.bf16.vlgmr.msrb.gmra.mxu0 %v6831_v13  ;;  %v12600_v5 = vrot.slane %v7533_v52, 9  ;;  %v6760_v22 = vrot.slane %v6758_v53, 4  ;;  %v13866_v13 = vld [vmem:[#allocation3 + $0x20] sm:$0x1] }
 0x307   : > { %v6761_v37 = vrot.slane %v13866_v13, 5  ;;  %v6759_v28 = vsel %vm14151_vm5, %v12417_v39, %v6758_v53  ;;  %v16421_v39 = vld [vmem:[#allocation3 + $0x34] sm:$0xf]  ;;  %v16423_v13 = vrot.slane %v7233_v20, 4  ;;  %v12418_v17 = vrot.slane %v16411_v50, 9 }
 0x308   : > { %v16385_v8 = vpop.f32.mrf.mxu1  ;;  %v5930_v59 = vadd.f32 %v16358_v60, %v5910_v0  ;;  %v7574_v4 = vsel %vm14151_vm5, %v12600_v5, %v7573_v11  ;;  %v6819_v5 = vunpack.c.l.b16 %v6759_v28  ;;  %v13698_v50 = vld [vmem:[%s18118_s3 + $0x228] sm:$0xff] }
 0x309   : > { %v6762_v42 = vsel %vm14151_vm5, %v6760_v22, %v6761_v37  ;;  %v7639_v0 = vunpack.c.l.b16 %v7574_v4  ;;  %v7580_v37 = vrot.slane %v16362_v33, 5  ;;  %v6765_v4 = vrot.slane %v13867_v55, 5  ;;  %8542 = vmatpush.bf16.msra.mxu2 %v13698_v50  ;;  %v13639_v55 = vld [vmem:[#allocation3 + $0x24] sm:$0xff] }
 0x30a   : > { %v5946_v18 = vmax.f32 %v5930_v59, 0.0  ;;  %7725 = vmatmul.bf16.vlgmr.msrb.gmra.mxu3 %v7653_v19  ;;  %v6820_v59 = vunpack.c.l.b16 %v6762_v42  ;;  %v7251_v42 = vshrl.u32 %v7163_v47, 16  ;;  %v7264_v33 = vshrl.u32 %v16421_v39, 16 }
 0x30b   : > { %7102 = vmatmul.bf16.gmra.mxu1 %v13638_v51  ;;  %v5623_v52 = vpop.f32.mrf.mxu0  ;;  %v16415_v51 = vrot.slane %v7246_v12, 5  ;;  %v7254_v12 = vshll.u32 %v7163_v47, 16 }
 0x30c   : > { %v5962_v34 = vpack.c.bf16 %v5946_v18, %v5946_v18  ;;  %v5662_v19 = vadd.f32 %v5623_v52, %v16051_v62  ;;  %v7640_v62 = vunpack.c.l.b16 %v7577_v7  ;;  %v16429_v52 = vld [vmem:[#allocation3 + $0x2c] sm:$0x1]  ;;  %v7253_v47 = vrot.slane %v7251_v42, 4 }
 0x30d   : > { %v6678_v11 = vpop.f32.mrf.mxu3  ;;  %v6768_v7 = vrot.slane %v16429_v52, 5 }
 0x30e   : > { %v6535_v32 = vpop.f32.mrf.mxu2  ;;  %v5979_v53 = vshrl.u32 %v5962_v34, 16  ;;  %v16408_v31 = vadd.f32 %v6678_v11, %v6533_v25  ;;  %v5911_v29 = vadd.f32 %v16347_v30, %v5662_v19  ;;  %v5982_v2 = vshll.u32 %v5962_v34, 16  ;;  %v6139_v30 = vld [vmem:[#allocation3 + $0x6c] sm:$0xf] }
 0x30f   : > { %v7243_v25 = vor.u32 %v7242_v36, %v16405_v58  ;;  %v7260_v34 = vshll.u32 %v16421_v39, 16 }
 0x310   : > { %v16413_v22 = vpop.f32.mrf.mxu1  ;;  %v16417_v9 = vrot.slane %v5979_v53, 7  ;;  %v5931_v24 = vadd.f32 %v16358_v60, %v5911_v29  ;;  %v16437_v53 = vpack.c.b16 %v6820_v59, %v6819_v5  ;;  %v7582_v29 = vrot.slane %v7580_v37, 4 }
 0x311   : > { %v7244_v63 = vrot.slane %v7243_v25, 4  ;;  %v16453_v5 = vsel %vm14151_vm5, %v12601_v56, %v7580_v37  ;;  %v6143_v37 = vld [vmem:[#allocation3 + $0x74] sm:$0x1] }
 0x312   : > { %v5984_v18 = vor.u32 %v5982_v2, %v16417_v9  ;;  %v5947_v6 = vmax.f32 %v5931_v24, 0.0  ;;  %v13682_v2 = vld [vmem:[%s18118_s3 + $0x1a8] sm:$0xff]  ;;  %v16472_v42 = vsel %vm14151_vm5, %v7582_v29, %v7583_v10 }
 0x313   : > { %7480 = vmatmul.bf16.gmra.mxu2 %v7404_v46  ;;  %v5626_v28 = vpop.f32.mrf.mxu0  ;;  %v7654_v46 = vpack.c.b16 %v7640_v62, %v7639_v0  ;;  %v13690_v62 = vld [vmem:[%s18118_s3 + $0x1e8] sm:$0xff]  ;;  %7914 = vmatpush.bf16.msra.mxu0 %v13682_v2  ;;  %v7249_v56 = vsel %vm14142_vm4, %v7244_v63, %v16415_v51 }
 0x314   : > { %v6140_v40 = vsel %vm14297_vm10, %v5984_v18, %v6139_v30  ;;  %v5963_v19 = vpack.c.bf16 %v5947_v6, %v5947_v6  ;;  %v5663_v36 = vadd.f32 %v5626_v28, %v16078_v3  ;;  %v13722_v3 = vld [vmem:[%s18118_s3 + $0x68] sm:$0xff]  ;;  %v7256_v30 = vrot.slane %v7254_v12, 5  ;;  %8292 = vmatpush.bf16.msra.mxu1 %v13690_v62 }
 0x315   : > { %6141 = vst [vmem:[#allocation3 + $0x6c] sm:$0xf] %v6140_v40  ;;  %v6680_v11 = vpop.f32.mrf.mxu3  ;;  %v16460_v18 = vrot.slane %v7260_v34, 5  ;;  %9004 = vmatpush.bf16.msra.mxu3 %v13722_v3  ;;  %v7239_v28 = vsel %vm14142_vm4, %v16423_v13, %v16405_v58  ;;  %v7641_v12 = vunpack.c.l.b16 %v16453_v5  ;;  %v6767_v34 = vrot.slane %v6765_v4, 4  ;;  %v7535_v2 = vld [vmem:[#allocation3 + $0x30] sm:$0xe] }
 0x316   : > { %v6538_v20 = vpop.f32.mrf.mxu2  ;;  %v5987_v24 = vshrl.u32 %v5963_v19, 16  ;;  %v16448_v25 = vadd.f32 %v6680_v11, %v6535_v32  ;;  %v5912_v0 = vadd.f32 %v16385_v8, %v5663_v36  ;;  %6908 = vmatmul.bf16.gmra.mxu0 %v6832_v14  ;;  %v7266_v32 = vrot.slane %v7264_v33, 4  ;;  %v16476_v36 = vld [vmem:[#allocation3 + $0x38] sm:$0x1] }
 0x317   : > { %v5990_v8 = vshll.u32 %v5963_v19, 16  ;;  %v5985_v33 = vrot.slane %v16417_v9, 4  ;;  %v7392_v11 = vunpack.c.l.b16 %v7249_v56  ;;  %v6766_v58 = vsel %vm14151_vm5, %v12418_v17, %v6765_v4 }
 0x318   : > { %v16458_v59 = vpop.f32.mrf.mxu1  ;;  %v5989_v6 = vrot.slane %v5987_v24, 7  ;;  %v5932_v14 = vadd.f32 %v16358_v60, %v5912_v0  ;;  %v7257_v13 = vor.u32 %v7256_v30, %v7253_v47  ;;  %v7267_v10 = vor.u32 %v7266_v32, %v16460_v18 }
 0x319   : > { %v7391_v0 = vunpack.c.l.b16 %v7239_v28  ;;  %v7642_v62 = vunpack.c.l.b16 %v16472_v42  ;;  %v7270_v17 = vshll.u32 %v16476_v36, 16  ;;  %v7587_v4 = vrot.slane %v16421_v39, 5  ;;  %v16501_v42 = vld [vmem:[#allocation3 + $0x40] sm:$0xf] }
 0x31a   : > { %v5992_v40 = vor.u32 %v5990_v8, %v5989_v6  ;;  %v5994_v19 = vrot.slane %v5989_v6, 4  ;;  %v5948_v51 = vmax.f32 %v5932_v14, 0.0  ;;  %7730 = vmatmul.bf16.gmra.mxu3 %v7654_v46  ;;  %v6821_v14 = vunpack.c.l.b16 %v6766_v58 }
 0x31b   : > { %7107 = vmatmul.bf16.gmra.mxu1 %v13639_v55  ;;  %v5628_v63 = vpop.f32.mrf.mxu0  ;;  %v7405_v6 = vpack.c.b16 %v7392_v11, %v7391_v0  ;;  %v7268_v55 = vrot.slane %v7267_v10, 4  ;;  %v12602_v56 = vrot.slane %v7535_v2, 9  ;;  %v7272_v52 = vrot.slane %v7270_v17, 5  ;;  %v16514_v10 = vld [vmem:[#allocation3 + $0x34] sm:$0xf] }
 0x31c   : > { %v5993_v29 = vsel %vm14314_vm12, %v5985_v33, %v5992_v40  ;;  %v6144_v9 = vsel %vm14324_vm13, %v5994_v19, %v6143_v37  ;;  %v5964_v50 = vpack.c.bf16 %v5948_v51, %v5948_v51  ;;  %v5664_v46 = vadd.f32 %v5628_v63, %v16096_v23  ;;  %v7166_v40 = vld [vmem:[#allocation3 + $0x3c] sm:$0xf] }
 0x31d   : > { %6142 = vst [vmem:[#allocation3 + $0x70] sm:$0xf] %v5993_v29  ;;  %v6683_v3 = vpop.f32.mrf.mxu3  ;;  %v6769_v23 = vsel %vm14151_vm5, %v6767_v34, %v6768_v7  ;;  %v16505_v7 = vsel %vm14151_vm5, %v12602_v56, %v7587_v4  ;;  %v7589_v34 = vrot.slane %v7587_v4, 4  ;;  %v7590_v11 = vrot.slane %v16476_v36, 5  ;;  %v13689_v56 = vld [vmem:[%s18118_s3 + $0x1e0] sm:$0xff] }
 0x31e   : > { %v6540_v24 = vpop.f32.mrf.mxu2  ;;  %6145 = vst [vmem:[#allocation3 + $0x74] sm:$0x1] %v6144_v9  ;;  %v5996_v47 = vshrl.u32 %v5964_v50, 16  ;;  %v16489_v30 = vadd.f32 %v6683_v3, %v6538_v20  ;;  %v5913_v32 = vadd.f32 %v16413_v22, %v5664_v46  ;;  %v5999_v39 = vshll.u32 %v5964_v50, 16  ;;  %v6146_v22 = vld [vmem:[#allocation3 + $0x78] sm:$0xf]  ;;  %8293 = vmatpush.bf16.msra.mxu1 %v13689_v56 }
 0x31f   : > { %v7258_v20 = vrot.slane %v7257_v13, 4  ;;  %v6822_v33 = vunpack.c.l.b16 %v6769_v23  ;;  %v7273_v13 = vsel %vm14142_vm4, %v7268_v55, %v7272_v52  ;;  %v6772_v29 = vrot.slane %v16514_v10, 5  ;;  %v6722_v3 = vld [vmem:[#allocation3 + $0x30] sm:$0xe]  ;;  %v13697_v23 = vld [vmem:[%s18118_s3 + $0x220] sm:$0xff] }
 0x320   : > { %v16496_v8 = vpop.f32.mrf.mxu1  ;;  %v16498_v37 = vrot.slane %v5996_v47, 7  ;;  %v5933_v28 = vadd.f32 %v16358_v60, %v5913_v32  ;;  %v7284_v9 = vshll.u32 %v16501_v42, 16  ;;  %v7288_v50 = vshrl.u32 %v16501_v42, 16  ;;  %8543 = vmatpush.bf16.msra.mxu2 %v13697_v23  ;;  %v13640_v52 = vld [vmem:[#allocation3 + $0x30] sm:$0xff] }
 0x321   : > { %v7263_v63 = vsel %vm14142_vm4, %v7258_v20, %v16460_v18  ;;  %v7275_v36 = vshrl.u32 %v7166_v40, 16  ;;  %v7655_v17 = vpack.c.b16 %v7642_v62, %v7641_v12  ;;  %v16524_v47 = vpack.c.b16 %v6822_v33, %v6821_v14 }
 0x322   : > { %v6001_v19 = vor.u32 %v5999_v39, %v16498_v37  ;;  %v5949_v51 = vmax.f32 %v5933_v28, 0.0  ;;  %v7643_v32 = vunpack.c.l.b16 %v16505_v7  ;;  %v7278_v55 = vshll.u32 %v7166_v40, 16  ;;  %v13720_v7 = vld [vmem:[%s18118_s3 + $0x58] sm:$0xff] }
 0x323   : > { %7485 = vmatmul.bf16.gmra.mxu2 %v7405_v6  ;;  %v5631_v58 = vpop.f32.mrf.mxu0  ;;  %v13721_v6 = vld [vmem:[%s18118_s3 + $0x60] sm:$0xff]  ;;  %v16540_v14 = vunpack.c.l.b16 %v7263_v63  ;;  %v16547_v28 = vunpack.c.l.b16 %v7273_v13  ;;  %v16551_v20 = vsel %vm14151_vm5, %v7589_v34, %v7590_v11  ;;  %v12419_v40 = vrot.slane %v6722_v3, 9  ;;  %v13870_v3 = vld [vmem:[#allocation3 + $0x38] sm:$0x1] }
 0x324   : > { %v6147_v46 = vsel %vm14297_vm10, %v6001_v19, %v6146_v22  ;;  %v5965_v2 = vpack.c.bf16 %v5949_v51, %v5949_v51  ;;  %v5665_v18 = vadd.f32 %v5631_v58, %v16123_v38  ;;  %v13681_v38 = vld [vmem:[%s18118_s3 + $0x1a0] sm:$0xff]  ;;  %9005 = vmatpush.bf16.msra.mxu3 %v13721_v6  ;;  %v7168_v19 = vld [vmem:[#allocation3 + $0x44] sm:$0x1]  ;;  %v6150_v51 = vld [vmem:[#allocation3 + $0x80] sm:$0x1]  ;;  %v6774_v63 = vrot.slane %v6772_v29, 4 }
 0x325   : > { %6148 = vst [vmem:[#allocation3 + $0x78] sm:$0xf] %v6147_v46  ;;  %v6685_v0 = vpop.f32.mrf.mxu3  ;;  %7915 = vmatpush.bf16.msra.mxu0 %v13681_v38  ;;  %v7277_v34 = vrot.slane %v7275_v36, 4  ;;  %v7280_v11 = vrot.slane %v7278_v55, 5  ;;  %v7594_v58 = vrot.slane %v16501_v42, 5  ;;  %v6002_v13 = vrot.slane %v16498_v37, 4 }
 0x326   : > { %v6543_v4 = vpop.f32.mrf.mxu2  ;;  %v6004_v5 = vshrl.u32 %v5965_v2, 16  ;;  %v16536_v12 = vadd.f32 %v6685_v0, %v6540_v24  ;;  %v5914_v62 = vadd.f32 %v16458_v59, %v5665_v18  ;;  %6913 = vmatmul.bf16.gmra.mxu0 %v16437_v53  ;;  %v16553_v24 = vrot.slane %v7284_v9, 5  ;;  %v7536_v55 = vld [vmem:[#allocation3 + $0x3c] sm:$0xe] }
 0x327   : > { %v7290_v59 = vrot.slane %v7288_v50, 4  ;;  %v6007_v22 = vshll.u32 %v5965_v2, 16  ;;  %v7644_v18 = vunpack.c.l.b16 %v16551_v20  ;;  %v6775_v0 = vrot.slane %v13870_v3, 5  ;;  %v16583_v3 = vld [vmem:[#allocation3 + $0x4c] sm:$0xf] }
 0x328   : > { %v16545_v39 = vpop.f32.mrf.mxu1  ;;  %v6006_v53 = vrot.slane %v6004_v5, 7  ;;  %v5934_v33 = vadd.f32 %v16358_v60, %v5914_v62  ;;  %v7294_v38 = vshll.u32 %v7168_v19, 16  ;;  %v7406_v62 = vpack.c.b16 %v16547_v28, %v16540_v14  ;;  %9006 = vmatpush.bf16.msra.mxu3 %v13720_v7 }
 0x329   : > { %v7291_v23 = vor.u32 %v7290_v59, %v16553_v24  ;;  %v6773_v56 = vsel %vm14151_vm5, %v12419_v40, %v6772_v29  ;;  %v6776_v20 = vsel %vm14151_vm5, %v6774_v63, %v6775_v0  ;;  %v7281_v59 = vor.u32 %v7280_v11, %v7277_v34  ;;  %v7169_v11 = vld [vmem:[#allocation3 + $0x48] sm:$0xf] }
 0x32a   : > { %v6009_v9 = vor.u32 %v6007_v22, %v6006_v53  ;;  %v6011_v50 = vrot.slane %v6006_v53, 4  ;;  %v5950_v46 = vmax.f32 %v5934_v33, 0.0  ;;  %7735 = vmatmul.bf16.gmra.mxu3 %v7655_v17  ;;  %v7596_v33 = vrot.slane %v7594_v58, 4 }
 0x32b   : > { %7112 = vmatmul.bf16.gmra.mxu1 %v13640_v52  ;;  %v5633_v2 = vpop.f32.mrf.mxu0  ;;  %v6723_v52 = vld [vmem:[#allocation3 + $0x3c] sm:$0xe]  ;;  %v7292_v14 = vrot.slane %v7291_v23, 4  ;;  %v7296_v28 = vrot.slane %v7294_v38, 5  ;;  %v12603_v10 = vrot.slane %v7536_v55, 9  ;;  %v7597_v34 = vrot.slane %v7168_v19, 5 }
 0x32c   : > { %v6010_v36 = vsel %vm14314_vm12, %v6002_v13, %v6009_v9  ;;  %v6151_v42 = vsel %vm14324_vm13, %v6011_v50, %v6150_v51  ;;  %v5966_v37 = vpack.c.bf16 %v5950_v46, %v5950_v46  ;;  %v5666_v6 = vadd.f32 %v5633_v2, %v16143_v21  ;;  %v13871_v13 = vld [vmem:[#allocation3 + $0x40] sm:$0xf] }
 0x32d   : > { %6149 = vst [vmem:[#allocation3 + $0x7c] sm:$0xf] %v6010_v36  ;;  %v6688_v17 = vpop.f32.mrf.mxu3  ;;  %v6779_v9 = vrot.slane %v13871_v13, 5  ;;  %v6823_v50 = vunpack.c.l.b16 %v6773_v56  ;;  %v6824_v46 = vunpack.c.l.b16 %v6776_v20  ;;  %v12420_v2 = vrot.slane %v6723_v52, 9  ;;  %v13696_v52 = vld [vmem:[%s18118_s3 + $0x218] sm:$0xff] }
 0x32e   : > { %v6545_v5 = vpop.f32.mrf.mxu2  ;;  %6152 = vst [vmem:[#allocation3 + $0x80] sm:$0x1] %v6151_v42  ;;  %v6013_v53 = vshrl.u32 %v5966_v37, 16  ;;  %v16575_v22 = vadd.f32 %v6688_v17, %v6543_v4  ;;  %v5915_v21 = vadd.f32 %v16496_v8, %v5666_v6  ;;  %v6016_v40 = vshll.u32 %v5966_v37, 16  ;;  %v6153_v4 = vld [vmem:[#allocation3 + $0x84] sm:$0xf]  ;;  %8544 = vmatpush.bf16.msra.mxu2 %v13696_v52 }
 0x32f   : > { %v7282_v8 = vrot.slane %v7281_v59, 4  ;;  %v16588_v38 = vsel %vm14151_vm5, %v12603_v10, %v7594_v58  ;;  %v16592_v36 = vsel %vm14151_vm5, %v7596_v33, %v7597_v34  ;;  %v7297_v42 = vsel %vm14142_vm4, %v7292_v14, %v7296_v28  ;;  %v13872_v10 = vld [vmem:[#allocation3 + $0x44] sm:$0x1] }
 0x330   : > { %v16578_v51 = vpop.f32.mrf.mxu1  ;;  %v16580_v29 = vrot.slane %v6013_v53, 7  ;;  %v5935_v63 = vadd.f32 %v16358_v60, %v5915_v21  ;;  %v6781_v37 = vrot.slane %v6779_v9, 4  ;;  %v7299_v6 = vshrl.u32 %v7169_v11, 16 }
 0x331   : > { %v7302_v55 = vshll.u32 %v7169_v11, 16  ;;  %v7308_v58 = vshll.u32 %v16583_v3, 16  ;;  %v7656_v59 = vpack.c.b16 %v7644_v18, %v7643_v32  ;;  %v16602_v21 = vpack.c.b16 %v6824_v46, %v6823_v50  ;;  %v13641_v50 = vld [vmem:[#allocation3 + $0x3c] sm:$0xff] }
 0x332   : > { %v6018_v0 = vor.u32 %v6016_v40, %v16580_v29  ;;  %v5951_v23 = vmax.f32 %v5935_v63, 0.0  ;;  %v7287_v33 = vsel %vm14142_vm4, %v7282_v8, %v16553_v24  ;;  %v7312_v32 = vshrl.u32 %v16583_v3, 16  ;;  %v13688_v24 = vld [vmem:[%s18118_s3 + $0x1d8] sm:$0xff]  ;;  %v7171_v8 = vld [vmem:[#allocation3 + $0x50] sm:$0x1] }
 0x333   : > { %7490 = vmatmul.bf16.gmra.mxu2 %v7406_v62  ;;  %v5636_v19 = vpop.f32.mrf.mxu0  ;;  %v6782_v13 = vrot.slane %v13872_v10, 5  ;;  %v16626_v63 = vunpack.c.l.b16 %v7297_v42  ;;  %v7645_v34 = vunpack.c.l.b16 %v16588_v38  ;;  %v7646_v11 = vunpack.c.l.b16 %v16592_v36  ;;  %8294 = vmatpush.bf16.msra.mxu1 %v13688_v24 }
 0x334   : > { %v6154_v17 = vsel %vm14297_vm10, %v6018_v0, %v6153_v4  ;;  %v5967_v56 = vpack.c.bf16 %v5951_v23, %v5951_v23  ;;  %v5667_v62 = vadd.f32 %v5636_v19, %v16167_v44  ;;  %v13680_v44 = vld [vmem:[%s18118_s3 + $0x198] sm:$0xff]  ;;  %v6157_v0 = vld [vmem:[#allocation3 + $0x8c] sm:$0x1]  ;;  %v7301_v23 = vrot.slane %v7299_v6, 4 }
 0x335   : > { %6155 = vst [vmem:[#allocation3 + $0x84] sm:$0xf] %v6154_v17  ;;  %v6690_v20 = vpop.f32.mrf.mxu3  ;;  %7916 = vmatpush.bf16.msra.mxu0 %v13680_v44  ;;  %v16637_v46 = vsel %vm14151_vm5, %v6781_v37, %v6782_v13  ;;  %v7304_v38 = vrot.slane %v7302_v55, 5  ;;  %v16639_v36 = vrot.slane %v7308_v58, 5  ;;  %v7314_v19 = vrot.slane %v7312_v32, 4 }
 0x336   : > { %v6548_v53 = vpop.f32.mrf.mxu2  ;;  %v6021_v18 = vshrl.u32 %v5967_v56, 16  ;;  %v16617_v14 = vadd.f32 %v6690_v20, %v6545_v5  ;;  %v5916_v28 = vadd.f32 %v16545_v39, %v5667_v62  ;;  %6918 = vmatmul.bf16.gmra.mxu0 %v16524_v47  ;;  %v16632_v39 = vsel %vm14151_vm5, %v12420_v2, %v6779_v9  ;;  %v7537_v44 = vld [vmem:[#allocation3 + $0x48] sm:$0xe] }
 0x337   : > { %v6024_v5 = vshll.u32 %v5967_v56, 16  ;;  %v6019_v9 = vrot.slane %v16580_v29, 4  ;;  %v7395_v62 = vunpack.c.l.b16 %v7287_v33  ;;  %v6825_v20 = vunpack.c.l.b16 %v16632_v39 }
 0x338   : > { %v16624_v40 = vpop.f32.mrf.mxu1  ;;  %v6023_v47 = vrot.slane %v6021_v18, 7  ;;  %v5936_v4 = vadd.f32 %v16358_v60, %v5916_v28  ;;  %v7318_v37 = vshll.u32 %v7171_v8, 16  ;;  %v7601_v52 = vrot.slane %v16583_v3, 5  ;;  %v16653_v28 = vld [vmem:[#allocation3 + $0x58] sm:$0xf] }
 0x339   : > { %v16649_v32 = vpack.c.b16 %v7646_v11, %v7645_v34  ;;  %v6826_v33 = vunpack.c.l.b16 %v16637_v46  ;;  %v7305_v18 = vor.u32 %v7304_v38, %v7301_v23  ;;  %v7315_v3 = vor.u32 %v7314_v19, %v16639_v36  ;;  %v7172_v23 = vld [vmem:[#allocation3 + $0x54] sm:$0xf]  ;;  %v6160_v38 = vld [vmem:[#allocation3 + $0x90] sm:$0xf] }
 0x33a   : > { %v6026_v2 = vor.u32 %v6024_v5, %v6023_v47  ;;  %v6028_v42 = vrot.slane %v6023_v47, 4  ;;  %v5952_v17 = vmax.f32 %v5936_v4, 0.0  ;;  %7740 = vmatmul.bf16.gmra.mxu3 %v7656_v59  ;;  %v16661_v47 = vrot.slane %v7318_v37, 5  ;;  %v16663_v5 = vld [vmem:[#allocation3 + $0x48] sm:$0xe] }
 0x33b   : > { %7117 = vmatmul.bf16.gmra.mxu1 %v13641_v50  ;;  %v5638_v56 = vpop.f32.mrf.mxu0  ;;  %v12604_v34 = vrot.slane %v7537_v44, 9  ;;  %v7603_v11 = vrot.slane %v7601_v52, 4  ;;  %v13873_v4 = vld [vmem:[#allocation3 + $0x4c] sm:$0xf]  ;;  %v7316_v19 = vrot.slane %v7315_v3, 4 }
 0x33c   : > { %v6027_v6 = vsel %vm14314_vm12, %v6019_v9, %v6026_v2  ;;  %v6158_v55 = vsel %vm14324_vm13, %v6028_v42, %v6157_v0  ;;  %v5968_v58 = vpack.c.bf16 %v5952_v17, %v5952_v17  ;;  %v5668_v29 = vadd.f32 %v5638_v56, %v16184_v16 }
 0x33d   : > { %6156 = vst [vmem:[#allocation3 + $0x88] sm:$0xf] %v6027_v6  ;;  %v6693_v59 = vpop.f32.mrf.mxu3  ;;  %v7407_v16 = vpack.c.b16 %v16626_v63, %v7395_v62  ;;  %v6786_v50 = vrot.slane %v13873_v4, 5  ;;  %v7306_v63 = vrot.slane %v7305_v18, 4  ;;  %v7604_v9 = vrot.slane %v7171_v8, 5  ;;  %v13687_v4 = vld [vmem:[%s18118_s3 + $0x1d0] sm:$0xff] }
 0x33e   : > { %v6550_v7 = vpop.f32.mrf.mxu2  ;;  %6159 = vst [vmem:[#allocation3 + $0x8c] sm:$0x1] %v6158_v55  ;;  %v6030_v24 = vshrl.u32 %v5968_v58, 16  ;;  %v16655_v10 = vadd.f32 %v6693_v59, %v6548_v53  ;;  %v5917_v13 = vadd.f32 %v16578_v51, %v5668_v29  ;;  %v6033_v0 = vshll.u32 %v5968_v58, 16  ;;  %8295 = vmatpush.bf16.msra.mxu1 %v13687_v4 }
 0x33f   : > { %v7332_v51 = vshll.u32 %v16653_v28, 16  ;;  %v7336_v2 = vshrl.u32 %v16653_v28, 16  ;;  %v16673_v56 = vsel %vm14151_vm5, %v12604_v34, %v7601_v52  ;;  %v12421_v62 = vrot.slane %v16663_v5, 9  ;;  %v13695_v34 = vld [vmem:[%s18118_s3 + $0x210] sm:$0xff] }
 0x340   : > { %v16659_v39 = vpop.f32.mrf.mxu1  ;;  %v16665_v46 = vrot.slane %v6030_v24, 7  ;;  %v5937_v53 = vadd.f32 %v16358_v60, %v5917_v13  ;;  %v16678_v6 = vsel %vm14151_vm5, %v7603_v11, %v7604_v9  ;;  %v6788_v55 = vrot.slane %v6786_v50, 4  ;;  %v13719_v11 = vld [vmem:[%s18118_s3 + $0x50] sm:$0xff]  ;;  %8545 = vmatpush.bf16.msra.mxu2 %v13695_v34 }
 0x341   : > { %v7323_v58 = vshrl.u32 %v7172_v23, 16  ;;  %v7326_v8 = vshll.u32 %v7172_v23, 16  ;;  %v16683_v18 = vrot.slane %v7332_v51, 5  ;;  %v16685_v24 = vpack.c.b16 %v6826_v33, %v6825_v20  ;;  %9007 = vmatpush.bf16.msra.mxu3 %v13719_v11 }
 0x342   : > { %v6035_v42 = vor.u32 %v6033_v0, %v16665_v46  ;;  %v5953_v17 = vmax.f32 %v5937_v53, 0.0  ;;  %v7321_v13 = vsel %vm14142_vm4, %v7316_v19, %v16661_v47  ;;  %v7338_v20 = vrot.slane %v7336_v2, 4  ;;  %v13874_v0 = vld [vmem:[#allocation3 + $0x50] sm:$0x1]  ;;  %v13642_v2 = vld [vmem:[#allocation3 + $0x48] sm:$0xff] }
 0x343   : > { %7495 = vmatmul.bf16.gmra.mxu2 %v7407_v16  ;;  %v5641_v37 = vpop.f32.mrf.mxu0  ;;  %v7647_v16 = vunpack.c.l.b16 %v16673_v56  ;;  %v6789_v53 = vrot.slane %v13874_v0, 5  ;;  %v7311_v51 = vsel %vm14142_vm4, %v7306_v63, %v16639_v36  ;;  %v6164_v56 = vld [vmem:[#allocation3 + $0x98] sm:$0x1]  ;;  %v6787_v36 = vsel %vm14151_vm5, %v12421_v62, %v6786_v50 }
 0x344   : > { %v6161_v29 = vsel %vm14297_vm10, %v6035_v42, %v6160_v38  ;;  %v5969_v44 = vpack.c.bf16 %v5953_v17, %v5953_v17  ;;  %v5669_v59 = vadd.f32 %v5641_v37, %v16209_v15  ;;  %v13679_v15 = vld [vmem:[%s18118_s3 + $0x190] sm:$0xff]  ;;  %v7648_v38 = vunpack.c.l.b16 %v16678_v6 }
 0x345   : > { %6162 = vst [vmem:[#allocation3 + $0x90] sm:$0xf] %v6161_v29  ;;  %v6695_v52 = vpop.f32.mrf.mxu3  ;;  %7917 = vmatpush.bf16.msra.mxu0 %v13679_v15  ;;  %v6790_v42 = vsel %vm14151_vm5, %v6788_v55, %v6789_v53  ;;  %v7174_v17 = vld [vmem:[#allocation3 + $0x5c] sm:$0x1]  ;;  %v7398_v37 = vunpack.c.l.b16 %v7321_v13  ;;  %v7339_v63 = vor.u32 %v7338_v20, %v16683_v18  ;;  %v7608_v6 = vrot.slane %v16653_v28, 5 }
 0x346   : > { %v6553_v3 = vpop.f32.mrf.mxu2  ;;  %v6038_v33 = vshrl.u32 %v5969_v44, 16  ;;  %v16700_v5 = vadd.f32 %v6695_v52, %v6550_v7  ;;  %v5918_v47 = vadd.f32 %v16624_v40, %v5669_v59  ;;  %6923 = vmatmul.bf16.gmra.mxu0 %v16602_v21  ;;  %v7325_v7 = vrot.slane %v7323_v58, 4  ;;  %v7538_v15 = vld [vmem:[#allocation3 + $0x54] sm:$0xe] }
 0x347   : > { %v7328_v40 = vrot.slane %v7326_v8, 5  ;;  %v6041_v21 = vshll.u32 %v5969_v44, 16  ;;  %v6036_v58 = vrot.slane %v16665_v46, 4  ;;  %v7397_v55 = vunpack.c.l.b16 %v7311_v51 }
 0x348   : > { %v16707_v23 = vpop.f32.mrf.mxu1  ;;  %v6040_v19 = vrot.slane %v6038_v33, 7  ;;  %v5938_v9 = vadd.f32 %v16358_v60, %v5918_v47  ;;  %v6828_v52 = vunpack.c.l.b16 %v6790_v42  ;;  %v7342_v13 = vshll.u32 %v7174_v17, 16 }
 0x349   : > { %v7329_v34 = vor.u32 %v7328_v40, %v7325_v7  ;;  %v16727_v33 = vpack.c.b16 %v7648_v38, %v7647_v16  ;;  %v6827_v47 = vunpack.c.l.b16 %v6787_v36  ;;  %v7340_v4 = vrot.slane %v7339_v63, 4  ;;  %v6725_v40 = vld [vmem:[#allocation3 + $0x54] sm:$0xe]  ;;  %v6167_v36 = vld [vmem:[#allocation3 + $0x9c] sm:$0xf] }
 0x34a   : > { %v6043_v8 = vor.u32 %v6041_v21, %v6040_v19  ;;  %v6045_v29 = vrot.slane %v6040_v19, 4  ;;  %v5954_v44 = vmax.f32 %v5938_v9, 0.0  ;;  %7745 = vmatmul.bf16.gmra.mxu3 %v16649_v32  ;;  %v7408_v32 = vpack.c.b16 %v7398_v37, %v7397_v55  ;;  %v7175_v37 = vld [vmem:[#allocation3 + $0x60] sm:$0xf] }
 0x34b   : > { %7122 = vmatmul.bf16.gmra.mxu1 %v13642_v2  ;;  %v5643_v59 = vpop.f32.mrf.mxu0  ;;  %v7610_v7 = vrot.slane %v7608_v6, 4  ;;  %v7344_v21 = vrot.slane %v7342_v13, 5  ;;  %v12605_v9 = vrot.slane %v7538_v15, 9  ;;  %v7611_v2 = vrot.slane %v7174_v17, 5  ;;  %v13875_v17 = vld [vmem:[#allocation3 + $0x58] sm:$0xf] }
 0x34c   : > { %v6044_v50 = vsel %vm14314_vm12, %v6036_v58, %v6043_v8  ;;  %v6165_v62 = vsel %vm14324_vm13, %v6045_v29, %v6164_v56  ;;  %v5970_v28 = vpack.c.bf16 %v5954_v44, %v5954_v44  ;;  %v5670_v46 = vadd.f32 %v5643_v59, %v16227_v54 }
 0x34d   : > { %6163 = vst [vmem:[#allocation3 + $0x94] sm:$0xf] %v6044_v50  ;;  %v6698_v11 = vpop.f32.mrf.mxu3  ;;  %v7330_v54 = vrot.slane %v7329_v34, 4  ;;  %v16737_v56 = vpack.c.b16 %v6828_v52, %v6827_v47  ;;  %v7345_v63 = vsel %vm14142_vm4, %v7340_v4, %v7344_v21  ;;  %v12422_v58 = vrot.slane %v6725_v40, 9 }
 0x34e   : > { %v6555_v20 = vpop.f32.mrf.mxu2  ;;  %6166 = vst [vmem:[#allocation3 + $0x98] sm:$0x1] %v6165_v62  ;;  %v6047_v0 = vshrl.u32 %v5970_v28, 16  ;;  %v16729_v53 = vadd.f32 %v6698_v11, %v6553_v3  ;;  %v5919_v51 = vadd.f32 %v16659_v39, %v5670_v46  ;;  %v6050_v16 = vshll.u32 %v5970_v28, 16  ;;  %v16739_v3 = vld [vmem:[#allocation3 + $0x64] sm:$0xf] }
 0x34f   : > { %v7335_v39 = vsel %vm14142_vm4, %v7330_v54, %v16683_v18  ;;  %v6793_v8 = vrot.slane %v13875_v17, 5  ;;  %v7609_v59 = vsel %vm14151_vm5, %v12605_v9, %v7608_v6  ;;  %v7612_v55 = vsel %vm14151_vm5, %v7610_v7, %v7611_v2  ;;  %v13686_v9 = vld [vmem:[%s18118_s3 + $0x1c8] sm:$0xff] }
 0x350   : > { %v16732_v19 = vpop.f32.mrf.mxu1  ;;  %v16734_v42 = vrot.slane %v6047_v0, 7  ;;  %v5939_v38 = vadd.f32 %v16358_v60, %v5919_v51  ;;  %v7347_v34 = vshrl.u32 %v7175_v37, 16  ;;  %v7350_v13 = vshll.u32 %v7175_v37, 16  ;;  %v13694_v0 = vld [vmem:[%s18118_s3 + $0x208] sm:$0xff]  ;;  %8296 = vmatpush.bf16.msra.mxu1 %v13686_v9 }
 0x351   : > { %v7356_v18 = vshll.u32 %v16739_v3, 16  ;;  %v7360_v50 = vshrl.u32 %v16739_v3, 16  ;;  %v16756_v15 = vunpack.c.l.b16 %v7345_v63  ;;  %v7649_v47 = vunpack.c.l.b16 %v7609_v59  ;;  %v13678_v51 = vld [vmem:[%s18118_s3 + $0x188] sm:$0xff]  ;;  %8546 = vmatpush.bf16.msra.mxu2 %v13694_v0  ;;  %v13876_v59 = vld [vmem:[#allocation3 + $0x5c] sm:$0x1] }
 0x352   : > { %v6052_v29 = vor.u32 %v6050_v16, %v16734_v42  ;;  %v5955_v44 = vmax.f32 %v5939_v38, 0.0  ;;  %v7650_v4 = vunpack.c.l.b16 %v7612_v55  ;;  %v16771_v7 = vsel %vm14151_vm5, %v12422_v58, %v6793_v8  ;;  %v16780_v16 = vld [vmem:[#allocation3 + $0x1c] sm:$0xf]  ;;  %7918 = vmatpush.bf16.msra.mxu0 %v13678_v51  ;;  %v13643_v58 = vld [vmem:[#allocation3 + $0x54] sm:$0xff] }
 0x353   : > { %7500 = vmatmul.bf16.gmra.mxu2 %v7408_v32  ;;  %v5646_v52 = vpop.f32.mrf.mxu0  ;;  %v16758_v32 = vunpack.c.l.b16 %v7335_v39  ;;  %v6795_v2 = vrot.slane %v6793_v8, 4  ;;  %v7349_v37 = vrot.slane %v7347_v34, 4  ;;  %v16784_v39 = vrot.slane %v7356_v18, 5  ;;  %v16789_v8 = vld [vmem:[#allocation3 + $0x68] sm:$0x1] }
 0x354   : > { %v6168_v62 = vsel %vm14297_vm10, %v6052_v29, %v6167_v36  ;;  %v5971_v28 = vpack.c.bf16 %v5955_v44, %v5955_v44  ;;  %v5671_v46 = vadd.f32 %v5646_v52, %v16254_v61  ;;  %v13718_v61 = vld [vmem:[%s18118_s3 + $0x48] sm:$0xff]  ;;  %v7352_v36 = vrot.slane %v7350_v13, 5  ;;  %v6171_v29 = vld [vmem:[#allocation3 + $0xa4] sm:$0x1] }
 0x355   : > { %6169 = vst [vmem:[#allocation3 + $0x9c] sm:$0xf] %v6168_v62  ;;  %v6700_v6 = vpop.f32.mrf.mxu3  ;;  %v7409_v17 = vpack.c.b16 %v16756_v15, %v16758_v32  ;;  %9008 = vmatpush.bf16.msra.mxu3 %v13718_v61  ;;  %v16791_v44 = vpack.c.b16 %v7650_v4, %v7649_v47  ;;  %v6796_v55 = vrot.slane %v13876_v59, 5  ;;  %v8011_v52 = vshll.u32 %v16780_v16, 16  ;;  %v7977_v62 = vld [vmem:[#allocation3 + $0x18] sm:$0xf] }
 0x356   : > { %v6558_v11 = vpop.f32.mrf.mxu2  ;;  %v6055_v40 = vshrl.u32 %v5971_v28, 16  ;;  %v16773_v54 = vadd.f32 %v6700_v6, %v6555_v20  ;;  %v5920_v21 = vadd.f32 %v16707_v23, %v5671_v46  ;;  %6928 = vmatmul.bf16.gmra.mxu0 %v16685_v24  ;;  %v7362_v20 = vrot.slane %v7360_v50, 4 }
 0x357   : > { %v6058_v23 = vshll.u32 %v5971_v28, 16  ;;  %v8015_v34 = vshrl.u32 %v16780_v16, 16  ;;  %v6053_v13 = vrot.slane %v16734_v42, 4  ;;  %v6829_v46 = vunpack.c.l.b16 %v16771_v7 }
 0x358   : > { %v16782_v38 = vpop.f32.mrf.mxu1  ;;  %v6057_v63 = vrot.slane %v6055_v40, 7  ;;  %v5940_v24 = vadd.f32 %v16358_v60, %v5920_v21  ;;  %v7353_v15 = vor.u32 %v7352_v36, %v7349_v37  ;;  %v7363_v6 = vor.u32 %v7362_v20, %v16784_v39 }
 0x359   : > { %v7366_v32 = vshll.u32 %v16789_v8, 16  ;;  %v8002_v40 = vshrl.u32 %v7977_v62, 16  ;;  %v8005_v21 = vshll.u32 %v7977_v62, 16  ;;  %v16805_v9 = vrot.slane %v8011_v52, 5 }
 0x35a   : > { %v6060_v60 = vor.u32 %v6058_v23, %v6057_v63  ;;  %v6062_v18 = vrot.slane %v6057_v63, 4  ;;  %v5956_v50 = vmax.f32 %v5940_v24, 0.0  ;;  %7750 = vmatmul.bf16.gmra.mxu3 %v16727_v33  ;;  %v7539_v33 = vld [vmem:[#allocation3 + $0x60] sm:$0xe]  ;;  %v8017_v37 = vrot.slane %v8015_v34, 4 }
 0x35b   : > { %7127 = vmatmul.bf16.gmra.mxu1 %v13643_v58  ;;  %v5648_v28 = vpop.f32.mrf.mxu0  ;;  %v16812_v23 = vsel %vm14151_vm5, %v6795_v2, %v6796_v55  ;;  %v7354_v24 = vrot.slane %v7353_v15, 4  ;;  %v7364_v58 = vrot.slane %v7363_v6, 4  ;;  %v7615_v59 = vrot.slane %v16739_v3, 5  ;;  %v6174_v55 = vld [vmem:[#allocation3 + $0xa8] sm:$0xf] }
 0x35c   : > { %v6061_v47 = vsel %vm14314_vm12, %v6053_v13, %v6060_v60  ;;  %v6172_v42 = vsel %vm14324_vm13, %v6062_v18, %v6171_v29  ;;  %v5972_v4 = vpack.c.bf16 %v5956_v50, %v5956_v50  ;;  %v5672_v0 = vadd.f32 %v5648_v28, %v16276_v41  ;;  %v7979_v13 = vld [vmem:[#allocation3 + $0x20] sm:$0x1] }
 0x35d   : > { %6170 = vst [vmem:[#allocation3 + $0xa0] sm:$0xf] %v6061_v47  ;;  %v6703_v51 = vpop.f32.mrf.mxu3  ;;  %v12606_v29 = vrot.slane %v7539_v33, 9  ;;  %v8389_v2 = vrot.slane %v16780_v16, 5  ;;  %v7368_v60 = vrot.slane %v7366_v32, 5  ;;  %v8004_v18 = vrot.slane %v8002_v40, 4 }
 0x35e   : > { %v6560_v61 = vpop.f32.mrf.mxu2  ;;  %6173 = vst [vmem:[#allocation3 + $0xa4] sm:$0x1] %v6172_v42  ;;  %v6064_v36 = vshrl.u32 %v5972_v4, 16  ;;  %v16807_v20 = vadd.f32 %v6703_v51, %v6558_v11  ;;  %v5921_v63 = vadd.f32 %v16732_v19, %v5672_v0  ;;  %v6067_v34 = vshll.u32 %v5972_v4, 16  ;;  %v16822_v11 = vld [vmem:[%s18117_s2] ss:$0 sm:$0xff] }
 0x35f   : > { %v8007_v50 = vrot.slane %v8005_v21, 5  ;;  %v8018_v62 = vor.u32 %v8017_v37, %v16805_v9  ;;  %v6830_v15 = vunpack.c.l.b16 %v16812_v23  ;;  %v7359_v6 = vsel %vm14142_vm4, %v7354_v24, %v16784_v39  ;;  %v7980_v21 = vld [vmem:[#allocation3 + $0x24] sm:$0xf]  ;;  %v13717_v24 = vld [vmem:[%s18118_s3 + $0x40] sm:$0xff] }
 0x360   : > { %v16814_v41 = vpop.f32.mrf.mxu1  ;;  %v16817_v52 = vrot.slane %v6064_v36, 7  ;;  %v5941_v19 = vadd.f32 %v16822_v11, %v5921_v63  ;;  %v7369_v42 = vsel %vm14142_vm4, %v7364_v58, %v7368_v60  ;;  %v7617_v4 = vrot.slane %v7615_v59, 4  ;;  %v13685_v60 = vld [vmem:[%s18118_s3 + $0x1c0] sm:$0xff]  ;;  %9009 = vmatpush.bf16.msra.mxu3 %v13717_v24 }
 0x361   : > { %v7618_v32 = vrot.slane %v16789_v8, 5  ;;  %v8021_v0 = vshll.u32 %v7979_v13, 16  ;;  %v8391_v40 = vrot.slane %v8389_v2, 4  ;;  %v16840_v36 = vunpack.c.l.b16 %v7359_v6  ;;  %v13693_v8 = vld [vmem:[%s18118_s3 + $0x200] sm:$0xff]  ;;  %8297 = vmatpush.bf16.msra.mxu1 %v13685_v60 }
 0x362   : > { %v6069_v3 = vor.u32 %v6067_v34, %v16817_v52  ;;  %v5957_v28 = vmax.f32 %v5941_v19, 0.0  ;;  %v16844_v63 = vsel %vm14151_vm5, %v12606_v29, %v7615_v59  ;;  %v8008_v58 = vor.u32 %v8007_v50, %v8004_v18  ;;  %8547 = vmatpush.bf16.msra.mxu2 %v13693_v8 }
 0x363   : > { %7505 = vmatmul.bf16.gmra.mxu2 %v7409_v17  ;;  %v5651_v47 = vpop.f32.mrf.mxu0  ;;  %v8019_v34 = vrot.slane %v8018_v62, 4  ;;  %v16859_v59 = vunpack.c.l.b16 %v7369_v42  ;;  %v8023_v18 = vrot.slane %v8021_v0, 5  ;;  %v8392_v50 = vrot.slane %v7979_v13, 5 }
 0x364   : > { %v6175_v33 = vsel %vm14297_vm10, %v6069_v3, %v6174_v55  ;;  %v5973_v51 = vpack.c.bf16 %v5957_v28, %v5957_v28  ;;  %v5673_v17 = vadd.f32 %v5651_v47, %v16295_v26  ;;  %v13677_v26 = vld [vmem:[%s18118_s3 + $0x180] sm:$0xff]  ;;  %v8355_v3 = vld [vmem:[#allocation3 + $0x18] sm:$0xe]  ;;  %v8026_v62 = vshrl.u32 %v7980_v21, 16 }
 0x365   : > { %6176 = vst [vmem:[#allocation3 + $0xa8] sm:$0xf] %v6175_v33  ;;  %v6705_v39 = vpop.f32.mrf.mxu3  ;;  %7919 = vmatpush.bf16.msra.mxu0 %v13677_v26  ;;  %v7619_v42 = vsel %vm14151_vm5, %v7617_v4, %v7618_v32  ;;  %v16869_v33 = vld [vmem:[#allocation3 + $0x28] sm:$0xf]  ;;  %v8024_v0 = vsel %vm14142_vm4, %v8019_v34, %v8023_v18  ;;  %v12783_v13 = vrot.slane %v8355_v3, 9  ;;  %v7651_v18 = vunpack.c.l.b16 %v16844_v63 }
 0x366   : > { %v6563_v37 = vpop.f32.mrf.mxu2  ;;  %v6072_v19 = vshrl.u32 %v5973_v51, 16  ;;  %v16855_v55 = vadd.f32 %v6705_v39, %v6560_v61  ;;  %v5922_v29 = vadd.f32 %v16782_v38, %v5673_v17  ;;  %6933 = vmatmul.bf16.gmra.mxu0 %v16737_v56  ;;  %v8029_v61 = vshll.u32 %v7980_v21, 16  ;;  %v13644_v56 = vld [vmem:[#allocation3 + $0x60] sm:$0xff]  ;;  %v6178_v17 = vld [vmem:[#allocation3 + $0xb0] sm:$0x1] }
 0x367   : > { %v6075_v47 = vshll.u32 %v5973_v51, 16  ;;  %v8009_v39 = vrot.slane %v8008_v58, 4  ;;  %v8393_v21 = vsel %vm14151_vm5, %v8391_v40, %v8392_v50  ;;  %v6070_v51 = vrot.slane %v16817_v52, 4 }
 0x368   : > { %v16864_v28 = vpop.f32.mrf.mxu1  ;;  %v6074_v6 = vrot.slane %v6072_v19, 7  ;;  %v5942_v38 = vadd.f32 %v16822_v11, %v5922_v29  ;;  %v8028_v32 = vrot.slane %v8026_v62, 4  ;;  %v8031_v24 = vrot.slane %v8029_v61, 5 }
 0x369   : > { %v8035_v58 = vshll.u32 %v16869_v33, 16  ;;  %v8039_v29 = vshrl.u32 %v16869_v33, 16  ;;  %v7652_v50 = vunpack.c.l.b16 %v7619_v42  ;;  %v8014_v62 = vsel %vm14142_vm4, %v8009_v39, %v16805_v9  ;;  %v16899_v42 = vld [vmem:[#allocation3 + $0x64] sm:$0xf] }
 0x36a   : > { %v6077_v8 = vor.u32 %v6075_v47, %v6074_v6  ;;  %v6079_v26 = vrot.slane %v6074_v6, 4  ;;  %v5958_v19 = vmax.f32 %v5942_v38, 0.0  ;;  %7755 = vmatmul.bf16.gmra.mxu3 %v16791_v44  ;;  %v8390_v61 = vsel %vm14151_vm5, %v12783_v13, %v8389_v2 }
 0x36b   : > { %7132 = vmatmul.bf16.gmra.mxu1 %v13644_v56  ;;  %v5653_v4 = vpop.f32.mrf.mxu0  ;;  %v8461_v38 = vunpack.c.l.b16 %v8393_v21  ;;  %v16897_v63 = vunpack.c.l.b16 %v8024_v0  ;;  %v8032_v9 = vor.u32 %v8031_v24, %v8028_v32  ;;  %v16903_v16 = vrot.slane %v8035_v58, 5  ;;  %v13748_v0 = vld [vmem:[%s18118_s3 + $0xf8] sm:$0xff] }
 0x36c   : > { %v6078_v34 = vsel %vm14314_vm12, %v6070_v51, %v6077_v8  ;;  %v6179_v40 = vsel %vm14324_vm13, %v6079_v26, %v6178_v17  ;;  %v5974_v52 = vpack.c.bf16 %v5958_v19, %v5958_v19  ;;  %v5674_v60 = vadd.f32 %v5653_v4, %v16313_v1  ;;  %v16901_v17 = vld [vmem:[#allocation3 + $0x2c] sm:$0x1]  ;;  %v13716_v21 = vld [vmem:[%s18118_s3 + $0x38] sm:$0xff]  ;;  %v6181_v8 = vld [vmem:[#allocation3 + $0xb4] sm:$0xf]  ;;  %9565 = vmatpush.bf16.msrb.mxu2 %v13748_v0 }
 0x36d   : > { %6177 = vst [vmem:[#allocation3 + $0xac] sm:$0xf] %v6078_v34  ;;  %v6708_v3 = vpop.f32.mrf.mxu3  ;;  %v8041_v39 = vrot.slane %v8039_v29, 4  ;;  %v13756_v51 = vld [vmem:[%s18118_s3 + $0x138] sm:$0xff]  ;;  %v8210_v26 = vunpack.c.l.b16 %v8014_v62  ;;  %v8460_v19 = vunpack.c.l.b16 %v8390_v61  ;;  %v8724_v4 = vshll.u32 %v16899_v42, 16  ;;  %9147 = vmatpush.bf16.msrb.mxu0 %v13716_v21 }
 0x36e   : > { %v6565_v44 = vpop.f32.mrf.mxu2  ;;  %6180 = vst [vmem:[#allocation3 + $0xb0] sm:$0x1] %v6179_v40  ;;  %v6081_v6 = vshrl.u32 %v5974_v52, 16  ;;  %v16892_v47 = vadd.f32 %v6708_v3, %v6563_v37  ;;  %v5923_v1 = vadd.f32 %v16814_v41, %v5674_v60  ;;  %v6084_v13 = vshll.u32 %v5974_v52, 16  ;;  %v8674_v34 = vld [vmem:[#allocation3 + $0x60] sm:$0xf]  ;;  %9942 = vmatpush.bf16.msrb.mxu3 %v13756_v51 }
 0x36f   : > { %v7410_v41 = vpack.c.b16 %v16859_v59, %v16840_v36  ;;  %v8728_v32 = vshrl.u32 %v16899_v42, 16  ;;  %v13732_v36 = vld [vmem:[%s18118_s3 + $0xb8] sm:$0xff]  ;;  %v6838_v58 = vpack.c.b16 %v6830_v15, %v6829_v46  ;;  %v7660_v29 = vpack.c.b16 %v7652_v50, %v7651_v18 }
 0x370   : > { %v16895_v56 = vpop.f32.mrf.mxu1  ;;  %v16905_v2 = vrot.slane %v6081_v6, 7  ;;  %v5943_v37 = vadd.f32 %v16822_v11, %v5923_v1  ;;  %v8226_v52 = vpack.c.b16 %v16897_v63, %v8210_v26  ;;  %v16930_v60 = vpack.c.b16 %v8461_v38, %v8460_v19  ;;  %v8356_v61 = vld [vmem:[#allocation3 + $0x24] sm:$0xe]  ;;  %9372 = vmatpush.bf16.msrb.mxu1 %v13732_v36 }
 0x371   : > { %v8033_v3 = vrot.slane %v8032_v9, 4  ;;  %v8042_v62 = vor.u32 %v8041_v39, %v16903_v16  ;;  %v8045_v15 = vshll.u32 %v16901_v17, 16  ;;  %v8715_v6 = vshrl.u32 %v8674_v34, 16 }
 0x372   : > { %v6086_v59 = vor.u32 %v6084_v13, %v16905_v2  ;;  %v5959_v24 = vmax.f32 %v5943_v37, 0.0  ;;  %v8718_v1 = vshll.u32 %v8674_v34, 16  ;;  %v16937_v38 = vrot.slane %v8724_v4, 5 }
 0x373   : > { %7510 = vmatmul.bf16.gmra.mxu2 %v7410_v41  ;;  %v5656_v40 = vpop.f32.mrf.mxu0  ;;  %v8730_v63 = vrot.slane %v8728_v32, 4  ;;  %v12784_v37 = vrot.slane %v8356_v61, 9  ;;  %v16942_v41 = vld [vmem:[#allocation3 + $0x30] sm:$0xf]  ;;  %v8038_v0 = vsel %vm14142_vm4, %v8033_v3, %v16903_v16  ;;  %v8043_v21 = vrot.slane %v8042_v62, 4  ;;  %v13715_v3 = vld [vmem:[%s18118_s3 + $0x30] sm:$0xff] }
 0x374   : > { %v6182_v7 = vsel %vm14297_vm10, %v6086_v59, %v6181_v8  ;;  %v5975_v23 = vpack.c.bf16 %v5959_v24, %v5959_v24  ;;  %v5675_v46 = vadd.f32 %v5656_v40, %v16342_v27  ;;  %v8396_v51 = vrot.slane %v16869_v33, 5  ;;  %v6185_v32 = vld [vmem:[#allocation3 + $0xbc] sm:$0x1]  ;;  %9148 = vmatpush.bf16.msrb.mxu0 %v13715_v3 }
 0x375   : > { %6183 = vst [vmem:[#allocation3 + $0xb4] sm:$0xf] %v6182_v7  ;;  %v6710_v18 = vpop.f32.mrf.mxu3  ;;  %v8399_v8 = vrot.slane %v16901_v17, 5  ;;  %v8047_v4 = vrot.slane %v8045_v15, 5  ;;  %v8717_v36 = vrot.slane %v8715_v6, 4  ;;  %v8720_v59 = vrot.slane %v8718_v1, 5 }
 0x376   : > { %v6568_v50 = vpop.f32.mrf.mxu2  ;;  %v6089_v9 = vshrl.u32 %v5975_v23, 16  ;;  %v16939_v39 = vadd.f32 %v6710_v18, %v6565_v44  ;;  %v5924_v13 = vadd.f32 %v16864_v28, %v5675_v46  ;;  %6938 = vmatmul.bf16.gmra.mxu0 %v6838_v58  ;;  %v6092_v44 = vshll.u32 %v5975_v23, 16  ;;  %v16952_v28 = vld [vmem:[#allocation3 + $0x68] sm:$0x1]  ;;  %v13747_v17 = vld [vmem:[%s18118_s3 + $0xf0] sm:$0xff] }
 0x377   : > { %v8731_v24 = vor.u32 %v8730_v63, %v16937_v38  ;;  %v8050_v58 = vshrl.u32 %v16942_v41, 16  ;;  %v6087_v16 = vrot.slane %v16905_v2, 4  ;;  %v13755_v62 = vld [vmem:[%s18118_s3 + $0x130] sm:$0xff]  ;;  %v8734_v2 = vshll.u32 %v16952_v28, 16  ;;  %9566 = vmatpush.bf16.msrb.mxu2 %v13747_v17  ;;  %v16976_v6 = vld [vmem:[#allocation3 + $0x34] sm:$0xf] }
 0x378   : > { %v16944_v27 = vpop.f32.mrf.mxu1  ;;  %v6091_v26 = vrot.slane %v6089_v9, 7  ;;  %v5944_v19 = vadd.f32 %v16822_v11, %v5924_v13  ;;  %v8048_v7 = vsel %vm14142_vm4, %v8043_v21, %v8047_v4  ;;  %v8721_v9 = vor.u32 %v8720_v59, %v8717_v36  ;;  %9943 = vmatpush.bf16.msrb.mxu3 %v13755_v62  ;;  %v8677_v4 = vld [vmem:[#allocation3 + $0x70] sm:$0xf] }
 0x379   : > { %v8732_v13 = vrot.slane %v8731_v24, 4  ;;  %v16982_v21 = vrot.slane %v8050_v58, 4  ;;  %v8736_v36 = vrot.slane %v8734_v2, 5  ;;  %v8059_v59 = vshll.u32 %v16976_v6, 16 }
 0x37a   : > { %v6094_v34 = vor.u32 %v6092_v44, %v6091_v26  ;;  %v6096_v33 = vrot.slane %v6091_v26, 4  ;;  %v5960_v40 = vmax.f32 %v5944_v19, 0.0  ;;  %7760 = vmatmul.bf16.gmra.mxu3 %v7660_v29  ;;  %v16969_v29 = vunpack.c.l.b16 %v8038_v0 }
 0x37b   : > { %8298 = vmatmul.bf16.vlgmr.msra.gmra.mxu1 %v8226_v52  ;;  %v5658_v61 = vpop.f32.mrf.mxu0  ;;  %v8398_v52 = vrot.slane %v8396_v51, 4  ;;  %v16980_v0 = vsel %vm14151_vm5, %v12784_v37, %v8396_v51  ;;  %v16987_v19 = vunpack.c.l.b16 %v8048_v7  ;;  %v8053_v51 = vshll.u32 %v16942_v41, 16 }
 0x37c   : > { %v6095_v23 = vsel %vm14314_vm12, %v6087_v16, %v6094_v34  ;;  %v6186_v46 = vsel %vm14324_vm13, %v6096_v33, %v6185_v32  ;;  %v5976_v15 = vpack.c.bf16 %v5960_v40, %v5960_v40  ;;  %v5676_v18 = vadd.f32 %v5658_v61, %v16375_v57  ;;  %v13731_v32 = vld [vmem:[%s18118_s3 + $0xb0] sm:$0xff]  ;;  %v6188_v34 = vld [vmem:[#allocation3 + $0xc0] sm:$0xf] }
 0x37d   : > { %6184 = vst [vmem:[#allocation3 + $0xb8] sm:$0xf] %v6095_v23  ;;  %v6713_v1 = vpop.f32.mrf.mxu3  ;;  %v8063_v24 = vshrl.u32 %v16976_v6, 16  ;;  %v17002_v16 = vsel %vm14151_vm5, %v8398_v52, %v8399_v8  ;;  %9373 = vmatpush.bf16.msrb.mxu1 %v13731_v32  ;;  %v8722_v33 = vrot.slane %v8721_v9, 4  ;;  %v8737_v40 = vsel %vm14142_vm4, %v8732_v13, %v8736_v36  ;;  %v8676_v8 = vld [vmem:[#allocation3 + $0x6c] sm:$0xf] }
 0x37e   : > { %v6570_v63 = vpop.f32.mrf.mxu2  ;;  %6187 = vst [vmem:[#allocation3 + $0xbc] sm:$0x1] %v6186_v46  ;;  %v6098_v26 = vshrl.u32 %v5976_v15, 16  ;;  %v16984_v44 = vadd.f32 %v6713_v1, %v6568_v50  ;;  %v5925_v57 = vadd.f32 %v16895_v56, %v5676_v18  ;;  %v6101_v58 = vshll.u32 %v5976_v15, 16  ;;  %v13669_v1 = vld [vmem:[#allocation3 + $0x18] sm:$0xff] }
 0x37f   : > { %v8748_v41 = vshll.u32 %v8677_v4, 16  ;;  %v8752_v17 = vshrl.u32 %v8677_v4, 16  ;;  %v8462_v61 = vunpack.c.l.b16 %v16980_v0  ;;  %v8727_v7 = vsel %vm14142_vm4, %v8722_v33, %v16937_v38  ;;  %v17019_v9 = vld [vmem:[#allocation3 + $0x38] sm:$0x1] }
 0x380   : > { %v16992_v37 = vpop.f32.mrf.mxu1  ;;  %v16997_v50 = vrot.slane %v6098_v26, 7  ;;  %v5945_v56 = vadd.f32 %v16822_v11, %v5925_v57  ;;  %v8227_v11 = vpack.c.b16 %v16987_v19, %v16969_v29  ;;  %v8055_v52 = vrot.slane %v8053_v51, 5 }
 0x381   : > { %v17014_v23 = vrot.slane %v8059_v59, 5  ;;  %v8065_v46 = vrot.slane %v8063_v24, 4  ;;  %v8923_v29 = vunpack.c.l.b16 %v8737_v40  ;;  %v8739_v57 = vshrl.u32 %v8676_v8, 16 }
 0x382   : > { %v6103_v3 = vor.u32 %v6101_v58, %v16997_v50  ;;  %v5961_v62 = vmax.f32 %v5945_v56, 0.0  ;;  %v8742_v19 = vshll.u32 %v8676_v8, 16  ;;  %v17021_v38 = vrot.slane %v8748_v41, 5 }
 0x383   : > { %8548 = vmatmul.bf16.vlgmr.msra.gmra.mxu2 %v16930_v60  ;;  %v6904_v2 = vpop.f32.mrf.mxu0  ;;  %v8754_v4 = vrot.slane %v8752_v17, 4  ;;  %v8922_v51 = vunpack.c.l.b16 %v8727_v7  ;;  %v8463_v24 = vunpack.c.l.b16 %v17002_v16  ;;  %v8056_v58 = vor.u32 %v8055_v52, %v16982_v21  ;;  %v8707_v17 = vld [vmem:[#allocation3 + $0x74] sm:$0x1] }
 0x384   : > { %v6189_v15 = vsel %vm14297_vm10, %v6103_v3, %v6188_v34  ;;  %v5977_v18 = vpack.c.bf16 %v5961_v62, %v5961_v62  ;;  %v6944_v60 = vadd.f32 %v6904_v2, %v16408_v31  ;;  %v17026_v31 = vld [vmem:[#allocation3 + $0x30] sm:$0xe]  ;;  %v8066_v56 = vor.u32 %v8065_v46, %v17014_v23  ;;  %v6192_v3 = vld [vmem:[#allocation3 + $0xc8] sm:$0x1] }
 0x385   : > { %6190 = vst [vmem:[#allocation3 + $0xc0] sm:$0xf] %v6189_v15  ;;  %v6715_v13 = vpop.f32.mrf.mxu3  ;;  %v8069_v34 = vshll.u32 %v17019_v9, 16  ;;  %v8741_v62 = vrot.slane %v8739_v57, 4  ;;  %v8744_v8 = vrot.slane %v8742_v19, 5  ;;  %v8755_v2 = vor.u32 %v8754_v4, %v17021_v38  ;;  %v13746_v15 = vld [vmem:[%s18118_s3 + $0xe8] sm:$0xff] }
 0x386   : > { %v7476_v26 = vpop.f32.mrf.mxu2  ;;  %v6106_v32 = vshrl.u32 %v5977_v18, 16  ;;  %v17023_v36 = vadd.f32 %v6715_v13, %v6570_v63  ;;  %v7138_v35 = vadd.f32 %v16944_v27, %v6944_v60  ;;  %7920 = vmatmul.bf16.vlgmr.msra.gmra.mxu0 %v13669_v1  ;;  %v6109_v40 = vshll.u32 %v5977_v18, 16  ;;  %v7986_v27 = vld [vmem:[#allocation3 + $0x3c] sm:$0xf]  ;;  %v13714_v18 = vld [vmem:[%s18118_s3 + $0x28] sm:$0xff]  ;;  %9567 = vmatpush.bf16.msrb.mxu2 %v13746_v15 }
 0x387   : > { %v8938_v63 = vpack.c.b16 %v8923_v29, %v8922_v51  ;;  %v12785_v7 = vrot.slane %v17026_v31, 9  ;;  %v6104_v16 = vrot.slane %v16997_v50, 4  ;;  %v8403_v46 = vrot.slane %v16976_v6, 5  ;;  %v13754_v60 = vld [vmem:[%s18118_s3 + $0x128] sm:$0xff]  ;;  %9149 = vmatpush.bf16.msrb.mxu0 %v13714_v18  ;;  %v17052_v19 = vld [vmem:[#allocation3 + $0x40] sm:$0xf] }
 0x388   : > { %v17028_v59 = vpop.f32.mrf.mxu1  ;;  %v6108_v33 = vrot.slane %v6106_v32, 7  ;;  %v7516_v41 = vadd.f32 %v7476_v26, %v7138_v35  ;;  %v8758_v50 = vshll.u32 %v8707_v17, 16  ;;  %v8057_v29 = vrot.slane %v8056_v58, 4  ;;  %9944 = vmatpush.bf16.msrb.mxu3 %v13754_v60 }
 0x389   : > { %v8067_v13 = vrot.slane %v8066_v56, 4  ;;  %v8074_v26 = vshrl.u32 %v7986_v27, 16  ;;  %v8077_v4 = vshll.u32 %v7986_v27, 16  ;;  %v8745_v51 = vor.u32 %v8744_v8, %v8741_v62  ;;  %v8678_v8 = vld [vmem:[#allocation3 + $0x78] sm:$0xf] }
 0x38a   : > { %v6111_v21 = vor.u32 %v6109_v40, %v6108_v33  ;;  %v6113_v52 = vrot.slane %v6108_v33, 4  ;;  %9010 = vmatmul.bf16.vlgmr.msra.gmra.mxu3 %v8938_v63  ;;  %v8756_v31 = vrot.slane %v8755_v2, 4  ;;  %v8071_v58 = vrot.slane %v8069_v34, 5  ;;  %v8679_v40 = vld [vmem:[#allocation3 + $0x7c] sm:$0xf]  ;;  %v13730_v63 = vld [vmem:[%s18118_s3 + $0xa8] sm:$0xff] }
 0x38b   : > { %8303 = vmatmul.bf16.gmra.mxu1 %v8227_v11  ;;  %v6906_v1 = vpop.f32.mrf.mxu0  ;;  %v8406_v56 = vrot.slane %v17019_v9, 5  ;;  %v8405_v33 = vrot.slane %v8403_v46, 4  ;;  %v8760_v17 = vrot.slane %v8758_v50, 5  ;;  %v8062_v9 = vsel %vm14142_vm4, %v8057_v29, %v17014_v23 }
 0x38c   : > { %v6112_v6 = vsel %vm14314_vm12, %v6104_v16, %v6111_v21  ;;  %v6193_v11 = vsel %vm14324_vm13, %v6113_v52, %v6192_v3  ;;  %v6945_v57 = vadd.f32 %v6906_v1, %v16448_v25  ;;  %v8477_v25 = vpack.c.b16 %v8463_v24, %v8462_v61  ;;  %9374 = vmatpush.bf16.msrb.mxu1 %v13730_v63  ;;  %v17081_v1 = vld [vmem:[#allocation3 + $0x44] sm:$0x1] }
 0x38d   : > { %6191 = vst [vmem:[#allocation3 + $0xc4] sm:$0xf] %v6112_v6  ;;  %v7726_v32 = vpop.f32.mrf.mxu3  ;;  %v8083_v34 = vshll.u32 %v17052_v19, 16  ;;  %v8072_v0 = vsel %vm14142_vm4, %v8067_v13, %v8071_v58  ;;  %v8076_v61 = vrot.slane %v8074_v26, 4  ;;  %v8079_v24 = vrot.slane %v8077_v4, 5  ;;  %v13670_v26 = vld [vmem:[#allocation3 + $0x24] sm:$0xff] }
 0x38e   : > { %v7478_v35 = vpop.f32.mrf.mxu2  ;;  %6194 = vst [vmem:[#allocation3 + $0xc8] sm:$0x1] %v6193_v11  ;;  %v17055_v43 = vadd.f32 %v7726_v32, %v7516_v41  ;;  %v7139_v49 = vadd.f32 %v16992_v37, %v6945_v57  ;;  %v8087_v37 = vshrl.u32 %v17052_v19, 16  ;;  %v8746_v3 = vrot.slane %v8745_v51, 4 }
 0x38f   : > { %v8761_v62 = vsel %vm14142_vm4, %v8756_v31, %v8760_v17  ;;  %v8772_v2 = vshll.u32 %v8679_v40, 16  ;;  %v8776_v16 = vshrl.u32 %v8679_v40, 16  ;;  %v8214_v23 = vunpack.c.l.b16 %v8062_v9  ;;  %v17095_v40 = vld [vmem:[#allocation3 + $0x3c] sm:$0xe]  ;;  %v8708_v9 = vld [vmem:[#allocation3 + $0x80] sm:$0x1] }
 0x390   : > { %v17063_v27 = vpop.f32.mrf.mxu1  ;;  %v7517_v41 = vadd.f32 %v7478_v35, %v7139_v49  ;;  %v8404_v21 = vsel %vm14151_vm5, %v12785_v7, %v8403_v46  ;;  %v8407_v52 = vsel %vm14151_vm5, %v8405_v33, %v8406_v56  ;;  %v8751_v18 = vsel %vm14142_vm4, %v8746_v3, %v17021_v38 }
 0x391   : > { %v8215_v60 = vunpack.c.l.b16 %v8072_v0  ;;  %v17083_v50 = vrot.slane %v8083_v34, 5  ;;  %v8089_v29 = vrot.slane %v8087_v37, 4  ;;  %v8925_v6 = vunpack.c.l.b16 %v8761_v62  ;;  %v17098_v0 = vld [vmem:[#allocation3 + $0x48] sm:$0xf] }
 0x392   : > { %v8763_v11 = vshrl.u32 %v8678_v8, 16  ;;  %v8766_v7 = vshll.u32 %v8678_v8, 16  ;;  %v8465_v4 = vunpack.c.l.b16 %v8407_v52  ;;  %v17086_v32 = vrot.slane %v8772_v2, 5  ;;  %v13745_v8 = vld [vmem:[%s18118_s3 + $0xe0] sm:$0xff] }
 0x393   : > { %8553 = vmatmul.bf16.gmra.mxu2 %v8477_v25  ;;  %v6909_v15 = vpop.f32.mrf.mxu0  ;;  %v8778_v35 = vrot.slane %v8776_v16, 4  ;;  %v8080_v51 = vor.u32 %v8079_v24, %v8076_v61  ;;  %v8924_v58 = vunpack.c.l.b16 %v8751_v18  ;;  %v8093_v56 = vshll.u32 %v17081_v1, 16  ;;  %v9196_v61 = vld [vmem:[#allocation3 + $0x60] sm:$0xe]  ;;  %v13713_v2 = vld [vmem:[%s18118_s3 + $0x20] sm:$0xff] }
 0x394   : > { %v6946_v13 = vadd.f32 %v6909_v15, %v16489_v30  ;;  %v8228_v49 = vpack.c.b16 %v8215_v60, %v8214_v23  ;;  %v8464_v25 = vunpack.c.l.b16 %v8404_v21  ;;  %v8090_v33 = vor.u32 %v8089_v29, %v17083_v50  ;;  %v13753_v16 = vld [vmem:[%s18118_s3 + $0x120] sm:$0xff]  ;;  %9568 = vmatpush.bf16.msrb.mxu2 %v13745_v8  ;;  %9150 = vmatpush.bf16.msrb.mxu0 %v13713_v2 }
 0x395   : > { %v7728_v46 = vpop.f32.mrf.mxu3  ;;  %v8939_v63 = vpack.c.b16 %v8925_v6, %v8924_v58  ;;  %v8765_v34 = vrot.slane %v8763_v11, 4  ;;  %v8768_v37 = vrot.slane %v8766_v7, 5  ;;  %v8095_v3 = vrot.slane %v8093_v56, 5  ;;  %v17115_v60 = vld [vmem:[#allocation3 + $0x4c] sm:$0xf]  ;;  %9945 = vmatpush.bf16.msrb.mxu3 %v13753_v16 }
 0x396   : > { %v7481_v57 = vpop.f32.mrf.mxu2  ;;  %v17088_v38 = vadd.f32 %v7728_v46, %v7517_v41  ;;  %v7140_v31 = vadd.f32 %v17028_v59, %v6946_v13  ;;  %7925 = vmatmul.bf16.gmra.mxu0 %v13670_v26  ;;  %v8779_v41 = vor.u32 %v8778_v35, %v17086_v32  ;;  %v8081_v59 = vrot.slane %v8080_v51, 4 }
 0x397   : > { %v8478_v24 = vpack.c.b16 %v8465_v4, %v8464_v25  ;;  %v12786_v62 = vrot.slane %v17095_v40, 9  ;;  %v8782_v21 = vshll.u32 %v8708_v9, 16  ;;  %v8410_v15 = vrot.slane %v17052_v19, 5 }
 0x398   : > { %v17092_v30 = vpop.f32.mrf.mxu1  ;;  %v7518_v17 = vadd.f32 %v7481_v57, %v7140_v31  ;;  %v8086_v52 = vsel %vm14142_vm4, %v8081_v59, %v17083_v50  ;;  %v8413_v18 = vrot.slane %v17081_v1, 5  ;;  %v8769_v13 = vor.u32 %v8768_v37, %v8765_v34  ;;  %v13729_v31 = vld [vmem:[%s18118_s3 + $0xa0] sm:$0xff]  ;;  %v13744_v1 = vld [vmem:[%s18118_s3 + $0xd8] sm:$0xff] }
 0x399   : > { %v8091_v26 = vrot.slane %v8090_v33, 4  ;;  %v9222_v6 = vrot.slane %v16899_v42, 5  ;;  %v8780_v46 = vrot.slane %v8779_v41, 4  ;;  %v8098_v50 = vshrl.u32 %v17098_v0, 16  ;;  %9375 = vmatpush.bf16.msrb.mxu1 %v13729_v31  ;;  %9569 = vmatpush.bf16.msrb.mxu2 %v13744_v1 }
 0x39a   : > { %9015 = vmatmul.bf16.gmra.mxu3 %v8939_v63  ;;  %v8101_v57 = vshll.u32 %v17098_v0, 16  ;;  %v12951_v4 = vrot.slane %v9196_v61, 9  ;;  %v8107_v42 = vshll.u32 %v17115_v60, 16  ;;  %v8111_v58 = vshrl.u32 %v17115_v60, 16  ;;  %v8680_v61 = vld [vmem:[#allocation3 + $0x84] sm:$0xf] }
 0x39b   : > { %8308 = vmatmul.bf16.gmra.mxu1 %v8228_v49  ;;  %v6911_v23 = vpop.f32.mrf.mxu0  ;;  %v8784_v56 = vrot.slane %v8782_v21, 5  ;;  %v9224_v33 = vrot.slane %v9222_v6, 4  ;;  %v9225_v63 = vrot.slane %v16952_v28, 5  ;;  %v8096_v9 = vsel %vm14142_vm4, %v8091_v26, %v8095_v3  ;;  %v13671_v26 = vld [vmem:[#allocation3 + $0x30] sm:$0xff] }
 0x39c   : > { %v6947_v29 = vadd.f32 %v6911_v23, %v16536_v12  ;;  %v8681_v12 = vld [vmem:[#allocation3 + $0x88] sm:$0xf]  ;;  %v9223_v25 = vsel %vm14151_vm5, %v12951_v4, %v9222_v6  ;;  %v8216_v34 = vunpack.c.l.b16 %v8086_v52  ;;  %v17140_v8 = vrot.slane %v8107_v42, 5 }
 0x39d   : > { %v7731_v11 = vpop.f32.mrf.mxu3  ;;  %v8785_v37 = vsel %vm14142_vm4, %v8780_v46, %v8784_v56  ;;  %v8796_v41 = vshll.u32 %v8681_v12, 16  ;;  %v8800_v59 = vshrl.u32 %v8681_v12, 16  ;;  %v9226_v0 = vsel %vm14151_vm5, %v9224_v33, %v9225_v63 }
 0x39e   : > { %v7483_v7 = vpop.f32.mrf.mxu2  ;;  %v17121_v35 = vadd.f32 %v7731_v11, %v7518_v17  ;;  %v7141_v51 = vadd.f32 %v17063_v27, %v6947_v29  ;;  %v8770_v27 = vrot.slane %v8769_v13, 4  ;;  %v8113_v28 = vrot.slane %v8111_v58, 4 }
 0x39f   : > { %v9292_v2 = vunpack.c.l.b16 %v9223_v25  ;;  %v9293_v16 = vunpack.c.l.b16 %v9226_v0  ;;  %v8217_v21 = vunpack.c.l.b16 %v8096_v9  ;;  %v8412_v52 = vrot.slane %v8410_v15, 4 }
 0x3a0   : > { %v17129_v49 = vpop.f32.mrf.mxu1  ;;  %v7519_v17 = vadd.f32 %v7483_v7, %v7141_v51  ;;  %v8775_v3 = vsel %vm14142_vm4, %v8770_v27, %v17086_v32  ;;  %v8100_v29 = vrot.slane %v8098_v50, 4  ;;  %v8103_v6 = vrot.slane %v8101_v57, 5  ;;  %v17152_v32 = vld [vmem:[#allocation3 + $0x50] sm:$0x1] }
 0x3a1   : > { %v17148_v11 = vpack.c.b16 %v9293_v16, %v9292_v2  ;;  %v8787_v4 = vshrl.u32 %v8680_v61, 16  ;;  %v8790_v51 = vshll.u32 %v8680_v61, 16  ;;  %v17150_v12 = vrot.slane %v8796_v41, 5  ;;  %v17182_v16 = vld [vmem:[#allocation3 + $0x58] sm:$0xf] }
 0x3a2   : > { %v8802_v31 = vrot.slane %v8800_v59, 4  ;;  %v8114_v58 = vor.u32 %v8113_v28, %v17140_v8  ;;  %v8411_v56 = vsel %vm14151_vm5, %v12786_v62, %v8410_v15  ;;  %v8414_v25 = vsel %vm14151_vm5, %v8412_v52, %v8413_v18  ;;  %v13712_v62 = vld [vmem:[%s18118_s3 + $0x18] sm:$0xff]  ;;  %v7992_v59 = vld [vmem:[#allocation3 + $0x54] sm:$0xf] }
 0x3a3   : > { %8558 = vmatmul.bf16.gmra.mxu2 %v8478_v24  ;;  %v6914_v23 = vpop.f32.mrf.mxu0  ;;  %v8927_v24 = vunpack.c.l.b16 %v8785_v37  ;;  %v8229_v63 = vpack.c.b16 %v8217_v21, %v8216_v34  ;;  %v8117_v27 = vshll.u32 %v17152_v32, 16  ;;  %v8789_v9 = vrot.slane %v8787_v4, 4  ;;  %v13752_v15 = vld [vmem:[%s18118_s3 + $0x118] sm:$0xff]  ;;  %9151 = vmatpush.bf16.msrb.mxu0 %v13712_v62 }
 0x3a4   : > { %v6948_v13 = vadd.f32 %v6914_v23, %v16575_v22  ;;  %v8926_v22 = vunpack.c.l.b16 %v8775_v3  ;;  %v8792_v37 = vrot.slane %v8790_v51, 5  ;;  %v8803_v19 = vor.u32 %v8802_v31, %v17150_v12  ;;  %9946 = vmatpush.bf16.msrb.mxu3 %v13752_v15 }
 0x3a5   : > { %v7733_v7 = vpop.f32.mrf.mxu3  ;;  %v8104_v41 = vor.u32 %v8103_v6, %v8100_v29  ;;  %v8115_v40 = vrot.slane %v8114_v58, 4  ;;  %v8466_v61 = vunpack.c.l.b16 %v8411_v56  ;;  %v8467_v28 = vunpack.c.l.b16 %v8414_v25  ;;  %v8683_v6 = vld [vmem:[#allocation3 + $0x94] sm:$0xf] }
 0x3a6   : > { %v7486_v46 = vpop.f32.mrf.mxu2  ;;  %v17154_v42 = vadd.f32 %v7733_v7, %v7519_v17  ;;  %v7142_v50 = vadd.f32 %v17092_v30, %v6948_v13  ;;  %7930 = vmatmul.bf16.gmra.mxu0 %v13671_v26  ;;  %v8940_v33 = vpack.c.b16 %v8927_v24, %v8926_v22  ;;  %v8709_v17 = vld [vmem:[#allocation3 + $0x8c] sm:$0x1]  ;;  %v8119_v2 = vrot.slane %v8117_v27, 5  ;;  %v13728_v7 = vld [vmem:[%s18118_s3 + $0x98] sm:$0xff]  ;;  %v8359_v27 = vld [vmem:[#allocation3 + $0x48] sm:$0xe] }
 0x3a7   : > { %v8806_v34 = vshll.u32 %v8709_v17, 16  ;;  %v8793_v21 = vor.u32 %v8792_v37, %v8789_v9  ;;  %v8804_v52 = vrot.slane %v8803_v19, 4  ;;  %v8105_v29 = vrot.slane %v8104_v41, 4  ;;  %9376 = vmatpush.bf16.msrb.mxu1 %v13728_v7 }
 0x3a8   : > { %v17158_v57 = vpop.f32.mrf.mxu1  ;;  %v7520_v30 = vadd.f32 %v7486_v46, %v7142_v50  ;;  %v8417_v13 = vrot.slane %v17115_v60, 5  ;;  %v8122_v46 = vshrl.u32 %v7992_v59, 16  ;;  %v8125_v31 = vshll.u32 %v7992_v59, 16 }
 0x3a9   : > { %v8808_v4 = vrot.slane %v8806_v34, 5  ;;  %v8131_v60 = vshll.u32 %v17182_v16, 16  ;;  %v8135_v50 = vshrl.u32 %v17182_v16, 16  ;;  %v8479_v58 = vpack.c.b16 %v8467_v28, %v8466_v61 }
 0x3aa   : > { %9020 = vmatmul.bf16.gmra.mxu3 %v8940_v33  ;;  %v8794_v56 = vrot.slane %v8793_v21, 4  ;;  %v8682_v33 = vld [vmem:[#allocation3 + $0x90] sm:$0xf]  ;;  %v8419_v9 = vrot.slane %v8417_v13, 4  ;;  %v8420_v37 = vrot.slane %v17152_v32, 5  ;;  %v8124_v19 = vrot.slane %v8122_v46, 4 }
 0x3ab   : > { %8313 = vmatmul.bf16.gmra.mxu1 %v8229_v63  ;;  %v6916_v18 = vpop.f32.mrf.mxu0  ;;  %v8809_v25 = vsel %vm14142_vm4, %v8804_v52, %v8808_v4  ;;  %v8824_v63 = vshrl.u32 %v8683_v6, 16  ;;  %v17206_v1 = vrot.slane %v8131_v60, 5  ;;  %v8137_v62 = vrot.slane %v8135_v50, 4  ;;  %v8710_v60 = vld [vmem:[#allocation3 + $0x98] sm:$0x1] }
 0x3ac   : > { %v6949_v0 = vadd.f32 %v6916_v18, %v16617_v14  ;;  %v8120_v14 = vsel %vm14142_vm4, %v8115_v40, %v8119_v2  ;;  %v8127_v40 = vrot.slane %v8125_v31, 5  ;;  %v13672_v18 = vld [vmem:[#allocation3 + $0x3c] sm:$0xff]  ;;  %v8929_v34 = vunpack.c.l.b16 %v8809_v25 }
 0x3ad   : > { %v7736_v23 = vpop.f32.mrf.mxu3  ;;  %v8219_v17 = vunpack.c.l.b16 %v8120_v14  ;;  %v8811_v59 = vshrl.u32 %v8682_v33, 16  ;;  %v12787_v32 = vrot.slane %v8359_v27, 9  ;;  %v8138_v46 = vor.u32 %v8137_v62, %v17206_v1  ;;  %v13711_v25 = vld [vmem:[%s18118_s3 + $0x10] sm:$0xff] }
 0x3ae   : > { %v7488_v3 = vpop.f32.mrf.mxu2  ;;  %v17185_v26 = vadd.f32 %v7736_v23, %v7520_v30  ;;  %v7143_v24 = vadd.f32 %v17129_v49, %v6949_v0  ;;  %v8110_v49 = vsel %vm14142_vm4, %v8105_v29, %v17140_v8  ;;  %v8820_v30 = vshll.u32 %v8683_v6, 16  ;;  %v17220_v6 = vld [vmem:[#allocation3 + $0x5c] sm:$0x1]  ;;  %9152 = vmatpush.bf16.msrb.mxu0 %v13711_v25 }
 0x3af   : > { %v8799_v8 = vsel %vm14142_vm4, %v8794_v56, %v17150_v12  ;;  %v8814_v0 = vshll.u32 %v8682_v33, 16  ;;  %v8218_v2 = vunpack.c.l.b16 %v8110_v49  ;;  %v8418_v14 = vsel %vm14151_vm5, %v12787_v32, %v8417_v13  ;;  %v17224_v49 = vld [vmem:[#allocation3 + $0x64] sm:$0xf]  ;;  %v13743_v13 = vld [vmem:[%s18118_s3 + $0xd0] sm:$0xff] }
 0x3b0   : > { %v17193_v51 = vpop.f32.mrf.mxu1  ;;  %v7521_v22 = vadd.f32 %v7488_v3, %v7143_v24  ;;  %v17209_v23 = vrot.slane %v8820_v30, 5  ;;  %v8826_v3 = vrot.slane %v8824_v63, 4  ;;  %v8928_v52 = vunpack.c.l.b16 %v8799_v8  ;;  %v13751_v33 = vld [vmem:[%s18118_s3 + $0x110] sm:$0xff]  ;;  %9570 = vmatpush.bf16.msrb.mxu2 %v13743_v13 }
 0x3b1   : > { %v8230_v24 = vpack.c.b16 %v8219_v17, %v8218_v2  ;;  %v8128_v7 = vor.u32 %v8127_v40, %v8124_v19  ;;  %v8816_v50 = vrot.slane %v8814_v0, 5  ;;  %v8141_v56 = vshll.u32 %v17220_v6, 16  ;;  %9947 = vmatpush.bf16.msrb.mxu3 %v13751_v33  ;;  %v13727_v2 = vld [vmem:[%s18118_s3 + $0x90] sm:$0xff] }
 0x3b2   : > { %v8941_v4 = vpack.c.b16 %v8929_v34, %v8928_v52  ;;  %v8468_v63 = vunpack.c.l.b16 %v8418_v14  ;;  %v8830_v17 = vshll.u32 %v8710_v60, 16  ;;  %v8139_v19 = vrot.slane %v8138_v46, 4  ;;  %v8684_v52 = vld [vmem:[#allocation3 + $0x9c] sm:$0xf]  ;;  %9377 = vmatpush.bf16.msrb.mxu1 %v13727_v2 }
 0x3b3   : > { %8563 = vmatmul.bf16.gmra.mxu2 %v8479_v58  ;;  %v6919_v41 = vpop.f32.mrf.mxu0  ;;  %v8827_v58 = vor.u32 %v8826_v3, %v17209_v23  ;;  %v8155_v34 = vshll.u32 %v17224_v49, 16 }
 0x3b4   : > { %v6950_v15 = vadd.f32 %v6919_v41, %v16655_v10  ;;  %v8421_v10 = vsel %vm14151_vm5, %v8419_v9, %v8420_v37  ;;  %v8129_v37 = vrot.slane %v8128_v7, 4  ;;  %v8685_v41 = vld [vmem:[#allocation3 + $0xa0] sm:$0xf]  ;;  %v8832_v32 = vrot.slane %v8830_v17, 5  ;;  %v8360_v17 = vld [vmem:[#allocation3 + $0x54] sm:$0xe] }
 0x3b5   : > { %v7738_v61 = vpop.f32.mrf.mxu3 }
 0x3b6   : > { %v7491_v28 = vpop.f32.mrf.mxu2  ;;  %v17211_v21 = vadd.f32 %v7738_v61, %v7521_v22  ;;  %v7144_v12 = vadd.f32 %v17158_v57, %v6950_v15  ;;  %7935 = vmatmul.bf16.gmra.mxu0 %v13672_v18  ;;  %v8813_v57 = vrot.slane %v8811_v59, 4  ;;  %v8469_v22 = vunpack.c.l.b16 %v8421_v10  ;;  %v7995_v18 = vld [vmem:[#allocation3 + $0x60] sm:$0xf] }
 0x3b7   : > { %v8828_v15 = vrot.slane %v8827_v58, 4  ;;  %v8159_v59 = vshrl.u32 %v17224_v49, 16  ;;  %v8134_v61 = vsel %vm14142_vm4, %v8129_v37, %v17206_v1  ;;  %v8844_v10 = vshll.u32 %v8685_v41, 16 }
 0x3b8   : > { %v17216_v29 = vpop.f32.mrf.mxu1  ;;  %v7522_v31 = vadd.f32 %v7491_v28, %v7144_v12  ;;  %v8817_v9 = vor.u32 %v8816_v50, %v8813_v57  ;;  %v8480_v62 = vpack.c.b16 %v8469_v22, %v8468_v63  ;;  %v8143_v28 = vrot.slane %v8141_v56, 5 }
 0x3b9   : > { %v8424_v12 = vrot.slane %v17182_v16, 5  ;;  %v8146_v1 = vshrl.u32 %v7995_v18, 16  ;;  %v8833_v46 = vsel %vm14142_vm4, %v8828_v15, %v8832_v32  ;;  %v8161_v60 = vrot.slane %v8159_v59, 4 }
 0x3ba   : > { %9025 = vmatmul.bf16.gmra.mxu3 %v8941_v4  ;;  %v8818_v7 = vrot.slane %v8817_v9, 4  ;;  %v8149_v4 = vshll.u32 %v7995_v18, 16  ;;  %v8835_v57 = vshrl.u32 %v8684_v52, 16  ;;  %v8838_v50 = vshll.u32 %v8684_v52, 16 }
 0x3bb   : > { %8318 = vmatmul.bf16.gmra.mxu1 %v8230_v24  ;;  %v6921_v30 = vpop.f32.mrf.mxu0  ;;  %v8848_v24 = vshrl.u32 %v8685_v41, 16  ;;  %v8220_v58 = vunpack.c.l.b16 %v8134_v61  ;;  %v17260_v13 = vrot.slane %v8844_v10, 5  ;;  %v8931_v63 = vunpack.c.l.b16 %v8833_v46  ;;  %v13710_v46 = vld [vmem:[%s18118_s3 + $0x8] sm:$0xff] }
 0x3bc   : > { %v6951_v27 = vadd.f32 %v6921_v30, %v16700_v5  ;;  %v8823_v16 = vsel %vm14142_vm4, %v8818_v7, %v17209_v23  ;;  %v13673_v30 = vld [vmem:[#allocation3 + $0x48] sm:$0xff]  ;;  %v8427_v9 = vrot.slane %v17220_v6, 5  ;;  %v8840_v59 = vrot.slane %v8838_v50, 5  ;;  %9153 = vmatpush.bf16.msrb.mxu0 %v13710_v46 }
 0x3bd   : > { %v7741_v8 = vpop.f32.mrf.mxu3  ;;  %v8850_v25 = vrot.slane %v8848_v24, 4  ;;  %v17264_v23 = vld [vmem:[#allocation3 + $0x68] sm:$0x1]  ;;  %v12788_v61 = vrot.slane %v8360_v17, 9 }
 0x3be   : > { %v7493_v40 = vpop.f32.mrf.mxu2  ;;  %v17239_v0 = vadd.f32 %v7741_v8, %v7522_v31  ;;  %v7145_v5 = vadd.f32 %v17193_v51, %v6951_v27  ;;  %v8144_v51 = vsel %vm14142_vm4, %v8139_v19, %v8143_v28  ;;  %v17255_v31 = vrot.slane %v8155_v34, 5 }
 0x3bf   : > { %v8221_v56 = vunpack.c.l.b16 %v8144_v51  ;;  %v8426_v27 = vrot.slane %v8424_v12, 4  ;;  %v8930_v19 = vunpack.c.l.b16 %v8823_v16  ;;  %v8148_v8 = vrot.slane %v8146_v1, 4  ;;  %v13742_v1 = vld [vmem:[%s18118_s3 + $0xc8] sm:$0xff] }
 0x3c0   : > { %v17248_v3 = vpop.f32.mrf.mxu1  ;;  %v7523_v14 = vadd.f32 %v7493_v40, %v7145_v5  ;;  %v8151_v40 = vrot.slane %v8149_v4, 5  ;;  %v8837_v34 = vrot.slane %v8835_v57, 4  ;;  %v8851_v28 = vor.u32 %v8850_v25, %v17260_v13  ;;  %v13750_v4 = vld [vmem:[%s18118_s3 + $0x108] sm:$0xff]  ;;  %9571 = vmatpush.bf16.msrb.mxu2 %v13742_v1 }
 0x3c1   : > { %v8231_v6 = vpack.c.b16 %v8221_v56, %v8220_v58  ;;  %v8942_v2 = vpack.c.b16 %v8931_v63, %v8930_v19  ;;  %v8428_v52 = vsel %vm14151_vm5, %v8426_v27, %v8427_v9  ;;  %v8165_v10 = vshll.u32 %v17264_v23, 16  ;;  %v8687_v63 = vld [vmem:[#allocation3 + $0xac] sm:$0xf]  ;;  %9948 = vmatpush.bf16.msrb.mxu3 %v13750_v4 }
 0x3c2   : > { %v8841_v7 = vor.u32 %v8840_v59, %v8837_v34  ;;  %v8471_v16 = vunpack.c.l.b16 %v8428_v52  ;;  %v8852_v57 = vrot.slane %v8851_v28, 4  ;;  %v8434_v52 = vrot.slane %v17264_v23, 5 }
 0x3c3   : > { %8568 = vmatmul.bf16.gmra.mxu2 %v8480_v62  ;;  %v6924_v22 = vpop.f32.mrf.mxu0  ;;  %v8162_v62 = vor.u32 %v8161_v60, %v17255_v31 }
 0x3c4   : > { %v6952_v33 = vadd.f32 %v6924_v22, %v16729_v53  ;;  %v8711_v53 = vld [vmem:[#allocation3 + $0xa4] sm:$0x1]  ;;  %v8842_v9 = vrot.slane %v8841_v7, 4 }
 0x3c5   : > { %v7743_v37 = vpop.f32.mrf.mxu3  ;;  %v8854_v24 = vshll.u32 %v8711_v53, 16  ;;  %v8163_v51 = vrot.slane %v8162_v62, 4  ;;  %v8686_v62 = vld [vmem:[#allocation3 + $0xa8] sm:$0xf]  ;;  %v8872_v53 = vshrl.u32 %v8687_v63, 16 }
 0x3c6   : > { %v7496_v41 = vpop.f32.mrf.mxu2  ;;  %v17267_v15 = vadd.f32 %v7743_v37, %v7523_v14  ;;  %v7146_v18 = vadd.f32 %v17216_v29, %v6952_v33  ;;  %7940 = vmatmul.bf16.gmra.mxu0 %v13673_v30  ;;  %v8152_v14 = vor.u32 %v8151_v40, %v8148_v8  ;;  %v8425_v29 = vsel %vm14151_vm5, %v12788_v61, %v8424_v12  ;;  %v13726_v37 = vld [vmem:[%s18118_s3 + $0x88] sm:$0xff] }
 0x3c7   : > { %v8167_v12 = vrot.slane %v8165_v10, 5  ;;  %v8470_v56 = vunpack.c.l.b16 %v8425_v29  ;;  %v8856_v25 = vrot.slane %v8854_v24, 5  ;;  %v8431_v30 = vrot.slane %v17224_v49, 5  ;;  %9378 = vmatpush.bf16.msrb.mxu1 %v13726_v37  ;;  %v13674_v24 = vld [vmem:[#allocation3 + $0x54] sm:$0xff] }
 0x3c8   : > { %v17270_v5 = vpop.f32.mrf.mxu1  ;;  %v7524_v32 = vadd.f32 %v7496_v41, %v7146_v18  ;;  %v8153_v33 = vrot.slane %v8152_v14, 4  ;;  %v8868_v18 = vshll.u32 %v8687_v63, 16  ;;  %v8862_v14 = vshll.u32 %v8686_v62, 16 }
 0x3c9   : > { %v8481_v19 = vpack.c.b16 %v8471_v16, %v8470_v56  ;;  %v8857_v41 = vsel %vm14142_vm4, %v8852_v57, %v8856_v25  ;;  %v8433_v61 = vrot.slane %v8431_v30, 4  ;;  %v8874_v29 = vrot.slane %v8872_v53, 4  ;;  %v7998_v57 = vld [vmem:[#allocation3 + $0x6c] sm:$0xf] }
 0x3ca   : > { %9030 = vmatmul.bf16.gmra.mxu3 %v8942_v2  ;;  %v8158_v49 = vsel %vm14142_vm4, %v8153_v33, %v17255_v31  ;;  %v8933_v59 = vunpack.c.l.b16 %v8857_v41  ;;  %v8859_v31 = vshrl.u32 %v8686_v62, 16 }
 0x3cb   : > { %8323 = vmatmul.bf16.gmra.mxu1 %v8231_v6  ;;  %v6926_v60 = vpop.f32.mrf.mxu0  ;;  %v8361_v6 = vld [vmem:[#allocation3 + $0x60] sm:$0xe]  ;;  %v8435_v23 = vsel %vm14151_vm5, %v8433_v61, %v8434_v52 }
 0x3cc   : > { %v6953_v50 = vadd.f32 %v6926_v60, %v16773_v54  ;;  %v8168_v54 = vsel %vm14142_vm4, %v8163_v51, %v8167_v12  ;;  %v12789_v46 = vrot.slane %v8361_v6, 9  ;;  %v8712_v12 = vld [vmem:[#allocation3 + $0xb0] sm:$0x1]  ;;  %v8861_v63 = vrot.slane %v8859_v31, 4 }
 0x3cd   : > { %v7746_v22 = vpop.f32.mrf.mxu3  ;;  %v8223_v34 = vunpack.c.l.b16 %v8168_v54  ;;  %v8473_v62 = vunpack.c.l.b16 %v8435_v23 }
 0x3ce   : > { %v7498_v58 = vpop.f32.mrf.mxu2  ;;  %v17289_v17 = vadd.f32 %v7746_v22, %v7524_v32  ;;  %v7147_v27 = vadd.f32 %v17248_v3, %v6953_v50  ;;  %v8847_v3 = vsel %vm14142_vm4, %v8842_v9, %v17260_v13  ;;  %v8222_v32 = vunpack.c.l.b16 %v8158_v49  ;;  %v17323_v9 = vld [vmem:[#allocation3 + $0x74] sm:$0x1] }
 0x3cf   : > { %v8932_v2 = vunpack.c.l.b16 %v8847_v3  ;;  %v17309_v13 = vrot.slane %v8868_v18, 5  ;;  %v8170_v22 = vshrl.u32 %v7998_v57, 16  ;;  %v8432_v49 = vsel %vm14151_vm5, %v12789_v46, %v8431_v30  ;;  %v13749_v30 = vld [vmem:[%s18118_s3 + $0x100] sm:$0xff] }
 0x3d0   : > { %v17299_v8 = vpop.f32.mrf.mxu1  ;;  %v7525_v40 = vadd.f32 %v7498_v58, %v7147_v27  ;;  %v8232_v1 = vpack.c.b16 %v8223_v34, %v8222_v32  ;;  %v8173_v58 = vshll.u32 %v7998_v57, 16  ;;  %v8189_v53 = vshll.u32 %v17323_v9, 16  ;;  %v13741_v34 = vld [vmem:[%s18118_s3 + $0xc0] sm:$0xff]  ;;  %9949 = vmatpush.bf16.msrb.mxu3 %v13749_v30 }
 0x3d1   : > { %v8943_v16 = vpack.c.b16 %v8933_v59, %v8932_v2  ;;  %v8875_v27 = vor.u32 %v8874_v29, %v17309_v13  ;;  %v8172_v54 = vrot.slane %v8170_v22, 4  ;;  %v13709_v59 = vld [vmem:[%s18118_s3] sm:$0xff]  ;;  %v8472_v52 = vunpack.c.l.b16 %v8432_v49  ;;  %9572 = vmatpush.bf16.msrb.mxu2 %v13741_v34 }
 0x3d2   : > { %v8175_v37 = vrot.slane %v8173_v58, 5  ;;  %9154 = vmatpush.bf16.msrb.mxu0 %v13709_v59  ;;  %v8191_v46 = vrot.slane %v8189_v53, 5 }
 0x3d3   : > { %8573 = vmatmul.bf16.gmra.mxu2 %v8481_v19  ;;  %v6929_v28 = vpop.f32.mrf.mxu0 }
 0x3d4   : > { %v6954_v10 = vadd.f32 %v6929_v28, %v16807_v20  ;;  %v17316_v20 = vld [vmem:[#allocation3 + $0x70] sm:$0xf]  ;;  %v8876_v28 = vrot.slane %v8875_v27, 4  ;;  %v8176_v31 = vor.u32 %v8175_v37, %v8172_v54 }
 0x3d5   : > { %v7748_v7 = vpop.f32.mrf.mxu3  ;;  %v8179_v56 = vshll.u32 %v17316_v20, 16  ;;  %v8183_v25 = vshrl.u32 %v17316_v20, 16  ;;  %v8438_v57 = vrot.slane %v17316_v20, 5  ;;  %v13675_v20 = vld [vmem:[#allocation3 + $0x60] sm:$0xff] }
 0x3d6   : > { %v7501_v51 = vpop.f32.mrf.mxu2  ;;  %v17311_v4 = vadd.f32 %v7748_v7, %v7525_v40  ;;  %v7148_v60 = vadd.f32 %v17270_v5, %v6954_v10  ;;  %7945 = vmatmul.bf16.gmra.mxu0 %v13674_v24  ;;  %v8864_v5 = vrot.slane %v8862_v14, 5  ;;  %v8878_v40 = vshll.u32 %v8712_v12, 16  ;;  %v8689_v7 = vld [vmem:[#allocation3 + $0xb8] sm:$0xf] }
 0x3d7   : > { %v8181_v19 = vrot.slane %v8179_v56, 5  ;;  %v8185_v41 = vrot.slane %v8183_v25, 4  ;;  %v8177_v12 = vrot.slane %v8176_v31, 4  ;;  %v8892_v22 = vshll.u32 %v8689_v7, 16  ;;  %v8688_v56 = vld [vmem:[#allocation3 + $0xb4] sm:$0xf] }
 0x3d8   : > { %v17318_v50 = vpop.f32.mrf.mxu1  ;;  %v7526_v33 = vadd.f32 %v7501_v51, %v7148_v60  ;;  %v8865_v61 = vor.u32 %v8864_v5, %v8861_v63  ;;  %v8880_v29 = vrot.slane %v8878_v40, 5  ;;  %v8482_v51 = vpack.c.b16 %v8473_v62, %v8472_v52  ;;  %v8362_v40 = vld [vmem:[#allocation3 + $0x6c] sm:$0xe] }
 0x3d9   : > { %v8186_v18 = vor.u32 %v8185_v41, %v8181_v19  ;;  %v8896_v58 = vshrl.u32 %v8689_v7, 16  ;;  %v8182_v63 = vsel %vm14142_vm4, %v8177_v12, %v8181_v19  ;;  %v8440_v37 = vrot.slane %v8438_v57, 4 }
 0x3da   : > { %9035 = vmatmul.bf16.gmra.mxu3 %v8943_v16  ;;  %v8866_v16 = vrot.slane %v8865_v61, 4  ;;  %v8881_v23 = vsel %vm14142_vm4, %v8876_v28, %v8880_v29  ;;  %v8886_v62 = vshll.u32 %v8688_v56, 16  ;;  %v8224_v59 = vunpack.c.l.b16 %v8182_v63  ;;  %v13796_v29 = vld [vmem:[%s18118_s3 + $0x238] sm:$0xff] }
 0x3db   : > { %8328 = vmatmul.bf16.gmra.mxu1 %v8232_v1  ;;  %v6931_v3 = vpop.f32.mrf.mxu0  ;;  %v8187_v10 = vrot.slane %v8186_v18, 4  ;;  %v8935_v27 = vunpack.c.l.b16 %v8881_v23  ;;  %v17355_v18 = vrot.slane %v8892_v22, 5  ;;  %v8898_v53 = vrot.slane %v8896_v58, 4  ;;  %11011 = vmatpush.bf16.msra.mxu3 %v13796_v29  ;;  %v13763_v29 = vld [vmem:[%s18118_s3 + $0x170] sm:$0xff] }
 0x3dc   : > { %v6955_v6 = vadd.f32 %v6931_v3, %v16855_v55  ;;  %v13725_v55 = vld [vmem:[%s18118_s3 + $0x80] sm:$0xff]  ;;  %v8883_v3 = vshrl.u32 %v8688_v56, 16 }
 0x3dd   : > { %v7751_v2 = vpop.f32.mrf.mxu3  ;;  %9379 = vmatpush.bf16.msrb.mxu1 %v13725_v55 }
 0x3de   : > { %v7503_v32 = vpop.f32.mrf.mxu2  ;;  %v17338_v24 = vadd.f32 %v7751_v2, %v7526_v33  ;;  %v7149_v14 = vadd.f32 %v17299_v8, %v6955_v6  ;;  %v8192_v8 = vsel %vm14142_vm4, %v8187_v10, %v8191_v46  ;;  %v8871_v33 = vsel %vm14142_vm4, %v8866_v16, %v17309_v13 }
 0x3df   : > { %v8225_v54 = vunpack.c.l.b16 %v8192_v8  ;;  %v8934_v19 = vunpack.c.l.b16 %v8871_v33  ;;  %v8441_v6 = vrot.slane %v17323_v9, 5  ;;  %v12790_v2 = vrot.slane %v8362_v40, 9  ;;  %v13764_v9 = vld [vmem:[%s18118_s3 + $0x178] sm:$0xff] }
 0x3e0   : > { %v7130_v1 = vpop.f32.mrf.mxu1  ;;  %v7527_v60 = vadd.f32 %v7503_v32, %v7149_v14  ;;  %v8713_v32 = vld [vmem:[#allocation3 + $0xbc] sm:$0x1]  ;;  %v8885_v31 = vrot.slane %v8883_v3, 4  ;;  %v8888_v10 = vrot.slane %v8886_v62, 5  ;;  %v8899_v14 = vor.u32 %v8898_v53, %v17355_v18  ;;  %10191 = vmatpush.bf16.msra.mxu0 %v13764_v9  ;;  %v13676_v3 = vld [vmem:[#allocation3 + $0x6c] sm:$0xff] }
 0x3e1   : > { %v8944_v61 = vpack.c.b16 %v8935_v27, %v8934_v19  ;;  %v8233_v30 = vpack.c.b16 %v8225_v54, %v8224_v59  ;;  %v8442_v52 = vsel %vm14151_vm5, %v8440_v37, %v8441_v6  ;;  %v8439_v55 = vsel %vm14151_vm5, %v12790_v2, %v8438_v57  ;;  %v13780_v57 = vld [vmem:[%s18118_s3 + $0x1b8] sm:$0xff]  ;;  %v9630_v54 = vld [vmem:[#allocation3 + $0x6c] sm:$0xf] }
 0x3e2   : > { %v8889_v12 = vor.u32 %v8888_v10, %v8885_v31  ;;  %v8900_v8 = vrot.slane %v8899_v14, 4  ;;  %v8474_v56 = vunpack.c.l.b16 %v8439_v55  ;;  %10385 = vmatpush.bf16.msra.mxu1 %v13780_v57  ;;  %v9655_v53 = vshrl.u32 %v9630_v54, 16 }
 0x3e3   : > { %8578 = vmatmul.bf16.gmra.mxu2 %v8482_v51  ;;  %v6934_v25 = vpop.f32.mrf.mxu0  ;;  %v8902_v51 = vshll.u32 %v8713_v32, 16 }
 0x3e4   : > { %v6956_v5 = vadd.f32 %v6934_v25, %v16892_v47  ;;  %v17378_v25 = vld [vmem:[#allocation3 + $0x70] sm:$0xf]  ;;  %10192 = vmatpush.bf16.msra.mxu0 %v13763_v29  ;;  %v17439_v29 = vld [vmem:[%s18119_s4] ss:$0 sm:$0xff] }
 0x3e5   : > { %v7753_v41 = vpop.f32.mrf.mxu3  ;;  %v8904_v33 = vrot.slane %v8902_v51, 5  ;;  %v9664_v37 = vshll.u32 %v17378_v25, 16 }
 0x3e6   : > { %v7506_v49 = vpop.f32.mrf.mxu2  ;;  %v17357_v34 = vadd.f32 %v7753_v41, %v7527_v60  ;;  %v7150_v13 = vadd.f32 %v17318_v50, %v6956_v5  ;;  %7950 = vmatmul.bf16.gmra.mxu0 %v13675_v20  ;;  %v13788_v50 = vld [vmem:[%s18118_s3 + $0x1f8] sm:$0xff]  ;;  %v8475_v60 = vunpack.c.l.b16 %v8442_v52  ;;  %v8890_v20 = vrot.slane %v8889_v12, 4 }
 0x3e7   : > { %10762 = vmatpush.bf16.msra.mxu2 %v13788_v50  ;;  %v8905_v27 = vsel %vm14142_vm4, %v8900_v8, %v8904_v33  ;;  %v17391_v6 = vrot.slane %v9664_v37, 5  ;;  %v13878_v50 = vld [vmem:[#allocation3 + $0x70] sm:$0xf]  ;;  %v9197_v8 = vld [vmem:[#allocation3 + $0x6c] sm:$0xe]  ;;  %v13779_v33 = vld [vmem:[%s18118_s3 + $0x1b0] sm:$0xff] }
 0x3e8   : > { %v7133_v47 = vpop.f32.mrf.mxu1  ;;  %v7528_v28 = vadd.f32 %v7506_v49, %v7150_v13  ;;  %v8483_v5 = vpack.c.b16 %v8475_v60, %v8474_v56  ;;  %v8895_v49 = vsel %vm14142_vm4, %v8890_v20, %v17355_v18  ;;  %v8937_v62 = vunpack.c.l.b16 %v8905_v27  ;;  %v17395_v18 = vld [vmem:[#allocation3 + $0x74] sm:$0x1]  ;;  %v9633_v27 = vld [vmem:[#allocation3 + $0x78] sm:$0xf]  ;;  %10386 = vmatpush.bf16.msra.mxu1 %v13779_v33 }
 0x3e9   : > { %v9658_v13 = vshll.u32 %v9630_v54, 16  ;;  %v8936_v2 = vunpack.c.l.b16 %v8895_v49  ;;  %v9229_v9 = vrot.slane %v13878_v50, 5  ;;  %v9674_v51 = vshll.u32 %v17395_v18, 16 }
 0x3ea   : > { %9040 = vmatmul.bf16.gmra.mxu3 %v8944_v61 }
 0x3eb   : > { %8333 = vmatmul.bf16.gmra.mxu1 %v8233_v30  ;;  %v6936_v7 = vpop.f32.mrf.mxu0  ;;  %v8945_v52 = vpack.c.b16 %v8937_v62, %v8936_v2  ;;  %v9660_v10 = vrot.slane %v9658_v13, 5  ;;  %v9679_v13 = vshrl.u32 %v9633_v27, 16 }
 0x3ec   : > { %v6957_v46 = vadd.f32 %v6936_v7, %v16939_v39  ;;  %v13795_v7 = vld [vmem:[%s18118_s3 + $0x230] sm:$0xff] }
 0x3ed   : > { %v7756_v16 = vpop.f32.mrf.mxu3  ;;  %11012 = vmatpush.bf16.msra.mxu3 %v13795_v7  ;;  %v9681_v7 = vrot.slane %v9679_v13, 4  ;;  %v9198_v13 = vld [vmem:[#allocation3 + $0x78] sm:$0xe] }
 0x3ee   : > { %v7508_v23 = vpop.f32.mrf.mxu2  ;;  %v17376_v22 = vadd.f32 %v7756_v16, %v7528_v28  ;;  %v7151_v58 = vadd.f32 %v7130_v1, %v6957_v46  ;;  %v9668_v1 = vshrl.u32 %v17378_v25, 16  ;;  %v17410_v16 = vld [vmem:[#allocation3 + $0x7c] sm:$0xf] }
 0x3ef   : > { %v9688_v54 = vshll.u32 %v17410_v16, 16  ;;  %v9692_v37 = vshrl.u32 %v17410_v16, 16 }
 0x3f0   : > { %v7135_v39 = vpop.f32.mrf.mxu1  ;;  %v7529_v63 = vadd.f32 %v7508_v23, %v7151_v58  ;;  %v9670_v61 = vrot.slane %v9668_v1, 4  ;;  %v9231_v58 = vrot.slane %v9229_v9, 4 }
 0x3f2   : > { %v9671_v14 = vor.u32 %v9670_v61, %v17391_v6  ;;  %v17430_v61 = vrot.slane %v9688_v54, 5 }
 0x3f3   : > { %8583 = vmatmul.bf16.gmra.mxu2 %v8483_v5  ;;  %v6939_v41 = vpop.f32.mrf.mxu0  ;;  %v13879_v5 = vld [vmem:[#allocation3 + $0x74] sm:$0x1] }
 0x3f4   : > { %v6958_v40 = vadd.f32 %v6939_v41, %v16984_v44  ;;  %v9657_v44 = vrot.slane %v9655_v53, 4  ;;  %v9672_v12 = vrot.slane %v9671_v14, 4  ;;  %v9232_v20 = vrot.slane %v13879_v5, 5  ;;  %v13733_v41 = vld [vmem:[#allocation3 + $0x6c] sm:$0xff] }
 0x3f5   : > { %v7758_v19 = vpop.f32.mrf.mxu3  ;;  %v13762_v5 = vld [vmem:[%s18118_s3 + $0x168] sm:$0xff] }
 0x3f6   : > { %v7511_v59 = vpop.f32.mrf.mxu2  ;;  %v17393_v28 = vadd.f32 %v7758_v19, %v7529_v63  ;;  %v7152_v30 = vadd.f32 %v7133_v47, %v6958_v40  ;;  %7955 = vmatmul.bf16.gmra.mxu0 %v13676_v3  ;;  %v13787_v47 = vld [vmem:[%s18118_s3 + $0x1f0] sm:$0xff]  ;;  %v9661_v60 = vor.u32 %v9660_v10, %v9657_v44  ;;  %v9676_v63 = vrot.slane %v9674_v51, 5 }
 0x3f7   : > { %10763 = vmatpush.bf16.msra.mxu2 %v13787_v47  ;;  %v12952_v40 = vrot.slane %v9197_v8, 9  ;;  %v9233_v3 = vsel %vm14151_vm5, %v9231_v58, %v9232_v20  ;;  %v9682_v19 = vshll.u32 %v9633_v27, 16  ;;  %v13880_v8 = vld [vmem:[#allocation3 + $0x7c] sm:$0xf]  ;;  %v13794_v20 = vld [vmem:[%s18118_s3 + $0x228] sm:$0xff]  ;;  %10193 = vmatpush.bf16.msra.mxu0 %v13762_v5 }
 0x3f8   : > { %v8299_v32 = vpop.f32.mrf.mxu1  ;;  %v7530_v31 = vadd.f32 %v7511_v59, %v7152_v30  ;;  %v9662_v49 = vrot.slane %v9661_v60, 4  ;;  %v9694_v30 = vrot.slane %v9692_v37, 4  ;;  %v9295_v44 = vunpack.c.l.b16 %v9233_v3  ;;  %11013 = vmatpush.bf16.msra.mxu3 %v13794_v20 }
 0x3f9   : > { %v9230_v53 = vsel %vm14151_vm5, %v12952_v40, %v9229_v9  ;;  %v9236_v58 = vrot.slane %v13880_v8, 5  ;;  %v10007_v8 = vld [vmem:[#allocation3 + $0x6c] sm:$0xe] }
 0x3fa   : > { %9045 = vmatmul.bf16.gmra.mxu3 %v8945_v52  ;;  %v9667_v62 = vsel %vm14142_vm4, %v9662_v49, %v17391_v6  ;;  %v13701_v52 = vld [vmem:[#allocation3 + $0x60] sm:$0xff]  ;;  %v9294_v50 = vunpack.c.l.b16 %v9230_v53 }
 0x3fb   : > { %9380 = vmatmul.bf16.vlgmr.msrb.gmra.mxu1 %v17148_v11  ;;  %v6941_v55 = vpop.f32.mrf.mxu0  ;;  %v9862_v14 = vunpack.c.l.b16 %v9667_v62  ;;  %v9238_v3 = vrot.slane %v9236_v58, 4 }
 0x3fc   : > { %v6959_v46 = vadd.f32 %v6941_v55, %v17023_v36  ;;  %v9684_v55 = vrot.slane %v9682_v19, 5 }
 0x3fd   : > { %v7761_v11 = vpop.f32.mrf.mxu3 }
 0x3fe   : > { %v7513_v23 = vpop.f32.mrf.mxu2  ;;  %v17412_v56 = vadd.f32 %v7761_v11, %v7530_v31  ;;  %v7153_v57 = vadd.f32 %v7135_v39, %v6959_v46  ;;  %v9677_v39 = vsel %vm14142_vm4, %v9672_v12, %v9676_v63  ;;  %v9695_v46 = vor.u32 %v9694_v30, %v17430_v61  ;;  %v13786_v63 = vld [vmem:[%s18118_s3 + $0x1e8] sm:$0xff]  ;;  %v13881_v30 = vld [vmem:[#allocation3 + $0x80] sm:$0x1] }
 0x3ff   : > { %v9863_v31 = vunpack.c.l.b16 %v9677_v39  ;;  %v9685_v33 = vor.u32 %v9684_v55, %v9681_v7  ;;  %10764 = vmatpush.bf16.msra.mxu2 %v13786_v63  ;;  %v13702_v63 = vld [vmem:[#allocation3 + $0x6c] sm:$0xff] }
 0x400   : > { %v17417_v36 = vpop.f32.mrf.mxu1  ;;  %v7531_v1 = vadd.f32 %v7513_v23, %v7153_v57  ;;  %v9309_v23 = vpack.c.b16 %v9295_v44, %v9294_v50  ;;  %v9696_v54 = vrot.slane %v9695_v46, 4  ;;  %v12953_v50 = vrot.slane %v9198_v13, 9 }
 0x401   : > { %v9878_v60 = vpack.c.b16 %v9863_v31, %v9862_v14  ;;  %v9686_v53 = vrot.slane %v9685_v33, 4  ;;  %v13734_v14 = vld [vmem:[#allocation3 + $0x78] sm:$0xff] }
 0x403   : > { %9573 = vmatmul.bf16.vlgmr.msrb.gmra.mxu2 %v13733_v41  ;;  %v7921_v59 = vpop.f32.mrf.mxu0  ;;  %v9637_v41 = vld [vmem:[#allocation3 + $0x88] sm:$0xf] }
 0x404   : > { %v7961_v2 = vadd.f32 %v7921_v59, %v17055_v43  ;;  %v17441_v43 = vld [vmem:[#allocation3 + $0x80] sm:$0x1]  ;;  %v9712_v31 = vshll.u32 %v9637_v41, 16  ;;  %v9716_v44 = vshrl.u32 %v9637_v41, 16 }
 0x405   : > { %v7763_v10 = vpop.f32.mrf.mxu3  ;;  %v9698_v12 = vshll.u32 %v17441_v43, 16 }
 0x406   : > { %v8549_v6 = vpop.f32.mrf.mxu2  ;;  %v17434_v47 = vadd.f32 %v7763_v10, %v7531_v1  ;;  %v8339_v9 = vadd.f32 %v8299_v32, %v7961_v2  ;;  %9155 = vmatmul.bf16.vlgmr.msrb.gmra.mxu0 %v13701_v52  ;;  %v8605_v32 = vld [vmem:[%s14256_s9] sm:$0xff]  ;;  %v9239_v2 = vrot.slane %v13881_v30, 5  ;;  %v9636_v52 = vld [vmem:[#allocation3 + $0x84] sm:$0xf] }
 0x407   : > { %v9700_v39 = vrot.slane %v9698_v12, 5  ;;  %v9703_v46 = vshrl.u32 %v9636_v52, 16  ;;  %v9718_v12 = vrot.slane %v9716_v44, 4  ;;  %v13785_v44 = vld [vmem:[%s18118_s3 + $0x1e0] sm:$0xff] }
 0x408   : > { %v17443_v51 = vpop.f32.mrf.mxu1  ;;  %v8589_v11 = vadd.f32 %v8549_v6, %v8339_v9  ;;  %v9691_v6 = vsel %vm14142_vm4, %v9686_v53, %v17430_v61  ;;  %v9240_v9 = vsel %vm14151_vm5, %v9238_v3, %v9239_v2  ;;  %v10041_v61 = vrot.slane %v17378_v25, 5  ;;  %v9638_v25 = vld [vmem:[#allocation3 + $0x8c] sm:$0x1]  ;;  %v8607_v2 = vld [vmem:[%s14256_s9 + $0x10] sm:$0xff]  ;;  %10765 = vmatpush.bf16.msra.mxu2 %v13785_v44 }
 0x409   : > { %v9701_v19 = vsel %vm14142_vm4, %v9696_v54, %v9700_v39  ;;  %v9864_v5 = vunpack.c.l.b16 %v9691_v6  ;;  %v9297_v20 = vunpack.c.l.b16 %v9240_v9  ;;  %v13135_v39 = vrot.slane %v10007_v8, 9  ;;  %v9640_v8 = vld [vmem:[#allocation3 + $0x94] sm:$0xf]  ;;  %v13703_v44 = vld [vmem:[#allocation3 + $0x78] sm:$0xff] }
 0x40a   : > { %9950 = vmatmul.bf16.vlgmr.msrb.gmra.mxu3 %v9878_v60  ;;  %v8625_v57 = vadd.f32 %v17439_v29, %v8589_v11  ;;  %v9865_v55 = vunpack.c.l.b16 %v9701_v19  ;;  %v9706_v60 = vshll.u32 %v9636_v52, 16  ;;  %v13882_v19 = vld [vmem:[#allocation3 + $0x88] sm:$0xf]  ;;  %v9722_v52 = vshll.u32 %v9638_v25, 16 }
 0x40b   : > { %9385 = vmatmul.bf16.gmra.mxu1 %v9309_v23  ;;  %v7923_v27 = vpop.f32.mrf.mxu0  ;;  %v9237_v23 = vsel %vm14151_vm5, %v12953_v50, %v9236_v58  ;;  %v9243_v30 = vrot.slane %v13882_v19, 5  ;;  %v9740_v25 = vshrl.u32 %v9640_v8, 16 }
 0x40c   : > { %v8641_v37 = vadd.f32 %v8625_v57, %v8605_v32  ;;  %v7962_v1 = vadd.f32 %v7923_v27, %v17088_v38  ;;  %v13778_v38 = vld [vmem:[%s18118_s3 + $0x1a8] sm:$0xff]  ;;  %v17483_v32 = vrot.slane %v9712_v31, 5  ;;  %v9879_v41 = vpack.c.b16 %v9865_v55, %v9864_v5 }
 0x40d   : > { %v17461_v49 = vpop.f32.mrf.mxu3  ;;  %10387 = vmatpush.bf16.msra.mxu1 %v13778_v38 }
 0x40e   : > { %v8551_v40 = vpop.f32.mrf.mxu2  ;;  %8657 = vst [vmem:[%s17463_s12] sm:$0xff] %v8641_v37  ;;  %v8340_v62 = vadd.f32 %v17417_v36, %v7962_v1  ;;  %v8606_v36 = vld [vmem:[%s14256_s9 + $0x8] sm:$0xff]  ;;  %v10043_v37 = vrot.slane %v10041_v61, 4  ;;  %v10044_v1 = vrot.slane %v17395_v18, 5  ;;  %v9719_v53 = vor.u32 %v9718_v12, %v17483_v32 }
 0x40f   : > { %v9724_v12 = vrot.slane %v9722_v52, 5 }
 0x410   : > { %v17472_v59 = vpop.f32.mrf.mxu1  ;;  %v8590_v10 = vadd.f32 %v8551_v40, %v8340_v62  ;;  %v9296_v40 = vunpack.c.l.b16 %v9237_v23  ;;  %v9708_v62 = vrot.slane %v9706_v60, 5  ;;  %v10045_v13 = vsel %vm14151_vm5, %v10043_v37, %v10044_v1 }
 0x411   : > { %v9720_v50 = vrot.slane %v9719_v53, 4  ;;  %v10112_v60 = vunpack.c.l.b16 %v10045_v13 }
 0x412   : > { %v8626_v7 = vadd.f32 %v17439_v29, %v8590_v10  ;;  %v9310_v18 = vpack.c.b16 %v9297_v20, %v9296_v40  ;;  %v13761_v10 = vld [vmem:[%s18118_s3 + $0x160] sm:$0xff]  ;;  %v9736_v40 = vshll.u32 %v9640_v8, 16 }
 0x413   : > { %9578 = vmatmul.bf16.gmra.mxu2 %v13734_v14  ;;  %v7926_v11 = vpop.f32.mrf.mxu0  ;;  %v13793_v14 = vld [vmem:[%s18118_s3 + $0x220] sm:$0xff]  ;;  %10194 = vmatpush.bf16.msra.mxu0 %v13761_v10 }
 0x414   : > { %v8642_v57 = vadd.f32 %v8626_v7, %v8606_v36  ;;  %v7963_v33 = vadd.f32 %v7926_v11, %v17121_v35  ;;  %v9705_v35 = vrot.slane %v9703_v46, 4  ;;  %v9245_v46 = vrot.slane %v9243_v30, 4  ;;  %11014 = vmatpush.bf16.msra.mxu3 %v13793_v14  ;;  %v8609_v8 = vld [vmem:[%s14256_s9 + $0x20] sm:$0xff] }
 0x415   : > { %v17487_v27 = vpop.f32.mrf.mxu3  ;;  %v17532_v10 = vrot.slane %v9736_v40, 5  ;;  %v9742_v14 = vrot.slane %v9740_v25, 4 }
 0x416   : > { %v8554_v54 = vpop.f32.mrf.mxu2  ;;  %8658 = vst [vmem:[%s17463_s12 + $0x8] sm:$0xff] %v8642_v57  ;;  %v8341_v58 = vadd.f32 %v17443_v51, %v7963_v33  ;;  %9160 = vmatmul.bf16.gmra.mxu0 %v13702_v63  ;;  %v10042_v51 = vsel %vm14151_vm5, %v13135_v39, %v10041_v61  ;;  %v9709_v6 = vor.u32 %v9708_v62, %v9705_v35  ;;  %v9199_v57 = vld [vmem:[#allocation3 + $0x84] sm:$0xe]  ;;  %v13883_v33 = vld [vmem:[#allocation3 + $0x8c] sm:$0x1] }
 0x417   : > { %v10111_v9 = vunpack.c.l.b16 %v10042_v51  ;;  %v9246_v63 = vrot.slane %v13883_v33, 5  ;;  %v8608_v39 = vld [vmem:[%s14256_s9 + $0x18] sm:$0xff]  ;;  %v12954_v35 = vrot.slane %v9199_v57, 9  ;;  %v13884_v57 = vld [vmem:[#allocation3 + $0x94] sm:$0xf] }
 0x418   : > { %v17492_v3 = vpop.f32.mrf.mxu1  ;;  %v8591_v38 = vadd.f32 %v8554_v54, %v8341_v58  ;;  %v9710_v20 = vrot.slane %v9709_v6, 4  ;;  %v9725_v54 = vsel %vm14142_vm4, %v9720_v50, %v9724_v12  ;;  %v13735_v58 = vld [vmem:[#allocation3 + $0x84] sm:$0xff]  ;;  %v9743_v12 = vor.u32 %v9742_v14, %v17532_v10 }
 0x419   : > { %v17518_v5 = vpack.c.b16 %v10112_v60, %v10111_v9  ;;  %v9867_v13 = vunpack.c.l.b16 %v9725_v54  ;;  %v9641_v9 = vld [vmem:[#allocation3 + $0x98] sm:$0x1]  ;;  %v9250_v33 = vrot.slane %v13884_v57, 5 }
 0x41a   : > { %9955 = vmatmul.bf16.gmra.mxu3 %v9879_v41  ;;  %v8627_v31 = vadd.f32 %v17439_v29, %v8591_v38  ;;  %v9639_v41 = vld [vmem:[#allocation3 + $0x90] sm:$0xf]  ;;  %v9715_v53 = vsel %vm14142_vm4, %v9710_v20, %v17483_v32  ;;  %v13792_v20 = vld [vmem:[%s18118_s3 + $0x218] sm:$0xff] }
 0x41b   : > { %9390 = vmatmul.bf16.gmra.mxu1 %v9310_v18  ;;  %v7928_v36 = vpop.f32.mrf.mxu0  ;;  %v9244_v18 = vsel %vm14151_vm5, %v12954_v35, %v9243_v30  ;;  %v9727_v51 = vshrl.u32 %v9639_v41, 16  ;;  %v9866_v6 = vunpack.c.l.b16 %v9715_v53  ;;  %v9252_v35 = vrot.slane %v9250_v33, 4  ;;  %11015 = vmatpush.bf16.msra.mxu3 %v13792_v20  ;;  %v9200_v53 = vld [vmem:[#allocation3 + $0x90] sm:$0xe] }
 0x41c   : > { %v8643_v7 = vadd.f32 %v8627_v31, %v8607_v2  ;;  %v7964_v55 = vadd.f32 %v7928_v36, %v17154_v42  ;;  %v13777_v42 = vld [vmem:[%s18118_s3 + $0x1a0] sm:$0xff]  ;;  %v9730_v2 = vshll.u32 %v9639_v41, 16  ;;  %v9298_v30 = vunpack.c.l.b16 %v9244_v18  ;;  %v13885_v18 = vld [vmem:[#allocation3 + $0x98] sm:$0x1] }
 0x41d   : > { %v17511_v11 = vpop.f32.mrf.mxu3  ;;  %10388 = vmatpush.bf16.msra.mxu1 %v13777_v42  ;;  %v13760_v42 = vld [vmem:[%s18118_s3 + $0x158] sm:$0xff]  ;;  %v9744_v41 = vrot.slane %v9743_v12, 4 }
 0x41e   : > { %v8556_v23 = vpop.f32.mrf.mxu2  ;;  %8659 = vst [vmem:[%s17463_s12 + $0x10] sm:$0xff] %v8643_v7  ;;  %v8342_v61 = vadd.f32 %v17472_v59, %v7964_v55  ;;  %v9247_v59 = vsel %vm14151_vm5, %v9245_v46, %v9246_v63  ;;  %v9880_v7 = vpack.c.b16 %v9867_v13, %v9866_v6  ;;  %v9729_v46 = vrot.slane %v9727_v51, 4  ;;  %10195 = vmatpush.bf16.msra.mxu0 %v13760_v42  ;;  %v9643_v13 = vld [vmem:[#allocation3 + $0xa0] sm:$0xf]  ;;  %v9642_v51 = vld [vmem:[#allocation3 + $0x9c] sm:$0xf] }
 0x41f   : > { %v9299_v19 = vunpack.c.l.b16 %v9247_v59  ;;  %v12955_v6 = vrot.slane %v9200_v53, 9 }
 0x420   : > { %v8311_v37 = vpop.f32.mrf.mxu1  ;;  %v8592_v1 = vadd.f32 %v8556_v23, %v8342_v61  ;;  %v9732_v23 = vrot.slane %v9730_v2, 5  ;;  %v9746_v61 = vshll.u32 %v9641_v9, 16  ;;  %v10048_v2 = vrot.slane %v17410_v16, 5 }
 0x421   : > { %v9311_v60 = vpack.c.b16 %v9299_v19, %v9298_v30  ;;  %v9253_v19 = vrot.slane %v13885_v18, 5  ;;  %v9764_v30 = vshrl.u32 %v9643_v13, 16 }
 0x422   : > { %v8628_v62 = vadd.f32 %v17439_v29, %v8592_v1  ;;  %v9733_v59 = vor.u32 %v9732_v23, %v9729_v46  ;;  %v10008_v46 = vld [vmem:[#allocation3 + $0x78] sm:$0xe]  ;;  %v9754_v23 = vshll.u32 %v9642_v51, 16  ;;  %v10050_v12 = vrot.slane %v10048_v2, 4 }
 0x423   : > { %9583 = vmatmul.bf16.gmra.mxu2 %v13735_v58  ;;  %v7931_v38 = vpop.f32.mrf.mxu0 }
 0x424   : > { %v8644_v52 = vadd.f32 %v8628_v62, %v8608_v39  ;;  %v7965_v31 = vadd.f32 %v7931_v38, %v17185_v26  ;;  %v9748_v39 = vrot.slane %v9746_v61, 5  ;;  %v13776_v38 = vld [vmem:[%s18118_s3 + $0x198] sm:$0xff] }
 0x425   : > { %v17534_v36 = vpop.f32.mrf.mxu3  ;;  %10389 = vmatpush.bf16.msra.mxu1 %v13776_v38  ;;  %v9644_v38 = vld [vmem:[#allocation3 + $0xa4] sm:$0x1] }
 0x426   : > { %v8559_v32 = vpop.f32.mrf.mxu2  ;;  %8660 = vst [vmem:[%s17463_s12 + $0x18] sm:$0xff] %v8644_v52  ;;  %v8343_v50 = vadd.f32 %v17492_v3, %v7965_v31  ;;  %9165 = vmatmul.bf16.gmra.mxu0 %v13703_v44  ;;  %v13784_v3 = vld [vmem:[%s18118_s3 + $0x1d8] sm:$0xff]  ;;  %v13736_v31 = vld [vmem:[#allocation3 + $0x90] sm:$0xff]  ;;  %v9734_v44 = vrot.slane %v9733_v59, 4  ;;  %v9749_v14 = vsel %vm14142_vm4, %v9744_v41, %v9748_v39  ;;  %v9756_v39 = vrot.slane %v9754_v23, 5 }
 0x427   : > { %10766 = vmatpush.bf16.msra.mxu2 %v13784_v3  ;;  %v9869_v3 = vunpack.c.l.b16 %v9749_v14  ;;  %v13791_v14 = vld [vmem:[%s18118_s3 + $0x210] sm:$0xff] }
 0x428   : > { %v17538_v55 = vpop.f32.mrf.mxu1  ;;  %v8593_v26 = vadd.f32 %v8559_v32, %v8343_v50  ;;  %v9254_v32 = vsel %vm14151_vm5, %v9252_v35, %v9253_v19  ;;  %v9760_v50 = vshll.u32 %v9643_v13, 16  ;;  %v9739_v16 = vsel %vm14142_vm4, %v9734_v44, %v17532_v10  ;;  %v8611_v19 = vld [vmem:[%s14256_s9 + $0x30] sm:$0xff]  ;;  %11016 = vmatpush.bf16.msra.mxu3 %v13791_v14 }
 0x429   : > { %v9301_v42 = vunpack.c.l.b16 %v9254_v32  ;;  %v9868_v59 = vunpack.c.l.b16 %v9739_v16  ;;  %v13783_v44 = vld [vmem:[%s18118_s3 + $0x1d0] sm:$0xff]  ;;  %v17600_v16 = vld [vmem:[#allocation3 + $0xac] sm:$0xf] }
 0x42a   : > { %9960 = vmatmul.bf16.gmra.mxu3 %v9880_v7  ;;  %v8629_v63 = vadd.f32 %v17439_v29, %v8593_v26  ;;  %v9751_v7 = vshrl.u32 %v9642_v51, 16 }
 0x42b   : > { %9395 = vmatmul.bf16.gmra.mxu1 %v9311_v60  ;;  %v7933_v54 = vpop.f32.mrf.mxu0  ;;  %v9251_v60 = vsel %vm14151_vm5, %v12955_v6, %v9250_v33  ;;  %10767 = vmatpush.bf16.msra.mxu2 %v13783_v44 }
 0x42c   : > { %v8645_v1 = vadd.f32 %v8629_v63, %v8609_v8  ;;  %v7966_v58 = vadd.f32 %v7933_v54, %v17211_v21  ;;  %v10051_v8 = vrot.slane %v17441_v43, 5  ;;  %v13704_v63 = vld [vmem:[#allocation3 + $0x84] sm:$0xff]  ;;  %v17577_v54 = vrot.slane %v9760_v50, 5 }
 0x42d   : > { %v17553_v40 = vpop.f32.mrf.mxu3  ;;  %v9770_v50 = vshll.u32 %v9644_v38, 16 }
 0x42e   : > { %v8561_v25 = vpop.f32.mrf.mxu2  ;;  %8661 = vst [vmem:[%s17463_s12 + $0x20] sm:$0xff] %v8645_v1  ;;  %v8344_v62 = vadd.f32 %v8311_v37, %v7966_v58  ;;  %v8610_v37 = vld [vmem:[%s14256_s9 + $0x28] sm:$0xff]  ;;  %v9766_v1 = vrot.slane %v9764_v30, 4  ;;  %v13136_v58 = vrot.slane %v10008_v46, 9  ;;  %v10052_v33 = vsel %vm14151_vm5, %v10050_v12, %v10051_v8  ;;  %v9201_v8 = vld [vmem:[#allocation3 + $0x9c] sm:$0xe] }
 0x42f   : > { %v10114_v18 = vunpack.c.l.b16 %v10052_v33  ;;  %v13737_v33 = vld [vmem:[#allocation3 + $0x9c] sm:$0xff] }
 0x430   : > { %v17559_v21 = vpop.f32.mrf.mxu1  ;;  %v8594_v52 = vadd.f32 %v8561_v25, %v8344_v62  ;;  %v9753_v25 = vrot.slane %v9751_v7, 4  ;;  %v10049_v35 = vsel %vm14151_vm5, %v13136_v58, %v10048_v2  ;;  %v9881_v62 = vpack.c.b16 %v9869_v3, %v9868_v59  ;;  %v13759_v2 = vld [vmem:[%s18118_s3 + $0x150] sm:$0xff] }
 0x431   : > { %v9767_v51 = vor.u32 %v9766_v1, %v17577_v54  ;;  %10196 = vmatpush.bf16.msra.mxu0 %v13759_v2  ;;  %v9788_v1 = vshrl.u32 %v17600_v16, 16 }
 0x432   : > { %v8630_v9 = vadd.f32 %v17439_v29, %v8594_v52  ;;  %v13886_v52 = vld [vmem:[#allocation3 + $0xa0] sm:$0xf]  ;;  %v9757_v32 = vor.u32 %v9756_v39, %v9753_v25 }
 0x433   : > { %9588 = vmatmul.bf16.gmra.mxu2 %v13736_v31  ;;  %v7936_v26 = vpop.f32.mrf.mxu0 }
 0x434   : > { %v8646_v61 = vadd.f32 %v8630_v9, %v8610_v37  ;;  %v7967_v57 = vadd.f32 %v7936_v26, %v17239_v0  ;;  %v9300_v0 = vunpack.c.l.b16 %v9251_v60  ;;  %v10113_v37 = vunpack.c.l.b16 %v10049_v35 }
 0x435   : > { %v17575_v20 = vpop.f32.mrf.mxu3  ;;  %v9768_v60 = vrot.slane %v9767_v51, 4 }
 0x436   : > { %v8564_v10 = vpop.f32.mrf.mxu2  ;;  %8662 = vst [vmem:[%s17463_s12 + $0x28] sm:$0xff] %v8646_v61  ;;  %v8345_v43 = vadd.f32 %v17538_v55, %v7967_v57  ;;  %9170 = vmatmul.bf16.gmra.mxu0 %v13704_v63  ;;  %v9312_v13 = vpack.c.b16 %v9301_v42, %v9300_v0  ;;  %v9257_v55 = vrot.slane %v13886_v52, 5  ;;  %v17602_v7 = vpack.c.b16 %v10114_v18, %v10113_v37  ;;  %v13887_v63 = vld [vmem:[#allocation3 + $0xa4] sm:$0x1]  ;;  %v9645_v42 = vld [vmem:[#allocation3 + $0xa8] sm:$0xf] }
 0x437   : > { %v9772_v61 = vrot.slane %v9770_v50, 5  ;;  %v9260_v3 = vrot.slane %v13887_v63, 5  ;;  %v12956_v0 = vrot.slane %v9201_v8, 9  ;;  %v9778_v38 = vshll.u32 %v9645_v42, 16  ;;  %v13782_v63 = vld [vmem:[%s18118_s3 + $0x1c8] sm:$0xff] }
 0x438   : > { %v17583_v41 = vpop.f32.mrf.mxu1  ;;  %v8595_v53 = vadd.f32 %v8564_v10, %v8345_v43  ;;  %v9259_v23 = vrot.slane %v9257_v55, 4  ;;  %v9784_v10 = vshll.u32 %v17600_v16, 16  ;;  %v9758_v43 = vrot.slane %v9757_v32, 4  ;;  %v17633_v32 = vld [vmem:[#allocation3 + $0xb0] sm:$0x1]  ;;  %10768 = vmatpush.bf16.msra.mxu2 %v13782_v63 }
 0x439   : > { %v9773_v59 = vsel %vm14142_vm4, %v9768_v60, %v9772_v61  ;;  %v9794_v61 = vshll.u32 %v17633_v32, 16 }
 0x43a   : > { %9965 = vmatmul.bf16.gmra.mxu3 %v9881_v62  ;;  %v8631_v31 = vadd.f32 %v17439_v29, %v8595_v53  ;;  %v9261_v25 = vsel %vm14151_vm5, %v9259_v23, %v9260_v3  ;;  %v9763_v35 = vsel %vm14142_vm4, %v9758_v43, %v17577_v54  ;;  %v9775_v62 = vshrl.u32 %v9645_v42, 16  ;;  %v13758_v3 = vld [vmem:[%s18118_s3 + $0x148] sm:$0xff] }
 0x43b   : > { %9400 = vmatmul.bf16.gmra.mxu1 %v9312_v13  ;;  %v7938_v6 = vpop.f32.mrf.mxu0  ;;  %v9258_v13 = vsel %vm14151_vm5, %v12956_v0, %v9257_v55  ;;  %v17626_v18 = vrot.slane %v9784_v10, 5  ;;  %v9871_v44 = vunpack.c.l.b16 %v9773_v59  ;;  %v9303_v2 = vunpack.c.l.b16 %v9261_v25  ;;  %v13790_v42 = vld [vmem:[%s18118_s3 + $0x208] sm:$0xff]  ;;  %10197 = vmatpush.bf16.msra.mxu0 %v13758_v3 }
 0x43c   : > { %v8647_v30 = vadd.f32 %v8631_v31, %v8611_v19  ;;  %v7968_v9 = vadd.f32 %v7938_v6, %v17267_v15  ;;  %v13775_v15 = vld [vmem:[%s18118_s3 + $0x190] sm:$0xff]  ;;  %v9790_v19 = vrot.slane %v9788_v1, 4  ;;  %v13705_v31 = vld [vmem:[#allocation3 + $0x90] sm:$0xff]  ;;  %v9870_v6 = vunpack.c.l.b16 %v9763_v35  ;;  %11017 = vmatpush.bf16.msra.mxu3 %v13790_v42 }
 0x43d   : > { %v17604_v46 = vpop.f32.mrf.mxu3  ;;  %10390 = vmatpush.bf16.msra.mxu1 %v13775_v15  ;;  %v9302_v55 = vunpack.c.l.b16 %v9258_v13  ;;  %v8613_v15 = vld [vmem:[%s14256_s9 + $0x40] sm:$0xff]  ;;  %v9796_v25 = vrot.slane %v9794_v61, 5 }
 0x43e   : > { %v8566_v26 = vpop.f32.mrf.mxu2  ;;  %8663 = vst [vmem:[%s17463_s12 + $0x30] sm:$0xff] %v8647_v30  ;;  %v8346_v12 = vadd.f32 %v17559_v21, %v7968_v9  ;;  %v8612_v21 = vld [vmem:[%s14256_s9 + $0x38] sm:$0xff]  ;;  %v9777_v30 = vrot.slane %v9775_v62, 4  ;;  %v9780_v9 = vrot.slane %v9778_v38, 5  ;;  %v9202_v62 = vld [vmem:[#allocation3 + $0xa8] sm:$0xe] }
 0x43f   : > { %v9313_v23 = vpack.c.b16 %v9303_v2, %v9302_v55  ;;  %v9648_v2 = vld [vmem:[#allocation3 + $0xb4] sm:$0xf] }
 0x440   : > { %v17611_v57 = vpop.f32.mrf.mxu1  ;;  %v8596_v58 = vadd.f32 %v8566_v26, %v8346_v12  ;;  %v9882_v26 = vpack.c.b16 %v9871_v44, %v9870_v6  ;;  %v13888_v12 = vld [vmem:[#allocation3 + $0xac] sm:$0xf]  ;;  %v9781_v1 = vor.u32 %v9780_v9, %v9777_v30  ;;  %v12957_v6 = vrot.slane %v9202_v62, 9  ;;  %v8615_v62 = vld [vmem:[%s14256_s9 + $0x50] sm:$0xff] }
 0x441   : > { %v9264_v8 = vrot.slane %v13888_v12, 5  ;;  %v9802_v12 = vshll.u32 %v9648_v2, 16 }
 0x442   : > { %v8632_v39 = vadd.f32 %v17439_v29, %v8596_v58  ;;  %v9782_v38 = vrot.slane %v9781_v1, 4 }
 0x443   : > { %9593 = vmatmul.bf16.gmra.mxu2 %v13737_v33  ;;  %v7941_v53 = vpop.f32.mrf.mxu0 }
 0x444   : > { %v8648_v51 = vadd.f32 %v8632_v39, %v8612_v21  ;;  %v7969_v52 = vadd.f32 %v7941_v53, %v17289_v17  ;;  %v9791_v17 = vor.u32 %v9790_v19, %v17626_v18  ;;  %v9266_v21 = vrot.slane %v9264_v8, 4  ;;  %v17653_v39 = vld [vmem:[#allocation3 + $0xb8] sm:$0xf]  ;;  %v13889_v53 = vld [vmem:[#allocation3 + $0xb0] sm:$0x1] }
 0x445   : > { %v17629_v14 = vpop.f32.mrf.mxu3  ;;  %v9267_v13 = vrot.slane %v13889_v53, 5  ;;  %v9787_v30 = vsel %vm14142_vm4, %v9782_v38, %v17626_v18  ;;  %v13781_v38 = vld [vmem:[%s18118_s3 + $0x1c0] sm:$0xff] }
 0x446   : > { %v8569_v37 = vpop.f32.mrf.mxu2  ;;  %8664 = vst [vmem:[%s17463_s12 + $0x38] sm:$0xff] %v8648_v51  ;;  %v8347_v54 = vadd.f32 %v17583_v41, %v7969_v52  ;;  %9175 = vmatmul.bf16.gmra.mxu0 %v13705_v31  ;;  %v9792_v58 = vrot.slane %v9791_v17, 4  ;;  %v13738_v31 = vld [vmem:[#allocation3 + $0xa8] sm:$0xff]  ;;  %10769 = vmatpush.bf16.msra.mxu2 %v13781_v38  ;;  %v17722_v38 = vld [vmem:[#allocation3 + $0x7c] sm:$0xf] }
 0x447   : > { %v9268_v44 = vsel %vm14151_vm5, %v9266_v21, %v9267_v13  ;;  %v13890_v13 = vld [vmem:[#allocation3 + $0xb8] sm:$0xf] }
 0x448   : > { %v17635_v50 = vpop.f32.mrf.mxu1  ;;  %v8597_v60 = vadd.f32 %v8569_v37, %v8347_v54  ;;  %v9797_v19 = vsel %vm14142_vm4, %v9792_v58, %v9796_v25  ;;  %v9812_v37 = vshrl.u32 %v17653_v39, 16  ;;  %v8614_v54 = vld [vmem:[%s14256_s9 + $0x48] sm:$0xff]  ;;  %v17680_v58 = vld [vmem:[#allocation3 + $0xbc] sm:$0x1]  ;;  %v9804_v25 = vrot.slane %v9802_v12, 5 }
 0x449   : > { %v9873_v9 = vunpack.c.l.b16 %v9797_v19  ;;  %v9818_v53 = vshll.u32 %v17680_v58, 16  ;;  %v13757_v19 = vld [vmem:[%s18118_s3 + $0x140] sm:$0xff] }
 0x44a   : > { %9970 = vmatmul.bf16.gmra.mxu3 %v9882_v26  ;;  %v8633_v41 = vadd.f32 %v17439_v29, %v8597_v60  ;;  %v9265_v26 = vsel %vm14151_vm5, %v12957_v6, %v9264_v8  ;;  %v9305_v60 = vunpack.c.l.b16 %v9268_v44  ;;  %v9814_v3 = vrot.slane %v9812_v37, 4  ;;  %10198 = vmatpush.bf16.msra.mxu0 %v13757_v19 }
 0x44b   : > { %9405 = vmatmul.bf16.gmra.mxu1 %v9313_v23  ;;  %v7943_v10 = vpop.f32.mrf.mxu0  ;;  %v9799_v23 = vshrl.u32 %v9648_v2, 16  ;;  %v9304_v8 = vunpack.c.l.b16 %v9265_v26  ;;  %v17701_v26 = vld [vmem:[#allocation3 + $0xc4] sm:$0xf] }
 0x44c   : > { %v8649_v33 = vadd.f32 %v8633_v41, %v8613_v15  ;;  %v7970_v43 = vadd.f32 %v7943_v10, %v17311_v4  ;;  %v13774_v4 = vld [vmem:[%s18118_s3 + $0x188] sm:$0xff]  ;;  %v13706_v41 = vld [vmem:[#allocation3 + $0x9c] sm:$0xff]  ;;  %v9872_v10 = vunpack.c.l.b16 %v9787_v30 }
 0x44d   : > { %v17651_v59 = vpop.f32.mrf.mxu3  ;;  %10391 = vmatpush.bf16.msra.mxu1 %v13774_v4  ;;  %v9271_v4 = vrot.slane %v13890_v13, 5 }
 0x44e   : > { %v8571_v0 = vpop.f32.mrf.mxu2  ;;  %8665 = vst [vmem:[%s17463_s12 + $0x40] sm:$0xff] %v8649_v33  ;;  %v8348_v35 = vadd.f32 %v17611_v57, %v7970_v43  ;;  %v9808_v57 = vshll.u32 %v17653_v39, 16  ;;  %v9883_v33 = vpack.c.b16 %v9873_v9, %v9872_v10  ;;  %v8616_v10 = vld [vmem:[%s14256_s9 + $0x58] sm:$0xff] }
 0x44f   : > { %v9273_v30 = vrot.slane %v9271_v4, 4 }
 0x450   : > { %v8326_v51 = vpop.f32.mrf.mxu1  ;;  %v8598_v52 = vadd.f32 %v8571_v0, %v8348_v35  ;;  %v17674_v63 = vrot.slane %v9808_v57, 5  ;;  %v9314_v0 = vpack.c.b16 %v9305_v60, %v9304_v8  ;;  %v9836_v8 = vshrl.u32 %v17701_v26, 16 }
 0x452   : > { %v8634_v55 = vadd.f32 %v17439_v29, %v8598_v52  ;;  %v9815_v35 = vor.u32 %v9814_v3, %v17674_v63  ;;  %v13789_v52 = vld [vmem:[%s18118_s3 + $0x200] sm:$0xff] }
 0x453   : > { %9598 = vmatmul.bf16.gmra.mxu2 %v13738_v31  ;;  %v7946_v17 = vpop.f32.mrf.mxu0  ;;  %11018 = vmatpush.bf16.msra.mxu3 %v13789_v52 }
 0x454   : > { %v8650_v15 = vadd.f32 %v8634_v55, %v8614_v54  ;;  %v7971_v61 = vadd.f32 %v7946_v17, %v17338_v24  ;;  %v9801_v24 = vrot.slane %v9799_v23, 4  ;;  %v9816_v37 = vrot.slane %v9815_v35, 4  ;;  %v9203_v17 = vld [vmem:[#allocation3 + $0xb4] sm:$0xe]  ;;  %v13891_v23 = vld [vmem:[#allocation3 + $0xbc] sm:$0x1] }
 0x455   : > { %v17676_v42 = vpop.f32.mrf.mxu3  ;;  %v9820_v55 = vrot.slane %v9818_v53, 5  ;;  %v9274_v12 = vrot.slane %v13891_v23, 5  ;;  %v13707_v53 = vld [vmem:[#allocation3 + $0xa8] sm:$0xff]  ;;  %v10488_v23 = vshrl.u32 %v17722_v38, 16 }
 0x456   : > { %v8574_v18 = vpop.f32.mrf.mxu2  ;;  %8666 = vst [vmem:[%s17463_s12 + $0x48] sm:$0xff] %v8650_v15  ;;  %v8349_v1 = vadd.f32 %v17635_v50, %v7971_v61  ;;  %9180 = vmatmul.bf16.gmra.mxu0 %v13706_v41  ;;  %v9805_v57 = vor.u32 %v9804_v25, %v9801_v24  ;;  %v13739_v61 = vld [vmem:[#allocation3 + $0xb4] sm:$0xff]  ;;  %v9651_v24 = vld [vmem:[#allocation3 + $0xc0] sm:$0xf] }
 0x457   : > { %v9821_v3 = vsel %vm14142_vm4, %v9816_v37, %v9820_v55 }
 0x458   : > { %v17682_v43 = vpop.f32.mrf.mxu1  ;;  %v8599_v21 = vadd.f32 %v8574_v18, %v8349_v1  ;;  %v9806_v41 = vrot.slane %v9805_v57, 4  ;;  %v9275_v18 = vsel %vm14151_vm5, %v9273_v30, %v9274_v12  ;;  %v9832_v1 = vshll.u32 %v17701_v26, 16  ;;  %v8617_v12 = vld [vmem:[%s14256_s9 + $0x60] sm:$0xff] }
 0x459   : > { %v9875_v13 = vunpack.c.l.b16 %v9821_v3 }
 0x45a   : > { %9975 = vmatmul.bf16.gmra.mxu3 %v9883_v33  ;;  %v8635_v50 = vadd.f32 %v17439_v29, %v8599_v21 }
 0x45b   : > { %9410 = vmatmul.bf16.gmra.mxu1 %v9314_v0  ;;  %v7948_v31 = vpop.f32.mrf.mxu0  ;;  %v9811_v0 = vsel %vm14142_vm4, %v9806_v41, %v17674_v63  ;;  %v9838_v63 = vrot.slane %v9836_v8, 4 }
 0x45c   : > { %v8651_v44 = vadd.f32 %v8635_v50, %v8615_v62  ;;  %v7972_v2 = vadd.f32 %v7948_v31, %v17357_v34  ;;  %v13773_v34 = vld [vmem:[%s18118_s3 + $0x180] sm:$0xff]  ;;  %v9307_v50 = vunpack.c.l.b16 %v9275_v18  ;;  %v9823_v31 = vshrl.u32 %v9651_v24, 16 }
 0x45d   : > { %v17698_v54 = vpop.f32.mrf.mxu3  ;;  %10392 = vmatpush.bf16.msra.mxu1 %v13773_v34  ;;  %v9874_v57 = vunpack.c.l.b16 %v9811_v0  ;;  %v10450_v34 = vld [vmem:[#allocation3 + $0x78] sm:$0xf] }
 0x45e   : > { %v8576_v6 = vpop.f32.mrf.mxu2  ;;  %8667 = vst [vmem:[%s17463_s12 + $0x50] sm:$0xff] %v8651_v44  ;;  %v8350_v9 = vadd.f32 %v8326_v51, %v7972_v2  ;;  %v12958_v51 = vrot.slane %v9203_v17, 9  ;;  %v9826_v44 = vshll.u32 %v9651_v24, 16  ;;  %v17726_v2 = vrot.slane %v9832_v1, 5  ;;  %v17731_v17 = vld [vmem:[#allocation3 + $0xc8] sm:$0x1] }
 0x45f   : > { %v9884_v55 = vpack.c.b16 %v9875_v13, %v9874_v57  ;;  %v10478_v18 = vshll.u32 %v10450_v34, 16  ;;  %v10490_v24 = vrot.slane %v10488_v23, 4 }
 0x460   : > { %v17706_v60 = vpop.f32.mrf.mxu1  ;;  %v8600_v15 = vadd.f32 %v8576_v6, %v8350_v9  ;;  %v9272_v25 = vsel %vm14151_vm5, %v12958_v51, %v9271_v4  ;;  %v10484_v6 = vshll.u32 %v17722_v38, 16  ;;  %v9839_v41 = vor.u32 %v9838_v63, %v17726_v2 }
 0x461   : > { %v10475_v51 = vshrl.u32 %v10450_v34, 16 }
 0x462   : > { %v8636_v33 = vadd.f32 %v17439_v29, %v8600_v15  ;;  %v9825_v15 = vrot.slane %v9823_v31, 4  ;;  %v10480_v31 = vrot.slane %v10478_v18, 5 }
 0x463   : > { %9603 = vmatmul.bf16.gmra.mxu2 %v13739_v61  ;;  %v7951_v21 = vpop.f32.mrf.mxu0  ;;  %v9828_v61 = vrot.slane %v9826_v44, 5  ;;  %v13740_v44 = vld [vmem:[#allocation3 + $0xc0] sm:$0xff] }
 0x464   : > { %v8652_v35 = vadd.f32 %v8636_v33, %v8616_v10  ;;  %v7973_v62 = vadd.f32 %v7951_v21, %v17376_v22  ;;  %v9306_v22 = vunpack.c.l.b16 %v9272_v25  ;;  %v9842_v10 = vshll.u32 %v17731_v17, 16 }
 0x465   : > { %v17724_v19 = vpop.f32.mrf.mxu3  ;;  %v17739_v33 = vrot.slane %v10484_v6, 5  ;;  %v9829_v25 = vor.u32 %v9828_v61, %v9825_v15 }
 0x466   : > { %v8579_v52 = vpop.f32.mrf.mxu2  ;;  %8668 = vst [vmem:[%s17463_s12 + $0x58] sm:$0xff] %v8652_v35  ;;  %v8351_v4 = vadd.f32 %v17682_v43, %v7973_v62  ;;  %9185 = vmatmul.bf16.gmra.mxu0 %v13707_v53  ;;  %v9315_v9 = vpack.c.b16 %v9307_v50, %v9306_v22  ;;  %v9840_v35 = vrot.slane %v9839_v41, 4  ;;  %v9844_v53 = vrot.slane %v9842_v10, 5  ;;  %v17747_v50 = vld [vmem:[#allocation3 + $0x80] sm:$0x1] }
 0x467   : > { %v10491_v63 = vor.u32 %v10490_v24, %v17739_v33  ;;  %v9830_v57 = vrot.slane %v9829_v25, 4  ;;  %v17759_v41 = vld [vmem:[#allocation3 + $0x88] sm:$0xf] }
 0x468   : > { %v8334_v37 = vpop.f32.mrf.mxu1  ;;  %v8601_v30 = vadd.f32 %v8579_v52, %v8351_v4  ;;  %v10477_v52 = vrot.slane %v10475_v51, 4  ;;  %v8618_v4 = vld [vmem:[%s14256_s9 + $0x68] sm:$0xff]  ;;  %v9845_v22 = vsel %vm14142_vm4, %v9840_v35, %v9844_v53  ;;  %v10861_v51 = vrot.slane %v17722_v38, 5  ;;  %v13765_v53 = vld [vmem:[#allocation3 + $0x78] sm:$0xff] }
 0x469   : > { %v9877_v15 = vunpack.c.l.b16 %v9845_v22  ;;  %v10492_v61 = vrot.slane %v10491_v63, 4  ;;  %v10508_v24 = vshll.u32 %v17759_v41, 16 }
 0x46a   : > { %9980 = vmatmul.bf16.gmra.mxu3 %v9884_v55  ;;  %v8637_v43 = vadd.f32 %v17439_v29, %v8601_v30  ;;  %v9835_v30 = vsel %vm14142_vm4, %v9830_v57, %v17726_v2  ;;  %v10453_v57 = vld [vmem:[#allocation3 + $0x84] sm:$0xf] }
 0x46b   : > { %9415 = vmatmul.bf16.gmra.mxu1 %v9315_v9  ;;  %v7953_v3 = vpop.f32.mrf.mxu0  ;;  %v10481_v9 = vor.u32 %v10480_v31, %v10477_v52  ;;  %v9876_v2 = vunpack.c.l.b16 %v9835_v30 }
 0x46c   : > { %v8653_v1 = vadd.f32 %v8637_v43, %v8617_v12  ;;  %v7974_v8 = vadd.f32 %v7953_v3, %v17393_v28  ;;  %v13708_v12 = vld [vmem:[#allocation3 + $0xb4] sm:$0xff]  ;;  %v10012_v43 = vld [vmem:[#allocation3 + $0xa8] sm:$0xe] }
 0x46d   : > { %v17741_v21 = vpop.f32.mrf.mxu3  ;;  %v13140_v25 = vrot.slane %v10012_v43, 9  ;;  %v9885_v35 = vpack.c.b16 %v9877_v15, %v9876_v2  ;;  %v10482_v52 = vrot.slane %v10481_v9, 4  ;;  %v17787_v15 = vld [vmem:[#allocation3 + $0x8c] sm:$0x1]  ;;  %v10502_v43 = vshll.u32 %v10453_v57, 16 }
 0x46e   : > { %v8581_v0 = vpop.f32.mrf.mxu2  ;;  %8669 = vst [vmem:[%s17463_s12 + $0x60] sm:$0xff] %v8653_v1  ;;  %v8352_v62 = vadd.f32 %v17706_v60, %v7974_v8  ;;  %v10494_v60 = vshll.u32 %v17747_v50, 16  ;;  %v10076_v8 = vrot.slane %v17600_v16, 5  ;;  %v10079_v16 = vrot.slane %v17633_v32, 5 }
 0x46f   : > { %v10487_v63 = vsel %vm14142_vm4, %v10482_v52, %v17739_v33  ;;  %v10864_v2 = vrot.slane %v17747_v50, 5  ;;  %v8620_v52 = vld [vmem:[%s14256_s9 + $0x78] sm:$0xff] }
 0x470   : > { %v17745_v13 = vpop.f32.mrf.mxu1  ;;  %v8602_v28 = vadd.f32 %v8581_v0, %v8352_v62  ;;  %v10496_v1 = vrot.slane %v10494_v60, 5  ;;  %v10512_v0 = vshrl.u32 %v17759_v41, 16  ;;  %v10077_v31 = vsel %vm14151_vm5, %v13140_v25, %v10076_v8 }
 0x471   : > { %v17780_v60 = vrot.slane %v10508_v24, 5 }
 0x472   : > { %v8638_v6 = vadd.f32 %v17439_v29, %v8602_v28  ;;  %v10497_v38 = vsel %vm14142_vm4, %v10492_v61, %v10496_v1  ;;  %v10078_v28 = vrot.slane %v10076_v8, 4  ;;  %v10499_v61 = vshrl.u32 %v10453_v57, 16 }
 0x473   : > { %9608 = vmatmul.bf16.gmra.mxu2 %v13740_v44  ;;  %v7956_v55 = vpop.f32.mrf.mxu0 }
 0x474   : > { %v8654_v34 = vadd.f32 %v8638_v6, %v8618_v4  ;;  %v7975_v23 = vadd.f32 %v7956_v55, %v17412_v56  ;;  %v10863_v4 = vrot.slane %v10861_v51, 4  ;;  %v10683_v6 = vunpack.c.l.b16 %v10497_v38 }
 0x475   : > { %v17761_v3 = vpop.f32.mrf.mxu3  ;;  %v10514_v55 = vrot.slane %v10512_v0, 4  ;;  %v10080_v30 = vsel %vm14151_vm5, %v10078_v28, %v10079_v16  ;;  %v10501_v50 = vrot.slane %v10499_v61, 4  ;;  %v10504_v38 = vrot.slane %v10502_v43, 5 }
 0x476   : > { %v8584_v10 = vpop.f32.mrf.mxu2  ;;  %8670 = vst [vmem:[%s17463_s12 + $0x68] sm:$0xff] %v8654_v34  ;;  %v8353_v18 = vadd.f32 %v8334_v37, %v7975_v23  ;;  %9190 = vmatmul.bf16.gmra.mxu0 %v13708_v12  ;;  %v8619_v37 = vld [vmem:[%s14256_s9 + $0x70] sm:$0xff]  ;;  %v10121_v34 = vunpack.c.l.b16 %v10077_v31  ;;  %v10122_v23 = vunpack.c.l.b16 %v10080_v30  ;;  %v13892_v31 = vld [vmem:[%s18119_s4] ss:$0 sm:$0xff]  ;;  %v10868_v43 = vrot.slane %v17759_v41, 5 }
 0x477   : > { %v10515_v24 = vor.u32 %v10514_v55, %v17780_v60  ;;  %v10090_v41 = vrot.slane %v17701_v26, 5 }
 0x478   : > { %v17766_v56 = vpop.f32.mrf.mxu1  ;;  %v8603_v62 = vadd.f32 %v8584_v10, %v8353_v18  ;;  %v10682_v18 = vunpack.c.l.b16 %v10487_v63  ;;  %v17792_v1 = vpack.c.b16 %v10122_v23, %v10121_v34  ;;  %v10086_v34 = vrot.slane %v17680_v58, 5 }
 0x479   : > { %v10516_v63 = vrot.slane %v10515_v24, 4 }
 0x47a   : > { %9985 = vmatmul.bf16.gmra.mxu3 %v9885_v35  ;;  %v8639_v44 = vadd.f32 %v17439_v29, %v8603_v62  ;;  %v10827_v29 = vld [vmem:[#allocation3 + $0x78] sm:$0xe]  ;;  %v10698_v25 = vpack.c.b16 %v10683_v6, %v10682_v18  ;;  %v10865_v35 = vsel %vm14151_vm5, %v10863_v4, %v10864_v2  ;;  %v10518_v62 = vshll.u32 %v17787_v15, 16  ;;  %v13766_v2 = vld [vmem:[#allocation3 + $0x84] sm:$0xff] }
 0x47b   : > { %10393 = vmatmul.bf16.vlgmr.msra.gmra.mxu1 %v13765_v53  ;;  %v7958_v22 = vpop.f32.mrf.mxu0  ;;  %v10013_v53 = vld [vmem:[#allocation3 + $0xb4] sm:$0xe] }
 0x47c   : > { %v8655_v32 = vadd.f32 %v8639_v44, %v8619_v37  ;;  %v7976_v9 = vadd.f32 %v7958_v22, %v17434_v47  ;;  %v13319_v47 = vrot.slane %v10827_v29, 9  ;;  %v10083_v37 = vrot.slane %v17653_v39, 5 }
 0x47d   : > { %v17785_v12 = vpop.f32.mrf.mxu3  ;;  %v10932_v44 = vunpack.c.l.b16 %v10865_v35  ;;  %v13141_v4 = vrot.slane %v10013_v53, 9  ;;  %v10505_v39 = vor.u32 %v10504_v38, %v10501_v50 }
 0x47e   : > { %v8586_v33 = vpop.f32.mrf.mxu2  ;;  %8671 = vst [vmem:[%s17463_s12 + $0x70] sm:$0xff] %v8655_v32  ;;  %v8354_v10 = vadd.f32 %v17745_v13, %v7976_v9  ;;  %v10862_v13 = vsel %vm14151_vm5, %v13319_v47, %v10861_v51  ;;  %v10520_v51 = vrot.slane %v10518_v62, 5  ;;  %v17810_v32 = vld [vmem:[#allocation3 + $0x94] sm:$0xf]  ;;  %v10085_v29 = vrot.slane %v10083_v37, 4 }
 0x47f   : > { %v10931_v6 = vunpack.c.l.b16 %v10862_v13  ;;  %v10084_v9 = vsel %vm14151_vm5, %v13141_v4, %v10083_v37  ;;  %v10532_v58 = vshll.u32 %v17810_v32, 16  ;;  %v10870_v13 = vrot.slane %v10868_v43, 4  ;;  %v10828_v37 = vld [vmem:[#allocation3 + $0x84] sm:$0xe] }
 0x480   : > { %v17794_v8 = vpop.f32.mrf.mxu1  ;;  %v8604_v0 = vadd.f32 %v8586_v33, %v8354_v10  ;;  %v10521_v61 = vsel %vm14142_vm4, %v10516_v63, %v10520_v51  ;;  %v10087_v10 = vsel %vm14151_vm5, %v10085_v29, %v10086_v34  ;;  %v10123_v47 = vunpack.c.l.b16 %v10084_v9 }
 0x481   : > { %v10124_v24 = vunpack.c.l.b16 %v10087_v10 }
 0x482   : > { %v8640_v28 = vadd.f32 %v13892_v31, %v8604_v0  ;;  %v10506_v0 = vrot.slane %v10505_v39, 4 }
 0x483   : > { %10770 = vmatmul.bf16.vlgmr.msra.gmra.mxu2 %v10698_v25  ;;  %v9156_v16 = vpop.f32.mrf.mxu0  ;;  %v10536_v25 = vshrl.u32 %v17810_v32, 16  ;;  %v17827_v35 = vpack.c.b16 %v10124_v24, %v10123_v47 }
 0x484   : > { %v8656_v57 = vadd.f32 %v8640_v28, %v8620_v52  ;;  %v9157_v22 = vadd.f32 %v9156_v16, %v17461_v49  ;;  %v10947_v49 = vpack.c.b16 %v10932_v44, %v10931_v6  ;;  %v10511_v53 = vsel %vm14142_vm4, %v10506_v0, %v17780_v60  ;;  %v13893_v0 = vld [vmem:[#allocation3 + $0x88] sm:$0xf] }
 0x485   : > { %v17808_v55 = vpop.f32.mrf.mxu3  ;;  %v10685_v52 = vunpack.c.l.b16 %v10521_v61  ;;  %v17834_v16 = vrot.slane %v10532_v58, 5  ;;  %v10538_v4 = vrot.slane %v10536_v25, 4  ;;  %v10684_v51 = vunpack.c.l.b16 %v10511_v53 }
 0x486   : > { %v9574_v30 = vpop.f32.mrf.mxu2  ;;  %8672 = vst [vmem:[%s17463_s12 + $0x78] sm:$0xff] %v8656_v57  ;;  %v9421_v23 = vadd.f32 %v17766_v56, %v9157_v22  ;;  %10199 = vmatmul.bf16.vlgmr.msra.gmra.mxu0 %v17518_v5  ;;  %v10014_v56 = vld [vmem:[#allocation3 + $0xc0] sm:$0xe]  ;;  %v10456_v5 = vld [vmem:[#allocation3 + $0x90] sm:$0xf]  ;;  %v10092_v57 = vrot.slane %v10090_v41, 4 }
 0x487   : > { %v13142_v50 = vrot.slane %v10014_v56, 9  ;;  %v10523_v31 = vshrl.u32 %v10456_v5, 16  ;;  %v10526_v28 = vshll.u32 %v10456_v5, 16  ;;  %v10093_v22 = vrot.slane %v17731_v17, 5 }
 0x488   : > { %v17818_v33 = vpop.f32.mrf.mxu1  ;;  %v9614_v18 = vadd.f32 %v9574_v30, %v9421_v23  ;;  %v10871_v30 = vrot.slane %v17787_v15, 5  ;;  %v10699_v34 = vpack.c.b16 %v10685_v52, %v10684_v51  ;;  %v17845_v23 = vld [vmem:[#allocation3 + $0x98] sm:$0x1]  ;;  %v10055_v5 = vrot.slane %v13893_v0, 5  ;;  %v10459_v51 = vld [vmem:[#allocation3 + $0x9c] sm:$0xf] }
 0x489   : > { %v10091_v26 = vsel %vm14151_vm5, %v13142_v50, %v10090_v41  ;;  %v10094_v9 = vsel %vm14151_vm5, %v10092_v57, %v10093_v22  ;;  %v10525_v10 = vrot.slane %v10523_v31, 4  ;;  %v10542_v47 = vshll.u32 %v17845_v23, 16  ;;  %v13894_v22 = vld [vmem:[#allocation3 + $0x8c] sm:$0x1] }
 0x48a   : > { %11019 = vmatmul.bf16.vlgmr.msra.gmra.mxu3 %v10947_v49  ;;  %v10125_v49 = vunpack.c.l.b16 %v10091_v26  ;;  %v10126_v61 = vunpack.c.l.b16 %v10094_v9  ;;  %v10872_v17 = vsel %vm14151_vm5, %v10870_v13, %v10871_v30 }
 0x48b   : > { %10398 = vmatmul.bf16.gmra.mxu1 %v13766_v2  ;;  %v9158_v62 = vpop.f32.mrf.mxu0  ;;  %v10934_v56 = vunpack.c.l.b16 %v10872_v17 }
 0x48c   : > { %v9159_v38 = vadd.f32 %v9158_v62, %v17487_v27  ;;  %v13320_v27 = vrot.slane %v10828_v37, 9  ;;  %v17850_v2 = vpack.c.b16 %v10126_v61, %v10125_v49  ;;  %v10544_v37 = vrot.slane %v10542_v47, 5 }
 0x48d   : > { %v9951_v44 = vpop.f32.mrf.mxu3 }
 0x48e   : > { %v9576_v63 = vpop.f32.mrf.mxu2  ;;  %v17839_v60 = vadd.f32 %v9951_v44, %v9614_v18  ;;  %v9422_v6 = vadd.f32 %v17794_v8, %v9159_v38  ;;  %v10528_v18 = vrot.slane %v10526_v28, 5  ;;  %v10539_v8 = vor.u32 %v10538_v4, %v17834_v16  ;;  %v17860_v38 = vld [vmem:[#allocation3 + $0xa0] sm:$0xf]  ;;  %v10009_v28 = vld [vmem:[#allocation3 + $0x84] sm:$0xe] }
 0x48f   : > { %v10869_v58 = vsel %vm14151_vm5, %v13320_v27, %v10868_v43  ;;  %v10057_v44 = vrot.slane %v10055_v5, 4  ;;  %v10875_v4 = vrot.slane %v17810_v32, 5  ;;  %v13137_v30 = vrot.slane %v10009_v28, 9 }
 0x490   : > { %v9388_v39 = vpop.f32.mrf.mxu1  ;;  %v9615_v29 = vadd.f32 %v9576_v63, %v9422_v6  ;;  %v10529_v62 = vor.u32 %v10528_v18, %v10525_v10  ;;  %v10540_v53 = vrot.slane %v10539_v8, 4  ;;  %v10933_v50 = vunpack.c.l.b16 %v10869_v58  ;;  %v13767_v63 = vld [vmem:[#allocation3 + $0x90] sm:$0xff] }
 0x491   : > { %v10058_v6 = vrot.slane %v13894_v22, 5  ;;  %v10877_v49 = vrot.slane %v10875_v4, 4  ;;  %v10829_v10 = vld [vmem:[#allocation3 + $0x90] sm:$0xe]  ;;  %v10547_v18 = vshrl.u32 %v10459_v51, 16  ;;  %v10550_v8 = vshll.u32 %v10459_v51, 16 }
 0x492   : > { %v10948_v31 = vpack.c.b16 %v10934_v56, %v10933_v50  ;;  %v10530_v26 = vrot.slane %v10529_v62, 4  ;;  %v10545_v57 = vsel %vm14142_vm4, %v10540_v53, %v10544_v37  ;;  %v13321_v53 = vrot.slane %v10829_v10, 9 }
 0x493   : > { %10775 = vmatmul.bf16.gmra.mxu2 %v10699_v34  ;;  %v9161_v15 = vpop.f32.mrf.mxu0  ;;  %v10687_v34 = vunpack.c.l.b16 %v10545_v57  ;;  %v10549_v37 = vrot.slane %v10547_v18, 4  ;;  %v13895_v57 = vld [vmem:[#allocation3 + $0x94] sm:$0xf]  ;;  %v10882_v10 = vrot.slane %v17860_v38, 5 }
 0x494   : > { %v9162_v24 = vadd.f32 %v9161_v15, %v17511_v11  ;;  %v10535_v9 = vsel %vm14142_vm4, %v10530_v26, %v17834_v16  ;;  %v10878_v16 = vrot.slane %v17845_v23, 5  ;;  %v10876_v23 = vsel %vm14151_vm5, %v13321_v53, %v10875_v4 }
 0x495   : > { %v9953_v25 = vpop.f32.mrf.mxu3  ;;  %v10686_v56 = vunpack.c.l.b16 %v10535_v9  ;;  %v10935_v9 = vunpack.c.l.b16 %v10876_v23 }
 0x496   : > { %v9579_v41 = vpop.f32.mrf.mxu2  ;;  %v17856_v52 = vadd.f32 %v9953_v25, %v9615_v29  ;;  %v9423_v13 = vadd.f32 %v17818_v33, %v9162_v24  ;;  %10204 = vmatmul.bf16.gmra.mxu0 %v17602_v7  ;;  %v10556_v33 = vshll.u32 %v17860_v38, 16  ;;  %v10560_v7 = vshrl.u32 %v17860_v38, 16 }
 0x497   : > { %v10059_v29 = vsel %vm14151_vm5, %v10057_v44, %v10058_v6  ;;  %v10700_v62 = vpack.c.b16 %v10687_v34, %v10686_v56  ;;  %v10879_v50 = vsel %vm14151_vm5, %v10877_v49, %v10878_v16 }
 0x498   : > { %v9391_v43 = vpop.f32.mrf.mxu1  ;;  %v9616_v11 = vadd.f32 %v9579_v41, %v9423_v13  ;;  %v17873_v15 = vrot.slane %v10556_v33, 5  ;;  %v10562_v58 = vrot.slane %v10560_v7, 4  ;;  %v10116_v41 = vunpack.c.l.b16 %v10059_v29  ;;  %v17880_v13 = vld [vmem:[#allocation3 + $0xa4] sm:$0x1] }
 0x499   : > { %v10936_v26 = vunpack.c.l.b16 %v10879_v50  ;;  %v10062_v33 = vrot.slane %v13895_v57, 5  ;;  %v10884_v50 = vrot.slane %v10882_v10, 4 }
 0x49a   : > { %11024 = vmatmul.bf16.gmra.mxu3 %v10948_v31  ;;  %v10552_v31 = vrot.slane %v10550_v8, 5 }
 0x49b   : > { %10403 = vmatmul.bf16.gmra.mxu1 %v13767_v63  ;;  %v9163_v27 = vpop.f32.mrf.mxu0  ;;  %v10949_v34 = vpack.c.b16 %v10936_v26, %v10935_v9 }
 0x49c   : > { %v9164_v32 = vadd.f32 %v9163_v27, %v17534_v36  ;;  %v10056_v36 = vsel %vm14151_vm5, %v13137_v30, %v10055_v5  ;;  %v10566_v5 = vshll.u32 %v17880_v13, 16  ;;  %v10553_v6 = vor.u32 %v10552_v31, %v10549_v37 }
 0x49d   : > { %v9956_v61 = vpop.f32.mrf.mxu3 }
 0x49e   : > { %v9581_v17 = vpop.f32.mrf.mxu2  ;;  %v17875_v47 = vadd.f32 %v9956_v61, %v9616_v11  ;;  %v9424_v24 = vadd.f32 %v9388_v39, %v9164_v32  ;;  %v10563_v39 = vor.u32 %v10562_v58, %v17873_v15  ;;  %v10115_v11 = vunpack.c.l.b16 %v10056_v36  ;;  %v17891_v32 = vld [vmem:[#allocation3 + $0xac] sm:$0xf]  ;;  %v10462_v36 = vld [vmem:[#allocation3 + $0xa8] sm:$0xf] }
 0x49f   : > { %v10568_v29 = vrot.slane %v10566_v5, 5  ;;  %v10064_v61 = vrot.slane %v10062_v33, 4  ;;  %v10554_v18 = vrot.slane %v10553_v6, 4  ;;  %v10580_v58 = vshll.u32 %v17891_v32, 16 }
 0x4a0   : > { %v9393_v0 = vpop.f32.mrf.mxu1  ;;  %v9617_v25 = vadd.f32 %v9581_v17, %v9424_v24  ;;  %v10129_v63 = vpack.c.b16 %v10116_v41, %v10115_v11  ;;  %v10564_v51 = vrot.slane %v10563_v39, 4  ;;  %v13768_v17 = vld [vmem:[#allocation3 + $0x9c] sm:$0xff]  ;;  %v13896_v24 = vld [vmem:[#allocation3 + $0x98] sm:$0x1]  ;;  %v10571_v11 = vshrl.u32 %v10462_v36, 16 }
 0x4a1   : > { %v10065_v56 = vrot.slane %v13896_v24, 5  ;;  %v10559_v41 = vsel %vm14142_vm4, %v10554_v18, %v17873_v15  ;;  %v10830_v39 = vld [vmem:[#allocation3 + $0x9c] sm:$0xe]  ;;  %v17904_v23 = vrot.slane %v10580_v58, 5  ;;  %v10885_v15 = vrot.slane %v17880_v13, 5 }
 0x4a2   : > { %v10569_v8 = vsel %vm14142_vm4, %v10564_v51, %v10568_v29  ;;  %v10688_v26 = vunpack.c.l.b16 %v10559_v41  ;;  %v13322_v51 = vrot.slane %v10830_v39, 9  ;;  %v10573_v29 = vrot.slane %v10571_v11, 4 }
 0x4a3   : > { %10780 = vmatmul.bf16.gmra.mxu2 %v10700_v62  ;;  %v9166_v28 = vpop.f32.mrf.mxu0  ;;  %v10066_v62 = vsel %vm14151_vm5, %v10064_v61, %v10065_v56  ;;  %v10689_v53 = vunpack.c.l.b16 %v10569_v8  ;;  %v10886_v9 = vsel %vm14151_vm5, %v10884_v50, %v10885_v15  ;;  %v13897_v8 = vld [vmem:[#allocation3 + $0xa0] sm:$0xf]  ;;  %v10889_v39 = vrot.slane %v17891_v32, 5 }
 0x4a4   : > { %v9167_v44 = vadd.f32 %v9166_v28, %v17553_v40  ;;  %v10010_v40 = vld [vmem:[#allocation3 + $0x90] sm:$0xe]  ;;  %v10574_v28 = vshll.u32 %v10462_v36, 16  ;;  %v10883_v13 = vsel %vm14151_vm5, %v13322_v51, %v10882_v10  ;;  %v10938_v18 = vunpack.c.l.b16 %v10886_v9 }
 0x4a5   : > { %v9958_v7 = vpop.f32.mrf.mxu3  ;;  %v10701_v6 = vpack.c.b16 %v10689_v53, %v10688_v26  ;;  %v10069_v58 = vrot.slane %v13897_v8, 5  ;;  %v10937_v41 = vunpack.c.l.b16 %v10883_v13  ;;  %v10891_v9 = vrot.slane %v10889_v39, 4 }
 0x4a6   : > { %v9584_v22 = vpop.f32.mrf.mxu2  ;;  %v17889_v27 = vadd.f32 %v9958_v7, %v9617_v25  ;;  %v9425_v30 = vadd.f32 %v9391_v43, %v9167_v44  ;;  %10209 = vmatmul.bf16.gmra.mxu0 %v10129_v63  ;;  %v10584_v43 = vshrl.u32 %v17891_v32, 16  ;;  %v13138_v25 = vrot.slane %v10010_v40, 9 }
 0x4a7   : > { %v10950_v53 = vpack.c.b16 %v10938_v18, %v10937_v41 }
 0x4a8   : > { %v9396_v4 = vpop.f32.mrf.mxu1  ;;  %v9618_v49 = vadd.f32 %v9584_v22, %v9425_v30  ;;  %v10586_v5 = vrot.slane %v10584_v43, 4  ;;  %v10118_v22 = vunpack.c.l.b16 %v10066_v62  ;;  %v17911_v30 = vld [vmem:[#allocation3 + $0xb0] sm:$0x1] }
 0x4aa   : > { %11029 = vmatmul.bf16.gmra.mxu3 %v10949_v34  ;;  %v10576_v34 = vrot.slane %v10574_v28, 5 }
 0x4ab   : > { %10408 = vmatmul.bf16.gmra.mxu1 %v13768_v17  ;;  %v9168_v16 = vpop.f32.mrf.mxu0 }
 0x4ac   : > { %v9169_v38 = vadd.f32 %v9168_v16, %v17575_v20  ;;  %v10063_v20 = vsel %vm14151_vm5, %v13138_v25, %v10062_v33  ;;  %v10590_v33 = vshll.u32 %v17911_v30, 16  ;;  %v10577_v56 = vor.u32 %v10576_v34, %v10573_v29 }
 0x4ad   : > { %v9961_v37 = vpop.f32.mrf.mxu3 }
 0x4ae   : > { %v9586_v31 = vpop.f32.mrf.mxu2  ;;  %v17906_v44 = vadd.f32 %v9961_v37, %v9618_v49  ;;  %v9426_v63 = vadd.f32 %v9393_v0, %v9169_v38  ;;  %v10587_v0 = vor.u32 %v10586_v5, %v17904_v23  ;;  %v10117_v49 = vunpack.c.l.b16 %v10063_v20  ;;  %v17922_v38 = vld [vmem:[#allocation3 + $0xb8] sm:$0xf]  ;;  %v10465_v20 = vld [vmem:[#allocation3 + $0xb4] sm:$0xf] }
 0x4af   : > { %v10592_v62 = vrot.slane %v10590_v33, 5  ;;  %v10071_v37 = vrot.slane %v10069_v58, 4  ;;  %v10578_v11 = vrot.slane %v10577_v56, 4  ;;  %v10604_v5 = vshll.u32 %v17922_v38, 16 }
 0x4b0   : > { %v9398_v57 = vpop.f32.mrf.mxu1  ;;  %v9619_v7 = vadd.f32 %v9586_v31, %v9426_v63  ;;  %v10130_v17 = vpack.c.b16 %v10118_v22, %v10117_v49  ;;  %v10588_v36 = vrot.slane %v10587_v0, 4  ;;  %v13769_v31 = vld [vmem:[#allocation3 + $0xa8] sm:$0xff]  ;;  %v13898_v63 = vld [vmem:[#allocation3 + $0xa4] sm:$0x1]  ;;  %v10595_v49 = vshrl.u32 %v10465_v20, 16 }
 0x4b1   : > { %v10072_v26 = vrot.slane %v13898_v63, 5  ;;  %v10583_v22 = vsel %vm14142_vm4, %v10578_v11, %v17904_v23  ;;  %v10831_v0 = vld [vmem:[#allocation3 + $0xa8] sm:$0xe]  ;;  %v10606_v13 = vrot.slane %v10604_v5, 5 }
 0x4b2   : > { %v10593_v28 = vsel %vm14142_vm4, %v10588_v36, %v10592_v62  ;;  %v10690_v18 = vunpack.c.l.b16 %v10583_v22  ;;  %v13323_v36 = vrot.slane %v10831_v0, 9  ;;  %v10597_v62 = vrot.slane %v10595_v49, 4 }
 0x4b3   : > { %10785 = vmatmul.bf16.gmra.mxu2 %v10701_v6  ;;  %v9171_v40 = vpop.f32.mrf.mxu0  ;;  %v10073_v6 = vsel %vm14151_vm5, %v10071_v37, %v10072_v26  ;;  %v10691_v51 = vunpack.c.l.b16 %v10593_v28 }
 0x4b4   : > { %v9172_v61 = vadd.f32 %v9171_v40, %v17604_v46  ;;  %v10011_v46 = vld [vmem:[#allocation3 + $0x9c] sm:$0xe]  ;;  %v10598_v40 = vshll.u32 %v10465_v20, 16 }
 0x4b5   : > { %v9963_v43 = vpop.f32.mrf.mxu3  ;;  %v10702_v56 = vpack.c.b16 %v10691_v51, %v10690_v18  ;;  %v13770_v51 = vld [vmem:[#allocation3 + $0xb4] sm:$0xff] }
 0x4b6   : > { %v9589_v24 = vpop.f32.mrf.mxu2  ;;  %v17920_v16 = vadd.f32 %v9963_v43, %v9619_v7  ;;  %v9427_v25 = vadd.f32 %v9396_v4, %v9172_v61  ;;  %10214 = vmatmul.bf16.gmra.mxu0 %v10130_v17  ;;  %v10608_v4 = vshrl.u32 %v17922_v38, 16  ;;  %v13139_v7 = vrot.slane %v10011_v46, 9 }
 0x4b8   : > { %v9401_v10 = vpop.f32.mrf.mxu1  ;;  %v9620_v50 = vadd.f32 %v9589_v24, %v9427_v25  ;;  %v10610_v33 = vrot.slane %v10608_v4, 4  ;;  %v10070_v23 = vsel %vm14151_vm5, %v13139_v7, %v10069_v58  ;;  %v10120_v24 = vunpack.c.l.b16 %v10073_v6  ;;  %v10467_v25 = vld [vmem:[#allocation3 + $0xbc] sm:$0x1]  ;;  %v17947_v7 = vld [vmem:[#allocation3 + $0xc4] sm:$0xf] }
 0x4b9   : > { %v10119_v46 = vunpack.c.l.b16 %v10070_v23  ;;  %v10890_v58 = vsel %vm14151_vm5, %v13323_v36, %v10889_v39  ;;  %v10614_v37 = vshll.u32 %v10467_v25, 16  ;;  %v10628_v0 = vshll.u32 %v17947_v7, 16 }
 0x4ba   : > { %11034 = vmatmul.bf16.gmra.mxu3 %v10950_v53  ;;  %v10600_v53 = vrot.slane %v10598_v40, 5 }
 0x4bb   : > { %10413 = vmatmul.bf16.gmra.mxu1 %v13769_v31  ;;  %v9173_v15 = vpop.f32.mrf.mxu0  ;;  %v10131_v31 = vpack.c.b16 %v10120_v24, %v10119_v46  ;;  %v10630_v24 = vrot.slane %v10628_v0, 5 }
 0x4bc   : > { %v9174_v32 = vadd.f32 %v9173_v15, %v17629_v14  ;;  %v10892_v14 = vrot.slane %v17911_v30, 5  ;;  %v10601_v4 = vor.u32 %v10600_v53, %v10597_v62  ;;  %v10939_v15 = vunpack.c.l.b16 %v10890_v58  ;;  %v10832_v53 = vld [vmem:[#allocation3 + $0xb4] sm:$0xe] }
 0x4bd   : > { %v9966_v29 = vpop.f32.mrf.mxu3 }
 0x4be   : > { %v9591_v34 = vpop.f32.mrf.mxu2  ;;  %v17935_v61 = vadd.f32 %v9966_v29, %v9620_v50  ;;  %v9428_v17 = vadd.f32 %v9398_v57, %v9174_v32  ;;  %v10893_v41 = vsel %vm14151_vm5, %v10891_v9, %v10892_v14  ;;  %v10611_v50 = vor.u32 %v10610_v33, %v10606_v13 }
 0x4bf   : > { %v10940_v11 = vunpack.c.l.b16 %v10893_v41  ;;  %v10616_v32 = vrot.slane %v10614_v37, 5  ;;  %v10602_v9 = vrot.slane %v10601_v4, 4 }
 0x4c0   : > { %v9403_v8 = vpop.f32.mrf.mxu1  ;;  %v9621_v43 = vadd.f32 %v9591_v34, %v9428_v17  ;;  %v10612_v63 = vrot.slane %v10611_v50, 4  ;;  %v10468_v34 = vld [vmem:[#allocation3 + $0xc0] sm:$0xf]  ;;  %v10899_v50 = vrot.slane %v10467_v25, 5 }
 0x4c1   : > { %v10951_v6 = vpack.c.b16 %v10940_v11, %v10939_v15  ;;  %v10607_v40 = vsel %vm14142_vm4, %v10602_v9, %v10606_v13  ;;  %v10619_v18 = vshrl.u32 %v10468_v34, 16 }
 0x4c2   : > { %v10617_v29 = vsel %vm14142_vm4, %v10612_v63, %v10616_v32  ;;  %v10692_v62 = vunpack.c.l.b16 %v10607_v40 }
 0x4c3   : > { %10790 = vmatmul.bf16.gmra.mxu2 %v10702_v56  ;;  %v9176_v57 = vpop.f32.mrf.mxu0  ;;  %v10693_v17 = vunpack.c.l.b16 %v10617_v29  ;;  %v10471_v29 = vld [vmem:[#allocation3 + $0xcc] sm:$0xf] }
 0x4c4   : > { %v9177_v30 = vadd.f32 %v9176_v57, %v17651_v59  ;;  %v10896_v59 = vrot.slane %v17922_v38, 5  ;;  %v10622_v38 = vshll.u32 %v10468_v34, 16  ;;  %v17959_v57 = vld [vmem:[#allocation3 + $0xc8] sm:$0x1]  ;;  %v17970_v34 = vld [vmem:[#allocation3 + $0xd0] sm:$0xf] }
 0x4c5   : > { %v9968_v28 = vpop.f32.mrf.mxu3  ;;  %v10703_v58 = vpack.c.b16 %v10693_v17, %v10692_v62  ;;  %v13771_v17 = vld [vmem:[#allocation3 + $0xc0] sm:$0xff] }
 0x4c6   : > { %v9594_v5 = vpop.f32.mrf.mxu2  ;;  %v17945_v26 = vadd.f32 %v9968_v28, %v9621_v43  ;;  %v9429_v20 = vadd.f32 %v9401_v10, %v9177_v30  ;;  %10219 = vmatmul.bf16.gmra.mxu0 %v10131_v31  ;;  %v10632_v10 = vshrl.u32 %v17947_v7, 16  ;;  %v10898_v43 = vrot.slane %v10896_v59, 4 }
 0x4c7   : > { %v10624_v37 = vrot.slane %v10622_v38, 5  ;;  %v13324_v30 = vrot.slane %v10832_v53, 9  ;;  %v10638_v28 = vshll.u32 %v17959_v57, 16 }
 0x4c8   : > { %v9406_v22 = vpop.f32.mrf.mxu1  ;;  %v9622_v39 = vadd.f32 %v9594_v5, %v9429_v20  ;;  %v10634_v56 = vrot.slane %v10632_v10, 4  ;;  %v10900_v31 = vsel %vm14151_vm5, %v10898_v43, %v10899_v50  ;;  %v10643_v10 = vshrl.u32 %v10471_v29, 16  ;;  %v10473_v50 = vld [vmem:[#allocation3 + $0xd4] sm:$0x1] }
 0x4c9   : > { %v10942_v4 = vunpack.c.l.b16 %v10900_v31  ;;  %v10640_v9 = vrot.slane %v10638_v28, 5  ;;  %v10833_v31 = vld [vmem:[#allocation3 + $0xc0] sm:$0xe] }
 0x4ca   : > { %11039 = vmatmul.bf16.gmra.mxu3 %v10951_v6  ;;  %v10635_v11 = vor.u32 %v10634_v56, %v10630_v24 }
 0x4cb   : > { %10418 = vmatmul.bf16.gmra.mxu1 %v13770_v51  ;;  %v9178_v49 = vpop.f32.mrf.mxu0 }
 0x4cc   : > { %v9179_v33 = vadd.f32 %v9178_v49, %v17676_v42  ;;  %v10621_v42 = vrot.slane %v10619_v18, 4  ;;  %v10636_v32 = vrot.slane %v10635_v11, 4  ;;  %v10656_v49 = vshrl.u32 %v17970_v34, 16 }
 0x4cd   : > { %v9971_v23 = vpop.f32.mrf.mxu3  ;;  %v10906_v11 = vrot.slane %v17959_v57, 5 }
 0x4ce   : > { %v9596_v14 = vpop.f32.mrf.mxu2  ;;  %v17957_v36 = vadd.f32 %v9971_v23, %v9622_v39  ;;  %v9430_v41 = vadd.f32 %v9403_v8, %v9179_v33  ;;  %v10897_v8 = vsel %vm14151_vm5, %v13324_v30, %v10896_v59  ;;  %v10625_v63 = vor.u32 %v10624_v37, %v10621_v42 }
 0x4cf   : > { %v10941_v51 = vunpack.c.l.b16 %v10897_v8  ;;  %v10646_v59 = vshll.u32 %v10471_v29, 16  ;;  %v10662_v8 = vshll.u32 %v10473_v50, 16 }
 0x4d0   : > { %v9408_v46 = vpop.f32.mrf.mxu1  ;;  %v9623_v13 = vadd.f32 %v9596_v14, %v9430_v41  ;;  %v10626_v18 = vrot.slane %v10625_v63, 4  ;;  %v10645_v14 = vrot.slane %v10643_v10, 4  ;;  %v10658_v41 = vrot.slane %v10656_v49, 4  ;;  %v13772_v49 = vld [vmem:[#allocation3 + $0xcc] sm:$0xff] }
 0x4d1   : > { %v10952_v40 = vpack.c.b16 %v10942_v4, %v10941_v51  ;;  %v10648_v43 = vrot.slane %v10646_v59, 5  ;;  %v13325_v63 = vrot.slane %v10833_v31, 9 }
 0x4d2   : > { %v10631_v38 = vsel %vm14142_vm4, %v10626_v18, %v10630_v24  ;;  %v10910_v18 = vrot.slane %v17970_v34, 5 }
 0x4d3   : > { %10795 = vmatmul.bf16.gmra.mxu2 %v10703_v58  ;;  %v9181_v5 = vpop.f32.mrf.mxu0  ;;  %v10694_v30 = vunpack.c.l.b16 %v10631_v38  ;;  %v10649_v28 = vor.u32 %v10648_v43, %v10645_v14  ;;  %v10913_v43 = vrot.slane %v10473_v50, 5 }
 0x4d4   : > { %v9182_v25 = vadd.f32 %v9181_v5, %v17698_v54  ;;  %v10652_v54 = vshll.u32 %v17970_v34, 16  ;;  %v10912_v14 = vrot.slane %v10910_v18, 4 }
 0x4d5   : > { %v9973_v20 = vpop.f32.mrf.mxu3 }
 0x4d6   : > { %v9599_v15 = vpop.f32.mrf.mxu2  ;;  %v17967_v6 = vadd.f32 %v9973_v20, %v9623_v13  ;;  %v9431_v39 = vadd.f32 %v9406_v22, %v9182_v25  ;;  %10224 = vmatmul.bf16.gmra.mxu0 %v17792_v1  ;;  %v10641_v22 = vsel %vm14142_vm4, %v10636_v32, %v10640_v9  ;;  %v10903_v1 = vrot.slane %v17947_v7, 5 }
 0x4d7   : > { %v10654_v56 = vrot.slane %v10652_v54, 5  ;;  %v10695_v53 = vunpack.c.l.b16 %v10641_v22 }
 0x4d8   : > { %v9411_v0 = vpop.f32.mrf.mxu1  ;;  %v9624_v33 = vadd.f32 %v9599_v15, %v9431_v39  ;;  %v10905_v42 = vrot.slane %v10903_v1, 4  ;;  %v10904_v15 = vsel %vm14151_vm5, %v13325_v63, %v10903_v1  ;;  %v10664_v39 = vrot.slane %v10662_v8, 5  ;;  %v10834_v1 = vld [vmem:[#allocation3 + $0xcc] sm:$0xe] }
 0x4d9   : > { %v10659_v5 = vor.u32 %v10658_v41, %v10654_v56  ;;  %v10704_v4 = vpack.c.b16 %v10695_v53, %v10694_v30  ;;  %v10943_v54 = vunpack.c.l.b16 %v10904_v15 }
 0x4da   : > { %11044 = vmatmul.bf16.gmra.mxu3 %v10952_v40 }
 0x4db   : > { %10423 = vmatmul.bf16.gmra.mxu1 %v13771_v17  ;;  %v9183_v23 = vpop.f32.mrf.mxu0  ;;  %v10660_v32 = vrot.slane %v10659_v5, 4 }
 0x4dc   : > { %v9184_v62 = vadd.f32 %v9183_v23, %v17724_v19  ;;  %v10907_v19 = vsel %vm14151_vm5, %v10905_v42, %v10906_v11 }
 0x4dd   : > { %v9976_v13 = vpop.f32.mrf.mxu3  ;;  %v10944_v51 = vunpack.c.l.b16 %v10907_v19  ;;  %v10665_v17 = vsel %vm14142_vm4, %v10660_v32, %v10664_v39 }
 0x4de   : > { %v9601_v58 = vpop.f32.mrf.mxu2  ;;  %v17980_v37 = vadd.f32 %v9976_v13, %v9624_v33  ;;  %v9432_v7 = vadd.f32 %v9408_v46, %v9184_v62  ;;  %v10650_v46 = vrot.slane %v10649_v28, 4 }
 0x4e0   : > { %v9413_v24 = vpop.f32.mrf.mxu1  ;;  %v9625_v25 = vadd.f32 %v9601_v58, %v9432_v7  ;;  %v10655_v33 = vsel %vm14142_vm4, %v10650_v46, %v10654_v56  ;;  %v10914_v58 = vsel %vm14151_vm5, %v10912_v14, %v10913_v43 }
 0x4e1   : > { %v10696_v38 = vunpack.c.l.b16 %v10655_v33  ;;  %v10946_v31 = vunpack.c.l.b16 %v10914_v58 }
 0x4e3   : > { %10800 = vmatmul.bf16.gmra.mxu2 %v10704_v4  ;;  %v9186_v20 = vpop.f32.mrf.mxu0 }
 0x4e4   : > { %v9187_v57 = vadd.f32 %v9186_v20, %v17741_v21  ;;  %v10953_v21 = vpack.c.b16 %v10944_v51, %v10943_v54 }
 0x4e5   : > { %v9978_v9 = vpop.f32.mrf.mxu3 }
 0x4e6   : > { %v9604_v29 = vpop.f32.mrf.mxu2  ;;  %v17988_v10 = vadd.f32 %v9978_v9, %v9625_v25  ;;  %v9433_v59 = vadd.f32 %v9411_v0, %v9187_v57  ;;  %10229 = vmatmul.bf16.gmra.mxu0 %v17827_v35  ;;  %v10697_v0 = vunpack.c.l.b16 %v10665_v17  ;;  %v13326_v35 = vrot.slane %v10834_v1, 9 }
 0x4e8   : > { %v9416_v40 = vpop.f32.mrf.mxu1  ;;  %v9626_v22 = vadd.f32 %v9604_v29, %v9433_v59  ;;  %v10705_v13 = vpack.c.b16 %v10697_v0, %v10696_v38  ;;  %v10911_v34 = vsel %vm14151_vm5, %v13326_v35, %v10910_v18  ;;  %v13375_v18 = vld [vmem:[%s14256_s9 + $0x80] sm:$0xff] }
 0x4e9   : > { %v10945_v30 = vunpack.c.l.b16 %v10911_v34 }
 0x4ea   : > { %11049 = vmatmul.bf16.gmra.mxu3 %v10953_v21 }
 0x4eb   : > { %10428 = vmatmul.bf16.gmra.mxu1 %v13772_v49  ;;  %v9188_v23 = vpop.f32.mrf.mxu0  ;;  %v10954_v8 = vpack.c.b16 %v10946_v31, %v10945_v30  ;;  %v18016_v49 = vld [vmem:[%s18119_s4] ss:$0 sm:$0xff]  ;;  %v13377_v31 = vld [vmem:[%s14256_s9 + $0x90] sm:$0xff] }
 0x4ec   : > { %v9189_v41 = vadd.f32 %v9188_v23, %v17761_v3 }
 0x4ed   : > { %v9981_v62 = vpop.f32.mrf.mxu3 }
 0x4ee   : > { %v9606_v56 = vpop.f32.mrf.mxu2  ;;  %v17997_v53 = vadd.f32 %v9981_v62, %v9626_v22  ;;  %v9434_v45 = vadd.f32 %v9413_v24, %v9189_v41  ;;  %v13376_v41 = vld [vmem:[%s14256_s9 + $0x88] sm:$0xff] }
 0x4f0   : > { %v9418_v42 = vpop.f32.mrf.mxu1  ;;  %v9627_v7 = vadd.f32 %v9606_v56, %v9434_v45 }
 0x4f3   : > { %10805 = vmatmul.bf16.gmra.mxu2 %v10705_v13  ;;  %v9191_v50 = vpop.f32.mrf.mxu0 }
 0x4f4   : > { %v9192_v3 = vadd.f32 %v9191_v50, %v17785_v12 }
 0x4f5   : > { %v9983_v11 = vpop.f32.mrf.mxu3 }
 0x4f6   : > { %v9609_v28 = vpop.f32.mrf.mxu2  ;;  %v18004_v5 = vadd.f32 %v9983_v11, %v9627_v7  ;;  %v9435_v24 = vadd.f32 %v9416_v40, %v9192_v3  ;;  %10234 = vmatmul.bf16.gmra.mxu0 %v17850_v2 }
 0x4f8   : > { %v10394_v25 = vpop.f32.mrf.mxu1  ;;  %v9628_v4 = vadd.f32 %v9609_v28, %v9435_v24 }
 0x4fa   : > { %11054 = vmatmul.bf16.gmra.mxu3 %v10954_v8 }
 0x4fb   : > { %v9193_v48 = vpop.f32.mrf.mxu0 }
 0x4fc   : > { %v9194_v63 = vadd.f32 %v9193_v48, %v17808_v55 }
 0x4fd   : > { %v9986_v19 = vpop.f32.mrf.mxu3 }
 0x4fe   : > { %v9611_v20 = vpop.f32.mrf.mxu2  ;;  %v18008_v15 = vadd.f32 %v9986_v19, %v9628_v4  ;;  %v9436_v46 = vadd.f32 %v9418_v42, %v9194_v63  ;;  %v13378_v63 = vld [vmem:[%s14256_s9 + $0x98] sm:$0xff] }
 0x500   : > { %v10396_v12 = vpop.f32.mrf.mxu1  ;;  %v9629_v32 = vadd.f32 %v9611_v20, %v9436_v46 }
 0x503   : > { %v10200_v39 = vpop.f32.mrf.mxu0 }
 0x504   : > { %v10240_v57 = vadd.f32 %v10200_v39, %v17839_v60 }
 0x505   : > { %v9988_v51 = vpop.f32.mrf.mxu3 }
 0x506   : > { %v10771_v2 = vpop.f32.mrf.mxu2  ;;  %v18011_v9 = vadd.f32 %v9988_v51, %v9629_v32  ;;  %v10434_v59 = vadd.f32 %v10394_v25, %v10240_v57 }
 0x508   : > { %v10399_v29 = vpop.f32.mrf.mxu1  ;;  %v10811_v54 = vadd.f32 %v10771_v2, %v10434_v59 }
 0x50b   : > { %v10202_v55 = vpop.f32.mrf.mxu0 }
 0x50c   : > { %v10241_v40 = vadd.f32 %v10202_v55, %v17856_v52 }
 0x50d   : > { %v11020_v33 = vpop.f32.mrf.mxu3 }
 0x50e   : > { %v10773_v17 = vpop.f32.mrf.mxu2  ;;  %v11060_v60 = vadd.f32 %v11020_v33, %v10811_v54  ;;  %v10435_v1 = vadd.f32 %v10396_v12, %v10241_v40 }
 0x510   : > { %v10401_v21 = vpop.f32.mrf.mxu1  ;;  %v11097_v22 = vadd.f32 %v18016_v49, %v11060_v60  ;;  %v10812_v0 = vadd.f32 %v10773_v17, %v10435_v1 }
 0x512   : > { %v11113_v38 = vadd.f32 %v13375_v18, %v11097_v22  ;;  %v13380_v22 = vld [vmem:[%s14256_s9 + $0xa8] sm:$0xff] }
 0x513   : > { %v10205_v23 = vpop.f32.mrf.mxu0 }
 0x514   : > { %13391 = vst [vmem:[%s17463_s12 + $0x80] sm:$0xff] %v11113_v38  ;;  %v10242_v35 = vadd.f32 %v10205_v23, %v17875_v47 }
 0x515   : > { %v11022_v14 = vpop.f32.mrf.mxu3 }
 0x516   : > { %v10776_v43 = vpop.f32.mrf.mxu2  ;;  %v11061_v52 = vadd.f32 %v11022_v14, %v10812_v0  ;;  %v10436_v45 = vadd.f32 %v10399_v29, %v10242_v35  ;;  %v13379_v29 = vld [vmem:[%s14256_s9 + $0xa0] sm:$0xff] }
 0x518   : > { %v10404_v62 = vpop.f32.mrf.mxu1  ;;  %v11098_v56 = vadd.f32 %v18016_v49, %v11061_v52  ;;  %v10813_v34 = vadd.f32 %v10776_v43, %v10436_v45 }
 0x51a   : > { %v11114_v13 = vadd.f32 %v13376_v41, %v11098_v56 }
 0x51b   : > { %v10207_v58 = vpop.f32.mrf.mxu0 }
 0x51c   : > { %13392 = vst [vmem:[%s17463_s12 + $0x88] sm:$0xff] %v11114_v13  ;;  %v10243_v42 = vadd.f32 %v10207_v58, %v17889_v27 }
 0x51d   : > { %v11025_v7 = vpop.f32.mrf.mxu3 }
 0x51e   : > { %v10778_v30 = vpop.f32.mrf.mxu2  ;;  %v11062_v47 = vadd.f32 %v11025_v7, %v10813_v34  ;;  %v10437_v11 = vadd.f32 %v10401_v21, %v10243_v42 }
 0x520   : > { %v10406_v50 = vpop.f32.mrf.mxu1  ;;  %v11099_v3 = vadd.f32 %v18016_v49, %v11062_v47  ;;  %v10814_v24 = vadd.f32 %v10778_v30, %v10437_v11 }
 0x522   : > { %v11115_v28 = vadd.f32 %v13377_v31, %v11099_v3  ;;  %v13382_v31 = vld [vmem:[%s14256_s9 + $0xb8] sm:$0xff] }
 0x523   : > { %v10210_v8 = vpop.f32.mrf.mxu0 }
 0x524   : > { %13393 = vst [vmem:[%s17463_s12 + $0x90] sm:$0xff] %v11115_v28  ;;  %v10244_v25 = vadd.f32 %v10210_v8, %v17906_v44 }
 0x525   : > { %v11027_v4 = vpop.f32.mrf.mxu3 }
 0x526   : > { %v10781_v48 = vpop.f32.mrf.mxu2  ;;  %v11063_v27 = vadd.f32 %v11027_v4, %v10814_v24  ;;  %v10438_v46 = vadd.f32 %v10404_v62, %v10244_v25  ;;  %v13381_v62 = vld [vmem:[%s14256_s9 + $0xb0] sm:$0xff] }
 0x528   : > { %v10409_v19 = vpop.f32.mrf.mxu1  ;;  %v11100_v20 = vadd.f32 %v18016_v49, %v11063_v27  ;;  %v10815_v32 = vadd.f32 %v10781_v48, %v10438_v46  ;;  %v13383_v27 = vld [vmem:[%s14256_s9 + $0xc0] sm:$0xff] }
 0x52a   : > { %v11116_v12 = vadd.f32 %v13378_v63, %v11100_v20 }
 0x52b   : > { %v10212_v39 = vpop.f32.mrf.mxu0 }
 0x52c   : > { %13394 = vst [vmem:[%s17463_s12 + $0x98] sm:$0xff] %v11116_v12  ;;  %v10245_v57 = vadd.f32 %v10212_v39, %v17920_v16 }
 0x52d   : > { %v11030_v51 = vpop.f32.mrf.mxu3 }
 0x52e   : > { %v10783_v2 = vpop.f32.mrf.mxu2  ;;  %v11064_v44 = vadd.f32 %v11030_v51, %v10815_v32  ;;  %v10439_v55 = vadd.f32 %v10406_v50, %v10245_v57 }
 0x530   : > { %v10411_v59 = vpop.f32.mrf.mxu1  ;;  %v11101_v54 = vadd.f32 %v18016_v49, %v11064_v44  ;;  %v10816_v33 = vadd.f32 %v10783_v2, %v10439_v55  ;;  %v13384_v2 = vld [vmem:[%s14256_s9 + $0xc8] sm:$0xff] }
 0x532   : > { %v11117_v40 = vadd.f32 %v13379_v29, %v11101_v54 }
 0x533   : > { %v10215_v17 = vpop.f32.mrf.mxu0 }
 0x534   : > { %13395 = vst [vmem:[%s17463_s12 + $0xa0] sm:$0xff] %v11117_v40  ;;  %v10246_v60 = vadd.f32 %v10215_v17, %v17935_v61 }
 0x535   : > { %v11032_v18 = vpop.f32.mrf.mxu3 }
 0x536   : > { %v10786_v21 = vpop.f32.mrf.mxu2  ;;  %v11065_v16 = vadd.f32 %v11032_v18, %v10816_v33  ;;  %v10440_v38 = vadd.f32 %v10409_v19, %v10246_v60  ;;  %v13385_v60 = vld [vmem:[%s14256_s9 + $0xd0] sm:$0xff] }
 0x538   : > { %v11102_v1 = vadd.f32 %v18016_v49, %v11065_v16  ;;  %v10414_v0 = vpop.f32.mrf.mxu1  ;;  %v10817_v35 = vadd.f32 %v10786_v21, %v10440_v38 }
 0x53a   : > { %v11118_v23 = vadd.f32 %v13380_v22, %v11102_v1 }
 0x53b   : > { %v10217_v14 = vpop.f32.mrf.mxu0 }
 0x53c   : > { %13396 = vst [vmem:[%s17463_s12 + $0xa8] sm:$0xff] %v11118_v23  ;;  %v10247_v43 = vadd.f32 %v10217_v14, %v17945_v26  ;;  %v13386_v14 = vld [vmem:[%s14256_s9 + $0xd8] sm:$0xff] }
 0x53d   : > { %v11035_v52 = vpop.f32.mrf.mxu3 }
 0x53e   : > { %v10788_v41 = vpop.f32.mrf.mxu2  ;;  %v11066_v61 = vadd.f32 %v11035_v52, %v10817_v35  ;;  %v10441_v45 = vadd.f32 %v10411_v59, %v10247_v43 }
 0x540   : > { %v11103_v56 = vadd.f32 %v18016_v49, %v11066_v61  ;;  %v10818_v34 = vadd.f32 %v10788_v41, %v10441_v45  ;;  %v10416_v58 = vpop.f32.mrf.mxu1 }
 0x542   : > { %v11119_v13 = vadd.f32 %v13381_v62, %v11103_v56 }
 0x543   : > { %v10220_v42 = vpop.f32.mrf.mxu0 }
 0x544   : > { %13397 = vst [vmem:[%s17463_s12 + $0xb0] sm:$0xff] %v11119_v13  ;;  %v10248_v7 = vadd.f32 %v10220_v42, %v17957_v36 }
 0x545   : > { %v11037_v30 = vpop.f32.mrf.mxu3 }
 0x546   : > { %v10791_v47 = vpop.f32.mrf.mxu2  ;;  %v11067_v26 = vadd.f32 %v11037_v30, %v10818_v34  ;;  %v10442_v3 = vadd.f32 %v10414_v0, %v10248_v7 }
 0x548   : > { %v11104_v50 = vadd.f32 %v18016_v49, %v11067_v26  ;;  %v10819_v28 = vadd.f32 %v10791_v47, %v10442_v3  ;;  %v10419_v25 = vpop.f32.mrf.mxu1 }
 0x54a   : > { %v11120_v11 = vadd.f32 %v13382_v31, %v11104_v50 }
 0x54b   : > { %v10222_v24 = vpop.f32.mrf.mxu0 }
 0x54c   : > { %13398 = vst [vmem:[%s17463_s12 + $0xb8] sm:$0xff] %v11120_v11  ;;  %v10249_v8 = vadd.f32 %v10222_v24, %v17967_v6 }
 0x54d   : > { %v11040_v4 = vpop.f32.mrf.mxu3 }
 0x54e   : > { %v10793_v48 = vpop.f32.mrf.mxu2  ;;  %v11068_v36 = vadd.f32 %v11040_v4, %v10819_v28  ;;  %v10443_v19 = vadd.f32 %v10416_v58, %v10249_v8  ;;  %v13387_v58 = vld [vmem:[%s14256_s9 + $0xe0] sm:$0xff]  ;;  %v13388_v28 = vld [vmem:[%s14256_s9 + $0xe8] sm:$0xff] }
 0x550   : > { %v11105_v63 = vadd.f32 %v18016_v49, %v11068_v36  ;;  %v10820_v46 = vadd.f32 %v10793_v48, %v10443_v19  ;;  %v10421_v51 = vpop.f32.mrf.mxu1 }
 0x552   : > { %v11121_v20 = vadd.f32 %v13383_v27, %v11105_v63  ;;  %v13389_v63 = vld [vmem:[%s14256_s9 + $0xf0] sm:$0xff] }
 0x553   : > { %v10225_v12 = vpop.f32.mrf.mxu0 }
 0x554   : > { %13399 = vst [vmem:[%s17463_s12 + $0xc0] sm:$0xff] %v11121_v20  ;;  %v10250_v32 = vadd.f32 %v10225_v12, %v17980_v37 }
 0x555   : > { %v11042_v39 = vpop.f32.mrf.mxu3 }
 0x556   : > { %v10796_v57 = vpop.f32.mrf.mxu2  ;;  %v11069_v6 = vadd.f32 %v11042_v39, %v10820_v46  ;;  %v10444_v29 = vadd.f32 %v10419_v25, %v10250_v32 }
 0x558   : > { %v11106_v44 = vadd.f32 %v18016_v49, %v11069_v6  ;;  %v10821_v54 = vadd.f32 %v10796_v57, %v10444_v29  ;;  %v10424_v16 = vpop.f32.mrf.mxu1  ;;  %v13390_v6 = vld [vmem:[%s14256_s9 + $0xf8] sm:$0xff] }
 0x55a   : > { %v11122_v59 = vadd.f32 %v13384_v2, %v11106_v44 }
 0x55b   : > { %v10227_v55 = vpop.f32.mrf.mxu0 }
 0x55c   : > { %13400 = vst [vmem:[%s17463_s12 + $0xc8] sm:$0xff] %v11122_v59  ;;  %v10251_v40 = vadd.f32 %v10227_v55, %v17988_v10 }
 0x55d   : > { %v11045_v33 = vpop.f32.mrf.mxu3 }
 0x55e   : > { %v10798_v17 = vpop.f32.mrf.mxu2  ;;  %v11070_v37 = vadd.f32 %v11045_v33, %v10821_v54  ;;  %v10445_v21 = vadd.f32 %v10421_v51, %v10251_v40 }
 0x560   : > { %v11107_v18 = vadd.f32 %v18016_v49, %v11070_v37  ;;  %v10822_v1 = vadd.f32 %v10798_v17, %v10445_v21  ;;  %v10426_v62 = vpop.f32.mrf.mxu1 }
 0x562   : > { %v11123_v22 = vadd.f32 %v13385_v60, %v11107_v18 }
 0x563   : > { %v10230_v38 = vpop.f32.mrf.mxu0 }
 0x564   : > { %13401 = vst [vmem:[%s17463_s12 + $0xd0] sm:$0xff] %v11123_v22  ;;  %v10252_v0 = vadd.f32 %v10230_v38, %v17997_v53 }
 0x565   : > { %v11047_v23 = vpop.f32.mrf.mxu3 }
 0x566   : > { %v10801_v35 = vpop.f32.mrf.mxu2  ;;  %v11071_v10 = vadd.f32 %v11047_v23, %v10822_v1  ;;  %v10446_v52 = vadd.f32 %v10424_v16, %v10252_v0 }
 0x568   : > { %v11108_v43 = vadd.f32 %v18016_v49, %v11071_v10  ;;  %v10823_v61 = vadd.f32 %v10801_v35, %v10446_v52  ;;  %v10429_v50 = vpop.f32.mrf.mxu1 }
 0x56a   : > { %v11124_v41 = vadd.f32 %v13386_v14, %v11108_v43 }
 0x56b   : > { %v10232_v56 = vpop.f32.mrf.mxu0 }
 0x56c   : > { %13402 = vst [vmem:[%s17463_s12 + $0xd8] sm:$0xff] %v11124_v41  ;;  %v10253_v45 = vadd.f32 %v10232_v56, %v18004_v5 }
 0x56d   : > { %v11050_v13 = vpop.f32.mrf.mxu3 }
 0x56e   : > { %v10803_v34 = vpop.f32.mrf.mxu2  ;;  %v11072_v53 = vadd.f32 %v11050_v13, %v10823_v61  ;;  %v10447_v7 = vadd.f32 %v10426_v62, %v10253_v45 }
 0x570   : > { %v11109_v42 = vadd.f32 %v18016_v49, %v11072_v53  ;;  %v10824_v47 = vadd.f32 %v10803_v34, %v10447_v7  ;;  %v10431_v19 = vpop.f32.mrf.mxu1 }
 0x572   : > { %v11125_v30 = vadd.f32 %v13387_v58, %v11109_v42 }
 0x573   : > { %v10235_v26 = vpop.f32.mrf.mxu0 }
 0x574   : > { %13403 = vst [vmem:[%s17463_s12 + $0xe0] sm:$0xff] %v11125_v30  ;;  %v10254_v31 = vadd.f32 %v10235_v26, %v18008_v15 }
 0x575   : > { %v11052_v3 = vpop.f32.mrf.mxu3 }
 0x576   : > { %v10806_v11 = vpop.f32.mrf.mxu2  ;;  %v11073_v5 = vadd.f32 %v11052_v3, %v10824_v47  ;;  %v10448_v8 = vadd.f32 %v10429_v50, %v10254_v31 }
 0x578   : > { %v11110_v24 = vadd.f32 %v18016_v49, %v11073_v5  ;;  %v10825_v4 = vadd.f32 %v10806_v11, %v10448_v8 }
 0x57a   : > { %v11126_v25 = vadd.f32 %v13388_v28, %v11110_v24 }
 0x57b   : > { %v10237_v48 = vpop.f32.mrf.mxu0 }
 0x57c   : > { %13404 = vst [vmem:[%s17463_s12 + $0xe8] sm:$0xff] %v11126_v25  ;;  %v10255_v36 = vadd.f32 %v10237_v48, %v18011_v9 }
 0x57d   : > { %v11055_v27 = vpop.f32.mrf.mxu3 }
 0x57e   : > { %v11074_v15 = vadd.f32 %v11055_v27, %v10825_v4  ;;  %v10808_v20 = vpop.f32.mrf.mxu2  ;;  %v10449_v12 = vadd.f32 %v10431_v19, %v10255_v36 }
 0x580   : > { %v11111_v46 = vadd.f32 %v18016_v49, %v11074_v15  ;;  %v10826_v39 = vadd.f32 %v10808_v20, %v10449_v12 }
 0x582   : > { %v11127_v32 = vadd.f32 %v13389_v63, %v11111_v46 }
 0x584   : > { %13405 = vst [vmem:[%s17463_s12 + $0xf0] sm:$0xff] %v11127_v32 }
 0x585   : > { %v11057_v9 = vpop.f32.mrf.mxu3 }
 0x586   : > { %v11075_v57 = vadd.f32 %v11057_v9, %v10826_v39 }
 0x588   : > { %v11112_v51 = vadd.f32 %v18016_v49, %v11075_v57 }
 0x58a   : > { %v11128_v2 = vadd.f32 %v13390_v6, %v11112_v51 }
 0x58c   : > { %13406 = vst [vmem:[%s17463_s12 + $0xf8] sm:$0xff] %v11128_v2 }
 0x58d   : > { %13926 = shalt.err (!%p13923_p3)
}
 0x58e   : > { %s13964_s17 = smov 128   ;;  %s13965_s12 = smov 8  }
 0x58f   : > { %13798 = dma.vmem_to_hbm [thread:$0]  (%p14034_p5), %s11160_s10, 4096, %s11162_s11, %s11147_s22, %s13964_s17, %s13964_s17, %s13965_s12  }
 0x590 PF: > { %p13804_p4 = scmp.ge.s32.totalorder %s13961_s21, 2  ;;  %s11176_s26 = sand.u32 1, %s13949_s18  }
 0x591   : > { %s11177_s30 = scalar_lea.sflag [#allocation5], %s11176_s26 }
 0x592   : > { %p13801_p7 = pnand %p13804_p4, %p14038_p6 }
 0x594   : > { %p13802_p8 = pneg %p13801_p7 }
 0x596   : > { %13944 = dma.done.wait (%p13802_p8), %s11177_s30, 4096  }
 0x597   : > { %13946 = vsyncadd (%p13802_p8), %s11177_s30, 4294963200  ;;  %p15_p9 = scmp.ge.s32.totalorder %s14021_s24, 4   ;;  %s18133_s18 = smov %s13953_s19 }
 0x598   : > { %s18134_s19 = smov %s13957_s20  ;;  %s18135_s20 = smov %s14032_s27 }
 0x599   : > { %s18136_s21 = smov %s14021_s24  ;;  %17 = sbr.rel (!%p15_p9) target bundleno = 3 (0x3), region = 103 }
 0x59e   :  { %11183 = vsyncpa [#allocation5], 1 }
 0x59f   :  { %11185 = vsyncpa [#allocation5 + $0x1], 1 }

</bundles_post_ra>
